<compile_context>
chip_gen: v7x
topology: tpu7x:2x2x1
jax: 0.10.0
libtpu: 0.0.40
codegen_flags: <defaults>
</compile_context>

<pallas_src>
import math

import jax
import jax.numpy as jnp
import numpy as np
from jax.experimental import pallas as pl
from jax.experimental.pallas import tpu as pltpu

# ---- module hyper-parameters (defaults of FeatureExtraction) -----------------
IN_CHANNELS = 3
CONV_CHANNELS = 24      # conv_channels
NUM_CONVS = 3           # num_convs
NUM_LAYERS = 3          # conv_num_layers  (=> exactly one "middle" layer)
LAYER_OUT = 12          # conv_layer_out_dim
KNN = 16                # conv_knn
EDGE_OUT = CONV_CHANNELS + NUM_LAYERS * LAYER_OUT   # 24 + 3*12 = 60


def _round_up(x, m):
    return ((x + m - 1) // m) * m


# ================== transform + neighbor-projection kernel ====================

def _make_transform_kernel(relu):
    def kernel(x_ref, wt_ref, bt_ref, wn_ref, xo_ref, nz_ref):
        h = jnp.dot(x_ref[...], wt_ref[...],
                    preferred_element_type=jnp.float32) + bt_ref[...]
        if relu:
            h = jnp.maximum(h, 0.0)
        xo_ref[...] = h.astype(xo_ref.dtype)
        # neighbor-side projection of the first EdgeConv layer (gather commutes
        # with this per-point linear map, so it can be applied before the gather).
        nz_ref[...] = jnp.dot(h, wn_ref[...],
                              preferred_element_type=jnp.float32).astype(nz_ref.dtype)
    return kernel


def transform_and_project(x, Wt, bt, Wn, relu, row_tile=512):
    """x: (B, N, Cin) -> (x_t: (B, N, Ct), nz: (B, N, L)) with nz = x_t @ Wn."""
    B, N, Cin = x.shape
    Ct = Wt.shape[1]
    L = Wn.shape[1]
    R = B * N
    rt = min(row_tile, _round_up(R, 8))
    Rp = _round_up(R, rt)
    x2 = x.reshape(R, Cin)
    if Rp != R:
        x2 = jnp.pad(x2, ((0, Rp - R), (0, 0)))

    x_t, nz = pl.pallas_call(
        _make_transform_kernel(relu),
        out_shape=(jax.ShapeDtypeStruct((Rp, Ct), x.dtype),
                   jax.ShapeDtypeStruct((Rp, L), x.dtype)),
        grid=(Rp // rt,),
        in_specs=[
            pl.BlockSpec((rt, Cin), lambda i: (i, 0)),
            pl.BlockSpec((Cin, Ct), lambda i: (0, 0)),
            pl.BlockSpec((1, Ct), lambda i: (0, 0)),
            pl.BlockSpec((Ct, L), lambda i: (0, 0)),
        ],
        out_specs=(pl.BlockSpec((rt, Ct), lambda i: (i, 0)),
                   pl.BlockSpec((rt, L), lambda i: (i, 0))),
        compiler_params=pltpu.CompilerParams(dimension_semantics=("parallel",)),
    )(x2, Wt, bt, Wn)

    x_t = x_t[:R].reshape(B, N, Ct)
    nz = nz[:R].reshape(B, N, L)
    return x_t, nz


# ============================ EdgeConv kernel ==================================

def _edgeconv_kernel(x_ref, nz_ref, w1x_ref, b1_ref, w2h_ref, w2x_ref, b2_ref,
                     w3h2_ref, w3h1_ref, w3x_ref, b3_ref, o_ref):
    # x_ref : (1, TN, d)       center features
    # nz_ref: (1, TN, K, L)    gathered neighbor features, pre-projected by W1n
    # o_ref : (1, TN, d + 3L)
    xc = x_ref[0]                                   # (TN, d)
    nz = nz_ref[0]                                  # (TN, K, L)
    TN, K, L = nz.shape

    # K-invariant center-point partials: computed once per point, not per edge.
    p1 = jnp.dot(xc, w1x_ref[...], preferred_element_type=jnp.float32) + b1_ref[...]
    p2 = jnp.dot(xc, w2x_ref[...], preferred_element_type=jnp.float32) + b2_ref[...]
    p3 = jnp.dot(xc, w3x_ref[...], preferred_element_type=jnp.float32) + b3_ref[...]

    # Per-edge dense-net with split weights: no lane-axis concats on edge data.
    h1 = jnp.maximum(nz + p1[:, None, :], 0.0)                       # (TN, K, L)
    h1f = h1.reshape(TN * K, L)
    a2 = jnp.dot(h1f, w2h_ref[...],
                 preferred_element_type=jnp.float32).reshape(TN, K, L)
    h2 = jnp.maximum(a2 + p2[:, None, :], 0.0)                       # (TN, K, L)
    h2f = h2.reshape(TN * K, L)
    a3 = (jnp.dot(h2f, w3h2_ref[...], preferred_element_type=jnp.float32) +
          jnp.dot(h1f, w3h1_ref[...], preferred_element_type=jnp.float32)
          ).reshape(TN, K, L)
    h3 = a3 + p3[:, None, :]                                         # (TN, K, L)

    # Segment-wise max over K; max over K of the broadcast center feature is xc.
    out = jnp.concatenate(
        [jnp.max(h3, axis=1), jnp.max(h2, axis=1), jnp.max(h1, axis=1), xc],
        axis=-1)
    o_ref[0] = out.astype(o_ref.dtype)


def edgeconv_pallas(x, knn_z, sp, n_tile=256):
    """x: (B,N,d); knn_z: (B,N,K,L) pre-projected neighbors; sp: split weights."""
    B, N, d = x.shape
    K, L = knn_z.shape[2], knn_z.shape[3]
    Cout = d + NUM_LAYERS * L
    tn = min(n_tile, _round_up(N, 8))
    Np = _round_up(N, tn)
    if Np != N:
        x = jnp.pad(x, ((0, 0), (0, Np - N), (0, 0)))
        knn_z = jnp.pad(knn_z, ((0, 0), (0, Np - N), (0, 0), (0, 0)))

    out = pl.pallas_call(
        _edgeconv_kernel,
        out_shape=jax.ShapeDtypeStruct((B, Np, Cout), x.dtype),
        grid=(B, Np // tn),
        in_specs=[
            pl.BlockSpec((1, tn, d), lambda b, n: (b, n, 0)),
            pl.BlockSpec((1, tn, K, L), lambda b, n: (b, n, 0, 0)),
            pl.BlockSpec((d, L), lambda b, n: (0, 0)),     # W1x = W1a - W1c
            pl.BlockSpec((1, L), lambda b, n: (0, 0)),     # b1
            pl.BlockSpec((L, L), lambda b, n: (0, 0)),     # W2h
            pl.BlockSpec((d, L), lambda b, n: (0, 0)),     # W2x
            pl.BlockSpec((1, L), lambda b, n: (0, 0)),     # b2
            pl.BlockSpec((L, L), lambda b, n: (0, 0)),     # W3h2
            pl.BlockSpec((L, L), lambda b, n: (0, 0)),     # W3h1
            pl.BlockSpec((d, L), lambda b, n: (0, 0)),     # W3x
            pl.BlockSpec((1, L), lambda b, n: (0, 0)),     # b3
        ],
        out_specs=pl.BlockSpec((1, tn, Cout), lambda b, n: (b, n, 0)),
        # Both grid axes are independent -> they can split across v7x's 2 TCs.
        compiler_params=pltpu.CompilerParams(
            dimension_semantics=("parallel", "parallel")),
    )(x, knn_z, sp["W1x"], sp["b1"], sp["W2h"], sp["W2x"], sp["b2"],
      sp["W3h2"], sp["W3h1"], sp["W3x"], sp["b3"])
    return out[:, :N]


def _split_conv_params(cp, d=CONV_CHANNELS, L=LAYER_OUT):
    """Split EdgeConv weights so the kernel never concatenates edge features:
       e @ W1 = x @ (W1a - W1c) + kn @ (W1b + W1c);  [h1,x] @ W2 = h1@W2h + x@W2x;
       [h2,h1,x] @ W3 = h2@W3h2 + h1@W3h1 + x@W3x."""
    W1, W2, W3 = cp["W1"], cp["W2"], cp["W3"]
    return {
        "W1x": W1[:d] - W1[2 * d:3 * d],
        "W1n": W1[d:2 * d] + W1[2 * d:3 * d],
        "b1": cp["b1"],
        "W2h": W2[:L], "W2x": W2[L:L + d], "b2": cp["b2"],
        "W3h2": W3[:L], "W3h1": W3[L:2 * L], "W3x": W3[2 * L:2 * L + d],
        "b3": cp["b3"],
    }


# ============================ JAX glue ========================================

def get_knn_idx(pos, k, offset=1):
    """pos: (B, N, D) -> (B, N, k) nearest-neighbor indices (excluding self)."""
    # TODO(synk): pytorch3d.ops.knn_points top-k sort has no clean Pallas
    # equivalent on TPU; done with lax.top_k in plain JAX.
    sq = jnp.sum(pos * pos, axis=-1)
    d2 = sq[:, :, None] - 2.0 * jnp.einsum("bnd,bmd->bnm", pos, pos) + sq[:, None, :]
    _, idx = jax.lax.top_k(-d2, k + offset)
    return idx[:, :, offset:]


def knn_group(x, idx):
    """x: (B, N, F), idx: (B, M, k) -> (B, M, k, F)."""
    # TODO(synk): gather still materializes (B,N,K,L) in HBM; an in-kernel DMA
    # gather via scalar-prefetched idx would remove this round trip entirely.
    return jax.vmap(lambda xb, ib: xb[ib])(x, idx)


# ============================ parameters ======================================

def _init_linear(key, fan_in, fan_out):
    k1, k2 = jax.random.split(key)
    bound = 1.0 / math.sqrt(fan_in)
    W = jax.random.uniform(k1, (fan_in, fan_out), jnp.float32, -bound, bound)
    b = jax.random.uniform(k2, (1, fan_out), jnp.float32, -bound, bound)
    return W, b


def init_feature_extraction(key):
    params = {"transforms": [], "convs": []}
    in_c = IN_CHANNELS
    for i in range(NUM_CONVS):
        key, kt, k1, k2, k3 = jax.random.split(key, 5)
        Wt, bt = _init_linear(kt, in_c, CONV_CHANNELS)
        params["transforms"].append({"W": Wt, "b": bt})
        d = CONV_CHANNELS
        W1, b1 = _init_linear(k1, 3 * d, LAYER_OUT)                 # layer_first
        W2, b2 = _init_linear(k2, d + 1 * LAYER_OUT, LAYER_OUT)     # middle layer
        W3, b3 = _init_linear(k3, d + 2 * LAYER_OUT, LAYER_OUT)     # layer_last
        params["convs"].append(
            {"W1": W1, "b1": b1, "W2": W2, "b2": b2, "W3": W3, "b3": b3})
        in_c = EDGE_OUT
    return params


# ============================ forward (Pallas) ================================

def feature_extraction_forward(params, x):
    """x: (B, N, 3) -> (B, N, 60); dynamic_graph=True semantics."""
    for i in range(NUM_CONVS):
        tp = params["transforms"][i]
        sp = _split_conv_params(params["convs"][i])
        # transform linear (+relu for i>0) fused with neighbor-side projection
        x, nz = transform_and_project(x, tp["W"], tp["b"], sp["W1n"],
                                      relu=(i != 0))            # (B,N,24), (B,N,12)
        idx = get_knn_idx(x, KNN, offset=1)                     # pos == x (dynamic)
        knn_z = knn_group(nz, idx)                              # (B, N, K, 12)
        x = edgeconv_pallas(x, knn_z, sp)                       # (B, N, 60)
    return x


# ============================ pure-JAX reference ==============================

def _edgeconv_ref(x, knn_feat, cp):
    x_t = jnp.broadcast_to(x[:, :, None, :], knn_feat.shape)
    e = jnp.concatenate([x_t, knn_feat, knn_feat - x_t], axis=-1)
    h1 = jnp.maximum(e @ cp["W1"] + cp["b1"], 0.0)
    y = jnp.concatenate([h1, x_t], axis=-1)
    h2 = jnp.maximum(y @ cp["W2"] + cp["b2"], 0.0)
    y = jnp.concatenate([h2, y], axis=-1)
    h3 = y @ cp["W3"] + cp["b3"]
    y = jnp.concatenate([h3, y], axis=-1)
    return jnp.max(y, axis=-2)


def feature_extraction_reference(params, x):
    for i in range(NUM_CONVS):
        tp = params["transforms"][i]
        x = x @ tp["W"] + tp["b"]
        if i != 0:
            x = jnp.maximum(x, 0.0)
        idx = get_knn_idx(x, KNN, offset=1)
        knn_feat = knn_group(x, idx)
        x = _edgeconv_ref(x, knn_feat, params["convs"][i])
    return x


# ============================ main ============================================

if __name__ == "__main__":
    key = jax.random.PRNGKey(0)
    kx, kp = jax.random.split(key)

    B, N = 2, 32                         # N must exceed KNN+1
    x = jax.random.normal(kx, (B, N, IN_CHANNELS), jnp.float32)
    params = init_feature_extraction(kp)

    fwd = jax.jit(feature_extraction_forward)
    out = jax.block_until_ready(fwd(params, x))
    assert out.shape == (B, N, EDGE_OUT)

    ref = jax.block_until_ready(feature_extraction_reference(params, x))
    np.testing.assert_allclose(np.asarray(out), np.asarray(ref),
                               rtol=1e-2, atol=1e-2)

    print("KERNEL_OK")
</pallas_src>

<mosaic_0001>
module attributes {stable_mosaic.version = 11 : i64} {
  func.func @kernel(%arg0: i32, %arg1: memref<64x3xf32, #tpu.memory_space<vmem>>, %arg2: memref<3x24xf32, #tpu.memory_space<vmem>>, %arg3: memref<1x24xf32, #tpu.memory_space<vmem>>, %arg4: memref<24x12xf32, #tpu.memory_space<vmem>>, %arg5: memref<64x24xf32, #tpu.memory_space<vmem>>, %arg6: memref<64x12xf32, #tpu.memory_space<vmem>>) attributes {dimension_semantics = [#tpu.dimension_semantics<parallel>], iteration_bounds = array<i64: 1>, scalar_prefetch = 0 : i64, scratch_operands = 0 : i64, tpu.core_type = #tpu.core_type<tc>, window_params = [{transform_indices = @transform_0, window_bounds = array<i64: 64, 3>}, {pipeline_mode = #tpu.pipeline_mode<synchronous>, transform_indices = @transform_1, window_bounds = array<i64: 3, 24>}, {pipeline_mode = #tpu.pipeline_mode<synchronous>, transform_indices = @transform_2, window_bounds = array<i64: 1, 24>}, {pipeline_mode = #tpu.pipeline_mode<synchronous>, transform_indices = @transform_3, window_bounds = array<i64: 24, 12>}, {transform_indices = @transform_4, window_bounds = array<i64: 64, 24>}, {transform_indices = @transform_5, window_bounds = array<i64: 64, 12>}]} {
    %c0 = arith.constant 0 : index
    %c0_0 = arith.constant 0 : index
    %0 = vector.load %arg1[%c0, %c0_0] : memref<64x3xf32, #tpu.memory_space<vmem>>, vector<64x3xf32>
    %c0_1 = arith.constant 0 : index
    %c0_2 = arith.constant 0 : index
    %1 = vector.load %arg2[%c0_1, %c0_2] : memref<3x24xf32, #tpu.memory_space<vmem>>, vector<3x24xf32>
    %cst = arith.constant dense<0.000000e+00> : vector<64x24xf32>
    %2 = tpu.matmul %0, %1, %cst {dimension_numbers = #tpu.dot_dimension_numbers<[1], [0], [0], [1], [0, 0, 1, 1], [], []>} : vector<64x3xf32>, vector<3x24xf32>, vector<64x24xf32> -> vector<64x24xf32>
    %c0_3 = arith.constant 0 : index
    %c0_4 = arith.constant 0 : index
    %3 = vector.load %arg3[%c0_3, %c0_4] : memref<1x24xf32, #tpu.memory_space<vmem>>, vector<1x24xf32>
    %4 = vector.broadcast %3 : vector<1x24xf32> to vector<64x24xf32>
    %5 = arith.addf %2, %4 : vector<64x24xf32>
    %c0_5 = arith.constant 0 : index
    %c0_6 = arith.constant 0 : index
    %6 = vector.load %arg5[%c0_5, %c0_6] : memref<64x24xf32, #tpu.memory_space<vmem>>, vector<64x24xf32>
    tpu.vector_store %arg5[%c0_5, %c0_6], %5 {strides = array<i32>} : memref<64x24xf32, #tpu.memory_space<vmem>>, vector<64x24xf32>,
    %c0_7 = arith.constant 0 : index
    %c0_8 = arith.constant 0 : index
    %7 = vector.load %arg4[%c0_7, %c0_8] : memref<24x12xf32, #tpu.memory_space<vmem>>, vector<24x12xf32>
    %cst_9 = arith.constant dense<0.000000e+00> : vector<64x12xf32>
    %8 = tpu.matmul %5, %7, %cst_9 {dimension_numbers = #tpu.dot_dimension_numbers<[1], [0], [0], [1], [0, 0, 1, 1], [], []>} : vector<64x24xf32>, vector<24x12xf32>, vector<64x12xf32> -> vector<64x12xf32>
    %c0_10 = arith.constant 0 : index
    %c0_11 = arith.constant 0 : index
    %9 = vector.load %arg6[%c0_10, %c0_11] : memref<64x12xf32, #tpu.memory_space<vmem>>, vector<64x12xf32>
    tpu.vector_store %arg6[%c0_10, %c0_11], %8 {strides = array<i32>} : memref<64x12xf32, #tpu.memory_space<vmem>>, vector<64x12xf32>,
    return
  }
  func.func @transform_0(%arg0: i32) -> (i32, i32) {
    %c0_i32 = arith.constant 0 : i32
    %c0_i32_0 = arith.constant 0 : i32
    return %arg0, %c0_i32 : i32, i32
  }
  func.func @transform_1(%arg0: i32) -> (i32, i32) {
    %c0_i32 = arith.constant 0 : i32
    %c0_i32_0 = arith.constant 0 : i32
    %c0_i32_1 = arith.constant 0 : i32
    return %c0_i32, %c0_i32_0 : i32, i32
  }
  func.func @transform_2(%arg0: i32) -> (i32, i32) {
    %c0_i32 = arith.constant 0 : i32
    %c0_i32_0 = arith.constant 0 : i32
    %c0_i32_1 = arith.constant 0 : i32
    return %c0_i32, %c0_i32_0 : i32, i32
  }
  func.func @transform_3(%arg0: i32) -> (i32, i32) {
    %c0_i32 = arith.constant 0 : i32
    %c0_i32_0 = arith.constant 0 : i32
    %c0_i32_1 = arith.constant 0 : i32
    return %c0_i32, %c0_i32_0 : i32, i32
  }
  func.func @transform_4(%arg0: i32) -> (i32, i32) {
    %c0_i32 = arith.constant 0 : i32
    %c0_i32_0 = arith.constant 0 : i32
    return %arg0, %c0_i32 : i32, i32
  }
  func.func @transform_5(%arg0: i32) -> (i32, i32) {
    %c0_i32 = arith.constant 0 : i32
    %c0_i32_0 = arith.constant 0 : i32
    return %arg0, %c0_i32 : i32, i32
  }
}

module attributes {stable_mosaic.version = 11 : i64} {
  func.func @_edgeconv_kernel(%arg0: i32, %arg1: i32, %arg2: memref<1x32x24xf32, #tpu.memory_space<vmem>>, %arg3: memref<1x32x16x12xf32, #tpu.memory_space<vmem>>, %arg4: memref<24x12xf32, #tpu.memory_space<vmem>>, %arg5: memref<1x12xf32, #tpu.memory_space<vmem>>, %arg6: memref<12x12xf32, #tpu.memory_space<vmem>>, %arg7: memref<24x12xf32, #tpu.memory_space<vmem>>, %arg8: memref<1x12xf32, #tpu.memory_space<vmem>>, %arg9: memref<12x12xf32, #tpu.memory_space<vmem>>, %arg10: memref<12x12xf32, #tpu.memory_space<vmem>>, %arg11: memref<24x12xf32, #tpu.memory_space<vmem>>, %arg12: memref<1x12xf32, #tpu.memory_space<vmem>>, %arg13: memref<1x32x60xf32, #tpu.memory_space<vmem>>) attributes {dimension_semantics = [#tpu.dimension_semantics<parallel>, #tpu.dimension_semantics<parallel>], iteration_bounds = array<i64: 2, 1>, scalar_prefetch = 0 : i64, scratch_operands = 0 : i64, tpu.core_type = #tpu.core_type<tc>, window_params = [{transform_indices = @transform_0, window_bounds = array<i64: 1, 32, 24>}, {transform_indices = @transform_1, window_bounds = array<i64: 1, 32, 16, 12>}, {pipeline_mode = #tpu.pipeline_mode<synchronous>, transform_indices = @transform_2, window_bounds = array<i64: 24, 12>}, {pipeline_mode = #tpu.pipeline_mode<synchronous>, transform_indices = @transform_3, window_bounds = array<i64: 1, 12>}, {pipeline_mode = #tpu.pipeline_mode<synchronous>, transform_indices = @transform_4, window_bounds = array<i64: 12, 12>}, {pipeline_mode = #tpu.pipeline_mode<synchronous>, transform_indices = @transform_5, window_bounds = array<i64: 24, 12>}, {pipeline_mode = #tpu.pipeline_mode<synchronous>, transform_indices = @transform_6, window_bounds = array<i64: 1, 12>}, {pipeline_mode = #tpu.pipeline_mode<synchronous>, transform_indices = @transform_7, window_bounds = array<i64: 12, 12>}, {pipeline_mode = #tpu.pipeline_mode<synchronous>, transform_indices = @transform_8, window_bounds = array<i64: 12, 12>}, {pipeline_mode = #tpu.pipeline_mode<synchronous>, transform_indices = @transform_9, window_bounds = array<i64: 24, 12>}, {pipeline_mode = #tpu.pipeline_mode<synchronous>, transform_indices = @transform_10, window_bounds = array<i64: 1, 12>}, {transform_indices = @transform_11, window_bounds = array<i64: 1, 32, 60>}]} {
    %c0 = arith.constant 0 : index
    %c0_0 = arith.constant 0 : index
    %c0_1 = arith.constant 0 : index
    %0 = vector.load %arg2[%c0, %c0_0, %c0_1] : memref<1x32x24xf32, #tpu.memory_space<vmem>>, vector<1x32x24xf32>
    %1 = vector.shape_cast %0 : vector<1x32x24xf32> to vector<32x24xf32>
    %c0_2 = arith.constant 0 : index
    %c0_3 = arith.constant 0 : index
    %c0_4 = arith.constant 0 : index
    %c0_5 = arith.constant 0 : index
    %2 = vector.load %arg3[%c0_2, %c0_3, %c0_4, %c0_5] : memref<1x32x16x12xf32, #tpu.memory_space<vmem>>, vector<1x32x16x12xf32>
    %3 = vector.shape_cast %2 : vector<1x32x16x12xf32> to vector<32x16x12xf32>
    %c0_6 = arith.constant 0 : index
    %c0_7 = arith.constant 0 : index
    %4 = vector.load %arg4[%c0_6, %c0_7] : memref<24x12xf32, #tpu.memory_space<vmem>>, vector<24x12xf32>
    %cst = arith.constant dense<0.000000e+00> : vector<32x12xf32>
    %5 = tpu.matmul %1, %4, %cst {dimension_numbers = #tpu.dot_dimension_numbers<[1], [0], [0], [1], [0, 0, 1, 1], [], []>} : vector<32x24xf32>, vector<24x12xf32>, vector<32x12xf32> -> vector<32x12xf32>
    %c0_8 = arith.constant 0 : index
    %c0_9 = arith.constant 0 : index
    %6 = vector.load %arg5[%c0_8, %c0_9] : memref<1x12xf32, #tpu.memory_space<vmem>>, vector<1x12xf32>
    %7 = vector.broadcast %6 : vector<1x12xf32> to vector<32x12xf32>
    %8 = arith.addf %5, %7 : vector<32x12xf32>
    %c0_10 = arith.constant 0 : index
    %c0_11 = arith.constant 0 : index
    %9 = vector.load %arg7[%c0_10, %c0_11] : memref<24x12xf32, #tpu.memory_space<vmem>>, vector<24x12xf32>
    %cst_12 = arith.constant dense<0.000000e+00> : vector<32x12xf32>
    %10 = tpu.matmul %1, %9, %cst_12 {dimension_numbers = #tpu.dot_dimension_numbers<[1], [0], [0], [1], [0, 0, 1, 1], [], []>} : vector<32x24xf32>, vector<24x12xf32>, vector<32x12xf32> -> vector<32x12xf32>
    %c0_13 = arith.constant 0 : index
    %c0_14 = arith.constant 0 : index
    %11 = vector.load %arg8[%c0_13, %c0_14] : memref<1x12xf32, #tpu.memory_space<vmem>>, vector<1x12xf32>
    %12 = vector.broadcast %11 : vector<1x12xf32> to vector<32x12xf32>
    %13 = arith.addf %10, %12 : vector<32x12xf32>
    %c0_15 = arith.constant 0 : index
    %c0_16 = arith.constant 0 : index
    %14 = vector.load %arg11[%c0_15, %c0_16] : memref<24x12xf32, #tpu.memory_space<vmem>>, vector<24x12xf32>
    %cst_17 = arith.constant dense<0.000000e+00> : vector<32x12xf32>
    %15 = tpu.matmul %1, %14, %cst_17 {dimension_numbers = #tpu.dot_dimension_numbers<[1], [0], [0], [1], [0, 0, 1, 1], [], []>} : vector<32x24xf32>, vector<24x12xf32>, vector<32x12xf32> -> vector<32x12xf32>
    %c0_18 = arith.constant 0 : index
    %c0_19 = arith.constant 0 : index
    %16 = vector.load %arg12[%c0_18, %c0_19] : memref<1x12xf32, #tpu.memory_space<vmem>>, vector<1x12xf32>
    %17 = vector.broadcast %16 : vector<1x12xf32> to vector<32x12xf32>
    %18 = arith.addf %15, %17 : vector<32x12xf32>
    %19 = vector.shape_cast %8 : vector<32x12xf32> to vector<32x1x12xf32>
    %20 = vector.broadcast %19 : vector<32x1x12xf32> to vector<32x16x12xf32>
    %21 = arith.addf %3, %20 : vector<32x16x12xf32>
    %cst_20 = arith.constant 0.000000e+00 : f32
    %22 = vector.broadcast %cst_20 : f32 to vector<32x16x12xf32>
    %23 = arith.maximumf %21, %22 : vector<32x16x12xf32>
    %24 = vector.shape_cast %23 : vector<32x16x12xf32> to vector<512x12xf32>
    %c0_21 = arith.constant 0 : index
    %c0_22 = arith.constant 0 : index
    %25 = vector.load %arg6[%c0_21, %c0_22] : memref<12x12xf32, #tpu.memory_space<vmem>>, vector<12x12xf32>
    %cst_23 = arith.constant dense<0.000000e+00> : vector<512x12xf32>
    %26 = tpu.matmul %24, %25, %cst_23 {dimension_numbers = #tpu.dot_dimension_numbers<[1], [0], [0], [1], [0, 0, 1, 1], [], []>} : vector<512x12xf32>, vector<12x12xf32>, vector<512x12xf32> -> vector<512x12xf32>
    %27 = vector.shape_cast %26 : vector<512x12xf32> to vector<32x16x12xf32>
    %28 = vector.shape_cast %13 : vector<32x12xf32> to vector<32x1x12xf32>
    %29 = vector.broadcast %28 : vector<32x1x12xf32> to vector<32x16x12xf32>
    %30 = arith.addf %27, %29 : vector<32x16x12xf32>
    %cst_24 = arith.constant 0.000000e+00 : f32
    %31 = vector.broadcast %cst_24 : f32 to vector<32x16x12xf32>
    %32 = arith.maximumf %30, %31 : vector<32x16x12xf32>
    %33 = vector.shape_cast %32 : vector<32x16x12xf32> to vector<512x12xf32>
    %c0_25 = arith.constant 0 : index
    %c0_26 = arith.constant 0 : index
    %34 = vector.load %arg9[%c0_25, %c0_26] : memref<12x12xf32, #tpu.memory_space<vmem>>, vector<12x12xf32>
    %cst_27 = arith.constant dense<0.000000e+00> : vector<512x12xf32>
    %35 = tpu.matmul %33, %34, %cst_27 {dimension_numbers = #tpu.dot_dimension_numbers<[1], [0], [0], [1], [0, 0, 1, 1], [], []>} : vector<512x12xf32>, vector<12x12xf32>, vector<512x12xf32> -> vector<512x12xf32>
    %c0_28 = arith.constant 0 : index
    %c0_29 = arith.constant 0 : index
    %36 = vector.load %arg10[%c0_28, %c0_29] : memref<12x12xf32, #tpu.memory_space<vmem>>, vector<12x12xf32>
    %cst_30 = arith.constant dense<0.000000e+00> : vector<512x12xf32>
    %37 = tpu.matmul %24, %36, %cst_30 {dimension_numbers = #tpu.dot_dimension_numbers<[1], [0], [0], [1], [0, 0, 1, 1], [], []>} : vector<512x12xf32>, vector<12x12xf32>, vector<512x12xf32> -> vector<512x12xf32>
    %38 = arith.addf %35, %37 : vector<512x12xf32>
    %39 = vector.shape_cast %38 : vector<512x12xf32> to vector<32x16x12xf32>
    %40 = vector.shape_cast %18 : vector<32x12xf32> to vector<32x1x12xf32>
    %41 = vector.broadcast %40 : vector<32x1x12xf32> to vector<32x16x12xf32>
    %42 = arith.addf %39, %41 : vector<32x16x12xf32>
    %cst_31 = arith.constant dense<0xFF800000> : vector<32x12xf32>
    %43 = vector.multi_reduction <maximumf>, %42, %cst_31 [1] : vector<32x16x12xf32> to vector<32x12xf32>
    %cst_32 = arith.constant dense<0xFF800000> : vector<32x12xf32>
    %44 = vector.multi_reduction <maximumf>, %32, %cst_32 [1] : vector<32x16x12xf32> to vector<32x12xf32>
    %cst_33 = arith.constant dense<0xFF800000> : vector<32x12xf32>
    %45 = vector.multi_reduction <maximumf>, %23, %cst_33 [1] : vector<32x16x12xf32> to vector<32x12xf32>
    %46 = tpu.concatenate %43, %44, %45, %1 in 1 : vector<32x12xf32>, vector<32x12xf32>, vector<32x12xf32>, vector<32x24xf32> -> vector<32x60xf32>
    %c0_34 = arith.constant 0 : index
    %c0_35 = arith.constant 0 : index
    %c0_36 = arith.constant 0 : index
    %47 = vector.load %arg13[%c0_34, %c0_35, %c0_36] : memref<1x32x60xf32, #tpu.memory_space<vmem>>, vector<1x32x60xf32>
    %48 = vector.shape_cast %47 : vector<1x32x60xf32> to vector<32x60xf32>
    %49 = vector.shape_cast %46 : vector<32x60xf32> to vector<1x32x60xf32>
    tpu.vector_store %arg13[%c0_34, %c0_35, %c0_36], %49 {strides = array<i32>} : memref<1x32x60xf32, #tpu.memory_space<vmem>>, vector<1x32x60xf32>,
    return
  }
  func.func @transform_0(%arg0: i32, %arg1: i32) -> (i32, i32, i32) {
    %c0_i32 = arith.constant 0 : i32
    %c0_i32_0 = arith.constant 0 : i32
    return %arg0, %arg1, %c0_i32 : i32, i32, i32
  }
  func.func @transform_1(%arg0: i32, %arg1: i32) -> (i32, i32, i32, i32) {
    %c0_i32 = arith.constant 0 : i32
    %c0_i32_0 = arith.constant 0 : i32
    %c0_i32_1 = arith.constant 0 : i32
    return %arg0, %arg1, %c0_i32, %c0_i32_0 : i32, i32, i32, i32
  }
  func.func @transform_2(%arg0: i32, %arg1: i32) -> (i32, i32) {
    %c0_i32 = arith.constant 0 : i32
    %c0_i32_0 = arith.constant 0 : i32
    %c0_i32_1 = arith.constant 0 : i32
    return %c0_i32, %c0_i32_0 : i32, i32
  }
  func.func @transform_3(%arg0: i32, %arg1: i32) -> (i32, i32) {
    %c0_i32 = arith.constant 0 : i32
    %c0_i32_0 = arith.constant 0 : i32
    %c0_i32_1 = arith.constant 0 : i32
    return %c0_i32, %c0_i32_0 : i32, i32
  }
  func.func @transform_4(%arg0: i32, %arg1: i32) -> (i32, i32) {
    %c0_i32 = arith.constant 0 : i32
    %c0_i32_0 = arith.constant 0 : i32
    %c0_i32_1 = arith.constant 0 : i32
    return %c0_i32, %c0_i32_0 : i32, i32
  }
  func.func @transform_5(%arg0: i32, %arg1: i32) -> (i32, i32) {
    %c0_i32 = arith.constant 0 : i32
    %c0_i32_0 = arith.constant 0 : i32
    %c0_i32_1 = arith.constant 0 : i32
    return %c0_i32, %c0_i32_0 : i32, i32
  }
  func.func @transform_6(%arg0: i32, %arg1: i32) -> (i32, i32) {
    %c0_i32 = arith.constant 0 : i32
    %c0_i32_0 = arith.constant 0 : i32
    %c0_i32_1 = arith.constant 0 : i32
    return %c0_i32, %c0_i32_0 : i32, i32
  }
  func.func @transform_7(%arg0: i32, %arg1: i32) -> (i32, i32) {
    %c0_i32 = arith.constant 0 : i32
    %c0_i32_0 = arith.constant 0 : i32
    %c0_i32_1 = arith.constant 0 : i32
    return %c0_i32, %c0_i32_0 : i32, i32
  }
  func.func @transform_8(%arg0: i32, %arg1: i32) -> (i32, i32) {
    %c0_i32 = arith.constant 0 : i32
    %c0_i32_0 = arith.constant 0 : i32
    %c0_i32_1 = arith.constant 0 : i32
    return %c0_i32, %c0_i32_0 : i32, i32
  }
  func.func @transform_9(%arg0: i32, %arg1: i32) -> (i32, i32) {
    %c0_i32 = arith.constant 0 : i32
    %c0_i32_0 = arith.constant 0 : i32
    %c0_i32_1 = arith.constant 0 : i32
    return %c0_i32, %c0_i32_0 : i32, i32
  }
  func.func @transform_10(%arg0: i32, %arg1: i32) -> (i32, i32) {
    %c0_i32 = arith.constant 0 : i32
    %c0_i32_0 = arith.constant 0 : i32
    %c0_i32_1 = arith.constant 0 : i32
    return %c0_i32, %c0_i32_0 : i32, i32
  }
  func.func @transform_11(%arg0: i32, %arg1: i32) -> (i32, i32, i32) {
    %c0_i32 = arith.constant 0 : i32
    %c0_i32_0 = arith.constant 0 : i32
    return %arg0, %arg1, %c0_i32 : i32, i32, i32
  }
}

module attributes {stable_mosaic.version = 11 : i64} {
  func.func @kernel(%arg0: i32, %arg1: memref<64x60xf32, #tpu.memory_space<vmem>>, %arg2: memref<60x24xf32, #tpu.memory_space<vmem>>, %arg3: memref<1x24xf32, #tpu.memory_space<vmem>>, %arg4: memref<24x12xf32, #tpu.memory_space<vmem>>, %arg5: memref<64x24xf32, #tpu.memory_space<vmem>>, %arg6: memref<64x12xf32, #tpu.memory_space<vmem>>) attributes {dimension_semantics = [#tpu.dimension_semantics<parallel>], iteration_bounds = array<i64: 1>, scalar_prefetch = 0 : i64, scratch_operands = 0 : i64, tpu.core_type = #tpu.core_type<tc>, window_params = [{transform_indices = @transform_0, window_bounds = array<i64: 64, 60>}, {pipeline_mode = #tpu.pipeline_mode<synchronous>, transform_indices = @transform_1, window_bounds = array<i64: 60, 24>}, {pipeline_mode = #tpu.pipeline_mode<synchronous>, transform_indices = @transform_2, window_bounds = array<i64: 1, 24>}, {pipeline_mode = #tpu.pipeline_mode<synchronous>, transform_indices = @transform_3, window_bounds = array<i64: 24, 12>}, {transform_indices = @transform_4, window_bounds = array<i64: 64, 24>}, {transform_indices = @transform_5, window_bounds = array<i64: 64, 12>}]} {
    %c0 = arith.constant 0 : index
    %c0_0 = arith.constant 0 : index
    %0 = vector.load %arg1[%c0, %c0_0] : memref<64x60xf32, #tpu.memory_space<vmem>>, vector<64x60xf32>
    %c0_1 = arith.constant 0 : index
    %c0_2 = arith.constant 0 : index
    %1 = vector.load %arg2[%c0_1, %c0_2] : memref<60x24xf32, #tpu.memory_space<vmem>>, vector<60x24xf32>
    %cst = arith.constant dense<0.000000e+00> : vector<64x24xf32>
    %2 = tpu.matmul %0, %1, %cst {dimension_numbers = #tpu.dot_dimension_numbers<[1], [0], [0], [1], [0, 0, 1, 1], [], []>} : vector<64x60xf32>, vector<60x24xf32>, vector<64x24xf32> -> vector<64x24xf32>
    %c0_3 = arith.constant 0 : index
    %c0_4 = arith.constant 0 : index
    %3 = vector.load %arg3[%c0_3, %c0_4] : memref<1x24xf32, #tpu.memory_space<vmem>>, vector<1x24xf32>
    %4 = vector.broadcast %3 : vector<1x24xf32> to vector<64x24xf32>
    %5 = arith.addf %2, %4 : vector<64x24xf32>
    %cst_5 = arith.constant 0.000000e+00 : f32
    %6 = vector.broadcast %cst_5 : f32 to vector<64x24xf32>
    %7 = arith.maximumf %5, %6 : vector<64x24xf32>
    %c0_6 = arith.constant 0 : index
    %c0_7 = arith.constant 0 : index
    %8 = vector.load %arg5[%c0_6, %c0_7] : memref<64x24xf32, #tpu.memory_space<vmem>>, vector<64x24xf32>
    tpu.vector_store %arg5[%c0_6, %c0_7], %7 {strides = array<i32>} : memref<64x24xf32, #tpu.memory_space<vmem>>, vector<64x24xf32>,
    %c0_8 = arith.constant 0 : index
    %c0_9 = arith.constant 0 : index
    %9 = vector.load %arg4[%c0_8, %c0_9] : memref<24x12xf32, #tpu.memory_space<vmem>>, vector<24x12xf32>
    %cst_10 = arith.constant dense<0.000000e+00> : vector<64x12xf32>
    %10 = tpu.matmul %7, %9, %cst_10 {dimension_numbers = #tpu.dot_dimension_numbers<[1], [0], [0], [1], [0, 0, 1, 1], [], []>} : vector<64x24xf32>, vector<24x12xf32>, vector<64x12xf32> -> vector<64x12xf32>
    %c0_11 = arith.constant 0 : index
    %c0_12 = arith.constant 0 : index
    %11 = vector.load %arg6[%c0_11, %c0_12] : memref<64x12xf32, #tpu.memory_space<vmem>>, vector<64x12xf32>
    tpu.vector_store %arg6[%c0_11, %c0_12], %10 {strides = array<i32>} : memref<64x12xf32, #tpu.memory_space<vmem>>, vector<64x12xf32>,
    return
  }
  func.func @transform_0(%arg0: i32) -> (i32, i32) {
    %c0_i32 = arith.constant 0 : i32
    %c0_i32_0 = arith.constant 0 : i32
    return %arg0, %c0_i32 : i32, i32
  }
  func.func @transform_1(%arg0: i32) -> (i32, i32) {
    %c0_i32 = arith.constant 0 : i32
    %c0_i32_0 = arith.constant 0 : i32
    %c0_i32_1 = arith.constant 0 : i32
    return %c0_i32, %c0_i32_0 : i32, i32
  }
  func.func @transform_2(%arg0: i32) -> (i32, i32) {
    %c0_i32 = arith.constant 0 : i32
    %c0_i32_0 = arith.constant 0 : i32
    %c0_i32_1 = arith.constant 0 : i32
    return %c0_i32, %c0_i32_0 : i32, i32
  }
  func.func @transform_3(%arg0: i32) -> (i32, i32) {
    %c0_i32 = arith.constant 0 : i32
    %c0_i32_0 = arith.constant 0 : i32
    %c0_i32_1 = arith.constant 0 : i32
    return %c0_i32, %c0_i32_0 : i32, i32
  }
  func.func @transform_4(%arg0: i32) -> (i32, i32) {
    %c0_i32 = arith.constant 0 : i32
    %c0_i32_0 = arith.constant 0 : i32
    return %arg0, %c0_i32 : i32, i32
  }
  func.func @transform_5(%arg0: i32) -> (i32, i32) {
    %c0_i32 = arith.constant 0 : i32
    %c0_i32_0 = arith.constant 0 : i32
    return %arg0, %c0_i32 : i32, i32
  }
}

module attributes {stable_mosaic.version = 11 : i64} {
  func.func @_edgeconv_kernel(%arg0: i32, %arg1: i32, %arg2: memref<1x32x24xf32, #tpu.memory_space<vmem>>, %arg3: memref<1x32x16x12xf32, #tpu.memory_space<vmem>>, %arg4: memref<24x12xf32, #tpu.memory_space<vmem>>, %arg5: memref<1x12xf32, #tpu.memory_space<vmem>>, %arg6: memref<12x12xf32, #tpu.memory_space<vmem>>, %arg7: memref<24x12xf32, #tpu.memory_space<vmem>>, %arg8: memref<1x12xf32, #tpu.memory_space<vmem>>, %arg9: memref<12x12xf32, #tpu.memory_space<vmem>>, %arg10: memref<12x12xf32, #tpu.memory_space<vmem>>, %arg11: memref<24x12xf32, #tpu.memory_space<vmem>>, %arg12: memref<1x12xf32, #tpu.memory_space<vmem>>, %arg13: memref<1x32x60xf32, #tpu.memory_space<vmem>>) attributes {dimension_semantics = [#tpu.dimension_semantics<parallel>, #tpu.dimension_semantics<parallel>], iteration_bounds = array<i64: 2, 1>, scalar_prefetch = 0 : i64, scratch_operands = 0 : i64, tpu.core_type = #tpu.core_type<tc>, window_params = [{transform_indices = @transform_0, window_bounds = array<i64: 1, 32, 24>}, {transform_indices = @transform_1, window_bounds = array<i64: 1, 32, 16, 12>}, {pipeline_mode = #tpu.pipeline_mode<synchronous>, transform_indices = @transform_2, window_bounds = array<i64: 24, 12>}, {pipeline_mode = #tpu.pipeline_mode<synchronous>, transform_indices = @transform_3, window_bounds = array<i64: 1, 12>}, {pipeline_mode = #tpu.pipeline_mode<synchronous>, transform_indices = @transform_4, window_bounds = array<i64: 12, 12>}, {pipeline_mode = #tpu.pipeline_mode<synchronous>, transform_indices = @transform_5, window_bounds = array<i64: 24, 12>}, {pipeline_mode = #tpu.pipeline_mode<synchronous>, transform_indices = @transform_6, window_bounds = array<i64: 1, 12>}, {pipeline_mode = #tpu.pipeline_mode<synchronous>, transform_indices = @transform_7, window_bounds = array<i64: 12, 12>}, {pipeline_mode = #tpu.pipeline_mode<synchronous>, transform_indices = @transform_8, window_bounds = array<i64: 12, 12>}, {pipeline_mode = #tpu.pipeline_mode<synchronous>, transform_indices = @transform_9, window_bounds = array<i64: 24, 12>}, {pipeline_mode = #tpu.pipeline_mode<synchronous>, transform_indices = @transform_10, window_bounds = array<i64: 1, 12>}, {transform_indices = @transform_11, window_bounds = array<i64: 1, 32, 60>}]} {
    %c0 = arith.constant 0 : index
    %c0_0 = arith.constant 0 : index
    %c0_1 = arith.constant 0 : index
    %0 = vector.load %arg2[%c0, %c0_0, %c0_1] : memref<1x32x24xf32, #tpu.memory_space<vmem>>, vector<1x32x24xf32>
    %1 = vector.shape_cast %0 : vector<1x32x24xf32> to vector<32x24xf32>
    %c0_2 = arith.constant 0 : index
    %c0_3 = arith.constant 0 : index
    %c0_4 = arith.constant 0 : index
    %c0_5 = arith.constant 0 : index
    %2 = vector.load %arg3[%c0_2, %c0_3, %c0_4, %c0_5] : memref<1x32x16x12xf32, #tpu.memory_space<vmem>>, vector<1x32x16x12xf32>
    %3 = vector.shape_cast %2 : vector<1x32x16x12xf32> to vector<32x16x12xf32>
    %c0_6 = arith.constant 0 : index
    %c0_7 = arith.constant 0 : index
    %4 = vector.load %arg4[%c0_6, %c0_7] : memref<24x12xf32, #tpu.memory_space<vmem>>, vector<24x12xf32>
    %cst = arith.constant dense<0.000000e+00> : vector<32x12xf32>
    %5 = tpu.matmul %1, %4, %cst {dimension_numbers = #tpu.dot_dimension_numbers<[1], [0], [0], [1], [0, 0, 1, 1], [], []>} : vector<32x24xf32>, vector<24x12xf32>, vector<32x12xf32> -> vector<32x12xf32>
    %c0_8 = arith.constant 0 : index
    %c0_9 = arith.constant 0 : index
    %6 = vector.load %arg5[%c0_8, %c0_9] : memref<1x12xf32, #tpu.memory_space<vmem>>, vector<1x12xf32>
    %7 = vector.broadcast %6 : vector<1x12xf32> to vector<32x12xf32>
    %8 = arith.addf %5, %7 : vector<32x12xf32>
    %c0_10 = arith.constant 0 : index
    %c0_11 = arith.constant 0 : index
    %9 = vector.load %arg7[%c0_10, %c0_11] : memref<24x12xf32, #tpu.memory_space<vmem>>, vector<24x12xf32>
    %cst_12 = arith.constant dense<0.000000e+00> : vector<32x12xf32>
    %10 = tpu.matmul %1, %9, %cst_12 {dimension_numbers = #tpu.dot_dimension_numbers<[1], [0], [0], [1], [0, 0, 1, 1], [], []>} : vector<32x24xf32>, vector<24x12xf32>, vector<32x12xf32> -> vector<32x12xf32>
    %c0_13 = arith.constant 0 : index
    %c0_14 = arith.constant 0 : index
    %11 = vector.load %arg8[%c0_13, %c0_14] : memref<1x12xf32, #tpu.memory_space<vmem>>, vector<1x12xf32>
    %12 = vector.broadcast %11 : vector<1x12xf32> to vector<32x12xf32>
    %13 = arith.addf %10, %12 : vector<32x12xf32>
    %c0_15 = arith.constant 0 : index
    %c0_16 = arith.constant 0 : index
    %14 = vector.load %arg11[%c0_15, %c0_16] : memref<24x12xf32, #tpu.memory_space<vmem>>, vector<24x12xf32>
    %cst_17 = arith.constant dense<0.000000e+00> : vector<32x12xf32>
    %15 = tpu.matmul %1, %14, %cst_17 {dimension_numbers = #tpu.dot_dimension_numbers<[1], [0], [0], [1], [0, 0, 1, 1], [], []>} : vector<32x24xf32>, vector<24x12xf32>, vector<32x12xf32> -> vector<32x12xf32>
    %c0_18 = arith.constant 0 : index
    %c0_19 = arith.constant 0 : index
    %16 = vector.load %arg12[%c0_18, %c0_19] : memref<1x12xf32, #tpu.memory_space<vmem>>, vector<1x12xf32>
    %17 = vector.broadcast %16 : vector<1x12xf32> to vector<32x12xf32>
    %18 = arith.addf %15, %17 : vector<32x12xf32>
    %19 = vector.shape_cast %8 : vector<32x12xf32> to vector<32x1x12xf32>
    %20 = vector.broadcast %19 : vector<32x1x12xf32> to vector<32x16x12xf32>
    %21 = arith.addf %3, %20 : vector<32x16x12xf32>
    %cst_20 = arith.constant 0.000000e+00 : f32
    %22 = vector.broadcast %cst_20 : f32 to vector<32x16x12xf32>
    %23 = arith.maximumf %21, %22 : vector<32x16x12xf32>
    %24 = vector.shape_cast %23 : vector<32x16x12xf32> to vector<512x12xf32>
    %c0_21 = arith.constant 0 : index
    %c0_22 = arith.constant 0 : index
    %25 = vector.load %arg6[%c0_21, %c0_22] : memref<12x12xf32, #tpu.memory_space<vmem>>, vector<12x12xf32>
    %cst_23 = arith.constant dense<0.000000e+00> : vector<512x12xf32>
    %26 = tpu.matmul %24, %25, %cst_23 {dimension_numbers = #tpu.dot_dimension_numbers<[1], [0], [0], [1], [0, 0, 1, 1], [], []>} : vector<512x12xf32>, vector<12x12xf32>, vector<512x12xf32> -> vector<512x12xf32>
    %27 = vector.shape_cast %26 : vector<512x12xf32> to vector<32x16x12xf32>
    %28 = vector.shape_cast %13 : vector<32x12xf32> to vector<32x1x12xf32>
    %29 = vector.broadcast %28 : vector<32x1x12xf32> to vector<32x16x12xf32>
    %30 = arith.addf %27, %29 : vector<32x16x12xf32>
    %cst_24 = arith.constant 0.000000e+00 : f32
    %31 = vector.broadcast %cst_24 : f32 to vector<32x16x12xf32>
    %32 = arith.maximumf %30, %31 : vector<32x16x12xf32>
    %33 = vector.shape_cast %32 : vector<32x16x12xf32> to vector<512x12xf32>
    %c0_25 = arith.constant 0 : index
    %c0_26 = arith.constant 0 : index
    %34 = vector.load %arg9[%c0_25, %c0_26] : memref<12x12xf32, #tpu.memory_space<vmem>>, vector<12x12xf32>
    %cst_27 = arith.constant dense<0.000000e+00> : vector<512x12xf32>
    %35 = tpu.matmul %33, %34, %cst_27 {dimension_numbers = #tpu.dot_dimension_numbers<[1], [0], [0], [1], [0, 0, 1, 1], [], []>} : vector<512x12xf32>, vector<12x12xf32>, vector<512x12xf32> -> vector<512x12xf32>
    %c0_28 = arith.constant 0 : index
    %c0_29 = arith.constant 0 : index
    %36 = vector.load %arg10[%c0_28, %c0_29] : memref<12x12xf32, #tpu.memory_space<vmem>>, vector<12x12xf32>
    %cst_30 = arith.constant dense<0.000000e+00> : vector<512x12xf32>
    %37 = tpu.matmul %24, %36, %cst_30 {dimension_numbers = #tpu.dot_dimension_numbers<[1], [0], [0], [1], [0, 0, 1, 1], [], []>} : vector<512x12xf32>, vector<12x12xf32>, vector<512x12xf32> -> vector<512x12xf32>
    %38 = arith.addf %35, %37 : vector<512x12xf32>
    %39 = vector.shape_cast %38 : vector<512x12xf32> to vector<32x16x12xf32>
    %40 = vector.shape_cast %18 : vector<32x12xf32> to vector<32x1x12xf32>
    %41 = vector.broadcast %40 : vector<32x1x12xf32> to vector<32x16x12xf32>
    %42 = arith.addf %39, %41 : vector<32x16x12xf32>
    %cst_31 = arith.constant dense<0xFF800000> : vector<32x12xf32>
    %43 = vector.multi_reduction <maximumf>, %42, %cst_31 [1] : vector<32x16x12xf32> to vector<32x12xf32>
    %cst_32 = arith.constant dense<0xFF800000> : vector<32x12xf32>
    %44 = vector.multi_reduction <maximumf>, %32, %cst_32 [1] : vector<32x16x12xf32> to vector<32x12xf32>
    %cst_33 = arith.constant dense<0xFF800000> : vector<32x12xf32>
    %45 = vector.multi_reduction <maximumf>, %23, %cst_33 [1] : vector<32x16x12xf32> to vector<32x12xf32>
    %46 = tpu.concatenate %43, %44, %45, %1 in 1 : vector<32x12xf32>, vector<32x12xf32>, vector<32x12xf32>, vector<32x24xf32> -> vector<32x60xf32>
    %c0_34 = arith.constant 0 : index
    %c0_35 = arith.constant 0 : index
    %c0_36 = arith.constant 0 : index
    %47 = vector.load %arg13[%c0_34, %c0_35, %c0_36] : memref<1x32x60xf32, #tpu.memory_space<vmem>>, vector<1x32x60xf32>
    %48 = vector.shape_cast %47 : vector<1x32x60xf32> to vector<32x60xf32>
    %49 = vector.shape_cast %46 : vector<32x60xf32> to vector<1x32x60xf32>
    tpu.vector_store %arg13[%c0_34, %c0_35, %c0_36], %49 {strides = array<i32>} : memref<1x32x60xf32, #tpu.memory_space<vmem>>, vector<1x32x60xf32>,
    return
  }
  func.func @transform_0(%arg0: i32, %arg1: i32) -> (i32, i32, i32) {
    %c0_i32 = arith.constant 0 : i32
    %c0_i32_0 = arith.constant 0 : i32
    return %arg0, %arg1, %c0_i32 : i32, i32, i32
  }
  func.func @transform_1(%arg0: i32, %arg1: i32) -> (i32, i32, i32, i32) {
    %c0_i32 = arith.constant 0 : i32
    %c0_i32_0 = arith.constant 0 : i32
    %c0_i32_1 = arith.constant 0 : i32
    return %arg0, %arg1, %c0_i32, %c0_i32_0 : i32, i32, i32, i32
  }
  func.func @transform_2(%arg0: i32, %arg1: i32) -> (i32, i32) {
    %c0_i32 = arith.constant 0 : i32
    %c0_i32_0 = arith.constant 0 : i32
    %c0_i32_1 = arith.constant 0 : i32
    return %c0_i32, %c0_i32_0 : i32, i32
  }
  func.func @transform_3(%arg0: i32, %arg1: i32) -> (i32, i32) {
    %c0_i32 = arith.constant 0 : i32
    %c0_i32_0 = arith.constant 0 : i32
    %c0_i32_1 = arith.constant 0 : i32
    return %c0_i32, %c0_i32_0 : i32, i32
  }
  func.func @transform_4(%arg0: i32, %arg1: i32) -> (i32, i32) {
    %c0_i32 = arith.constant 0 : i32
    %c0_i32_0 = arith.constant 0 : i32
    %c0_i32_1 = arith.constant 0 : i32
    return %c0_i32, %c0_i32_0 : i32, i32
  }
  func.func @transform_5(%arg0: i32, %arg1: i32) -> (i32, i32) {
    %c0_i32 = arith.constant 0 : i32
    %c0_i32_0 = arith.constant 0 : i32
    %c0_i32_1 = arith.constant 0 : i32
    return %c0_i32, %c0_i32_0 : i32, i32
  }
  func.func @transform_6(%arg0: i32, %arg1: i32) -> (i32, i32) {
    %c0_i32 = arith.constant 0 : i32
    %c0_i32_0 = arith.constant 0 : i32
    %c0_i32_1 = arith.constant 0 : i32
    return %c0_i32, %c0_i32_0 : i32, i32
  }
  func.func @transform_7(%arg0: i32, %arg1: i32) -> (i32, i32) {
    %c0_i32 = arith.constant 0 : i32
    %c0_i32_0 = arith.constant 0 : i32
    %c0_i32_1 = arith.constant 0 : i32
    return %c0_i32, %c0_i32_0 : i32, i32
  }
  func.func @transform_8(%arg0: i32, %arg1: i32) -> (i32, i32) {
    %c0_i32 = arith.constant 0 : i32
    %c0_i32_0 = arith.constant 0 : i32
    %c0_i32_1 = arith.constant 0 : i32
    return %c0_i32, %c0_i32_0 : i32, i32
  }
  func.func @transform_9(%arg0: i32, %arg1: i32) -> (i32, i32) {
    %c0_i32 = arith.constant 0 : i32
    %c0_i32_0 = arith.constant 0 : i32
    %c0_i32_1 = arith.constant 0 : i32
    return %c0_i32, %c0_i32_0 : i32, i32
  }
  func.func @transform_10(%arg0: i32, %arg1: i32) -> (i32, i32) {
    %c0_i32 = arith.constant 0 : i32
    %c0_i32_0 = arith.constant 0 : i32
    %c0_i32_1 = arith.constant 0 : i32
    return %c0_i32, %c0_i32_0 : i32, i32
  }
  func.func @transform_11(%arg0: i32, %arg1: i32) -> (i32, i32, i32) {
    %c0_i32 = arith.constant 0 : i32
    %c0_i32_0 = arith.constant 0 : i32
    return %arg0, %arg1, %c0_i32 : i32, i32, i32
  }
}

</mosaic_0001>

<bundles_post_ra>
// kernel: sub.17
= control target key start
LH: loop header
LB: loop body
LE: loop exit
PB: predicated region body
PF: predicated region fallthrough
CT: control target
= control target key end

     0   :  { %vm7_vm0 = vcmask 261120   ;;  %s39_s0 = inlined_call_operand.vmem [shape: f32[64], index: 0, kind: input, shape index: {}]   ;;  %s40_s1 = inlined_call_operand.vmem [shape: f32[2,32], index: 1, kind: output, shape index: {}]  }
   0x1   :  { %v4_v0 = vld [vmem:[%s39_s0] sm:$0x1]  ;;  %s22_s0 = smov 96  }
   0x2   :  { %5 = vst [vmem:[#allocation1] sm:$0x1] %v4_v0 }
   0x9   :  { %v9_v1 = vld [vmem:[#allocation1] sm:$0x1]  }
   0xa   :  { %v6_v2 = vld [vmem:[#allocation1] sm:$0x1]   ;;  %10 = vrot.lane.b32.xlu0 %v9_v1, %s22_s0 }
   0xb   :  { %8 = vst.msk [vmem:[#allocation0] sm:$0x1] %vm7_vm0, %v6_v2  }
  0x7c   :  { %v11_v3 = vpop.permute.xlu0 %10  }
  0x7d   :  { %14 = vst.msk [vmem:[#allocation0 + $0x1] sm:$0x1] %vm7_vm0, %v11_v3  }
  0x84   :  { %v18_v4 = vld [vmem:[#allocation0] sm:$0x3] }
  0x85   :  { %20 = vst [vmem:[%s40_s1] sm:$0x3] %v18_v4 }

// kernel: feature_extraction_forward.6
= control target key start
LH: loop header
LB: loop body
LE: loop exit
PB: predicated region body
PF: predicated region fallthrough
CT: control target
= control target key end

     0   :  { %vm60_vm0 = vcmask 1042432   ;;  %vm35_vm1 = vcmask 23552   ;;  %vm169_vm2 = vcmask 195584   ;;  %vm310_vm3 = vcmask 97280   ;;  %s550_s1 = inlined_call_operand.vmem [shape: f32[3,24], index: 1, kind: input, shape index: {}]   ;;  %s551_s0 = inlined_call_operand.vmem [shape: f32[64,3], index: 0, kind: input, shape index: {}]   ;;  %s552_s3 = inlined_call_operand.vmem [shape: f32[24,12], index: 3, kind: input, shape index: {}]   ;;  %s553_s2 = inlined_call_operand.vmem [shape: f32[1,24], index: 2, kind: input, shape index: {}]   ;;  %s554_s4 = inlined_call_operand.vmem [shape: f32[64,24], index: 4, kind: output, shape index: {0}]   ;;  %s555_s5 = inlined_call_operand.vmem [shape: f32[64,12], index: 5, kind: output, shape index: {1}]  }
   0x1   :  { %v27_v0 = vld [vmem:[%s550_s1] sm:$0x7]  ;;  %v20_v2 = vld [vmem:[%s551_s0 + $0x8] sm:$0xff]  ;;  %v21_v3 = vld [vmem:[%s551_s0 + $0x10] sm:$0xff] }
   0x2   :  { %v19_v1 = vld [vmem:[%s551_s0] sm:$0xff]  ;;  %365 = vmatprep.subr.msk.mxu0 %vm60_vm0, %v27_v0  ;;  %v179_v5 = vld [vmem:[%s552_s3 + $0x8] sm:$0xff]  ;;  %v22_v6 = vld [vmem:[%s551_s0 + $0x18] sm:$0xff] }
   0x3   :  { %367 = vmatprep.mubr.msk.f32.mxu0 %vm35_vm1, %v19_v1  ;;  %366 = vmatpush3.msk.msra.mxu0 %vm60_vm0, %v27_v0  ;;  %v178_v4 = vld [vmem:[%s552_s3] sm:$0xff]  ;;  %v24_v9 = vld [vmem:[%s551_s0 + $0x28] sm:$0xff]  ;;  %v25_v10 = vld [vmem:[%s551_s0 + $0x30] sm:$0xff] }
   0x4   :  { %368 = vmatmul.mubr.msk.f32.vlgmr.msra.gmra.mrb[0].mxu0 %vm35_vm1, %v20_v2  ;;  %v397_v7 = vpack.c.bf16 %v179_v5, %v178_v4  ;;  %v23_v8 = vld [vmem:[%s551_s0 + $0x20] sm:$0xff]  ;;  %v26_v11 = vld [vmem:[%s551_s0 + $0x38] sm:$0xff]  ;;  %v180_v12 = vld [vmem:[%s552_s3 + $0x10] sm:$0xff] }
   0x5   :  { %370 = vmatprep.mubr.msk.f32.mxu0 %vm35_vm1, %v21_v3  ;;  %v327_v13 = vld [vmem:[%s553_s2] ss:$0 sm:$0xff] }
   0x6   :  { %398 = vmatprep.subr.bf16.mxu1 %v397_v7 }
   0x7   :  { %400 = vmatpush3.bf16.msra.mxu1 %v397_v7 }
   0x8   :  { %371 = vmatmul.mubr.msk.f32.gmra.mrb[2].mxu0 %vm35_vm1, %v22_v6  ;;  %383 = vmatprep.subr.mxu1 %v180_v12 }
   0x9   :  { %373 = vmatprep.mubr.msk.f32.mxu0 %vm35_vm1, %v23_v8 }
   0xb   :  { %384 = vmatpush3.msra.mxu1 %v180_v12 }
   0xc   :  { %374 = vmatmul.mubr.msk.f32.gmra.mrb[4].mxu0 %vm35_vm1, %v24_v9 }
   0xd   :  { %376 = vmatprep.mubr.msk.f32.mxu0 %vm35_vm1, %v25_v10 }
  0x10   :  { %377 = vmatmul.mubr.msk.f32.gmra.mrb[6].mxu0 %vm35_vm1, %v26_v11 }
  0xd7   :  { %v369_v14 = vpop.f32.mrb[0].mxu0 }
  0xd8   :  { %v136_v15 = vadd.f32 %v369_v14, %v327_v13  ;;  %v130_v16 = vpop.f32.mrb[1].mxu0 }
  0xd9   :  { %v131_v17 = vadd.f32 %v327_v13, %v130_v16 }
  0xda   :  { %171 = vst.msk [vmem:[%s554_s4 + $0x8] sm:$0xff] %vm169_vm2, %v136_v15 }
  0xdb   :  { %170 = vst.msk [vmem:[%s554_s4] sm:$0xff] %vm169_vm2, %v131_v17  ;;  %v372_v18 = vpop.f32.mrb[2].mxu0  ;;  %385 = vmatprep.mubr.msk.f32.mxu1 %vm169_vm2, %v131_v17 }
  0xdc   :  { %v146_v19 = vadd.f32 %v372_v18, %v327_v13  ;;  %v140_v20 = vpop.f32.mrb[3].mxu0  ;;  %386 = vmatmul.mubr.msk.f32.vlgmr.msra.gmra.mrb[0].mxu1 %vm169_vm2, %v136_v15 }
  0xdd   :  { %v141_v21 = vadd.f32 %v327_v13, %v140_v20 }
  0xde   :  { %173 = vst.msk [vmem:[%s554_s4 + $0x18] sm:$0xff] %vm169_vm2, %v146_v19 }
  0xdf   :  { %172 = vst.msk [vmem:[%s554_s4 + $0x10] sm:$0xff] %vm169_vm2, %v141_v21  ;;  %v375_v22 = vpop.f32.mrb[4].mxu0  ;;  %388 = vmatprep.mubr.msk.f32.mxu1 %vm169_vm2, %v141_v21 }
  0xe0   :  { %v156_v23 = vadd.f32 %v375_v22, %v327_v13  ;;  %v150_v24 = vpop.f32.mrb[5].mxu0  ;;  %389 = vmatmul.mubr.msk.f32.gmra.mrb[2].mxu1 %vm169_vm2, %v146_v19 }
  0xe1   :  { %v151_v25 = vadd.f32 %v327_v13, %v150_v24 }
  0xe2   :  { %175 = vst.msk [vmem:[%s554_s4 + $0x28] sm:$0xff] %vm169_vm2, %v156_v23 }
  0xe3   :  { %174 = vst.msk [vmem:[%s554_s4 + $0x20] sm:$0xff] %vm169_vm2, %v151_v25  ;;  %v378_v26 = vpop.f32.mrb[6].mxu0  ;;  %391 = vmatprep.mubr.msk.f32.mxu1 %vm169_vm2, %v151_v25 }
  0xe4   :  { %v166_v27 = vadd.f32 %v378_v26, %v327_v13  ;;  %v160_v28 = vpop.f32.mrb[7].mxu0  ;;  %392 = vmatmul.mubr.msk.f32.gmra.mrb[4].mxu1 %vm169_vm2, %v156_v23 }
  0xe5   :  { %v161_v29 = vadd.f32 %v327_v13, %v160_v28 }
  0xe6   :  { %177 = vst.msk [vmem:[%s554_s4 + $0x38] sm:$0xff] %vm169_vm2, %v166_v27 }
  0xe7   :  { %176 = vst.msk [vmem:[%s554_s4 + $0x30] sm:$0xff] %vm169_vm2, %v161_v29  ;;  %394 = vmatprep.mubr.msk.f32.mxu1 %vm169_vm2, %v161_v29 }
  0xe8   :  { %395 = vmatmul.mubr.msk.f32.gmra.mrb[6].mxu1 %vm169_vm2, %v166_v27 }
 0x1af   :  { %v387_v30 = vpop.f32.mrb[0].mxu1 }
 0x1b0   :  { %312 = vst.msk [vmem:[%s555_s5 + $0x8] sm:$0xff] %vm310_vm3, %v387_v30  ;;  %v271_v31 = vpop.f32.mrb[1].mxu1 }
 0x1b1   :  { %311 = vst.msk [vmem:[%s555_s5] sm:$0xff] %vm310_vm3, %v271_v31 }
 0x1b3   :  { %v390_v32 = vpop.f32.mrb[2].mxu1 }
 0x1b4   :  { %314 = vst.msk [vmem:[%s555_s5 + $0x18] sm:$0xff] %vm310_vm3, %v390_v32  ;;  %v281_v33 = vpop.f32.mrb[3].mxu1 }
 0x1b5   :  { %313 = vst.msk [vmem:[%s555_s5 + $0x10] sm:$0xff] %vm310_vm3, %v281_v33 }
 0x1b7   :  { %v393_v34 = vpop.f32.mrb[4].mxu1 }
 0x1b8   :  { %316 = vst.msk [vmem:[%s555_s5 + $0x28] sm:$0xff] %vm310_vm3, %v393_v34  ;;  %v291_v35 = vpop.f32.mrb[5].mxu1 }
 0x1b9   :  { %315 = vst.msk [vmem:[%s555_s5 + $0x20] sm:$0xff] %vm310_vm3, %v291_v35 }
 0x1bb   :  { %v396_v36 = vpop.f32.mrb[6].mxu1 }
 0x1bc   :  { %318 = vst.msk [vmem:[%s555_s5 + $0x38] sm:$0xff] %vm310_vm3, %v396_v36  ;;  %v301_v37 = vpop.f32.mrb[7].mxu1 }
 0x1bd   :  { %317 = vst.msk [vmem:[%s555_s5 + $0x30] sm:$0xff] %vm310_vm3, %v301_v37 }

// kernel: feature_extraction_forward.8
= control target key start
LH: loop header
LB: loop body
LE: loop exit
PB: predicated region body
PF: predicated region fallthrough
CT: control target
= control target key end

     0   :  { %vm42_vm0 = vcmask 490496   ;;  %vm67_vm1 = vcmask 1043456   ;;  %vm456_vm2 = vmmov 1   ;;  %vm184_vm4 = vcmask 195584   ;;  %s627_s1 = inlined_call_operand.vmem [shape: f32[60,24], index: 1, kind: input, shape index: {}]   ;;  %s628_s0 = inlined_call_operand.vmem [shape: f32[64,60], index: 0, kind: input, shape index: {}]   ;;  %s629_s3 = inlined_call_operand.vmem [shape: f32[24,12], index: 3, kind: input, shape index: {}]   ;;  %s630_s2 = inlined_call_operand.vmem [shape: f32[1,24], index: 2, kind: input, shape index: {}]   ;;  %s631_s4 = inlined_call_operand.vmem [shape: f32[64,24], index: 4, kind: output, shape index: {0}]   ;;  %s632_s5 = inlined_call_operand.vmem [shape: f32[64,12], index: 5, kind: output, shape index: {1}]  }
   0x1   :  { %v27_v0 = vld [vmem:[%s627_s1] sm:$0xff]  ;;  %v28_v1 = vld [vmem:[%s627_s1 + $0x8] sm:$0xff]  ;;  %v29_v2 = vld [vmem:[%s627_s1 + $0x10] sm:$0xff]  ;;  %vm325_vm5 = vcmask 97280  }
   0x2   :  { %v433_v3 = vpack.c.bf16 %v28_v1, %v27_v0  ;;  %v30_v4 = vld [vmem:[%s627_s1 + $0x18] sm:$0xff]  ;;  %v31_v6 = vld [vmem:[%s627_s1 + $0x20] sm:$0xff]  ;;  %v32_v7 = vld [vmem:[%s627_s1 + $0x28] sm:$0xff] }
   0x3   :  { %v437_v5 = vpack.c.bf16 %v30_v4, %v29_v2  ;;  %v19_v8 = vld [vmem:[%s628_s0] sm:$0xff]  ;;  %v441_v9 = vpack.c.bf16 %v32_v7, %v31_v6  ;;  %v33_v10 = vld [vmem:[%s627_s1 + $0x30] sm:$0xff]  ;;  %v34_v11 = vld [vmem:[%s627_s1 + $0x38] sm:$0xf] }
   0x4   :  { %434 = vmatprep.subr.bf16.mxu0 %v433_v3  ;;  %403 = vmatprep.mubr.msk.f32.mxu0 %vm42_vm0, %v19_v8  ;;  %v445_v12 = vpack.c.bf16 %v34_v11, %v33_v10  ;;  %vm446_vm3 = vmpackc.low %vm67_vm1, %vm456_vm2  ;;  %v20_v13 = vld [vmem:[%s628_s0 + $0x8] sm:$0xff]  ;;  %v21_v14 = vld [vmem:[%s628_s0 + $0x10] sm:$0xff] }
   0x5   :  { %436 = vmatpush3.bf16.msra.mxu0 %v433_v3  ;;  %v22_v15 = vld [vmem:[%s628_s0 + $0x18] sm:$0xff]  ;;  %v23_v16 = vld [vmem:[%s628_s0 + $0x20] sm:$0xff]  ;;  %v24_v17 = vld [vmem:[%s628_s0 + $0x28] sm:$0xff] }
   0x6   :  { %438 = vmatprep.subr.bf16.mxu0 %v437_v5  ;;  %v25_v18 = vld [vmem:[%s628_s0 + $0x30] sm:$0xff]  ;;  %v26_v19 = vld [vmem:[%s628_s0 + $0x38] sm:$0xff]  ;;  %v193_v20 = vld [vmem:[%s629_s3] sm:$0xff] }
   0x7   :  { %v194_v21 = vld [vmem:[%s629_s3 + $0x8] sm:$0xff]  ;;  %v195_v23 = vld [vmem:[%s629_s3 + $0x10] sm:$0xff]  ;;  %v342_v24 = vld [vmem:[%s630_s2] ss:$0 sm:$0xff] }
   0x8   :  { %v451_v22 = vpack.c.bf16 %v194_v21, %v193_v20 }
   0x9   :  { %440 = vmatpush3.bf16.msra.mxu0 %v437_v5 }
   0xa   :  { %442 = vmatprep.subr.bf16.mxu0 %v441_v9  ;;  %452 = vmatprep.subr.bf16.mxu1 %v451_v22 }
   0xb   :  { %454 = vmatpush3.bf16.msra.mxu1 %v451_v22 }
   0xc   :  { %419 = vmatprep.subr.mxu1 %v195_v23 }
   0xd   :  { %444 = vmatpush3.bf16.msra.mxu0 %v441_v9 }
   0xe   :  { %447 = vmatprep.subr.msk.bf16.mxu0 %vm446_vm3, %v445_v12 }
   0xf   :  { %420 = vmatpush3.msra.mxu1 %v195_v23 }
  0x11   :  { %450 = vmatpush3.bf16.msk.msra.mxu0 %vm446_vm3, %v445_v12 }
  0x14   :  { %404 = vmatmul.mubr.msk.f32.vlgmr.msra.gmra.mrb[0].mxu0 %vm42_vm0, %v20_v13 }
  0x15   :  { %406 = vmatprep.mubr.msk.f32.mxu0 %vm42_vm0, %v21_v14 }
  0x18   :  { %407 = vmatmul.mubr.msk.f32.gmra.mrb[2].mxu0 %vm42_vm0, %v22_v15 }
  0x19   :  { %409 = vmatprep.mubr.msk.f32.mxu0 %vm42_vm0, %v23_v16 }
  0x1c   :  { %410 = vmatmul.mubr.msk.f32.gmra.mrb[4].mxu0 %vm42_vm0, %v24_v17 }
  0x1d   :  { %412 = vmatprep.mubr.msk.f32.mxu0 %vm42_vm0, %v25_v18 }
  0x20   :  { %413 = vmatmul.mubr.msk.f32.gmra.mrb[6].mxu0 %vm42_vm0, %v26_v19 }
  0xe7   :  { %v405_v25 = vpop.f32.mrb[0].mxu0 }
  0xe8   :  { %v143_v26 = vadd.f32 %v405_v25, %v342_v24  ;;  %v137_v27 = vpop.f32.mrb[1].mxu0 }
  0xe9   :  { %v138_v28 = vadd.f32 %v342_v24, %v137_v27 }
  0xea   :  { %v177_v29 = vmax.f32 %v143_v26, 0.0 }
  0xeb   :  { %v176_v30 = vmax.f32 %v138_v28, 0.0  ;;  %v408_v31 = vpop.f32.mrb[2].mxu0 }
  0xec   :  { %186 = vst.msk [vmem:[%s631_s4 + $0x8] sm:$0xff] %vm184_vm4, %v177_v29  ;;  %v153_v32 = vadd.f32 %v408_v31, %v342_v24  ;;  %v147_v33 = vpop.f32.mrb[3].mxu0 }
  0xed   :  { %185 = vst.msk [vmem:[%s631_s4] sm:$0xff] %vm184_vm4, %v176_v30  ;;  %v148_v34 = vadd.f32 %v342_v24, %v147_v33  ;;  %421 = vmatprep.mubr.msk.f32.mxu1 %vm184_vm4, %v176_v30 }
  0xee   :  { %v179_v35 = vmax.f32 %v153_v32, 0.0  ;;  %422 = vmatmul.mubr.msk.f32.vlgmr.msra.gmra.mrb[0].mxu1 %vm184_vm4, %v177_v29 }
  0xef   :  { %v178_v36 = vmax.f32 %v148_v34, 0.0  ;;  %v411_v37 = vpop.f32.mrb[4].mxu0 }
  0xf0   :  { %188 = vst.msk [vmem:[%s631_s4 + $0x18] sm:$0xff] %vm184_vm4, %v179_v35  ;;  %v163_v38 = vadd.f32 %v411_v37, %v342_v24  ;;  %v157_v39 = vpop.f32.mrb[5].mxu0 }
  0xf1   :  { %187 = vst.msk [vmem:[%s631_s4 + $0x10] sm:$0xff] %vm184_vm4, %v178_v36  ;;  %v158_v40 = vadd.f32 %v342_v24, %v157_v39  ;;  %424 = vmatprep.mubr.msk.f32.mxu1 %vm184_vm4, %v178_v36 }
  0xf2   :  { %v181_v41 = vmax.f32 %v163_v38, 0.0  ;;  %425 = vmatmul.mubr.msk.f32.gmra.mrb[2].mxu1 %vm184_vm4, %v179_v35 }
  0xf3   :  { %v180_v42 = vmax.f32 %v158_v40, 0.0  ;;  %v414_v43 = vpop.f32.mrb[6].mxu0 }
  0xf4   :  { %190 = vst.msk [vmem:[%s631_s4 + $0x28] sm:$0xff] %vm184_vm4, %v181_v41  ;;  %v173_v44 = vadd.f32 %v414_v43, %v342_v24  ;;  %v167_v45 = vpop.f32.mrb[7].mxu0 }
  0xf5   :  { %189 = vst.msk [vmem:[%s631_s4 + $0x20] sm:$0xff] %vm184_vm4, %v180_v42  ;;  %v168_v46 = vadd.f32 %v342_v24, %v167_v45  ;;  %427 = vmatprep.mubr.msk.f32.mxu1 %vm184_vm4, %v180_v42 }
  0xf6   :  { %v183_v47 = vmax.f32 %v173_v44, 0.0  ;;  %428 = vmatmul.mubr.msk.f32.gmra.mrb[4].mxu1 %vm184_vm4, %v181_v41 }
  0xf7   :  { %v182_v48 = vmax.f32 %v168_v46, 0.0 }
  0xf8   :  { %192 = vst.msk [vmem:[%s631_s4 + $0x38] sm:$0xff] %vm184_vm4, %v183_v47 }
  0xf9   :  { %191 = vst.msk [vmem:[%s631_s4 + $0x30] sm:$0xff] %vm184_vm4, %v182_v48  ;;  %430 = vmatprep.mubr.msk.f32.mxu1 %vm184_vm4, %v182_v48 }
  0xfa   :  { %431 = vmatmul.mubr.msk.f32.gmra.mrb[6].mxu1 %vm184_vm4, %v183_v47 }
 0x1c1   :  { %v423_v49 = vpop.f32.mrb[0].mxu1 }
 0x1c2   :  { %327 = vst.msk [vmem:[%s632_s5 + $0x8] sm:$0xff] %vm325_vm5, %v423_v49  ;;  %v286_v50 = vpop.f32.mrb[1].mxu1 }
 0x1c3   :  { %326 = vst.msk [vmem:[%s632_s5] sm:$0xff] %vm325_vm5, %v286_v50 }
 0x1c5   :  { %v426_v51 = vpop.f32.mrb[2].mxu1 }
 0x1c6   :  { %329 = vst.msk [vmem:[%s632_s5 + $0x18] sm:$0xff] %vm325_vm5, %v426_v51  ;;  %v296_v52 = vpop.f32.mrb[3].mxu1 }
 0x1c7   :  { %328 = vst.msk [vmem:[%s632_s5 + $0x10] sm:$0xff] %vm325_vm5, %v296_v52 }
 0x1c9   :  { %v429_v53 = vpop.f32.mrb[4].mxu1 }
 0x1ca   :  { %331 = vst.msk [vmem:[%s632_s5 + $0x28] sm:$0xff] %vm325_vm5, %v429_v53  ;;  %v306_v54 = vpop.f32.mrb[5].mxu1 }
 0x1cb   :  { %330 = vst.msk [vmem:[%s632_s5 + $0x20] sm:$0xff] %vm325_vm5, %v306_v54 }
 0x1cd   :  { %v432_v55 = vpop.f32.mrb[6].mxu1 }
 0x1ce   :  { %333 = vst.msk [vmem:[%s632_s5 + $0x38] sm:$0xff] %vm325_vm5, %v432_v55  ;;  %v316_v56 = vpop.f32.mrb[7].mxu1 }
 0x1cf   :  { %332 = vst.msk [vmem:[%s632_s5 + $0x30] sm:$0xff] %vm325_vm5, %v316_v56 }

// kernel: feature_extraction_forward.7
= control target key start
LH: loop header
LB: loop body
LE: loop exit
PB: predicated region body
PF: predicated region fallthrough
CT: control target
= control target key end

     0   :  { %s6002_s17 = smov 0   ;;  %s6004_s18 = smov 0   ;;  %s7519_s0 = inlined_call_operand.vmem [shape: f32[2,32,24], index: 0, kind: input, shape index: {}]   ;;  %s7520_s1 = inlined_call_operand.vmem [shape: f32[2,32,16,12], index: 1, kind: input, shape index: {}]   ;;  %s7521_s2 = inlined_call_operand.vmem [shape: f32[24,12], index: 2, kind: input, shape index: {}]   ;;  %s7522_s3 = inlined_call_operand.vmem [shape: f32[1,12], index: 3, kind: input, shape index: {}]   ;;  %s7523_s4 = inlined_call_operand.vmem [shape: f32[12,12], index: 4, kind: input, shape index: {}]   ;;  %s7524_s5 = inlined_call_operand.vmem [shape: f32[24,12], index: 5, kind: input, shape index: {}]   ;;  %s7525_s6 = inlined_call_operand.vmem [shape: f32[1,12], index: 6, kind: input, shape index: {}]   ;;  %s7526_s7 = inlined_call_operand.vmem [shape: f32[12,12], index: 7, kind: input, shape index: {}]   ;;  %s7527_s8 = inlined_call_operand.vmem [shape: f32[12,12], index: 8, kind: input, shape index: {}]   ;;  %s7528_s9 = inlined_call_operand.vmem [shape: f32[24,12], index: 9, kind: input, shape index: {}]   ;;  %s7529_s10 = inlined_call_operand.vmem [shape: f32[1,12], index: 10, kind: input, shape index: {}]   ;;  %s7530_s11 = inlined_call_operand.vmem [shape: f32[2,32,60], index: 11, kind: output, shape index: {}]  }
   0x1   :  { %s6006_s19 = smov 0  }
   0x2 LB: > { %s33_s20 = sadd.s32 1, %s5931_s18  ;;  %p5008_p0 = scmp.ge.s32.totalorder %s5935_s19, 1  ;;  %s5935_s19 = sphi %s6006_s19, %s21_s19   ;;  %s5931_s18 = sphi %s6004_s18, %s7570_s18   ;;  %s5927_s17 = sphi %s6002_s17, %s7569_s17  }
   0x3   : > { %p35_p1 = scmp.ge.s32.totalorder %s33_s20, 2  ;;  %p376_p2 = scmp.lt.s32.totalorder %s5935_s19, 3 }
   0x5   : > { %s7572_s20 = smov (%p35_p1, %s33_s20), 0  ;;  %p377_p3 = pnand %p5008_p0, %p376_p2 }
   0x7   : > { %380 = sbr.rel (%p377_p3) target bundleno = 855 (0x357), region = 64 }
   0xe   : > { %v533_v0 = vld [vmem:[%s7521_s2] sm:$0xff]  ;;  %v534_v1 = vld [vmem:[%s7521_s2 + $0x8] sm:$0xff]  ;;  %p435_p4 = scmp.lt.s32.totalorder %s5927_s17, 1  ;;  %v535_v3 = vld [vmem:[%s7521_s2 + $0x10] sm:$0xff]  ;;  %vm543_vm0 = vcmask 195584   ;;  %vm1514_vm1 = vcmask 1043456   ;;  %v839_v25 = vlaneseq }
   0xf   : > { %v5785_v2 = vpack.c.bf16 %v534_v1, %v533_v0  ;;  %v641_v8 = vld [vmem:[%s7524_s5] sm:$0xff]  ;;  %v642_v9 = vld [vmem:[%s7524_s5 + $0x8] sm:$0xff]  ;;  %v643_v14 = vld [vmem:[%s7524_s5 + $0x10] sm:$0xff]  ;;  %vm5937_vm2 = vmmov 1   ;;  %s5938_s23 = smov 36   ;;  %vm1321_vm4 = vcmask 97280  }
  0x10   : > { %s7574_s17 = smov (!%p435_p4, %s5927_s17), 1  ;;  %v5789_v10 = vpack.c.bf16 %v642_v9, %v641_v8  ;;  %v736_v11 = vld [vmem:[%s7528_s9] sm:$0xff]  ;;  %v737_v12 = vld [vmem:[%s7528_s9 + $0x8] sm:$0xff]  ;;  %v738_v15 = vld [vmem:[%s7528_s9 + $0x10] sm:$0xff]  ;;  %v5939_v23 = vmov 1966171168  }
  0x11   : > { %5786 = vmatprep.subr.bf16.mxu0 %v5785_v2  ;;  %s5227_s27 = sshll.u32 %s7574_s17, 5  ;;  %v5793_v13 = vpack.c.bf16 %v737_v12, %v736_v11  ;;  %v1319_v16 = vld [vmem:[%s7523_s4] sm:$0xff]  ;;  %v1320_v17 = vld [vmem:[%s7523_s4 + $0x8] sm:$0xf]  ;;  %vm6083_vm3 = vmpackc.low %vm1514_vm1, %vm5937_vm2  ;;  %v837_v24 = vunpack.c.l.s4 %v5939_v23  ;;  %v840_v27 = vshrl.u32 %v839_v25, 7  ;;  %s5228_s26 = sshll.u32 %s7574_s17, 9 }
  0x12   : > { %5788 = vmatpush3.bf16.msra.mxu0 %v5785_v2  ;;  %s6037_s30 = scalar_lea.vmem %s7519_s0, %s5227_s27  ;;  %5790 = vmatprep.subr.bf16.mxu1 %v5789_v10  ;;  %v2393_v18 = vld [vmem:[%s7527_s8] sm:$0xff]  ;;  %v5797_v19 = vpack.c.bf16 %v1320_v17, %v1319_v16  ;;  %v2394_v20 = vld [vmem:[%s7527_s8 + $0x8] sm:$0xf]  ;;  %s6116_s12 = scalar_lea.vmem %s7520_s1, %s5228_s26  ;;  %vm4683_vm5 = vcmask 1041409   ;;  %vm4685_vm6 = vcmask 1042434   ;;  %vm4687_vm7 = vcmask 1043459  }
  0x13   : > { %5453 = vmatprep.subr.mxu0 %v535_v3  ;;  %v465_v4 = vld [vmem:[%s6037_s30] sm:$0xff]  ;;  %v466_v5 = vld [vmem:[%s6037_s30 + $0x8] sm:$0xff]  ;;  %v467_v6 = vld [vmem:[%s6037_s30 + $0x10] sm:$0xff]  ;;  %5792 = vmatpush3.bf16.msra.mxu1 %v5789_v10  ;;  %v6088_v22 = vpack.c.bf16 %v2394_v20, %v2393_v18  ;;  %v838_v26 = vunpack.c.0.s8 %v837_v24  ;;  %v6118_v36 = vsub.s32 0, %v840_v27  ;;  %vm4689_vm8 = vcmask 1044484   ;;  %s5940_s13 = smov 24  }
  0x14   : > { %5455 = vmatprep.mubr.msk.f32.mxu0 %vm543_vm0, %v465_v4  ;;  %5467 = vmatprep.mubr.msk.f32.mxu1 %vm543_vm0, %v465_v4  ;;  %v468_v7 = vld [vmem:[%s6037_s30 + $0x18] sm:$0xff]  ;;  %v5015_v28 = vld [vmem:[%s7522_s3] ss:$0 sm:$0xff]  ;;  %v486_v50 = vld [vmem:[%s6116_s12 + $0x88] sm:$0xff]  ;;  %vm4691_vm9 = vcmask 1045509   ;;  %vm4693_vm10 = vcmask 1046534  }
  0x15   : > { %5465 = vmatprep.subr.mxu1 %v643_v14  ;;  %4868 = vrot.lane.b32.xlu1 %v466_v5, %s5938_s23  ;;  %v6109_v29 = vsub.s32 %v838_v26, %v840_v27  ;;  %7543 = vst [vmem:[#allocation3_spill] sm:$0xff] %v6118_v36  ;;  %v485_v49 = vld [vmem:[%s6116_s12 + $0x80] sm:$0xff]  ;;  %v487_v55 = vld [vmem:[%s6116_s12 + $0x90] sm:$0xff]  ;;  %v488_v56 = vld [vmem:[%s6116_s12 + $0x98] sm:$0xff]  ;;  %vm4695_vm11 = vcmask 1047559   ;;  %s5941_s28 = smov 12  }
  0x16   : > { %5454 = vmatpush3.msra.mxu0 %v535_v3  ;;  %4866 = vrot.lane.b32.xlu0 %v465_v4, %s5938_s23  ;;  %v489_v61 = vld [vmem:[%s6116_s12 + $0xa0] sm:$0xff]  ;;  %v490_v62 = vld [vmem:[%s6116_s12 + $0xa8] sm:$0xff]  ;;  %v491_v63 = vld [vmem:[%s6116_s12 + $0xb0] sm:$0xff]  ;;  %vm4886_vm12 = vcmask 293888   ;;  %vm4891_vm13 = vcmask 490496  }
  0x17   : > { %5456 = vmatmul.mubr.msk.f32.vlgmr.msra.gmra.mrb[0].mxu0 %vm543_vm0, %v466_v5  ;;  %5794 = vmatprep.subr.bf16.mxu0 %v5793_v13  ;;  %7542 = vst [vmem:[#allocation2_spill] sm:$0xff] %v6109_v29  ;;  %v495_v11 = vld [vmem:[%s6116_s12 + $0xd0] sm:$0xff]  ;;  %v496_v12 = vld [vmem:[%s6116_s12 + $0xd8] sm:$0xff]  ;;  %v498_v18 = vld [vmem:[%s6116_s12 + $0xe8] sm:$0xff] }
  0x18   : > { %5458 = vmatprep.mubr.msk.f32.mxu0 %vm543_vm0, %v467_v6  ;;  %5796 = vmatpush3.bf16.msra.mxu0 %v5793_v13  ;;  %v497_v13 = vld [vmem:[%s6116_s12 + $0xe0] sm:$0xff]  ;;  %v500_v20 = vld [vmem:[%s6116_s12 + $0xf8] sm:$0xff] }
  0x19   : > { %5466 = vmatpush3.msra.mxu1 %v643_v14  ;;  %5477 = vmatprep.subr.mxu0 %v738_v15 }
  0x1a   : > { %5468 = vmatmul.mubr.msk.f32.vlgmr.msra.gmra.mrb[0].mxu1 %vm543_vm0, %v466_v5  ;;  %5799 = vmatprep.subr.msk.bf16.mxu1 %vm6083_vm3, %v5797_v19 }
  0x1b   : > { %5459 = vmatmul.mubr.msk.f32.gmra.mrb[2].mxu0 %vm543_vm0, %v468_v7  ;;  %5470 = vmatprep.mubr.msk.f32.mxu1 %vm543_vm0, %v467_v6 }
  0x1c   : > { %5479 = vmatprep.mubr.msk.f32.mxu0 %vm543_vm0, %v465_v4  ;;  %5478 = vmatpush3.msra.mxu0 %v738_v15  ;;  %v492_v4 = vld [vmem:[%s6116_s12 + $0xb8] sm:$0xff] }
  0x1d   : > { %5802 = vmatpush3.bf16.msk.msra.mxu1 %vm6083_vm3, %v5797_v19  ;;  %5805 = vmatprep.subr.msk.bf16.mxu0 %vm6083_vm3, %v6088_v22  ;;  %v499_v19 = vld [vmem:[%s6116_s12 + $0xf0] sm:$0xff] }
  0x1e   : > { %5471 = vmatmul.mubr.msk.f32.gmra.mrb[2].mxu1 %vm543_vm0, %v468_v7  ;;  %5815 = vmatprep.subr.msk.bf16.mxu1 %vm6083_vm3, %v6088_v22 }
  0x1f   : > { %5480 = vmatmul.mubr.msk.f32.vlgmr.msra.gmra.mrb[4].mxu0 %vm543_vm0, %v466_v5  ;;  %v493_v5 = vld [vmem:[%s6116_s12 + $0xc0] sm:$0xff] }
  0x20   : > { %5482 = vmatprep.mubr.msk.f32.mxu0 %vm543_vm0, %v467_v6  ;;  %5808 = vmatpush3.bf16.msk.msra.mxu0 %vm6083_vm3, %v6088_v22  ;;  %v494_v6 = vld [vmem:[%s6116_s12 + $0xc8] sm:$0xff] }
  0x23   : > { %5483 = vmatmul.mubr.msk.f32.gmra.mrb[6].mxu0 %vm543_vm0, %v468_v7 }
  0xea   : > { %v5457_v30 = vpop.f32.mrb[0].mxu0 }
  0xeb   : > { %v628_v31 = vadd.f32 %v5457_v30, %v5015_v28  ;;  %v622_v32 = vpop.f32.mrb[1].mxu0 }
  0xec   : > { %v623_v33 = vadd.f32 %v5015_v28, %v622_v32 }
  0xed   : > { %v884_v34 = vcombine.high %v628_v31, %v628_v31  ;;  %v891_v35 = vrot.slane %v628_v31, %v6109_v29 }
  0xee   : > { %v835_v37 = vcombine.high %v623_v33, %v623_v33  ;;  %v842_v38 = vrot.slane %v623_v33, %v6109_v29  ;;  %v5460_v39 = vpop.f32.mrb[2].mxu0 }
  0xef   : > { %v898_v40 = vrot.slane %v884_v34, %v6109_v29  ;;  %v899_v41 = vcombine.high %v891_v35, %v891_v35  ;;  %v907_v42 = vrot.slane %v891_v35, %v6109_v29  ;;  %v6123_v43 = vadd.f32 %v5460_v39, %v5015_v28  ;;  %v632_v44 = vpop.f32.mrb[3].mxu0 }
  0xf0   : > { %v6126_v45 = vrot.slane %v835_v37, %v6109_v29  ;;  %v850_v46 = vcombine.high %v842_v38, %v842_v38  ;;  %v6129_v47 = vrot.slane %v842_v38, %v6109_v29  ;;  %v6131_v48 = vadd.f32 %v5015_v28, %v632_v44 }
  0xf1   : > { %v900_v51 = vcombine.high %v898_v40, %v898_v40  ;;  %v914_v52 = vrot.slane %v898_v40, %v6109_v29  ;;  %v921_v53 = vrot.slane %v899_v41, %v6109_v29  ;;  %v929_v54 = vcombine.high %v907_v42, %v907_v42 }
  0xf2   : > { %v1066_v57 = vrot.slane %v907_v42, %v6118_v36  ;;  %v851_v58 = vcombine.high %v6126_v45, %v6126_v45  ;;  %v6144_v59 = vrot.slane %v6126_v45, %v6109_v29  ;;  %v6147_v60 = vrot.slane %v850_v46, %v6109_v29 }
  0xf3   : > { %v928_v0 = vrot.slane %v900_v51, %v6109_v29  ;;  %v930_v1 = vcombine.high %v914_v52, %v914_v52  ;;  %v931_v2 = vcombine.high %v921_v53, %v921_v53  ;;  %v1070_v3 = vrot.slane %v921_v53, %v6118_v36 }
  0xf4   : > { %v1074_v7 = vrot.slane %v929_v54, %v6118_v36  ;;  %v1082_v8 = vrot.slane %v914_v52, %v6118_v36  ;;  %v1207_v9 = vadd.f32 %v1066_v57, %v485_v49  ;;  %v1208_v10 = vadd.f32 %v1066_v57, %v486_v50 }
  0xf5   : > { %v932_v14 = vcombine.high %v928_v0, %v928_v0  ;;  %v1078_v15 = vrot.slane %v931_v2, %v6118_v36  ;;  %v1086_v16 = vrot.slane %v928_v0, %v6118_v36  ;;  %v1090_v17 = vrot.slane %v930_v1, %v6118_v36 }
  0xf6   : > { %v1209_v23 = vadd.f32 %v1070_v3, %v487_v55  ;;  %v1210_v24 = vadd.f32 %v1070_v3, %v488_v56  ;;  %v1211_v25 = vadd.f32 %v1074_v7, %v489_v61  ;;  %v1212_v26 = vadd.f32 %v1074_v7, %v490_v62 }
  0xf7   : > { %v1094_v27 = vrot.slane %v932_v14, %v6118_v36  ;;  %v1213_v28 = vadd.f32 %v1078_v15, %v491_v63  ;;  %v1214_v30 = vadd.f32 %v1078_v15, %v492_v4  ;;  %v1215_v31 = vadd.f32 %v1082_v8, %v493_v5 }
  0xf8   : > { %v1216_v32 = vadd.f32 %v1082_v8, %v494_v6  ;;  %v1217_v33 = vadd.f32 %v1086_v16, %v495_v11  ;;  %v1218_v34 = vadd.f32 %v1086_v16, %v496_v12  ;;  %v1219_v35 = vadd.f32 %v1090_v17, %v497_v13 }
  0xf9   : > { %v1220_v37 = vadd.f32 %v1090_v17, %v498_v18  ;;  %v1221_v38 = vadd.f32 %v1094_v27, %v499_v19  ;;  %v1222_v39 = vadd.f32 %v1094_v27, %v500_v20  ;;  %v6169_v40 = vmax.f32 %v1207_v9, 0.0  ;;  %v470_v27 = vld [vmem:[%s6116_s12 + $0x8] sm:$0xff] }
  0xfa   : > { %v6171_v41 = vmax.f32 %v1208_v10, 0.0  ;;  %v6173_v42 = vmax.f32 %v1209_v23, 0.0  ;;  %v6175_v44 = vmax.f32 %v1210_v24, 0.0  ;;  %v6177_v46 = vmax.f32 %v1211_v25, 0.0  ;;  %v482_v25 = vld [vmem:[%s6116_s12 + $0x68] sm:$0xff] }
  0xfb   : > { %v6179_v49 = vmax.f32 %v1212_v26, 0.0  ;;  %v6181_v50 = vmax.f32 %v1213_v28, 0.0  ;;  %v6183_v51 = vmax.f32 %v1214_v30, 0.0  ;;  %v6185_v52 = vmax.f32 %v1215_v31, 0.0  ;;  %v469_v30 = vld [vmem:[%s6116_s12] sm:$0xff] }
  0xfc   : > { %v6187_v53 = vmax.f32 %v1216_v32, 0.0  ;;  %v6189_v54 = vmax.f32 %v1217_v33, 0.0  ;;  %v6191_v55 = vmax.f32 %v1218_v34, 0.0  ;;  %v6193_v56 = vmax.f32 %v1219_v35, 0.0  ;;  %v471_v35 = vld [vmem:[%s6116_s12 + $0x10] sm:$0xff] }
  0xfd   : > { %v6195_v57 = vmax.f32 %v1220_v37, 0.0  ;;  %v6197_v61 = vmax.f32 %v1221_v38, 0.0  ;;  %v6199_v62 = vmax.f32 %v1222_v39, 0.0  ;;  %v4435_v63 = vsel %vm1321_vm4, %v6169_v40, -inf  ;;  %v472_v37 = vld [vmem:[%s6116_s12 + $0x18] sm:$0xff]  ;;  %v473_v38 = vld [vmem:[%s6116_s12 + $0x20] sm:$0xff] }
  0xfe   : > { %v4436_v0 = vsel %vm1321_vm4, %v6171_v41, -inf  ;;  %v4444_v1 = vsel %vm1321_vm4, %v6173_v42, -inf  ;;  %v4445_v2 = vsel %vm1321_vm4, %v6175_v44, -inf  ;;  %v4453_v3 = vsel %vm1321_vm4, %v6177_v46, -inf }
  0xff   : > { %v4437_v4 = vmax.f32 %v4435_v63, %v4436_v0  ;;  %v4446_v5 = vmax.f32 %v4444_v1, %v4445_v2  ;;  %v4454_v6 = vsel %vm1321_vm4, %v6179_v49, -inf  ;;  %v4462_v7 = vsel %vm1321_vm4, %v6181_v50, -inf  ;;  %v483_v63 = vld [vmem:[%s6116_s12 + $0x70] sm:$0xff]  ;;  %v484_v0 = vld [vmem:[%s6116_s12 + $0x78] sm:$0xff] }
 0x100   : > { %v4455_v8 = vmax.f32 %v4453_v3, %v4454_v6  ;;  %v4463_v9 = vsel %vm1321_vm4, %v6183_v51, -inf  ;;  %v4471_v10 = vsel %vm1321_vm4, %v6185_v52, -inf  ;;  %v4472_v11 = vsel %vm1321_vm4, %v6187_v53, -inf }
 0x101   : > { %v4438_v12 = vrot.slane %v4437_v4, 4  ;;  %v4447_v13 = vrot.slane %v4446_v5, 4  ;;  %v6221_v14 = vmax.f32 %v4462_v7, %v4463_v9  ;;  %v6223_v15 = vmax.f32 %v4471_v10, %v4472_v11  ;;  %v474_v11 = vld [vmem:[%s6116_s12 + $0x28] sm:$0xff] }
 0x102   : > { %v4456_v16 = vrot.slane %v4455_v8, 4  ;;  %v6227_v17 = vsel %vm1321_vm4, %v6189_v54, -inf  ;;  %v6231_v18 = vsel %vm1321_vm4, %v6191_v55, -inf  ;;  %v6237_v19 = vrot.slane %v851_v58, %v6109_v29 }
 0x103   : > { %v4439_v20 = vmax.f32 %v4437_v4, %v4438_v12  ;;  %v4448_v23 = vmax.f32 %v4446_v5, %v4447_v13  ;;  %v880_v28 = vcombine.high %v6129_v47, %v6129_v47  ;;  %v881_v45 = vcombine.high %v6144_v59, %v6144_v59 }
 0x104   : > { %v6241_v26 = vmax.f32 %v4455_v8, %v4456_v16  ;;  %v882_v58 = vcombine.high %v6147_v60, %v6147_v60  ;;  %v883_v33 = vcombine.high %v6237_v19, %v6237_v19  ;;  %v1034_v34 = vrot.slane %v6129_v47, %v6118_v36 }
 0x105   : > { %v4440_v31 = vrot.slane %v4439_v20, 2  ;;  %v4449_v32 = vrot.slane %v4448_v23, 2  ;;  %v1038_v1 = vrot.slane %v6147_v60, %v6118_v36  ;;  %v1042_v2 = vrot.slane %v880_v28, %v6118_v36 }
 0x106   : > { %v4458_v39 = vrot.slane %v6241_v26, 2  ;;  %v1050_v3 = vrot.slane %v6144_v59, %v6118_v36  ;;  %v1062_v47 = vrot.slane %v883_v33, %v6118_v36  ;;  %v1192_v6 = vadd.f32 %v1034_v34, %v470_v27 }
 0x107   : > { %v6266_v4 = vmax.f32 %v4439_v20, %v4440_v31  ;;  %v6268_v5 = vmax.f32 %v4448_v23, %v4449_v32  ;;  %v1191_v7 = vadd.f32 %v1034_v34, %v469_v30  ;;  %v1193_v8 = vadd.f32 %v1038_v1, %v471_v35  ;;  %v477_v34 = vld [vmem:[%s6116_s12 + $0x40] sm:$0xff]  ;;  %v478_v35 = vld [vmem:[%s6116_s12 + $0x48] sm:$0xff] }
 0x108   : > { %v1194_v9 = vadd.f32 %v1038_v1, %v472_v37  ;;  %v1195_v10 = vadd.f32 %v1042_v2, %v473_v38  ;;  %v1205_v12 = vadd.f32 %v1062_v47, %v483_v63  ;;  %v1206_v13 = vadd.f32 %v1062_v47, %v484_v0  ;;  %v475_v1 = vld [vmem:[%s6116_s12 + $0x30] sm:$0xff] }
 0x109   : > { %v4442_v60 = vrot.slane %v6266_v4, 1  ;;  %v1256_v16 = vmax.f32 %v1192_v6, 0.0  ;;  %v1255_v28 = vmax.f32 %v1191_v7, 0.0  ;;  %v1257_v20 = vmax.f32 %v1193_v8, 0.0  ;;  %v476_v8 = vld [vmem:[%s6116_s12 + $0x38] sm:$0xff] }
 0x10a   : > { %v1258_v23 = vmax.f32 %v1194_v9, 0.0  ;;  %v1259_v31 = vmax.f32 %v1195_v10, 0.0  ;;  %v6273_v32 = vmax.f32 %v1205_v12, 0.0  ;;  %v6275_v27 = vmax.f32 %v1206_v13, 0.0 }
 0x10b   : > { %v4364_v30 = vsel %vm1321_vm4, %v1256_v16, -inf  ;;  %v1196_v33 = vadd.f32 %v1042_v2, %v474_v11  ;;  %5489 = vmatprep.mubr.msk.f32.mxu1 %vm1321_vm4, %v1255_v28  ;;  %v4363_v37 = vsel %vm1321_vm4, %v1255_v28, -inf  ;;  %5589 = vmatprep.mubr.msk.f32.mxu0 %vm1321_vm4, %v1255_v28  ;;  %v4372_v38 = vsel %vm1321_vm4, %v1257_v20, -inf  ;;  %v479_v11 = vld [vmem:[%s6116_s12 + $0x50] sm:$0xff] }
 0x10c   : > { %v4373_v63 = vsel %vm1321_vm4, %v1258_v23, -inf  ;;  %v4381_v0 = vsel %vm1321_vm4, %v1259_v31, -inf  ;;  %v4365_v47 = vmax.f32 %v4363_v37, %v4364_v30  ;;  %5490 = vmatmul.mubr.msk.f32.vlgmr.msra.gmra.mrb[4].mxu1 %vm1321_vm4, %v1256_v16  ;;  %5590 = vmatmul.mubr.msk.f32.vlgmr.msra.gmra.mrb[8].mxu0 %vm1321_vm4, %v1256_v16  ;;  %v1046_v7 = vrot.slane %v882_v58, %v6118_v36 }
 0x10d   : > { %v4374_v2 = vmax.f32 %v4372_v38, %v4373_v63  ;;  %v1260_v6 = vmax.f32 %v1196_v33, 0.0  ;;  %5492 = vmatprep.mubr.msk.f32.mxu1 %vm1321_vm4, %v1257_v20  ;;  %5592 = vmatprep.mubr.msk.f32.mxu0 %vm1321_vm4, %v1257_v20  ;;  %v1199_v9 = vadd.f32 %v1050_v3, %v477_v34  ;;  %v1200_v10 = vadd.f32 %v1050_v3, %v478_v35  ;;  %v480_v63 = vld [vmem:[%s6116_s12 + $0x58] sm:$0xff] }
 0x10e   : > { %v1054_v12 = vrot.slane %v6237_v19, %v6118_v36  ;;  %v4451_v13 = vrot.slane %v6268_v5, 1  ;;  %v4366_v28 = vrot.slane %v4365_v47, 4  ;;  %v1197_v33 = vadd.f32 %v1046_v7, %v475_v1  ;;  %5816 = vmatpush3.bf16.msk.msra.mxu1 %vm6083_vm3, %v6088_v22 }
 0x10f   : > { %v4375_v16 = vrot.slane %v4374_v2, 4  ;;  %v4382_v30 = vsel %vm1321_vm4, %v1260_v6, -inf  ;;  %v1198_v20 = vadd.f32 %v1046_v7, %v476_v8  ;;  %v1263_v34 = vmax.f32 %v1199_v9, 0.0 }
 0x110   : > { %v4383_v58 = vmax.f32 %v4381_v0, %v4382_v30  ;;  %v6301_v3 = vmax.f32 %v1200_v10, 0.0  ;;  %v4367_v35 = vmax.f32 %v4365_v47, %v4366_v28  ;;  %5493 = vmatmul.mubr.msk.f32.gmra.mrb[6].mxu1 %vm1321_vm4, %v1258_v23  ;;  %5593 = vmatmul.mubr.msk.f32.gmra.mrb[10].mxu0 %vm1321_vm4, %v1258_v23  ;;  %v1261_v37 = vmax.f32 %v1197_v33, 0.0 }
 0x111   : > { %v4376_v19 = vmax.f32 %v4374_v2, %v4375_v16  ;;  %v1201_v38 = vadd.f32 %v1054_v12, %v479_v11  ;;  %5495 = vmatprep.mubr.msk.f32.mxu1 %vm1321_vm4, %v1259_v31  ;;  %5595 = vmatprep.mubr.msk.f32.mxu0 %vm1321_vm4, %v1259_v31  ;;  %v1262_v22 = vmax.f32 %v1198_v20, 0.0  ;;  %v4399_v0 = vsel %vm1321_vm4, %v1263_v34, -inf  ;;  %v481_v20 = vld [vmem:[%s6116_s12 + $0x60] sm:$0xff] }
 0x112   : > { %v4384_v1 = vrot.slane %v4383_v58, 4  ;;  %v4400_v47 = vsel %vm1321_vm4, %v6301_v3, -inf  ;;  %v4368_v7 = vrot.slane %v4367_v35, 2  ;;  %v4390_v23 = vsel %vm1321_vm4, %v1261_v37, -inf }
 0x113   : > { %v4377_v2 = vrot.slane %v4376_v19, 2  ;;  %v4401_v8 = vmax.f32 %v4399_v0, %v4400_v47  ;;  %v4391_v10 = vsel %vm1321_vm4, %v1262_v22, -inf  ;;  %v1265_v11 = vmax.f32 %v1201_v38, 0.0 }
 0x114   : > { %v4385_v9 = vmax.f32 %v4383_v58, %v4384_v1  ;;  %v1202_v28 = vadd.f32 %v1054_v12, %v480_v63  ;;  %v4369_v31 = vmax.f32 %v4367_v35, %v4368_v7  ;;  %5496 = vmatmul.mubr.msk.f32.gmra.mrb[8].mxu1 %vm1321_vm4, %v1260_v6  ;;  %5596 = vmatmul.mubr.msk.f32.gmra.mrb[12].mxu0 %vm1321_vm4, %v1260_v6  ;;  %v4489_v59 = vsel %vm1321_vm4, %v6193_v56, -inf }
 0x115   : > { %v4378_v16 = vmax.f32 %v4376_v19, %v4377_v2  ;;  %v4392_v30 = vmax.f32 %v4390_v23, %v4391_v10  ;;  %v4402_v33 = vrot.slane %v4401_v8, 4  ;;  %5498 = vmatprep.mubr.msk.f32.mxu1 %vm1321_vm4, %v1261_v37  ;;  %5598 = vmatprep.mubr.msk.f32.mxu0 %vm1321_vm4, %v1261_v37  ;;  %v4408_v58 = vsel %vm1321_vm4, %v1265_v11, -inf }
 0x116   : > { %v4386_v24 = vrot.slane %v4385_v9, 2  ;;  %v1266_v38 = vmax.f32 %v1202_v28, 0.0  ;;  %v1058_v12 = vrot.slane %v881_v45, %v6118_v36  ;;  %v4370_v6 = vrot.slane %v4369_v31, 1 }
 0x117   : > { %v4379_v35 = vrot.slane %v4378_v16, 1  ;;  %v4393_v19 = vrot.slane %v4392_v30, 4  ;;  %v6324_v63 = vmax.f32 %v4401_v8, %v4402_v33  ;;  %v4443_v10 = vmax.f32 %v6266_v4, %v4442_v60 }
 0x118   : > { %v4387_v1 = vmax.f32 %v4385_v9, %v4386_v24  ;;  %v4409_v0 = vsel %vm1321_vm4, %v1266_v38, -inf  ;;  %v1203_v47 = vadd.f32 %v1058_v12, %v481_v20  ;;  %v1204_v7 = vadd.f32 %v1058_v12, %v482_v25  ;;  %5499 = vmatmul.mubr.msk.f32.gmra.mrb[10].mxu1 %vm1321_vm4, %v1262_v22  ;;  %5599 = vmatmul.mubr.msk.f32.gmra.mrb[14].mxu0 %vm1321_vm4, %v1262_v22 }
 0x119   : > { %v6327_v37 = vmax.f32 %v4369_v31, %v4370_v6  ;;  %v6329_v2 = vmax.f32 %v4378_v16, %v4379_v35  ;;  %v4394_v23 = vmax.f32 %v4392_v30, %v4393_v19  ;;  %5501 = vmatprep.mubr.msk.f32.mxu1 %vm1321_vm4, %v1263_v34  ;;  %5601 = vmatprep.mubr.msk.f32.mxu0 %vm1321_vm4, %v1263_v34  ;;  %v7544_v30 = vrot.slane %v6221_v14, 4 }
 0x11a   : > { %v4388_v45 = vrot.slane %v4387_v1, 1  ;;  %v4410_v24 = vmax.f32 %v4408_v58, %v4409_v0  ;;  %v1267_v8 = vmax.f32 %v1203_v47, 0.0  ;;  %v1268_v25 = vmax.f32 %v1204_v7, 0.0 }
 0x11b   : > { %v4395_v9 = vrot.slane %v4394_v23, 2  ;;  %v4452_v22 = vmax.f32 %v6268_v5, %v4451_v13  ;;  %v4459_v28 = vmax.f32 %v6241_v26, %v4458_v39  ;;  %v4466_v33 = vmax.f32 %v6221_v14, %v7544_v30 }
 0x11c   : > { %v4411_v31 = vrot.slane %v4410_v24, 4  ;;  %v4417_v34 = vsel %vm1321_vm4, %v1267_v8, -inf  ;;  %v4418_v16 = vsel %vm1321_vm4, %v1268_v25, -inf  ;;  %5502 = vmatmul.mubr.msk.f32.gmra.mrb[12].mxu1 %vm1321_vm4, %v6301_v3  ;;  %5602 = vmatmul.mubr.msk.f32.gmra.mrb[16].mxu0 %vm1321_vm4, %v6301_v3  ;;  %v7545_v39 = vrot.slane %v6223_v15, 4 }
 0x11d   : > { %v4396_v4 = vmax.f32 %v4394_v23, %v4395_v9  ;;  %v4419_v5 = vmax.f32 %v4417_v34, %v4418_v16  ;;  %v4460_v26 = vrot.slane %v4459_v28, 1  ;;  %5504 = vmatprep.mubr.msk.f32.mxu1 %vm1321_vm4, %v1265_v11  ;;  %5604 = vmatprep.mubr.msk.f32.mxu0 %vm1321_vm4, %v1265_v11  ;;  %v4467_v13 = vrot.slane %v4466_v33, 2 }
 0x11e   : > { %v4475_v60 = vmax.f32 %v6223_v15, %v7545_v39  ;;  %v4482_v14 = vmax.f32 %v6227_v17, %v6231_v18  ;;  %v4490_v20 = vsel %vm1321_vm4, %v6195_v57, -inf  ;;  %v4498_v3 = vsel %vm1321_vm4, %v6197_v61, -inf }
 0x11f   : > { %v4461_v58 = vmax.f32 %v4459_v28, %v4460_v26  ;;  %v4491_v6 = vmax.f32 %v4489_v59, %v4490_v20  ;;  %v4499_v15 = vsel %vm1321_vm4, %v6199_v62, -inf  ;;  %v4468_v35 = vmax.f32 %v4466_v33, %v4467_v13 }
 0x120   : > { %v4476_v12 = vrot.slane %v4475_v60, 2  ;;  %v4483_v19 = vrot.slane %v4482_v14, 4  ;;  %v4500_v0 = vmax.f32 %v4498_v3, %v4499_v15  ;;  %v4833_v11 = vsel %vm4683_vm5, %v4452_v22, %v4443_v10  ;;  %5505 = vmatmul.mubr.msk.f32.gmra.mrb[14].mxu1 %vm1321_vm4, %v1266_v38  ;;  %5605 = vmatmul.mubr.msk.f32.gmra.mrb[18].mxu0 %vm1321_vm4, %v1266_v38 }
 0x121   : > { %v4492_v18 = vrot.slane %v4491_v6, 4  ;;  %v4834_v47 = vsel %vm4685_vm6, %v4461_v58, %v4833_v11  ;;  %v4389_v7 = vmax.f32 %v4387_v1, %v4388_v45  ;;  %5507 = vmatprep.mubr.msk.f32.mxu1 %vm1321_vm4, %v1267_v8  ;;  %5607 = vmatprep.mubr.msk.f32.mxu0 %vm1321_vm4, %v1267_v8  ;;  %v4469_v23 = vrot.slane %v4468_v35, 1 }
 0x122   : > { %v4477_v17 = vmax.f32 %v4475_v60, %v4476_v12  ;;  %v4484_v59 = vmax.f32 %v4482_v14, %v4483_v19  ;;  %v4501_v9 = vrot.slane %v4500_v0, 4  ;;  %v4397_v28 = vrot.slane %v4396_v4, 1 }
 0x123   : > { %v4493_v22 = vmax.f32 %v4491_v6, %v4492_v18  ;;  %v4404_v38 = vrot.slane %v6324_v63, 2  ;;  %v4412_v34 = vmax.f32 %v4410_v24, %v4411_v31  ;;  %v4470_v16 = vmax.f32 %v4468_v35, %v4469_v23 }
 0x124   : > { %v4478_v10 = vrot.slane %v4477_v17, 1  ;;  %v4485_v30 = vrot.slane %v4484_v59, 2  ;;  %v4502_v33 = vmax.f32 %v4500_v0, %v4501_v9  ;;  %v4398_v26 = vmax.f32 %v4396_v4, %v4397_v28  ;;  %5508 = vmatmul.mubr.msk.f32.gmra.mrb[16].mxu1 %vm1321_vm4, %v1268_v25  ;;  %5608 = vmatmul.mubr.msk.f32.gmra.mrb[20].mxu0 %vm1321_vm4, %v1268_v25 }
 0x125   : > { %v4494_v45 = vrot.slane %v4493_v22, 2  ;;  %v4405_v39 = vmax.f32 %v6324_v63, %v4404_v38  ;;  %v4413_v8 = vrot.slane %v4412_v34, 2  ;;  %v4835_v14 = vsel %vm4687_vm7, %v4470_v16, %v4834_v47  ;;  %5510 = vmatprep.mubr.msk.f32.mxu1 %vm1321_vm4, %v6273_v32  ;;  %5610 = vmatprep.mubr.msk.f32.mxu0 %vm1321_vm4, %v6273_v32 }
 0x126   : > { %v4479_v1 = vmax.f32 %v4477_v17, %v4478_v10  ;;  %v4486_v60 = vmax.f32 %v4484_v59, %v4485_v30  ;;  %v4503_v13 = vrot.slane %v4502_v33, 2  ;;  %v4420_v20 = vrot.slane %v4419_v5, 4 }
 0x127   : > { %v4495_v24 = vmax.f32 %v4493_v22, %v4494_v45  ;;  %v4406_v63 = vrot.slane %v4405_v39, 1  ;;  %v4414_v4 = vmax.f32 %v4412_v34, %v4413_v8  ;;  %v4426_v25 = vsel %vm1321_vm4, %v6273_v32, -inf }
 0x128   : > { %v4836_v31 = vsel %vm4689_vm8, %v4479_v1, %v4835_v14  ;;  %v4487_v3 = vrot.slane %v4486_v60, 1  ;;  %v4504_v58 = vmax.f32 %v4502_v33, %v4503_v13  ;;  %v4421_v12 = vmax.f32 %v4419_v5, %v4420_v20  ;;  %5511 = vmatmul.mubr.msk.f32.gmra.mrb[18].mxu1 %vm1321_vm4, %v6275_v27  ;;  %5611 = vmatmul.mubr.msk.f32.gmra.mrb[22].mxu0 %vm1321_vm4, %v6275_v27  ;;  %v518_v13 = vld [vmem:[%s6116_s12 + $0x188] sm:$0xff]  ;;  %v519_v14 = vld [vmem:[%s6116_s12 + $0x190] sm:$0xff] }
 0x129   : > { %v4496_v6 = vrot.slane %v4495_v24, 1  ;;  %v4407_v15 = vmax.f32 %v4405_v39, %v4406_v63  ;;  %v4415_v35 = vrot.slane %v4414_v4, 1  ;;  %v4427_v19 = vsel %vm1321_vm4, %v6275_v27, -inf  ;;  %5513 = vmatprep.mubr.msk.f32.mxu1 %vm1321_vm4, %v6169_v40  ;;  %5613 = vmatprep.mubr.msk.f32.mxu0 %vm1321_vm4, %v6169_v40 }
 0x12a   : > { %v4488_v0 = vmax.f32 %v4486_v60, %v4487_v3  ;;  %v4505_v11 = vrot.slane %v4504_v58, 1  ;;  %v4422_v17 = vrot.slane %v4421_v12, 2  ;;  %v4428_v18 = vmax.f32 %v4426_v25, %v4427_v19  ;;  %v517_v60 = vld [vmem:[%s6116_s12 + $0x180] sm:$0xff]  ;;  %v520_v3 = vld [vmem:[%s6116_s12 + $0x198] sm:$0xff] }
 0x12b   : > { %v4497_v32 = vmax.f32 %v4495_v24, %v4496_v6  ;;  %v4416_v5 = vmax.f32 %v4414_v4, %v4415_v35  ;;  %v4826_v47 = vsel %vm4683_vm5, %v6329_v2, %v6327_v37  ;;  %v982_v23 = vcombine.high %v6123_v43, %v6123_v43  ;;  %v524_v35 = vld [vmem:[%s6116_s12 + $0x1b8] sm:$0xff]  ;;  %v525_v19 = vld [vmem:[%s6116_s12 + $0x1c0] sm:$0xff] }
 0x12c   : > { %v4506_v27 = vmax.f32 %v4504_v58, %v4505_v11  ;;  %v4837_v59 = vsel %vm4691_vm9, %v4488_v0, %v4836_v31  ;;  %v4423_v9 = vmax.f32 %v4421_v12, %v4422_v17  ;;  %v4429_v28 = vrot.slane %v4428_v18, 4  ;;  %5514 = vmatmul.mubr.msk.f32.gmra.mrb[20].mxu1 %vm1321_vm4, %v6171_v41  ;;  %5614 = vmatmul.mubr.msk.f32.gmra.mrb[24].mxu0 %vm1321_vm4, %v6171_v41  ;;  %v521_v58 = vld [vmem:[%s6116_s12 + $0x1a0] sm:$0xff]  ;;  %v522_v12 = vld [vmem:[%s6116_s12 + $0x1a8] sm:$0xff] }
 0x12d   : > { %v4838_v10 = vsel %vm4693_vm10, %v4497_v32, %v4837_v59  ;;  %v4827_v22 = vsel %vm4685_vm6, %v4389_v7, %v4826_v47  ;;  %v989_v40 = vrot.slane %v6123_v43, %v6109_v29  ;;  %5516 = vmatprep.mubr.msk.f32.mxu1 %vm1321_vm4, %v6173_v42  ;;  %5616 = vmatprep.mubr.msk.f32.mxu0 %vm1321_vm4, %v6173_v42  ;;  %v527_v47 = vld [vmem:[%s6116_s12 + $0x1d0] sm:$0xff] }
 0x12e   : > { %v4839_v37 = vsel %vm4695_vm11, %v4506_v27, %v4838_v10  ;;  %v4424_v2 = vrot.slane %v4423_v9, 1  ;;  %v4430_v38 = vmax.f32 %v4428_v18, %v4429_v28  ;;  %v4828_v34 = vsel %vm4687_vm7, %v4398_v26, %v4827_v22  ;;  %v529_v28 = vld [vmem:[%s6116_s12 + $0x1e0] sm:$0xff]  ;;  %v530_v10 = vld [vmem:[%s6116_s12 + $0x1e8] sm:$0xff]  ;;  %v531_v22 = vld [vmem:[%s6116_s12 + $0x1f0] sm:$0xff] }
 0x12f   : > { %4856 = vrot.lane.b32.xlu1 %v4839_v37, %s5940_s13  ;;  %v4829_v41 = vsel %vm4689_vm8, %v4407_v15, %v4828_v34  ;;  %v996_v7 = vrot.slane %v982_v23, %v6109_v29  ;;  %v997_v43 = vcombine.high %v989_v40, %v989_v40  ;;  %v1005_v16 = vrot.slane %v989_v40, %v6109_v29  ;;  %v523_v15 = vld [vmem:[%s6116_s12 + $0x1b0] sm:$0xff]  ;;  %v528_v23 = vld [vmem:[%s6116_s12 + $0x1d8] sm:$0xff] }
 0x130   : > { %v4425_v30 = vmax.f32 %v4423_v9, %v4424_v2  ;;  %v4431_v33 = vrot.slane %v4430_v38, 2  ;;  %v4830_v26 = vsel %vm4691_vm9, %v4416_v5, %v4829_v41  ;;  %5517 = vmatmul.mubr.msk.f32.gmra.mrb[22].mxu1 %vm1321_vm4, %v6175_v44  ;;  %5617 = vmatmul.mubr.msk.f32.gmra.mrb[26].mxu0 %vm1321_vm4, %v6175_v44  ;;  %v933_v44 = vcombine.high %v6131_v48, %v6131_v48  ;;  %v526_v5 = vld [vmem:[%s6116_s12 + $0x1c8] sm:$0xff] }
 0x131   : > { %v998_v42 = vcombine.high %v996_v7, %v996_v7  ;;  %v1012_v1 = vrot.slane %v996_v7, %v6109_v29  ;;  %v1019_v45 = vrot.slane %v997_v43, %v6109_v29  ;;  %5519 = vmatprep.mubr.msk.f32.mxu1 %vm1321_vm4, %v6177_v46  ;;  %5619 = vmatprep.mubr.msk.f32.mxu0 %vm1321_vm4, %v6177_v46 }
 0x132   : > { %v4432_v39 = vmax.f32 %v4430_v38, %v4431_v33  ;;  %v1027_v8 = vcombine.high %v1005_v16, %v1005_v16  ;;  %v1130_v63 = vrot.slane %v1005_v16, %v6118_v36  ;;  %v4831_v46 = vsel %vm4693_vm10, %v4425_v30, %v4830_v26 }
 0x133   : > { %v1026_v20 = vrot.slane %v998_v42, %v6109_v29  ;;  %v1028_v24 = vcombine.high %v1012_v1, %v1012_v1  ;;  %v1029_v31 = vcombine.high %v1019_v45, %v1019_v45  ;;  %v1134_v25 = vrot.slane %v1019_v45, %v6118_v36 }
 0x134   : > { %v4433_v4 = vrot.slane %v4432_v39, 1  ;;  %v1138_v6 = vrot.slane %v1027_v8, %v6118_v36  ;;  %v1146_v17 = vrot.slane %v1012_v1, %v6118_v36  ;;  %5520 = vmatmul.mubr.msk.f32.gmra.mrb[24].mxu1 %vm1321_vm4, %v6179_v49  ;;  %v1239_v59 = vadd.f32 %v1130_v63, %v517_v60  ;;  %5620 = vmatmul.mubr.msk.f32.gmra.mrb[28].mxu0 %vm1321_vm4, %v6179_v49  ;;  %v532_v49 = vld [vmem:[%s6116_s12 + $0x1f8] sm:$0xff] }
 0x135   : > { %v1030_v0 = vcombine.high %v1026_v20, %v1026_v20  ;;  %v1142_v11 = vrot.slane %v1029_v31, %v6118_v36  ;;  %v1150_v18 = vrot.slane %v1026_v20, %v6118_v36  ;;  %v1154_v27 = vrot.slane %v1028_v24, %v6118_v36  ;;  %5522 = vmatprep.mubr.msk.f32.mxu1 %vm1321_vm4, %v6181_v50 }
 0x136   : > { %v4434_v32 = vmax.f32 %v4432_v39, %v4433_v4  ;;  %v1240_v9 = vadd.f32 %v1130_v63, %v518_v13  ;;  %v1241_v37 = vadd.f32 %v1134_v25, %v519_v14  ;;  %v1242_v2 = vadd.f32 %v1134_v25, %v520_v3  ;;  %5622 = vmatprep.mubr.msk.f32.mxu0 %vm1321_vm4, %v6181_v50 }
 0x137   : > { %v1158_v40 = vrot.slane %v1030_v0, %v6118_v36  ;;  %v1243_v38 = vadd.f32 %v1138_v6, %v521_v58  ;;  %v1244_v41 = vadd.f32 %v1138_v6, %v522_v12  ;;  %v1245_v7 = vadd.f32 %v1142_v11, %v523_v15 }
 0x138   : > { %v4832_v34 = vsel %vm4695_vm11, %v4434_v32, %v4831_v46  ;;  %v1246_v43 = vadd.f32 %v1142_v11, %v524_v35  ;;  %v1247_v16 = vadd.f32 %v1146_v17, %v525_v19  ;;  %v1248_v30 = vadd.f32 %v1146_v17, %v526_v5  ;;  %5523 = vmatmul.mubr.msk.f32.gmra.mrb[26].mxu1 %vm1321_vm4, %v6183_v51 }
 0x139   : > { %4854 = vrot.lane.b32.xlu0 %v4832_v34, %s5940_s13  ;;  %v1249_v33 = vadd.f32 %v1150_v18, %v527_v47  ;;  %v1250_v26 = vadd.f32 %v1150_v18, %v528_v23  ;;  %v1251_v42 = vadd.f32 %v1154_v27, %v529_v28  ;;  %v1252_v1 = vadd.f32 %v1154_v27, %v530_v10 }
 0x13a   : > { %v1253_v45 = vadd.f32 %v1158_v40, %v531_v22  ;;  %v6469_v39 = vmax.f32 %v1239_v59, 0.0  ;;  %5623 = vmatmul.mubr.msk.f32.gmra.mrb[30].mxu0 %vm1321_vm4, %v6183_v51  ;;  %v6475_v8 = vmax.f32 %v1240_v9, 0.0  ;;  %v6477_v50 = vmax.f32 %v1241_v37, 0.0  ;;  %5525 = vmatprep.mubr.msk.f32.mxu1 %vm1321_vm4, %v6185_v52 }
 0x13b   : > { %v6479_v60 = vmax.f32 %v1242_v2, 0.0  ;;  %v6481_v13 = vmax.f32 %v1243_v38, 0.0  ;;  %5625 = vmatprep.mubr.msk.f32.mxu0 %vm1321_vm4, %v6185_v52  ;;  %v1254_v14 = vadd.f32 %v1158_v40, %v532_v49  ;;  %v6487_v20 = vmax.f32 %v1244_v41, 0.0 }
 0x13c   : > { %v6489_v24 = vmax.f32 %v1245_v7, 0.0  ;;  %v6491_v51 = vmax.f32 %v1246_v43, 0.0  ;;  %v6493_v31 = vmax.f32 %v1247_v16, 0.0  ;;  %v6495_v63 = vmax.f32 %v1248_v30, 0.0  ;;  %5526 = vmatmul.mubr.msk.f32.gmra.mrb[28].mxu1 %vm1321_vm4, %v6187_v53  ;;  %v501_v30 = vld [vmem:[%s6116_s12 + $0x100] sm:$0xff] }
 0x13d   : > { %v6497_v4 = vmax.f32 %v1249_v33, 0.0  ;;  %v6499_v46 = vmax.f32 %v1250_v26, 0.0  ;;  %v6501_v3 = vmax.f32 %v1251_v42, 0.0  ;;  %v6503_v58 = vmax.f32 %v1252_v1, 0.0  ;;  %5528 = vmatprep.mubr.msk.f32.mxu1 %vm1321_vm4, %v6189_v54 }
 0x13e   : > { %v6505_v52 = vmax.f32 %v1253_v45, 0.0  ;;  %v4579_v12 = vsel %vm1321_vm4, %v6469_v39, -inf  ;;  %5626 = vmatmul.mubr.msk.f32.gmra.mrb[32].mxu0 %vm1321_vm4, %v6187_v53  ;;  %v4580_v25 = vsel %vm1321_vm4, %v6475_v8, -inf  ;;  %v4588_v6 = vsel %vm1321_vm4, %v6477_v50, -inf }
 0x13f   : > { %v4589_v15 = vsel %vm1321_vm4, %v6479_v60, -inf  ;;  %v4597_v35 = vsel %vm1321_vm4, %v6481_v13, -inf  ;;  %5628 = vmatprep.mubr.msk.f32.mxu0 %vm1321_vm4, %v6189_v54  ;;  %v4581_v19 = vmax.f32 %v4579_v12, %v4580_v25  ;;  %v4598_v0 = vsel %vm1321_vm4, %v6487_v20, -inf  ;;  %v510_v12 = vld [vmem:[%s6116_s12 + $0x148] sm:$0xff] }
 0x140   : > { %v4590_v53 = vmax.f32 %v4588_v6, %v4589_v15  ;;  %v4606_v11 = vsel %vm1321_vm4, %v6489_v24, -inf  ;;  %v4599_v17 = vmax.f32 %v4597_v35, %v4598_v0  ;;  %v4607_v18 = vsel %vm1321_vm4, %v6491_v51, -inf  ;;  %5529 = vmatmul.mubr.msk.f32.gmra.mrb[30].mxu1 %vm1321_vm4, %v6191_v55  ;;  %v502_v35 = vld [vmem:[%s6116_s12 + $0x108] sm:$0xff]  ;;  %v512_v0 = vld [vmem:[%s6116_s12 + $0x158] sm:$0xff] }
 0x141   : > { %v4615_v32 = vsel %vm1321_vm4, %v6493_v31, -inf  ;;  %v4616_v5 = vsel %vm1321_vm4, %v6495_v63, -inf  ;;  %v4582_v47 = vrot.slane %v4581_v19, 4  ;;  %v4608_v23 = vmax.f32 %v4606_v11, %v4607_v18  ;;  %5531 = vmatprep.mubr.msk.f32.mxu1 %vm1321_vm4, %v6193_v56  ;;  %v513_v11 = vld [vmem:[%s6116_s12 + $0x160] sm:$0xff] }
 0x142   : > { %v4591_v54 = vrot.slane %v4590_v53, 4  ;;  %v4617_v27 = vmax.f32 %v4615_v32, %v4616_v5  ;;  %5629 = vmatmul.mubr.msk.f32.gmra.mrb[34].mxu0 %vm1321_vm4, %v6191_v55  ;;  %v6539_v59 = vmax.f32 %v1254_v14, 0.0  ;;  %v4600_v9 = vrot.slane %v4599_v17, 4  ;;  %v509_v14 = vld [vmem:[%s6116_s12 + $0x140] sm:$0xff]  ;;  %v514_v5 = vld [vmem:[%s6116_s12 + $0x168] sm:$0xff] }
 0x143   : > { %v6543_v28 = vsel %vm1321_vm4, %v6497_v4, -inf  ;;  %v940_v10 = vrot.slane %v6131_v48, %v6109_v29  ;;  %5631 = vmatprep.mubr.msk.f32.mxu0 %vm1321_vm4, %v6193_v56  ;;  %v4583_v22 = vmax.f32 %v4581_v19, %v4582_v47  ;;  %v4609_v37 = vrot.slane %v4608_v23, 4 }
 0x144   : > { %v4592_v40 = vmax.f32 %v4590_v53, %v4591_v54  ;;  %v4618_v55 = vrot.slane %v4617_v27, 4  ;;  %v6551_v2 = vmax.f32 %v4599_v17, %v4600_v9  ;;  %v947_v38 = vrot.slane %v933_v44, %v6109_v29  ;;  %5532 = vmatmul.mubr.msk.f32.gmra.mrb[32].mxu1 %vm1321_vm4, %v6195_v57  ;;  %v511_v53 = vld [vmem:[%s6116_s12 + $0x150] sm:$0xff] }
 0x145   : > { %v948_v34 = vcombine.high %v940_v10, %v940_v10  ;;  %v956_v41 = vrot.slane %v940_v10, %v6109_v29  ;;  %v4584_v7 = vrot.slane %v4583_v22, 2  ;;  %v6560_v56 = vsel %vm1321_vm4, %v6499_v46, -inf  ;;  %5534 = vmatprep.mubr.msk.f32.mxu1 %vm1321_vm4, %v6197_v61  ;;  %v503_v9 = vld [vmem:[%s6116_s12 + $0x110] sm:$0xff] }
 0x146   : > { %v4593_v43 = vrot.slane %v4592_v40, 2  ;;  %5632 = vmatmul.mubr.msk.f32.gmra.mrb[36].mxu0 %vm1321_vm4, %v6195_v57  ;;  %v6566_v49 = vmax.f32 %v4608_v23, %v4609_v37  ;;  %v949_v48 = vcombine.high %v947_v38, %v947_v38  ;;  %v963_v44 = vrot.slane %v947_v38, %v6109_v29  ;;  %v515_v10 = vld [vmem:[%s6116_s12 + $0x170] sm:$0xff] }
 0x147   : > { %v6570_v16 = vrot.slane %v948_v34, %v6109_v29  ;;  %v6575_v33 = vmax.f32 %v4617_v27, %v4618_v55  ;;  %v6577_v26 = vmax.f32 %v4583_v22, %v4584_v7  ;;  %v4602_v57 = vrot.slane %v6551_v2, 2  ;;  %v516_v22 = vld [vmem:[%s6116_s12 + $0x178] sm:$0xff] }
 0x148   : > { %v978_v42 = vcombine.high %v956_v41, %v956_v41  ;;  %v1098_v1 = vrot.slane %v956_v41, %v6118_v36  ;;  %v6581_v45 = vmax.f32 %v4592_v40, %v4593_v43  ;;  %v977_v25 = vrot.slane %v949_v48, %v6109_v29  ;;  %5535 = vmatmul.mubr.msk.f32.gmra.mrb[34].mxu1 %vm1321_vm4, %v6199_v62 }
 0x149   : > { %v979_v6 = vcombine.high %v963_v44, %v963_v44  ;;  %v980_v15 = vcombine.high %v6570_v16, %v6570_v16  ;;  %v4586_v19 = vrot.slane %v6577_v26, 1  ;;  %v1102_v17 = vrot.slane %v6570_v16, %v6118_v36 }
 0x14a   : > { %v1114_v18 = vrot.slane %v963_v44, %v6118_v36  ;;  %v1223_v32 = vadd.f32 %v1098_v1, %v501_v30  ;;  %v981_v47 = vcombine.high %v977_v25, %v977_v25  ;;  %v1106_v54 = vrot.slane %v978_v42, %v6118_v36 }
 0x14b   : > { %v1118_v23 = vrot.slane %v977_v25, %v6118_v36  ;;  %v1122_v27 = vrot.slane %v979_v6, %v6118_v36  ;;  %v1224_v38 = vadd.f32 %v1098_v1, %v502_v35  ;;  %v1225_v30 = vadd.f32 %v1102_v17, %v503_v9  ;;  %v504_v25 = vld [vmem:[%s6116_s12 + $0x118] sm:$0xff] }
 0x14c   : > { %v1231_v40 = vadd.f32 %v1114_v18, %v509_v14  ;;  %v1232_v37 = vadd.f32 %v1114_v18, %v510_v12  ;;  %v6605_v55 = vmax.f32 %v1223_v32, 0.0  ;;  %v1126_v34 = vrot.slane %v981_v47, %v6118_v36  ;;  %v506_v18 = vld [vmem:[%s6116_s12 + $0x128] sm:$0xff] }
 0x14d   : > { %v1233_v41 = vadd.f32 %v1118_v23, %v511_v53  ;;  %v1234_v7 = vadd.f32 %v1118_v23, %v512_v0  ;;  %v1235_v43 = vadd.f32 %v1122_v27, %v513_v11  ;;  %v1236_v48 = vadd.f32 %v1122_v27, %v514_v5  ;;  %v505_v11 = vld [vmem:[%s6116_s12 + $0x120] sm:$0xff] }
 0x14e   : > { %v6608_v44 = vmax.f32 %v1231_v40, 0.0  ;;  %v6610_v16 = vmax.f32 %v1232_v37, 0.0  ;;  %5537 = vmatprep.mubr.msk.f32.mxu1 %vm1321_vm4, %v6605_v55  ;;  %v1237_v42 = vadd.f32 %v1126_v34, %v515_v10  ;;  %v1238_v14 = vadd.f32 %v1126_v34, %v516_v22  ;;  %v507_v40 = vld [vmem:[%s6116_s12 + $0x130] sm:$0xff] }
 0x14f   : > { %v6614_v12 = vmax.f32 %v1233_v41, 0.0  ;;  %v6616_v1 = vmax.f32 %v1234_v7, 0.0  ;;  %v6619_v6 = vmax.f32 %v1235_v43, 0.0  ;;  %v4507_v0 = vsel %vm1321_vm4, %v6605_v55, -inf  ;;  %v508_v43 = vld [vmem:[%s6116_s12 + $0x138] sm:$0xff] }
 0x150   : > { %v4543_v35 = vsel %vm1321_vm4, %v6608_v44, -inf  ;;  %v4544_v53 = vsel %vm1321_vm4, %v6610_v16, -inf  ;;  %v6629_v32 = vmax.f32 %v1236_v48, 0.0  ;;  %v6631_v5 = vmax.f32 %v1237_v42, 0.0 }
 0x151   : > { %v6633_v47 = vmax.f32 %v1238_v14, 0.0  ;;  %v6635_v23 = vmax.f32 %v4543_v35, %v4544_v53  ;;  %v6639_v27 = vsel %vm1321_vm4, %v6614_v12, -inf  ;;  %v6641_v9 = vmax.f32 %v1224_v38, 0.0 }
 0x152   : > { %v6643_v10 = vmax.f32 %v1225_v30, 0.0  ;;  %v1226_v22 = vadd.f32 %v1102_v17, %v504_v25  ;;  %v6648_v37 = vsel %vm1321_vm4, %v6616_v1, -inf  ;;  %v1227_v34 = vadd.f32 %v1106_v54, %v505_v11 }
 0x153   : > { %v1228_v41 = vadd.f32 %v1106_v54, %v506_v18  ;;  %v1110_v7 = vrot.slane %v980_v15, %v6118_v36  ;;  %5538 = vmatmul.mubr.msk.f32.gmra.mrb[36].mxu1 %vm1321_vm4, %v6641_v9  ;;  %v4508_v38 = vsel %vm1321_vm4, %v6641_v9, -inf  ;;  %v4595_v53 = vrot.slane %v6581_v45, 1 }
 0x154   : > { %7546 = vst [vmem:[#allocation4_spill] sm:$0xff] %v6643_v10  ;;  %v4516_v17 = vsel %vm1321_vm4, %v6643_v10, -inf  ;;  %v6659_v30 = vmax.f32 %v1226_v22, 0.0  ;;  %v4509_v42 = vmax.f32 %v4507_v0, %v4508_v38  ;;  %5540 = vmatprep.mubr.msk.f32.mxu1 %vm1321_vm4, %v6643_v10  ;;  %v6663_v54 = vmax.f32 %v1227_v34, 0.0 }
 0x155   : > { %v6665_v15 = vmax.f32 %v1228_v41, 0.0  ;;  %v1229_v14 = vadd.f32 %v1110_v7, %v507_v40  ;;  %v1230_v35 = vadd.f32 %v1110_v7, %v508_v43  ;;  %v4603_v11 = vmax.f32 %v6551_v2, %v4602_v57 }
 0x156   : > { %7547 = vst [vmem:[#allocation5_spill] sm:$0xff] %v6659_v30  ;;  %7548 = vst [vmem:[#allocation6_spill] sm:$0xff] %v6663_v54  ;;  %v4517_v25 = vsel %vm1321_vm4, %v6659_v30, -inf  ;;  %v4510_v18 = vrot.slane %v4509_v42, 4  ;;  %v4525_v22 = vsel %vm1321_vm4, %v6663_v54, -inf  ;;  %v4587_v2 = vmax.f32 %v6577_v26, %v4586_v19 }
 0x157   : > { %7549 = vst [vmem:[#allocation7_spill] sm:$0xff] %v6665_v15  ;;  %v4518_v0 = vmax.f32 %v4516_v17, %v4517_v25  ;;  %v4526_v34 = vsel %vm1321_vm4, %v6665_v15, -inf  ;;  %5541 = vmatmul.mubr.msk.f32.gmra.mrb[38].mxu1 %vm1321_vm4, %v6659_v30  ;;  %v6679_v41 = vmax.f32 %v1229_v14, 0.0  ;;  %v6681_v7 = vmax.f32 %v1230_v35, 0.0 }
 0x158   : > { %v4527_v40 = vmax.f32 %v4525_v22, %v4526_v34  ;;  %v4511_v57 = vmax.f32 %v4509_v42, %v4510_v18  ;;  %5543 = vmatprep.mubr.msk.f32.mxu1 %vm1321_vm4, %v6663_v54  ;;  %v4596_v38 = vmax.f32 %v6581_v45, %v4595_v53  ;;  %v4611_v17 = vrot.slane %v6566_v49, 2 }
 0x159   : > { %7550 = vst [vmem:[#allocation8_spill] sm:$0xff] %v6679_v41  ;;  %v4519_v43 = vrot.slane %v4518_v0, 4  ;;  %v4534_v14 = vsel %vm1321_vm4, %v6679_v41, -inf  ;;  %v4535_v35 = vsel %vm1321_vm4, %v6681_v7, -inf  ;;  %v4620_v22 = vrot.slane %v6575_v33, 2 }
 0x15a   : > { %v4528_v25 = vrot.slane %v4527_v40, 4  ;;  %v4512_v34 = vrot.slane %v4511_v57, 2  ;;  %v4536_v19 = vmax.f32 %v4534_v14, %v4535_v35  ;;  %v4604_v42 = vrot.slane %v4603_v11, 1 }
 0x15b   : > { %v4520_v26 = vmax.f32 %v4518_v0, %v4519_v43  ;;  %5544 = vmatmul.mubr.msk.f32.gmra.mrb[40].mxu1 %vm1321_vm4, %v6665_v15  ;;  %v4612_v45 = vmax.f32 %v6566_v49, %v4611_v17  ;;  %v4621_v53 = vmax.f32 %v6575_v33, %v4620_v22  ;;  %v4626_v48 = vmax.f32 %v6543_v28, %v6560_v56 }
 0x15c   : > { %v4529_v18 = vmax.f32 %v4527_v40, %v4528_v25  ;;  %v4513_v36 = vmax.f32 %v4511_v57, %v4512_v34  ;;  %5546 = vmatprep.mubr.msk.f32.mxu1 %vm1321_vm4, %v6679_v41  ;;  %v4537_v54 = vrot.slane %v4536_v19, 4  ;;  %v4633_v0 = vsel %vm1321_vm4, %v6501_v3, -inf }
 0x15d   : > { %v4521_v29 = vrot.slane %v4520_v26, 2  ;;  %v4613_v14 = vrot.slane %v4612_v45, 1  ;;  %v4622_v35 = vrot.slane %v4621_v53, 1  ;;  %v4627_v40 = vrot.slane %v4626_v48, 4 }
 0x15e   : > { %v4530_v43 = vrot.slane %v4529_v18, 2  ;;  %v4514_v25 = vrot.slane %v4513_v36, 1  ;;  %v4538_v17 = vmax.f32 %v4536_v19, %v4537_v54  ;;  %v4634_v33 = vsel %vm1321_vm4, %v6503_v58, -inf }
 0x15f   : > { %v4522_v49 = vmax.f32 %v4520_v26, %v4521_v29  ;;  %5547 = vmatmul.mubr.msk.f32.gmra.mrb[42].mxu1 %vm1321_vm4, %v6681_v7  ;;  %v4605_v56 = vmax.f32 %v4603_v11, %v4604_v42  ;;  %v4614_v57 = vmax.f32 %v4612_v45, %v4613_v14  ;;  %v4628_v22 = vmax.f32 %v4626_v48, %v4627_v40 }
 0x160   : > { %v4531_v28 = vmax.f32 %v4529_v18, %v4530_v43  ;;  %v4539_v41 = vrot.slane %v4538_v17, 2  ;;  %v4623_v15 = vmax.f32 %v4621_v53, %v4622_v35  ;;  %v4635_v30 = vmax.f32 %v4633_v0, %v4634_v33  ;;  %5549 = vmatprep.mubr.msk.f32.mxu1 %vm1321_vm4, %v6608_v44 }
 0x161   : > { %v4523_v34 = vrot.slane %v4522_v49, 1  ;;  %v4515_v10 = vmax.f32 %v4513_v36, %v4514_v25  ;;  %v4629_v29 = vrot.slane %v4628_v22, 2  ;;  %v4642_v54 = vsel %vm1321_vm4, %v6505_v52, -inf }
 0x162   : > { %v4643_v26 = vsel %vm1321_vm4, %v6539_v59, -inf  ;;  %v4532_v19 = vrot.slane %v4531_v28, 1  ;;  %v4540_v18 = vmax.f32 %v4538_v17, %v4539_v41  ;;  %v4636_v11 = vrot.slane %v4635_v30, 4 }
 0x163   : > { %v4644_v42 = vmax.f32 %v4642_v54, %v4643_v26  ;;  %v4524_v48 = vmax.f32 %v4522_v49, %v4523_v34  ;;  %v4630_v45 = vmax.f32 %v4628_v22, %v4629_v29  ;;  %v4847_v53 = vsel %vm4683_vm5, %v4596_v38, %v4587_v2  ;;  %5550 = vmatmul.mubr.msk.f32.gmra.mrb[44].mxu1 %vm1321_vm4, %v6610_v16 }
 0x164   : > { %v7551_v0 = vrot.slane %v6635_v23, 4  ;;  %v4637_v36 = vmax.f32 %v4635_v30, %v4636_v11  ;;  %v4848_v35 = vsel %vm4685_vm6, %v4605_v56, %v4847_v53  ;;  %v4541_v40 = vrot.slane %v4540_v18, 1  ;;  %5552 = vmatprep.mubr.msk.f32.mxu1 %vm1321_vm4, %v6614_v12  ;;  %v2392_v11 = vld [vmem:[%s7526_s7 + $0x8] sm:$0xf] }
 0x165   : > { %v4645_v14 = vrot.slane %v4644_v42, 4  ;;  %v4631_v41 = vrot.slane %v4630_v45, 1  ;;  %v4849_v25 = vsel %vm4687_vm7, %v4614_v57, %v4848_v35  ;;  %v4554_v2 = vmax.f32 %v6639_v27, %v6648_v37 }
 0x166   : > { %v4547_v43 = vmax.f32 %v6635_v23, %v7551_v0  ;;  %v4638_v38 = vrot.slane %v4637_v36, 2  ;;  %v4850_v17 = vsel %vm4689_vm8, %v4623_v15, %v4849_v25  ;;  %v4533_v33 = vmax.f32 %v4531_v28, %v4532_v19  ;;  %v2391_v19 = vld [vmem:[%s7526_s7] sm:$0xff] }
 0x167   : > { %v4646_v23 = vmax.f32 %v4644_v42, %v4645_v14  ;;  %v4632_v30 = vmax.f32 %v4630_v45, %v4631_v41  ;;  %v4555_v34 = vrot.slane %v4554_v2, 4  ;;  %v4561_v56 = vsel %vm1321_vm4, %v6619_v6, -inf  ;;  %5553 = vmatmul.mubr.msk.f32.gmra.mrb[46].mxu1 %vm1321_vm4, %v6616_v1 }
 0x168   : > { %v4548_v49 = vrot.slane %v4547_v43, 2  ;;  %v4639_v29 = vmax.f32 %v4637_v36, %v4638_v38  ;;  %v4562_v54 = vsel %vm1321_vm4, %v6629_v32, -inf  ;;  %v4570_v27 = vsel %vm1321_vm4, %v6631_v5, -inf  ;;  %5555 = vmatprep.mubr.msk.f32.mxu1 %vm1321_vm4, %v6619_v6 }
 0x169   : > { %v4647_v57 = vrot.slane %v4646_v23, 2  ;;  %v4542_v37 = vmax.f32 %v4540_v18, %v4541_v40  ;;  %v4556_v28 = vmax.f32 %v4554_v2, %v4555_v34  ;;  %v4563_v26 = vmax.f32 %v4561_v56, %v4562_v54 }
 0x16a   : > { %v4549_v22 = vmax.f32 %v4547_v43, %v4548_v49  ;;  %v4640_v42 = vrot.slane %v4639_v29, 1  ;;  %v4571_v53 = vsel %vm1321_vm4, %v6633_v47, -inf  ;;  %v4840_v0 = vsel %vm4683_vm5, %v4524_v48, %v4515_v10  ;;  %v6753_v49 = vpop.f32.mrb[0].mxu1 }
 0x16b   : > { %v4648_v45 = vmax.f32 %v4646_v23, %v4647_v57  ;;  %v4851_v18 = vsel %vm4691_vm9, %v4632_v30, %v4850_v17  ;;  %v4557_v43 = vrot.slane %v4556_v28, 2  ;;  %v4564_v36 = vrot.slane %v4563_v26, 4  ;;  %5556 = vmatmul.mubr.msk.f32.gmra.mrb[48].mxu1 %vm1321_vm4, %v6629_v32  ;;  %v6755_v23 = vpop.f32.mrb[1].mxu1 }
 0x16c   : > { %v4550_v15 = vrot.slane %v4549_v22, 1  ;;  %v4572_v14 = vmax.f32 %v4570_v27, %v4571_v53  ;;  %v4641_v35 = vmax.f32 %v4639_v29, %v4640_v42  ;;  %v4841_v41 = vsel %vm4685_vm6, %v4533_v33, %v4840_v0  ;;  %5558 = vmatprep.mubr.msk.f32.mxu1 %vm1321_vm4, %v6631_v5  ;;  %v5472_v33 = vpop.f32.mrb[2].mxu1 }
 0x16d   : > { %v4649_v40 = vrot.slane %v4648_v45, 1  ;;  %v5809_v25 = vpack.c.bf16 %v2392_v11, %v2391_v19  ;;  %v4558_v10 = vmax.f32 %v4556_v28, %v4557_v43  ;;  %v4565_v48 = vmax.f32 %v4563_v26, %v4564_v36  ;;  %v727_v54 = vpop.f32.mrb[3].mxu1 }
 0x16e   : > { %v4551_v2 = vmax.f32 %v4549_v22, %v4550_v15  ;;  %v4573_v38 = vrot.slane %v4572_v14, 4  ;;  %v4852_v30 = vsel %vm4693_vm10, %v4641_v35, %v4851_v18  ;;  %v4842_v34 = vsel %vm4687_vm7, %v4542_v37, %v4841_v41  ;;  %v6768_v22 = vld [vmem:[%s7525_s6] ss:$0 sm:$0xff]  ;;  %v7553_v35 = vld [vmem:[#allocation5_spill] sm:$0xff]  ;;  %v7555_v41 = vld [vmem:[#allocation7_spill] sm:$0xff] }
 0x16f   : > { %v4650_v17 = vmax.f32 %v4648_v45, %v4649_v40  ;;  %5811 = vmatprep.subr.msk.bf16.mxu0 %vm6083_vm3, %v5809_v25  ;;  %v4559_v56 = vrot.slane %v4558_v10, 1  ;;  %v4566_v29 = vrot.slane %v4565_v48, 2  ;;  %5559 = vmatmul.mubr.msk.f32.gmra.mrb[50].mxu1 %vm1321_vm4, %v6633_v47  ;;  %v6774_v37 = vadd.f32 %v5472_v33, %v6768_v22  ;;  %v7554_v40 = vld [vmem:[#allocation6_spill] sm:$0xff] }
 0x170   : > { %v4574_v57 = vmax.f32 %v4572_v14, %v4573_v38  ;;  %5814 = vmatpush3.bf16.msk.msra.mxu0 %vm6083_vm3, %v5809_v25  ;;  %5561 = vmatprep.mubr.msk.f32.mxu1 %vm1321_vm4, %v6469_v39  ;;  %v4843_v26 = vsel %vm4689_vm8, %v4551_v2, %v4842_v34  ;;  %v6784_v45 = vadd.f32 %v6768_v22, %v727_v54  ;;  %v7552_v14 = vld [vmem:[#allocation4_spill] sm:$0xff] }
 0x171   : > { %v4853_v27 = vsel %vm4695_vm11, %v4650_v17, %v4852_v30  ;;  %v4560_v15 = vmax.f32 %v4558_v10, %v4559_v56  ;;  %v4567_v28 = vmax.f32 %v4565_v48, %v4566_v29  ;;  %v723_v25 = vadd.f32 %v6753_v49, %v6768_v22 }
 0x172   : > { %4860 = vrot.lane.b32.xlu1 %v4853_v27, %s5940_s13  ;;  %v4575_v21 = vrot.slane %v4574_v57, 2 }
 0x173   : > { %v4568_v19 = vrot.slane %v4567_v28, 1  ;;  %5562 = vmatmul.mubr.msk.f32.gmra.mrb[52].mxu1 %vm1321_vm4, %v6475_v8  ;;  %v4844_v42 = vsel %vm4691_vm9, %v4560_v15, %v4843_v26 }
 0x174   : > { %v4576_v11 = vmax.f32 %v4574_v57, %v4575_v21  ;;  %5564 = vmatprep.mubr.msk.f32.mxu1 %vm1321_vm4, %v6477_v50 }
 0x175   : > { %v4569_v53 = vmax.f32 %v4567_v28, %v4568_v19 }
 0x176   : > { %v4577_v0 = vrot.slane %v4576_v11, 1 }
 0x177   : > { %v4845_v43 = vsel %vm4693_vm10, %v4569_v53, %v4844_v42  ;;  %5565 = vmatmul.mubr.msk.f32.gmra.mrb[54].mxu1 %vm1321_vm4, %v6479_v60 }
 0x178   : > { %v4578_v18 = vmax.f32 %v4576_v11, %v4577_v0  ;;  %5567 = vmatprep.mubr.msk.f32.mxu1 %vm1321_vm4, %v6481_v13 }
 0x17a   : > { %v4846_v36 = vsel %vm4695_vm11, %v4578_v18, %v4845_v43 }
 0x17b   : > { %4858 = vrot.lane.b32.xlu0 %v4846_v36, %s5940_s13  ;;  %5568 = vmatmul.mubr.msk.f32.gmra.mrb[56].mxu1 %vm1321_vm4, %v6487_v20  ;;  %s7317_s13 = scalar_lea.vmem %s7530_s11, %s5227_s27 }
 0x17c   : > { %5570 = vmatprep.mubr.msk.f32.mxu1 %vm1321_vm4, %v6489_v24 }
 0x17f   : > { %5571 = vmatmul.mubr.msk.f32.gmra.mrb[58].mxu1 %vm1321_vm4, %v6491_v51 }
 0x180   : > { %5573 = vmatprep.mubr.msk.f32.mxu1 %vm1321_vm4, %v6493_v31 }
 0x183   : > { %5574 = vmatmul.mubr.msk.f32.gmra.mrb[60].mxu1 %vm1321_vm4, %v6495_v63 }
 0x184   : > { %5576 = vmatprep.mubr.msk.f32.mxu1 %vm1321_vm4, %v6497_v4 }
 0x187   : > { %5577 = vmatmul.mubr.msk.f32.gmra.mrb[62].mxu1 %vm1321_vm4, %v6499_v46 }
 0x188   : > { %5579 = vmatprep.mubr.msk.f32.mxu1 %vm1321_vm4, %v6501_v3 }
 0x18b   : > { %5580 = vmatmul.mubr.msk.f32.gmra.mrb[64].mxu1 %vm1321_vm4, %v6503_v58 }
 0x18c   : > { %5582 = vmatprep.mubr.msk.f32.mxu1 %vm1321_vm4, %v6505_v52 }
 0x18f   : > { %5583 = vmatmul.mubr.msk.f32.gmra.mrb[66].mxu1 %vm1321_vm4, %v6539_v59 }
 0x190   : > { %5634 = vmatprep.mubr.msk.f32.mxu1 %vm1321_vm4, %v6197_v61  ;;  %v7556_v61 = vld [vmem:[#allocation8_spill] sm:$0xff] }
 0x193   : > { %5635 = vmatmul.mubr.msk.f32.vlgmr.msra.gmra.mrb[68].mxu1 %vm1321_vm4, %v6199_v62  ;;  %v718_v62 = vadd.f32 %v6768_v22, %v6755_v23  ;;  %v1956_v22 = vcombine.high %v723_v25, %v723_v25 }
 0x194   : > { %5637 = vmatprep.mubr.msk.f32.mxu1 %vm1321_vm4, %v6605_v55 }
 0x197   : > { %5638 = vmatmul.mubr.msk.f32.gmra.mrb[70].mxu1 %vm1321_vm4, %v6641_v9 }
 0x198   : > { %5640 = vmatprep.mubr.msk.f32.mxu1 %vm1321_vm4, %v7552_v14 }
 0x19b   : > { %5641 = vmatmul.mubr.msk.f32.gmra.mrb[72].mxu1 %vm1321_vm4, %v7553_v35 }
 0x19c   : > { %5643 = vmatprep.mubr.msk.f32.mxu1 %vm1321_vm4, %v7554_v40 }
 0x19f   : > { %5644 = vmatmul.mubr.msk.f32.gmra.mrb[74].mxu1 %vm1321_vm4, %v7555_v41 }
 0x1a0   : > { %5646 = vmatprep.mubr.msk.f32.mxu1 %vm1321_vm4, %v7556_v61 }
 0x1a3   : > { %5647 = vmatmul.mubr.msk.f32.gmra.mrb[76].mxu1 %vm1321_vm4, %v6681_v7 }
 0x1a4   : > { %5649 = vmatprep.mubr.msk.f32.mxu1 %vm1321_vm4, %v6608_v44 }
 0x1a7   : > { %5650 = vmatmul.mubr.msk.f32.gmra.mrb[78].mxu1 %vm1321_vm4, %v6610_v16 }
 0x1a8   : > { %5652 = vmatprep.mubr.msk.f32.mxu1 %vm1321_vm4, %v6614_v12 }
 0x1ab   : > { %5653 = vmatmul.mubr.msk.f32.gmra.mrb[80].mxu1 %vm1321_vm4, %v6616_v1 }
 0x1ac   : > { %5655 = vmatprep.mubr.msk.f32.mxu1 %vm1321_vm4, %v6619_v6 }
 0x1af   : > { %5656 = vmatmul.mubr.msk.f32.gmra.mrb[82].mxu1 %vm1321_vm4, %v6629_v32 }
 0x1b0   : > { %5658 = vmatprep.mubr.msk.f32.mxu1 %vm1321_vm4, %v6631_v5 }
 0x1b3   : > { %5659 = vmatmul.mubr.msk.f32.gmra.mrb[84].mxu1 %vm1321_vm4, %v6633_v47 }
 0x1b4   : > { %5661 = vmatprep.mubr.msk.f32.mxu1 %vm1321_vm4, %v6469_v39  ;;  %v7557_v39 = vld [vmem:[#allocation2_spill] sm:$0xff] }
 0x1b5   : > { %v6904_v54 = vrot.slane %v723_v25, %v7557_v39  ;;  %v6913_v40 = vrot.slane %v1956_v22, %v7557_v39 }
 0x1b7   : > { %5662 = vmatmul.mubr.msk.f32.gmra.mrb[86].mxu1 %vm1321_vm4, %v6475_v8  ;;  %v1914_v8 = vrot.slane %v718_v62, %v7557_v39  ;;  %v1971_v41 = vcombine.high %v6904_v54, %v6904_v54 }
 0x1b8   : > { %5664 = vmatprep.mubr.msk.f32.mxu1 %vm1321_vm4, %v6477_v50 }
 0x1b9   : > { %v1930_v50 = vrot.slane %v1914_v8, %v7557_v39 }
 0x1bb   : > { %5665 = vmatmul.mubr.msk.f32.gmra.mrb[88].mxu1 %vm1321_vm4, %v6479_v60  ;;  %v1922_v60 = vcombine.high %v1914_v8, %v1914_v8 }
 0x1bc   : > { %5667 = vmatprep.mubr.msk.f32.mxu1 %vm1321_vm4, %v6481_v13  ;;  %v7558_v13 = vld [vmem:[#allocation3_spill] sm:$0xff] }
 0x1bf   : > { %5668 = vmatmul.mubr.msk.f32.gmra.mrb[90].mxu1 %vm1321_vm4, %v6487_v20  ;;  %v2106_v20 = vrot.slane %v1930_v50, %v7558_v13 }
 0x1c0   : > { %5670 = vmatprep.mubr.msk.f32.mxu1 %vm1321_vm4, %v6489_v24  ;;  %v1944_v24 = vrot.slane %v1922_v60, %v7557_v39 }
 0x1c2   : > { %v1954_v7 = vcombine.high %v1944_v24, %v1944_v24 }
 0x1c3   : > { %5671 = vmatmul.mubr.msk.f32.gmra.mrb[92].mxu1 %vm1321_vm4, %v6491_v51 }
 0x1c4   : > { %5673 = vmatprep.mubr.msk.f32.mxu1 %vm1321_vm4, %v6493_v31  ;;  %v2118_v49 = vrot.slane %v1954_v7, %v7558_v13 }
 0x1c7   : > { %5674 = vmatmul.mubr.msk.f32.gmra.mrb[94].mxu1 %vm1321_vm4, %v6495_v63 }
 0x1c8   : > { %5676 = vmatprep.mubr.msk.f32.mxu1 %vm1321_vm4, %v6497_v4  ;;  %v1907_v4 = vcombine.high %v718_v62, %v718_v62 }
 0x1ca   : > { %v1921_v1 = vrot.slane %v1907_v4, %v7557_v39 }
 0x1cb   : > { %5677 = vmatmul.mubr.msk.f32.gmra.mrb[96].mxu1 %vm1321_vm4, %v6499_v46 }
 0x1cc   : > { %5679 = vmatprep.mubr.msk.f32.mxu1 %vm1321_vm4, %v6501_v3  ;;  %v1923_v33 = vcombine.high %v1921_v1, %v1921_v1  ;;  %v1937_v28 = vrot.slane %v1921_v1, %v7557_v39 }
 0x1ce   : > { %v1951_v18 = vrot.slane %v1923_v33, %v7557_v39  ;;  %v2122_v8 = vrot.slane %v1937_v28, %v7558_v13 }
 0x1cf   : > { %5680 = vmatmul.mubr.msk.f32.gmra.mrb[98].mxu1 %vm1321_vm4, %v6503_v58  ;;  %v2110_v58 = vrot.slane %v1944_v24, %v7558_v13 }
 0x1d0   : > { %5682 = vmatprep.mubr.msk.f32.mxu1 %vm1321_vm4, %v6505_v52  ;;  %v1952_v52 = vcombine.high %v1930_v50, %v1930_v50  ;;  %v1955_v1 = vcombine.high %v1951_v18, %v1951_v18 }
 0x1d2   : > { %v2114_v9 = vrot.slane %v1952_v52, %v7558_v13 }
 0x1d3   : > { %5683 = vmatmul.mubr.msk.f32.gmra.mrb[100].mxu1 %vm1321_vm4, %v6539_v59 }
 0x1df   : > { %v5491_v51 = vpop.f32.mrb[4].mxu1 }
 0x1e0   : > { %v2264_v31 = vadd.f32 %v5491_v51, %v2106_v20  ;;  %v1584_v63 = vpop.f32.mrb[5].mxu1  ;;  %v6921_v51 = vrot.slane %v6904_v54, %v7557_v39 }
 0x1e1   : > { %v2263_v46 = vadd.f32 %v2106_v20, %v1584_v63 }
 0x1e2   : > { %v2328_v3 = vmax.f32 %v2264_v31, 0.0 }
 0x1e3   : > { %v2327_v55 = vmax.f32 %v2263_v46, 0.0  ;;  %v5494_v59 = vpop.f32.mrb[6].mxu1 }
 0x1e4   : > { %v4076_v44 = vsel %vm1321_vm4, %v2328_v3, -inf  ;;  %v2266_v16 = vadd.f32 %v5494_v59, %v2110_v58  ;;  %v1594_v12 = vpop.f32.mrb[7].mxu1 }
 0x1e5   : > { %v4075_v6 = vsel %vm1321_vm4, %v2327_v55, -inf  ;;  %v2265_v32 = vadd.f32 %v2110_v58, %v1594_v12  ;;  %5689 = vmatprep.mubr.msk.f32.mxu0 %vm1321_vm4, %v2327_v55  ;;  %v2126_v55 = vrot.slane %v1951_v18, %v7558_v13  ;;  %v1953_v12 = vcombine.high %v1937_v28, %v1937_v28  ;;  %v6938_v18 = vpop.f32.mrb[4].mxu0 }
 0x1e6   : > { %v4077_v5 = vmax.f32 %v4075_v6, %v4076_v44  ;;  %v2330_v47 = vmax.f32 %v2266_v16, 0.0  ;;  %5690 = vmatmul.mubr.msk.f32.vlgmr.msra.gmra.mrb[8].mxu0 %vm1321_vm4, %v2328_v3 }
 0x1e7   : > { %v2329_v2 = vmax.f32 %v2265_v32, 0.0  ;;  %v5497_v10 = vpop.f32.mrb[8].mxu1 }
 0x1e8   : > { %v4078_v48 = vrot.slane %v4077_v5, 4  ;;  %v4085_v38 = vsel %vm1321_vm4, %v2330_v47, -inf  ;;  %v2268_v23 = vadd.f32 %v5497_v10, %v2114_v9  ;;  %v1604_v17 = vpop.f32.mrb[9].mxu1 }
 0x1e9   : > { %v4084_v30 = vsel %vm1321_vm4, %v2329_v2, -inf  ;;  %v2267_v34 = vadd.f32 %v2114_v9, %v1604_v17  ;;  %5692 = vmatprep.mubr.msk.f32.mxu0 %vm1321_vm4, %v2329_v2 }
 0x1ea   : > { %v4079_v56 = vmax.f32 %v4077_v5, %v4078_v48  ;;  %v4086_v29 = vmax.f32 %v4084_v30, %v4085_v38  ;;  %v2332_v57 = vmax.f32 %v2268_v23, 0.0  ;;  %5693 = vmatmul.mubr.msk.f32.gmra.mrb[10].mxu0 %vm1321_vm4, %v2330_v47 }
 0x1eb   : > { %v2331_v27 = vmax.f32 %v2267_v34, 0.0  ;;  %v5500_v15 = vpop.f32.mrb[10].mxu1 }
 0x1ec   : > { %v4080_v21 = vrot.slane %v4079_v56, 2  ;;  %v4087_v26 = vrot.slane %v4086_v29, 4  ;;  %v4094_v19 = vsel %vm1321_vm4, %v2332_v57, -inf  ;;  %v2270_v11 = vadd.f32 %v5500_v15, %v2118_v49  ;;  %v1614_v42 = vpop.f32.mrb[11].mxu1 }
 0x1ed   : > { %v4093_v53 = vsel %vm1321_vm4, %v2331_v27, -inf  ;;  %v2269_v0 = vadd.f32 %v2118_v49, %v1614_v42  ;;  %5695 = vmatprep.mubr.msk.f32.mxu0 %vm1321_vm4, %v2331_v27 }
 0x1ee   : > { %v4081_v43 = vmax.f32 %v4079_v56, %v4080_v21  ;;  %v4088_v36 = vmax.f32 %v4086_v29, %v4087_v26  ;;  %v4095_v14 = vmax.f32 %v4093_v53, %v4094_v19  ;;  %v2334_v35 = vmax.f32 %v2270_v11, 0.0  ;;  %5696 = vmatmul.mubr.msk.f32.gmra.mrb[12].mxu0 %vm1321_vm4, %v2332_v57 }
 0x1ef   : > { %v2333_v61 = vmax.f32 %v2269_v0, 0.0  ;;  %v5503_v62 = vpop.f32.mrb[12].mxu1  ;;  %v2130_v56 = vrot.slane %v1953_v12, %v7558_v13  ;;  %v2134_v29 = vrot.slane %v1955_v1, %v7558_v13  ;;  %v2001_v12 = vcombine.high %v6921_v51, %v6921_v51 }
 0x1f0   : > { %v4089_v50 = vrot.slane %v4088_v36, 2  ;;  %v4096_v60 = vrot.slane %v4095_v14, 4  ;;  %v4103_v20 = vsel %vm1321_vm4, %v2334_v35, -inf  ;;  %v1624_v24 = vpop.f32.mrb[13].mxu1  ;;  %v4082_v31 = vrot.slane %v4081_v43, 1 }
 0x1f1   : > { %v4102_v63 = vsel %vm1321_vm4, %v2333_v61, -inf  ;;  %v2272_v4 = vadd.f32 %v5503_v62, %v2122_v8  ;;  %v2271_v46 = vadd.f32 %v2122_v8, %v1624_v24  ;;  %5698 = vmatprep.mubr.msk.f32.mxu0 %vm1321_vm4, %v2333_v61  ;;  %v6946_v61 = vrot.slane %v1971_v41, %v7557_v39  ;;  %v6948_v62 = vpop.f32.mrb[5].mxu0 }
 0x1f2   : > { %v4090_v3 = vmax.f32 %v4088_v36, %v4089_v50  ;;  %v4097_v58 = vmax.f32 %v4095_v14, %v4096_v60  ;;  %v4104_v52 = vmax.f32 %v4102_v63, %v4103_v20  ;;  %5699 = vmatmul.mubr.msk.f32.gmra.mrb[14].mxu0 %vm1321_vm4, %v2334_v35  ;;  %v4083_v7 = vmax.f32 %v4081_v43, %v4082_v31 }
 0x1f3   : > { %v2336_v59 = vmax.f32 %v2272_v4, 0.0  ;;  %v2335_v44 = vmax.f32 %v2271_v46, 0.0  ;;  %v5506_v16 = vpop.f32.mrb[14].mxu1  ;;  %v2138_v35 = vrot.slane %v6921_v51, %v7558_v13 }
 0x1f4   : > { %v4091_v6 = vrot.slane %v4090_v3, 1  ;;  %v4098_v32 = vrot.slane %v4097_v58, 2  ;;  %v4105_v5 = vrot.slane %v4104_v52, 4  ;;  %v2274_v47 = vadd.f32 %v5506_v16, %v2126_v55  ;;  %v1634_v9 = vpop.f32.mrb[15].mxu1 }
 0x1f5   : > { %v4112_v25 = vsel %vm1321_vm4, %v2336_v59, -inf  ;;  %v4111_v2 = vsel %vm1321_vm4, %v2335_v44, -inf  ;;  %v2273_v10 = vadd.f32 %v2126_v55, %v1634_v9  ;;  %5701 = vmatprep.mubr.msk.f32.mxu0 %vm1321_vm4, %v2335_v44  ;;  %v2142_v16 = vrot.slane %v6946_v61, %v7558_v13 }
 0x1f6   : > { %v4092_v48 = vmax.f32 %v4090_v3, %v4091_v6  ;;  %v4099_v38 = vmax.f32 %v4097_v58, %v4098_v32  ;;  %v4106_v23 = vmax.f32 %v4104_v52, %v4105_v5  ;;  %v4113_v17 = vmax.f32 %v4111_v2, %v4112_v25  ;;  %5702 = vmatmul.mubr.msk.f32.gmra.mrb[16].mxu0 %vm1321_vm4, %v2336_v59  ;;  %v5484_v52 = vpop.f32.mrb[6].mxu0 }
 0x1f7   : > { %v2338_v30 = vmax.f32 %v2274_v47, 0.0  ;;  %v2337_v34 = vmax.f32 %v2273_v10, 0.0  ;;  %v5509_v33 = vpop.f32.mrb[16].mxu1  ;;  %v6959_v1 = vpop.f32.mrb[7].mxu0 }
 0x1f8   : > { %v4754_v57 = vsel %vm4683_vm5, %v4092_v48, %v4083_v7  ;;  %v4100_v49 = vrot.slane %v4099_v38, 1  ;;  %v4107_v22 = vrot.slane %v4106_v23, 2  ;;  %v4114_v27 = vrot.slane %v4113_v17, 4  ;;  %v1644_v15 = vpop.f32.mrb[17].mxu1 }
 0x1f9   : > { %v4121_v28 = vsel %vm1321_vm4, %v2338_v30, -inf  ;;  %v4120_v21 = vsel %vm1321_vm4, %v2337_v34, -inf  ;;  %v2276_v26 = vadd.f32 %v5509_v33, %v2130_v56  ;;  %v2275_v19 = vadd.f32 %v2130_v56, %v1644_v15  ;;  %5704 = vmatprep.mubr.msk.f32.mxu0 %vm1321_vm4, %v2337_v34 }
 0x1fa   : > { %v4101_v11 = vmax.f32 %v4099_v38, %v4100_v49  ;;  %v4108_v42 = vmax.f32 %v4106_v23, %v4107_v22  ;;  %v4115_v53 = vmax.f32 %v4113_v17, %v4114_v27  ;;  %v4122_v0 = vmax.f32 %v4120_v21, %v4121_v28  ;;  %5705 = vmatmul.mubr.msk.f32.gmra.mrb[18].mxu0 %vm1321_vm4, %v2338_v30 }
 0x1fb   : > { %v2340_v43 = vmax.f32 %v2276_v26, 0.0  ;;  %v2339_v36 = vmax.f32 %v2275_v19, 0.0  ;;  %v5512_v14 = vpop.f32.mrb[18].mxu1  ;;  %v2146_v33 = vrot.slane %v2001_v12, %v7558_v13  ;;  %v6969_v56 = vrot.slane %v6913_v40, %v7557_v39 }
 0x1fc   : > { %v4109_v8 = vrot.slane %v4108_v42, 1  ;;  %v4116_v50 = vrot.slane %v4115_v53, 2  ;;  %v4123_v60 = vrot.slane %v4122_v0, 4  ;;  %v2278_v20 = vadd.f32 %v5512_v14, %v2134_v29  ;;  %v1654_v24 = vpop.f32.mrb[19].mxu1 }
 0x1fd   : > { %v4130_v31 = vsel %vm1321_vm4, %v2340_v43, -inf  ;;  %v4129_v63 = vsel %vm1321_vm4, %v2339_v36, -inf  ;;  %v2277_v4 = vadd.f32 %v2134_v29, %v1654_v24  ;;  %5707 = vmatprep.mubr.msk.f32.mxu0 %vm1321_vm4, %v2339_v36  ;;  %v4755_v46 = vsel %vm4685_vm6, %v4101_v11, %v4754_v57 }
 0x1fe   : > { %v4110_v3 = vmax.f32 %v4108_v42, %v4109_v8  ;;  %v4117_v54 = vmax.f32 %v4115_v53, %v4116_v50  ;;  %v4124_v41 = vmax.f32 %v4122_v0, %v4123_v60  ;;  %v4131_v58 = vmax.f32 %v4129_v63, %v4130_v31  ;;  %5708 = vmatmul.mubr.msk.f32.gmra.mrb[20].mxu0 %vm1321_vm4, %v2340_v43  ;;  %v6979_v0 = vld [vmem:[%s7529_s10] ss:$0 sm:$0xff] }
 0x1ff   : > { %v2342_v55 = vmax.f32 %v2278_v20, 0.0  ;;  %v2341_v59 = vmax.f32 %v2277_v4, 0.0  ;;  %v5515_v44 = vpop.f32.mrb[20].mxu1  ;;  %v6984_v8 = vadd.f32 %v5484_v52, %v6979_v0 }
 0x200   : > { %v4118_v6 = vrot.slane %v4117_v54, 1  ;;  %v4125_v32 = vrot.slane %v4124_v41, 2  ;;  %v4132_v5 = vrot.slane %v4131_v58, 4  ;;  %v2280_v47 = vadd.f32 %v5515_v44, %v2138_v35  ;;  %v1664_v9 = vpop.f32.mrb[21].mxu1 }
 0x201   : > { %v4139_v7 = vsel %vm1321_vm4, %v2342_v55, -inf  ;;  %v4138_v25 = vsel %vm1321_vm4, %v2341_v59, -inf  ;;  %v2279_v2 = vadd.f32 %v2138_v35, %v1664_v9  ;;  %5710 = vmatprep.mubr.msk.f32.mxu0 %vm1321_vm4, %v2341_v59  ;;  %v4756_v10 = vsel %vm4687_vm7, %v4110_v3, %v4755_v46 }
 0x202   : > { %v4119_v48 = vmax.f32 %v4117_v54, %v4118_v6  ;;  %v4126_v38 = vmax.f32 %v4124_v41, %v4125_v32  ;;  %v4133_v23 = vmax.f32 %v4131_v58, %v4132_v5  ;;  %v4140_v51 = vmax.f32 %v4138_v25, %v4139_v7  ;;  %5711 = vmatmul.mubr.msk.f32.gmra.mrb[22].mxu0 %vm1321_vm4, %v2342_v55 }
 0x203   : > { %v2344_v17 = vmax.f32 %v2280_v47, 0.0  ;;  %v2343_v30 = vmax.f32 %v2279_v2, 0.0  ;;  %v5518_v34 = vpop.f32.mrb[22].mxu1  ;;  %v2003_v35 = vcombine.high %v6946_v61, %v6946_v61  ;;  %v1972_v44 = vcombine.high %v6913_v40, %v6913_v40 }
 0x204   : > { %v4127_v29 = vrot.slane %v4126_v38, 1  ;;  %v4134_v57 = vrot.slane %v4133_v23, 2  ;;  %v4141_v49 = vrot.slane %v4140_v51, 4  ;;  %v2282_v22 = vadd.f32 %v5518_v34, %v2142_v16  ;;  %v1674_v27 = vpop.f32.mrb[23].mxu1 }
 0x205   : > { %v4148_v15 = vsel %vm1321_vm4, %v2344_v17, -inf  ;;  %v4147_v28 = vsel %vm1321_vm4, %v2343_v30, -inf  ;;  %v2281_v21 = vadd.f32 %v2142_v16, %v1674_v27  ;;  %5713 = vmatprep.mubr.msk.f32.mxu0 %vm1321_vm4, %v2343_v30  ;;  %v4757_v26 = vsel %vm4689_vm8, %v4119_v48, %v4756_v10 }
 0x206   : > { %v4128_v19 = vmax.f32 %v4126_v38, %v4127_v29  ;;  %v4135_v11 = vmax.f32 %v4133_v23, %v4134_v57  ;;  %v4142_v42 = vmax.f32 %v4140_v51, %v4141_v49  ;;  %v4149_v53 = vmax.f32 %v4147_v28, %v4148_v15  ;;  %5714 = vmatmul.mubr.msk.f32.gmra.mrb[24].mxu0 %vm1321_vm4, %v2344_v17 }
 0x207   : > { %v2346_v43 = vmax.f32 %v2282_v22, 0.0  ;;  %v2345_v36 = vmax.f32 %v2281_v21, 0.0  ;;  %v5521_v14 = vpop.f32.mrb[24].mxu1  ;;  %v2150_v55 = vrot.slane %v2003_v35, %v7558_v13  ;;  %v2154_v23 = vrot.slane %v6969_v56, %v7558_v13 }
 0x208   : > { %v4136_v50 = vrot.slane %v4135_v11, 1  ;;  %v4143_v60 = vrot.slane %v4142_v42, 2  ;;  %v4150_v20 = vrot.slane %v4149_v53, 4  ;;  %v2284_v24 = vadd.f32 %v5521_v14, %v2146_v33  ;;  %v1684_v31 = vpop.f32.mrb[25].mxu1 }
 0x209   : > { %v4157_v63 = vsel %vm1321_vm4, %v2346_v43, -inf  ;;  %v4156_v4 = vsel %vm1321_vm4, %v2345_v36, -inf  ;;  %v2283_v46 = vadd.f32 %v2146_v33, %v1684_v31  ;;  %5716 = vmatprep.mubr.msk.f32.mxu0 %vm1321_vm4, %v2345_v36  ;;  %v4758_v3 = vsel %vm4691_vm9, %v4128_v19, %v4757_v26 }
 0x20a   : > { %v4144_v54 = vmax.f32 %v4142_v42, %v4143_v60  ;;  %v4151_v41 = vmax.f32 %v4149_v53, %v4150_v20  ;;  %v4158_v61 = vmax.f32 %v4156_v4, %v4157_v63  ;;  %v2348_v58 = vmax.f32 %v2284_v24, 0.0  ;;  %5717 = vmatmul.mubr.msk.f32.gmra.mrb[26].mxu0 %vm1321_vm4, %v2346_v43 }
 0x20b   : > { %v2347_v52 = vmax.f32 %v2283_v46, 0.0  ;;  %v4137_v59 = vmax.f32 %v4135_v11, %v4136_v50  ;;  %v5524_v32 = vpop.f32.mrb[26].mxu1  ;;  %v2000_v17 = vrot.slane %v1972_v44, %v7557_v39  ;;  %v2002_v57 = vcombine.high %v6969_v56, %v6969_v56 }
 0x20c   : > { %v4152_v16 = vrot.slane %v4151_v41, 2  ;;  %v4159_v12 = vrot.slane %v4158_v61, 4  ;;  %v4166_v6 = vsel %vm1321_vm4, %v2348_v58, -inf  ;;  %v4145_v5 = vrot.slane %v4144_v54, 1  ;;  %v1694_v7 = vpop.f32.mrb[27].mxu1 }
 0x20d   : > { %v4165_v47 = vsel %vm1321_vm4, %v2347_v52, -inf  ;;  %v2286_v9 = vadd.f32 %v5524_v32, %v2150_v55  ;;  %5719 = vmatprep.mubr.msk.f32.mxu0 %vm1321_vm4, %v2347_v52  ;;  %v4759_v25 = vsel %vm4693_vm10, %v4137_v59, %v4758_v3  ;;  %v2285_v38 = vadd.f32 %v2150_v55, %v1694_v7 }
 0x20e   : > { %v4153_v2 = vmax.f32 %v4151_v41, %v4152_v16  ;;  %v4160_v10 = vmax.f32 %v4158_v61, %v4159_v12  ;;  %v4167_v48 = vmax.f32 %v4165_v47, %v4166_v6  ;;  %5720 = vmatmul.mubr.msk.f32.gmra.mrb[28].mxu0 %vm1321_vm4, %v2348_v58  ;;  %v4146_v51 = vmax.f32 %v4144_v54, %v4145_v5 }
 0x20f   : > { %v2350_v40 = vmax.f32 %v2286_v9, 0.0  ;;  %v2349_v33 = vmax.f32 %v2285_v38, 0.0  ;;  %v5527_v29 = vpop.f32.mrb[28].mxu1  ;;  %v2158_v56 = vrot.slane %v2000_v17, %v7558_v13  ;;  %v2162_v35 = vrot.slane %v2002_v57, %v7558_v13 }
 0x210   : > { %v4161_v30 = vrot.slane %v4160_v10, 2  ;;  %v4168_v34 = vrot.slane %v4167_v48, 4  ;;  %v2288_v22 = vadd.f32 %v5527_v29, %v2154_v23  ;;  %v1704_v27 = vpop.f32.mrb[29].mxu1  ;;  %v4760_v15 = vsel %vm4695_vm11, %v4146_v51, %v4759_v25 }
 0x211   : > { %v4175_v49 = vsel %vm1321_vm4, %v2350_v40, -inf  ;;  %v4154_v28 = vrot.slane %v4153_v2, 1  ;;  %v4174_v19 = vsel %vm1321_vm4, %v2349_v33, -inf  ;;  %4782 = vrot.lane.b32.xlu0 %v4760_v15, %s5941_s28  ;;  %5722 = vmatprep.mubr.msk.f32.mxu0 %vm1321_vm4, %v2349_v33  ;;  %v2287_v53 = vadd.f32 %v2154_v23, %v1704_v27 }
 0x212   : > { %v4162_v21 = vmax.f32 %v4160_v10, %v4161_v30  ;;  %v4169_v26 = vmax.f32 %v4167_v48, %v4168_v34  ;;  %v4176_v11 = vmax.f32 %v4174_v19, %v4175_v49  ;;  %v2352_v42 = vmax.f32 %v2288_v22, 0.0  ;;  %5723 = vmatmul.mubr.msk.f32.gmra.mrb[30].mxu0 %vm1321_vm4, %v2350_v40 }
 0x213   : > { %v5530_v14 = vpop.f32.mrb[30].mxu1  ;;  %v2004_v50 = vcombine.high %v2000_v17, %v2000_v17  ;;  %v2351_v24 = vmax.f32 %v2287_v53, 0.0  ;;  %v4155_v4 = vmax.f32 %v4153_v2, %v4154_v28  ;;  %v7017_v52 = vadd.f32 %v6979_v0, %v6959_v1 }
 0x214   : > { %v4163_v43 = vrot.slane %v4162_v21, 1  ;;  %v4170_v36 = vrot.slane %v4169_v26, 2  ;;  %v4177_v60 = vrot.slane %v4176_v11, 4  ;;  %v4184_v20 = vsel %vm1321_vm4, %v2352_v42, -inf  ;;  %v1714_v63 = vpop.f32.mrb[31].mxu1 }
 0x215   : > { %v2290_v31 = vadd.f32 %v5530_v14, %v2158_v56  ;;  %v2289_v54 = vadd.f32 %v2158_v56, %v1714_v63  ;;  %v4183_v61 = vsel %vm1321_vm4, %v2351_v24, -inf  ;;  %5725 = vmatprep.mubr.msk.f32.mxu0 %vm1321_vm4, %v2351_v24  ;;  %v2166_v48 = vrot.slane %v2004_v50, %v7558_v13 }
 0x216   : > { %v4164_v46 = vmax.f32 %v4162_v21, %v4163_v43  ;;  %v4171_v3 = vmax.f32 %v4169_v26, %v4170_v36  ;;  %v4178_v41 = vmax.f32 %v4176_v11, %v4177_v60  ;;  %v4185_v44 = vmax.f32 %v4183_v61, %v4184_v20  ;;  %5726 = vmatmul.mubr.msk.f32.gmra.mrb[32].mxu0 %vm1321_vm4, %v2352_v42 }
 0x217   : > { %v2354_v58 = vmax.f32 %v2290_v31, 0.0  ;;  %v2353_v16 = vmax.f32 %v2289_v54, 0.0  ;;  %v5533_v12 = vpop.f32.mrb[32].mxu1  ;;  %v2012_v38 = vrot.slane %v6784_v45, %v7557_v39 }
 0x218   : > { %v4761_v55 = vsel %vm4683_vm5, %v4164_v46, %v4155_v4  ;;  %v4172_v59 = vrot.slane %v4171_v3, 1  ;;  %v4179_v6 = vrot.slane %v4178_v41, 2  ;;  %v2292_v5 = vadd.f32 %v5533_v12, %v2162_v35  ;;  %v1724_v47 = vpop.f32.mrb[33].mxu1 }
 0x219   : > { %v4193_v32 = vsel %vm1321_vm4, %v2354_v58, -inf  ;;  %v4186_v7 = vrot.slane %v4185_v44, 4  ;;  %v4192_v25 = vsel %vm1321_vm4, %v2353_v16, -inf  ;;  %v2291_v2 = vadd.f32 %v2162_v35, %v1724_v47  ;;  %5728 = vmatprep.mubr.msk.f32.mxu0 %vm1321_vm4, %v2353_v16 }
 0x21a   : > { %v4173_v9 = vmax.f32 %v4171_v3, %v4172_v59  ;;  %v4180_v1 = vmax.f32 %v4178_v41, %v4179_v6  ;;  %v4194_v0 = vmax.f32 %v4192_v25, %v4193_v32  ;;  %v2356_v10 = vmax.f32 %v2292_v5, 0.0  ;;  %5729 = vmatmul.mubr.msk.f32.gmra.mrb[34].mxu0 %vm1321_vm4, %v2354_v58 }
 0x21b   : > { %v4187_v40 = vmax.f32 %v4185_v44, %v4186_v7  ;;  %v2355_v23 = vmax.f32 %v2291_v2, 0.0  ;;  %v5536_v51 = vpop.f32.mrb[34].mxu1  ;;  %v2020_v19 = vcombine.high %v2012_v38, %v2012_v38  ;;  %v2028_v53 = vrot.slane %v2012_v38, %v7557_v39 }
 0x21c   : > { %v4762_v17 = vsel %vm4685_vm6, %v4173_v9, %v4761_v55  ;;  %v4181_v30 = vrot.slane %v4180_v1, 1  ;;  %v4195_v34 = vrot.slane %v4194_v0, 4  ;;  %v4202_v33 = vsel %vm1321_vm4, %v2356_v10, -inf  ;;  %v1734_v57 = vpop.f32.mrb[35].mxu1 }
 0x21d   : > { %v2294_v29 = vadd.f32 %v5536_v51, %v2166_v48  ;;  %v4188_v49 = vrot.slane %v4187_v40, 2  ;;  %v4201_v22 = vsel %vm1321_vm4, %v2355_v23, -inf  ;;  %v2293_v27 = vadd.f32 %v2166_v48, %v1734_v57  ;;  %5731 = vmatprep.mubr.msk.f32.mxu0 %vm1321_vm4, %v2355_v23 }
 0x21e   : > { %v4182_v15 = vmax.f32 %v4180_v1, %v4181_v30  ;;  %v4196_v28 = vmax.f32 %v4194_v0, %v4195_v34  ;;  %v4203_v21 = vmax.f32 %v4201_v22, %v4202_v33  ;;  %5732 = vmatmul.mubr.msk.f32.gmra.mrb[36].mxu0 %vm1321_vm4, %v2356_v10  ;;  %v2042_v63 = vrot.slane %v2020_v19, %v7557_v39 }
 0x21f   : > { %v2358_v26 = vmax.f32 %v2294_v29, 0.0  ;;  %v4189_v11 = vmax.f32 %v4187_v40, %v4188_v49  ;;  %v2357_v42 = vmax.f32 %v2293_v27, 0.0  ;;  %v2170_v54 = vrot.slane %v2028_v53, %v7558_v13 }
 0x220   : > { %v4197_v56 = vrot.slane %v4196_v28, 2  ;;  %v4204_v43 = vrot.slane %v4203_v21, 4  ;;  %v4763_v14 = vsel %vm4687_vm7, %v4182_v15, %v4762_v17  ;;  %v2005_v41 = vcombine.high %v6784_v45, %v6784_v45 }
 0x221   : > { %v4211_v36 = vsel %vm1321_vm4, %v2358_v26, -inf  ;;  %v4190_v35 = vrot.slane %v4189_v11, 1  ;;  %v4210_v50 = vsel %vm1321_vm4, %v2357_v42, -inf  ;;  %5734 = vmatprep.mubr.msk.f32.mxu0 %vm1321_vm4, %v2357_v42  ;;  %v2174_v32 = vrot.slane %v2042_v63, %v7558_v13 }
 0x222   : > { %v4198_v60 = vmax.f32 %v4196_v28, %v4197_v56  ;;  %v4205_v20 = vmax.f32 %v4203_v21, %v4204_v43  ;;  %v4212_v24 = vmax.f32 %v4210_v50, %v4211_v36  ;;  %5735 = vmatmul.mubr.msk.f32.gmra.mrb[38].mxu0 %vm1321_vm4, %v2358_v26  ;;  %v2050_v5 = vcombine.high %v2028_v53, %v2028_v53 }
 0x223   : > { %v4191_v31 = vmax.f32 %v4189_v11, %v4190_v35  ;;  %v2019_v2 = vrot.slane %v2005_v41, %v7557_v39  ;;  %v2052_v30 = vcombine.high %v2042_v63, %v2042_v63  ;;  %v2054_v35 = vcombine.high %v6774_v37, %v6774_v37 }
 0x224   : > { %v4199_v4 = vrot.slane %v4198_v60, 1  ;;  %v4206_v46 = vrot.slane %v4205_v20, 2  ;;  %v4213_v3 = vrot.slane %v4212_v24, 4  ;;  %v2178_v17 = vrot.slane %v2050_v5, %v7558_v13  ;;  %v5910_v5 = vld [vmem:[%s6037_s30 + $0x10] sm:$0xff] }
 0x225   : > { %v4764_v58 = vsel %vm4689_vm8, %v4191_v31, %v4763_v14  ;;  %v2182_v42 = vrot.slane %v2052_v30, %v7558_v13  ;;  %v2021_v53 = vcombine.high %v2019_v2, %v2019_v2  ;;  %v7063_v50 = vrot.slane %v6774_v37, %v7557_v39 }
 0x226   : > { %v5539_v61 = vpop.f32.mrb[36].mxu1  ;;  %v4200_v55 = vmax.f32 %v4198_v60, %v4199_v4  ;;  %v4207_v59 = vmax.f32 %v4205_v20, %v4206_v46  ;;  %v4214_v44 = vmax.f32 %v4212_v24, %v4213_v3  ;;  %v2035_v24 = vrot.slane %v2019_v2, %v7557_v39 }
 0x227   : > { %v2296_v16 = vadd.f32 %v5539_v61, %v2170_v54  ;;  %v1744_v12 = vpop.f32.mrb[37].mxu1  ;;  %v2049_v37 = vrot.slane %v2021_v53, %v7557_v39  ;;  %v7083_v2 = vrot.slane %v7063_v50, %v7557_v39 }
 0x228   : > { %v2295_v6 = vadd.f32 %v2170_v54, %v1744_v12  ;;  %v4208_v47 = vrot.slane %v4207_v59, 1  ;;  %v4215_v9 = vrot.slane %v4214_v44, 2  ;;  %v4765_v25 = vsel %vm4691_vm9, %v4200_v55, %v4764_v58 }
 0x229   : > { %v2360_v7 = vmax.f32 %v2296_v16, 0.0  ;;  %v2069_v16 = vcombine.high %v7063_v50, %v7063_v50 }
 0x22a   : > { %v2359_v45 = vmax.f32 %v2295_v6, 0.0  ;;  %v5542_v1 = vpop.f32.mrb[38].mxu1  ;;  %v4216_v0 = vmax.f32 %v4214_v44, %v4215_v9  ;;  %v4209_v40 = vmax.f32 %v4207_v59, %v4208_v47  ;;  %v7073_v44 = vrot.slane %v2054_v35, %v7557_v39 }
 0x22b   : > { %v4220_v10 = vsel %vm1321_vm4, %v2360_v7, -inf  ;;  %v2298_v48 = vadd.f32 %v5542_v1, %v2174_v32  ;;  %v1754_v38 = vpop.f32.mrb[39].mxu1 }
 0x22c   : > { %v4219_v23 = vsel %vm1321_vm4, %v2359_v45, -inf  ;;  %v2297_v51 = vadd.f32 %v2174_v32, %v1754_v38  ;;  %5737 = vmatprep.mubr.msk.f32.mxu0 %vm1321_vm4, %v2359_v45  ;;  %v4217_v29 = vrot.slane %v4216_v0, 1  ;;  %v4766_v57 = vsel %vm4693_vm10, %v4209_v40, %v4765_v25 }
 0x22d   : > { %v4221_v34 = vmax.f32 %v4219_v23, %v4220_v10  ;;  %v2362_v33 = vmax.f32 %v2298_v48, 0.0  ;;  %5738 = vmatmul.mubr.msk.f32.gmra.mrb[40].mxu0 %vm1321_vm4, %v2360_v7  ;;  %v2186_v32 = vrot.slane %v2035_v24, %v7558_v13  ;;  %v2190_v23 = vrot.slane %v2049_v37, %v7558_v13 }
 0x22e   : > { %v2361_v49 = vmax.f32 %v2297_v51, 0.0  ;;  %v5545_v22 = vpop.f32.mrb[40].mxu1  ;;  %v4218_v26 = vmax.f32 %v4216_v0, %v4217_v29 }
 0x22f   : > { %v4222_v27 = vrot.slane %v4221_v34, 4  ;;  %v4229_v15 = vsel %vm1321_vm4, %v2362_v33, -inf  ;;  %v2300_v28 = vadd.f32 %v5545_v22, %v2178_v17  ;;  %v1764_v21 = vpop.f32.mrb[41].mxu1 }
 0x230   : > { %v4228_v19 = vsel %vm1321_vm4, %v2361_v49, -inf  ;;  %v2299_v11 = vadd.f32 %v2178_v17, %v1764_v21  ;;  %5740 = vmatprep.mubr.msk.f32.mxu0 %vm1321_vm4, %v2361_v49  ;;  %v4767_v14 = vsel %vm4695_vm11, %v4218_v26, %v4766_v57 }
 0x231   : > { %v4223_v56 = vmax.f32 %v4221_v34, %v4222_v27  ;;  %v4230_v43 = vmax.f32 %v4228_v19, %v4229_v15  ;;  %v2364_v36 = vmax.f32 %v2300_v28, 0.0  ;;  %5741 = vmatmul.mubr.msk.f32.gmra.mrb[42].mxu0 %vm1321_vm4, %v2362_v33  ;;  %4784 = vrot.lane.b32.xlu0 %v4767_v14, %s5941_s28  ;;  %v2051_v34 = vcombine.high %v2035_v24, %v2035_v24 }
 0x232   : > { %v2363_v60 = vmax.f32 %v2299_v11, 0.0  ;;  %v5548_v20 = vpop.f32.mrb[42].mxu1  ;;  %v2053_v33 = vcombine.high %v2049_v37, %v2049_v37 }
 0x233   : > { %v4224_v31 = vrot.slane %v4223_v56, 2  ;;  %v4231_v63 = vrot.slane %v4230_v43, 4  ;;  %v4238_v4 = vsel %vm1321_vm4, %v2364_v36, -inf  ;;  %v2302_v46 = vadd.f32 %v5548_v20, %v2182_v42  ;;  %v1774_v3 = vpop.f32.mrb[43].mxu1 }
 0x234   : > { %v4237_v54 = vsel %vm1321_vm4, %v2363_v60, -inf  ;;  %v2301_v41 = vadd.f32 %v2182_v42, %v1774_v3  ;;  %5743 = vmatprep.mubr.msk.f32.mxu0 %vm1321_vm4, %v2363_v60  ;;  %v2194_v14 = vrot.slane %v2051_v34, %v7558_v13  ;;  %v2198_v35 = vrot.slane %v2053_v33, %v7558_v13 }
 0x235   : > { %v4225_v61 = vmax.f32 %v4223_v56, %v4224_v31  ;;  %v4232_v58 = vmax.f32 %v4230_v43, %v4231_v63  ;;  %v4239_v55 = vmax.f32 %v4237_v54, %v4238_v4  ;;  %v2366_v59 = vmax.f32 %v2302_v46, 0.0  ;;  %5744 = vmatmul.mubr.msk.f32.gmra.mrb[44].mxu0 %vm1321_vm4, %v2364_v36  ;;  %4870 = vrot.lane.b32.xlu0 %v5910_v5, %s5938_s23 }
 0x236   : > { %v2365_v12 = vmax.f32 %v2301_v41, 0.0  ;;  %v5551_v6 = vpop.f32.mrb[44].mxu1 }
 0x237   : > { %v4233_v47 = vrot.slane %v4232_v58, 2  ;;  %v4240_v9 = vrot.slane %v4239_v55, 4  ;;  %v4247_v7 = vsel %vm1321_vm4, %v2366_v59, -inf  ;;  %v1784_v25 = vpop.f32.mrb[45].mxu1  ;;  %v4226_v45 = vrot.slane %v4225_v61, 1 }
 0x238   : > { %v4246_v1 = vsel %vm1321_vm4, %v2365_v12, -inf  ;;  %v2304_v0 = vadd.f32 %v5551_v6, %v2186_v32  ;;  %v2303_v10 = vadd.f32 %v2186_v32, %v1784_v25  ;;  %5746 = vmatprep.mubr.msk.f32.mxu0 %vm1321_vm4, %v2365_v12  ;;  %v2202_v6 = vrot.slane %v7083_v2, %v7558_v13 }
 0x239   : > { %v4234_v48 = vmax.f32 %v4232_v58, %v4233_v47  ;;  %v4241_v38 = vmax.f32 %v4239_v55, %v4240_v9  ;;  %v4248_v40 = vmax.f32 %v4246_v1, %v4247_v7  ;;  %5747 = vmatmul.mubr.msk.f32.gmra.mrb[46].mxu0 %vm1321_vm4, %v2366_v59  ;;  %v4227_v15 = vmax.f32 %v4225_v61, %v4226_v45 }
 0x23a   : > { %v2368_v51 = vmax.f32 %v2304_v0, 0.0  ;;  %v2367_v17 = vmax.f32 %v2303_v10, 0.0  ;;  %v5554_v30 = vpop.f32.mrb[46].mxu1  ;;  %v2091_v32 = vrot.slane %v2069_v16, %v7557_v39 }
 0x23b   : > { %v4235_v29 = vrot.slane %v4234_v48, 1  ;;  %v4242_v57 = vrot.slane %v4241_v38, 2  ;;  %v4249_v49 = vrot.slane %v4248_v40, 4  ;;  %v2306_v22 = vadd.f32 %v5554_v30, %v2190_v23  ;;  %v1794_v27 = vpop.f32.mrb[47].mxu1 }
 0x23c   : > { %v4256_v28 = vsel %vm1321_vm4, %v2368_v51, -inf  ;;  %v4255_v21 = vsel %vm1321_vm4, %v2367_v17, -inf  ;;  %v2305_v26 = vadd.f32 %v2190_v23, %v1794_v27  ;;  %5749 = vmatprep.mubr.msk.f32.mxu0 %vm1321_vm4, %v2367_v17  ;;  %v2206_v17 = vrot.slane %v2091_v32, %v7558_v13 }
 0x23d   : > { %v4236_v19 = vmax.f32 %v4234_v48, %v4235_v29  ;;  %v4243_v11 = vmax.f32 %v4241_v38, %v4242_v57  ;;  %v4250_v42 = vmax.f32 %v4248_v40, %v4249_v49  ;;  %v4257_v53 = vmax.f32 %v4255_v21, %v4256_v28  ;;  %5750 = vmatmul.mubr.msk.f32.gmra.mrb[48].mxu0 %vm1321_vm4, %v2368_v51 }
 0x23e   : > { %v2370_v56 = vmax.f32 %v2306_v22, 0.0  ;;  %v2369_v43 = vmax.f32 %v2305_v26, 0.0  ;;  %v5557_v36 = vpop.f32.mrb[48].mxu1  ;;  %v2099_v30 = vcombine.high %v7083_v2, %v7083_v2 }
 0x23f   : > { %v4768_v60 = vsel %vm4683_vm5, %v4236_v19, %v4227_v15  ;;  %v4244_v20 = vrot.slane %v4243_v11, 1  ;;  %v4251_v24 = vrot.slane %v4250_v42, 2  ;;  %v4258_v31 = vrot.slane %v4257_v53, 4  ;;  %v1804_v63 = vpop.f32.mrb[49].mxu1 }
 0x240   : > { %v4265_v4 = vsel %vm1321_vm4, %v2370_v56, -inf  ;;  %v4264_v46 = vsel %vm1321_vm4, %v2369_v43, -inf  ;;  %v2308_v3 = vadd.f32 %v5557_v36, %v2194_v14  ;;  %v2307_v54 = vadd.f32 %v2194_v14, %v1804_v63  ;;  %5752 = vmatprep.mubr.msk.f32.mxu0 %vm1321_vm4, %v2369_v43 }
 0x241   : > { %v4245_v41 = vmax.f32 %v4243_v11, %v4244_v20  ;;  %v4252_v37 = vmax.f32 %v4250_v42, %v4251_v24  ;;  %v4259_v61 = vmax.f32 %v4257_v53, %v4258_v31  ;;  %v4266_v58 = vmax.f32 %v4264_v46, %v4265_v4  ;;  %5753 = vmatmul.mubr.msk.f32.gmra.mrb[50].mxu0 %vm1321_vm4, %v2370_v56 }
 0x242   : > { %v2372_v55 = vmax.f32 %v2308_v3, 0.0  ;;  %v2371_v59 = vmax.f32 %v2307_v54, 0.0  ;;  %v5560_v12 = vpop.f32.mrb[50].mxu1  ;;  %v2210_v56 = vrot.slane %v2099_v30, %v7558_v13  ;;  %v2101_v43 = vcombine.high %v2091_v32, %v2091_v32 }
 0x243   : > { %v4253_v5 = vrot.slane %v4252_v37, 1  ;;  %v4260_v47 = vrot.slane %v4259_v61, 2  ;;  %v4267_v9 = vrot.slane %v4266_v58, 4  ;;  %v2310_v7 = vadd.f32 %v5560_v12, %v2198_v35  ;;  %v1814_v25 = vpop.f32.mrb[51].mxu1 }
 0x244   : > { %v4274_v45 = vsel %vm1321_vm4, %v2372_v55, -inf  ;;  %v4273_v1 = vsel %vm1321_vm4, %v2371_v59, -inf  ;;  %v2309_v0 = vadd.f32 %v2198_v35, %v1814_v25  ;;  %5755 = vmatprep.mubr.msk.f32.mxu0 %vm1321_vm4, %v2371_v59  ;;  %v4769_v10 = vsel %vm4685_vm6, %v4245_v41, %v4768_v60 }
 0x245   : > { %v4254_v48 = vmax.f32 %v4252_v37, %v4253_v5  ;;  %v4261_v38 = vmax.f32 %v4259_v61, %v4260_v47  ;;  %v4268_v40 = vmax.f32 %v4266_v58, %v4267_v9  ;;  %v4275_v23 = vmax.f32 %v4273_v1, %v4274_v45  ;;  %5756 = vmatmul.mubr.msk.f32.gmra.mrb[52].mxu0 %vm1321_vm4, %v2372_v55 }
 0x246   : > { %v2374_v50 = vmax.f32 %v2310_v7, 0.0  ;;  %v2373_v16 = vmax.f32 %v2309_v0, 0.0  ;;  %v5563_v51 = vpop.f32.mrb[52].mxu1  ;;  %v2214_v55 = vrot.slane %v2101_v43, %v7558_v13  ;;  %v2070_v59 = vcombine.high %v7073_v44, %v7073_v44 }
 0x247   : > { %v4262_v34 = vrot.slane %v4261_v38, 1  ;;  %v4269_v33 = vrot.slane %v4268_v40, 2  ;;  %v4276_v29 = vrot.slane %v4275_v23, 4  ;;  %v2312_v57 = vadd.f32 %v5563_v51, %v2202_v6  ;;  %v1824_v49 = vpop.f32.mrb[53].mxu1 }
 0x248   : > { %v4283_v22 = vsel %vm1321_vm4, %v2374_v50, -inf  ;;  %v4282_v27 = vsel %vm1321_vm4, %v2373_v16, -inf  ;;  %v2311_v15 = vadd.f32 %v2202_v6, %v1824_v49  ;;  %5758 = vmatprep.mubr.msk.f32.mxu0 %vm1321_vm4, %v2373_v16  ;;  %v4770_v28 = vsel %vm4687_vm7, %v4254_v48, %v4769_v10 }
 0x249   : > { %v4263_v21 = vmax.f32 %v4261_v38, %v4262_v34  ;;  %v4270_v26 = vmax.f32 %v4268_v40, %v4269_v33  ;;  %v4277_v19 = vmax.f32 %v4275_v23, %v4276_v29  ;;  %v4284_v11 = vmax.f32 %v4282_v27, %v4283_v22  ;;  %5759 = vmatmul.mubr.msk.f32.gmra.mrb[54].mxu0 %vm1321_vm4, %v2374_v50 }
 0x24a   : > { %v2376_v2 = vmax.f32 %v2312_v57, 0.0  ;;  %v2375_v42 = vmax.f32 %v2311_v15, 0.0  ;;  %v5566_v53 = vpop.f32.mrb[54].mxu1  ;;  %v2084_v23 = vrot.slane %v7073_v44, %v7557_v39  ;;  %v2098_v16 = vrot.slane %v2070_v59, %v7557_v39 }
 0x24b   : > { %v4271_v36 = vrot.slane %v4270_v26, 1  ;;  %v4278_v14 = vrot.slane %v4277_v19, 2  ;;  %v4285_v35 = vrot.slane %v4284_v11, 4  ;;  %v2314_v60 = vadd.f32 %v5566_v53, %v2206_v17  ;;  %v1834_v20 = vpop.f32.mrb[55].mxu1 }
 0x24c   : > { %v4292_v24 = vsel %vm1321_vm4, %v2376_v2, -inf  ;;  %v4291_v31 = vsel %vm1321_vm4, %v2375_v42, -inf  ;;  %v2313_v63 = vadd.f32 %v2206_v17, %v1834_v20  ;;  %5761 = vmatprep.mubr.msk.f32.mxu0 %vm1321_vm4, %v2375_v42  ;;  %v4771_v4 = vsel %vm4689_vm8, %v4263_v21, %v4770_v28 }
 0x24d   : > { %v4272_v46 = vmax.f32 %v4270_v26, %v4271_v36  ;;  %v4279_v3 = vmax.f32 %v4277_v19, %v4278_v14  ;;  %v4286_v54 = vmax.f32 %v4284_v11, %v4285_v35  ;;  %v4293_v41 = vmax.f32 %v4291_v31, %v4292_v24  ;;  %5762 = vmatmul.mubr.msk.f32.gmra.mrb[56].mxu0 %vm1321_vm4, %v2376_v2 }
 0x24e   : > { %v2378_v37 = vmax.f32 %v2314_v60, 0.0  ;;  %v2377_v61 = vmax.f32 %v2313_v63, 0.0  ;;  %v5569_v58 = vpop.f32.mrb[56].mxu1  ;;  %v2218_v19 = vrot.slane %v2084_v23, %v7558_v13  ;;  %v2222_v63 = vrot.slane %v2098_v16, %v7558_v13 }
 0x24f   : > { %v4280_v12 = vrot.slane %v4279_v3, 1  ;;  %v4287_v6 = vrot.slane %v4286_v54, 2  ;;  %v4294_v32 = vrot.slane %v4293_v41, 4  ;;  %v2316_v5 = vadd.f32 %v5569_v58, %v2210_v56  ;;  %v1844_v47 = vpop.f32.mrb[57].mxu1 }
 0x250   : > { %v4301_v9 = vsel %vm1321_vm4, %v2378_v37, -inf  ;;  %v4300_v7 = vsel %vm1321_vm4, %v2377_v61, -inf  ;;  %v2315_v25 = vadd.f32 %v2210_v56, %v1844_v47  ;;  %5764 = vmatprep.mubr.msk.f32.mxu0 %vm1321_vm4, %v2377_v61  ;;  %v4772_v45 = vsel %vm4691_vm9, %v4272_v46, %v4771_v4 }
 0x251   : > { %v4288_v1 = vmax.f32 %v4286_v54, %v4287_v6  ;;  %v4295_v0 = vmax.f32 %v4293_v41, %v4294_v32  ;;  %v4302_v10 = vmax.f32 %v4300_v7, %v4301_v9  ;;  %v2380_v48 = vmax.f32 %v2316_v5, 0.0  ;;  %5765 = vmatmul.mubr.msk.f32.gmra.mrb[58].mxu0 %vm1321_vm4, %v2378_v37 }
 0x252   : > { %v2379_v38 = vmax.f32 %v2315_v25, 0.0  ;;  %v5572_v40 = vpop.f32.mrb[58].mxu1  ;;  %v4281_v50 = vmax.f32 %v4279_v3, %v4280_v12  ;;  %v2100_v54 = vcombine.high %v2084_v23, %v2084_v23  ;;  %v2102_v41 = vcombine.high %v2098_v16, %v2098_v16 }
 0x253   : > { %v4296_v51 = vrot.slane %v4295_v0, 2  ;;  %v4303_v17 = vrot.slane %v4302_v10, 4  ;;  %v4310_v30 = vsel %vm1321_vm4, %v2380_v48, -inf  ;;  %v2318_v34 = vadd.f32 %v5572_v40, %v2214_v55  ;;  %v1854_v33 = vpop.f32.mrb[59].mxu1 }
 0x254   : > { %v4309_v29 = vsel %vm1321_vm4, %v2379_v38, -inf  ;;  %v2317_v57 = vadd.f32 %v2214_v55, %v1854_v33  ;;  %5767 = vmatprep.mubr.msk.f32.mxu0 %vm1321_vm4, %v2379_v38  ;;  %v4289_v49 = vrot.slane %v4288_v1, 1  ;;  %v4773_v22 = vsel %vm4693_vm10, %v4281_v50, %v4772_v45 }
 0x255   : > { %v4297_v27 = vmax.f32 %v4295_v0, %v4296_v51  ;;  %v4304_v15 = vmax.f32 %v4302_v10, %v4303_v17  ;;  %v4311_v44 = vmax.f32 %v4309_v29, %v4310_v30  ;;  %v2382_v28 = vmax.f32 %v2318_v34, 0.0  ;;  %5768 = vmatmul.mubr.msk.f32.gmra.mrb[60].mxu0 %vm1321_vm4, %v2380_v48 }
 0x256   : > { %v2381_v21 = vmax.f32 %v2317_v57, 0.0  ;;  %v5575_v26 = vpop.f32.mrb[60].mxu1  ;;  %v4290_v11 = vmax.f32 %v4288_v1, %v4289_v49  ;;  %v2226_v10 = vrot.slane %v2100_v54, %v7558_v13  ;;  %v2230_v48 = vrot.slane %v2102_v41, %v7558_v13 }
 0x257   : > { %v4298_v2 = vrot.slane %v4297_v27, 1  ;;  %v4305_v42 = vrot.slane %v4304_v15, 2  ;;  %v4312_v53 = vrot.slane %v4311_v44, 4  ;;  %v4319_v56 = vsel %vm1321_vm4, %v2382_v28, -inf  ;;  %v1864_v43 = vpop.f32.mrb[61].mxu1 }
 0x258   : > { %v4318_v36 = vsel %vm1321_vm4, %v2381_v21, -inf  ;;  %v2320_v14 = vadd.f32 %v5575_v26, %v2218_v19  ;;  %v2319_v35 = vadd.f32 %v2218_v19, %v1864_v43  ;;  %v4774_v60 = vsel %vm4695_vm11, %v4290_v11, %v4773_v22  ;;  %5770 = vmatprep.mubr.msk.f32.mxu0 %vm1321_vm4, %v2381_v21 }
 0x259   : > { %v4306_v20 = vmax.f32 %v4304_v15, %v4305_v42  ;;  %v4313_v24 = vmax.f32 %v4311_v44, %v4312_v53  ;;  %v4320_v31 = vmax.f32 %v4318_v36, %v4319_v56  ;;  %4786 = vrot.lane.b32.xlu1 %v4774_v60, %s5941_s28  ;;  %5771 = vmatmul.mubr.msk.f32.gmra.mrb[62].mxu0 %vm1321_vm4, %v2382_v28 }
 0x25a   : > { %v2384_v4 = vmax.f32 %v2320_v14, 0.0  ;;  %v2383_v46 = vmax.f32 %v2319_v35, 0.0  ;;  %v5578_v3 = vpop.f32.mrb[62].mxu1  ;;  %v4299_v12 = vmax.f32 %v4297_v27, %v4298_v2 }
 0x25b   : > { %v4307_v37 = vrot.slane %v4306_v20, 1  ;;  %v4314_v61 = vrot.slane %v4313_v24, 2  ;;  %v4321_v58 = vrot.slane %v4320_v31, 4  ;;  %v2322_v55 = vadd.f32 %v5578_v3, %v2222_v63  ;;  %v1874_v59 = vpop.f32.mrb[63].mxu1 }
 0x25c   : > { %v4328_v6 = vsel %vm1321_vm4, %v2384_v4, -inf  ;;  %v4327_v32 = vsel %vm1321_vm4, %v2383_v46, -inf  ;;  %v2321_v5 = vadd.f32 %v2222_v63, %v1874_v59  ;;  %5773 = vmatprep.mubr.msk.f32.mxu0 %vm1321_vm4, %v2383_v46 }
 0x25d   : > { %v4308_v47 = vmax.f32 %v4306_v20, %v4307_v37  ;;  %v4315_v9 = vmax.f32 %v4313_v24, %v4314_v61  ;;  %v4322_v7 = vmax.f32 %v4320_v31, %v4321_v58  ;;  %v4329_v25 = vmax.f32 %v4327_v32, %v4328_v6  ;;  %5774 = vmatmul.mubr.msk.f32.gmra.mrb[64].mxu0 %vm1321_vm4, %v2384_v4 }
 0x25e   : > { %v2386_v45 = vmax.f32 %v2322_v55, 0.0  ;;  %v2385_v1 = vmax.f32 %v2321_v5, 0.0  ;;  %v5581_v0 = vpop.f32.mrb[64].mxu1 }
 0x25f   : > { %v4775_v38 = vsel %vm4683_vm5, %v4308_v47, %v4299_v12  ;;  %v4316_v40 = vrot.slane %v4315_v9, 1  ;;  %v4323_v23 = vrot.slane %v4322_v7, 2  ;;  %v4330_v50 = vrot.slane %v4329_v25, 4  ;;  %v1884_v16 = vpop.f32.mrb[65].mxu1 }
 0x260   : > { %v4337_v51 = vsel %vm1321_vm4, %v2386_v45, -inf  ;;  %v4336_v17 = vsel %vm1321_vm4, %v2385_v1, -inf  ;;  %v2324_v30 = vadd.f32 %v5581_v0, %v2226_v10  ;;  %v2323_v34 = vadd.f32 %v2226_v10, %v1884_v16  ;;  %5776 = vmatprep.mubr.msk.f32.mxu0 %vm1321_vm4, %v2385_v1 }
 0x261   : > { %v4317_v33 = vmax.f32 %v4315_v9, %v4316_v40  ;;  %v4324_v29 = vmax.f32 %v4322_v7, %v4323_v23  ;;  %v4331_v57 = vmax.f32 %v4329_v25, %v4330_v50  ;;  %v4338_v49 = vmax.f32 %v4336_v17, %v4337_v51  ;;  %5777 = vmatmul.mubr.msk.f32.gmra.mrb[66].mxu0 %vm1321_vm4, %v2386_v45 }
 0x262   : > { %v2388_v22 = vmax.f32 %v2324_v30, 0.0  ;;  %v2387_v27 = vmax.f32 %v2323_v34, 0.0  ;;  %v5584_v15 = vpop.f32.mrb[66].mxu1 }
 0x263   : > { %v4325_v44 = vrot.slane %v4324_v29, 1  ;;  %v4332_v28 = vrot.slane %v4331_v57, 2  ;;  %v4339_v21 = vrot.slane %v4338_v49, 4  ;;  %v2326_v26 = vadd.f32 %v5584_v15, %v2230_v48  ;;  %v1894_v19 = vpop.f32.mrb[67].mxu1 }
 0x264   : > { %v4346_v11 = vsel %vm1321_vm4, %v2388_v22, -inf  ;;  %v4345_v2 = vsel %vm1321_vm4, %v2387_v27, -inf  ;;  %v2325_v42 = vadd.f32 %v2230_v48, %v1894_v19  ;;  %5779 = vmatprep.mubr.msk.f32.mxu0 %vm1321_vm4, %v2387_v27  ;;  %v4776_v53 = vsel %vm4685_vm6, %v4317_v33, %v4775_v38 }
 0x265   : > { %v4326_v56 = vmax.f32 %v4324_v29, %v4325_v44  ;;  %v4333_v43 = vmax.f32 %v4331_v57, %v4332_v28  ;;  %v4340_v36 = vmax.f32 %v4338_v49, %v4339_v21  ;;  %v4347_v14 = vmax.f32 %v4345_v2, %v4346_v11  ;;  %5780 = vmatmul.mubr.msk.f32.gmra.mrb[68].mxu0 %vm1321_vm4, %v2388_v22  ;;  %v5911_v57 = vld [vmem:[%s6037_s30 + $0x18] sm:$0xff] }
 0x266   : > { %v2390_v35 = vmax.f32 %v2326_v26, 0.0  ;;  %v2389_v60 = vmax.f32 %v2325_v42, 0.0  ;;  %v7165_v20 = vpop.f32.mrb[68].mxu1 }
 0x267   : > { %v4334_v24 = vrot.slane %v4333_v43, 1  ;;  %v4341_v31 = vrot.slane %v4340_v36, 2  ;;  %v4348_v63 = vrot.slane %v4347_v14, 4  ;;  %v7167_v4 = vpop.f32.mrb[69].mxu1  ;;  %v4777_v46 = vsel %vm4687_vm7, %v4326_v56, %v4776_v53 }
 0x268   : > { %v4355_v3 = vsel %vm1321_vm4, %v2390_v35, -inf  ;;  %v4354_v54 = vsel %vm1321_vm4, %v2389_v60, -inf  ;;  %5782 = vmatprep.mubr.msk.f32.mxu0 %vm1321_vm4, %v2389_v60 }
 0x269   : > { %v4335_v41 = vmax.f32 %v4333_v43, %v4334_v24  ;;  %v4342_v37 = vmax.f32 %v4340_v36, %v4341_v31  ;;  %v4349_v61 = vmax.f32 %v4347_v14, %v4348_v63  ;;  %v4356_v58 = vmax.f32 %v4354_v54, %v4355_v3  ;;  %5783 = vmatmul.mubr.msk.f32.gmra.mrb[70].mxu0 %vm1321_vm4, %v2390_v35 }
 0x26a   : > { %v7174_v55 = vpop.f32.mrb[70].mxu1 }
 0x26b   : > { %v4343_v59 = vrot.slane %v4342_v37, 1  ;;  %v4350_v12 = vrot.slane %v4349_v61, 2  ;;  %v4357_v6 = vrot.slane %v4356_v58, 4  ;;  %v7176_v32 = vpop.f32.mrb[71].mxu1  ;;  %v4778_v5 = vsel %vm4689_vm8, %v4335_v41, %v4777_v46  ;;  %v5912_v46 = vld [vmem:[%s7529_s10] ss:$0 sm:$0xff] }
 0x26c   : > { %v813_v3 = vadd.f32 %v5912_v46, %v6948_v62 }
 0x26d   : > { %v4344_v47 = vmax.f32 %v4342_v37, %v4343_v59  ;;  %v4351_v9 = vmax.f32 %v4349_v61, %v4350_v12  ;;  %v4358_v7 = vmax.f32 %v4356_v58, %v4357_v6 }
 0x26e   : > { %v7179_v25 = vpop.f32.mrb[72].mxu1  ;;  %v3374_v54 = vrot.slane %v813_v3, %v7557_v39 }
 0x26f   : > { %v4352_v45 = vrot.slane %v4351_v9, 1  ;;  %v4359_v1 = vrot.slane %v4358_v7, 2  ;;  %v7181_v0 = vpop.f32.mrb[73].mxu1  ;;  %v4779_v10 = vsel %vm4691_vm9, %v4344_v47, %v4778_v5 }
 0x270   : > { %v3382_v41 = vcombine.high %v3374_v54, %v3374_v54  ;;  %v3390_v37 = vrot.slane %v3374_v54, %v7557_v39 }
 0x271   : > { %v4360_v48 = vmax.f32 %v4358_v7, %v4359_v1  ;;  %v4353_v38 = vmax.f32 %v4351_v9, %v4352_v45  ;;  %v3367_v45 = vcombine.high %v813_v3, %v813_v3 }
 0x272   : > { %v7184_v40 = vpop.f32.mrb[74].mxu1  ;;  %v3566_v61 = vrot.slane %v3390_v37, %v7558_v13  ;;  %v3404_v58 = vrot.slane %v3382_v41, %v7557_v39  ;;  %v3412_v7 = vcombine.high %v3390_v37, %v3390_v37 }
 0x273   : > { %v7186_v23 = vpop.f32.mrb[75].mxu1  ;;  %v4361_v50 = vrot.slane %v4360_v48, 1  ;;  %v4780_v16 = vsel %vm4693_vm10, %v4353_v38, %v4779_v10  ;;  %v3381_v54 = vrot.slane %v3367_v45, %v7557_v39 }
 0x274   : > { %v3570_v9 = vrot.slane %v3404_v58, %v7558_v13 }
 0x275   : > { %v4362_v51 = vmax.f32 %v4360_v48, %v4361_v50  ;;  %v3383_v45 = vcombine.high %v3381_v54, %v3381_v54 }
 0x276   : > { %v7189_v17 = vpop.f32.mrb[76].mxu1 }
 0x277   : > { %v7191_v30 = vpop.f32.mrb[77].mxu1  ;;  %v4781_v34 = vsel %vm4695_vm11, %v4362_v51, %v4780_v16 }
 0x278   : > { %4788 = vrot.lane.b32.xlu1 %v4781_v34, %s5941_s28  ;;  %v3574_v34 = vrot.slane %v3412_v7, %v7558_v13 }
 0x27a   : > { %v7195_v33 = vpop.f32.mrb[78].mxu1 }
 0x27b   : > { %v7197_v29 = vpop.f32.mrb[79].mxu1 }
 0x27c   : > { %4872 = vrot.lane.b32.xlu1 %v5911_v57, %s5938_s23  ;;  %v3414_v57 = vcombine.high %v3404_v58, %v3404_v58  ;;  %v3397_v58 = vrot.slane %v3381_v54, %v7557_v39 }
 0x27e   : > { %v7201_v49 = vpop.f32.mrb[80].mxu1 }
 0x27f   : > { %v7203_v22 = vpop.f32.mrb[81].mxu1 }
 0x282   : > { %v7205_v27 = vpop.f32.mrb[82].mxu1 }
 0x283   : > { %v7207_v15 = vpop.f32.mrb[83].mxu1 }
 0x286   : > { %v7209_v44 = vpop.f32.mrb[84].mxu1 }
 0x287   : > { %v7211_v28 = vpop.f32.mrb[85].mxu1 }
 0x28a   : > { %v7213_v21 = vpop.f32.mrb[86].mxu1 }
 0x28b   : > { %v7215_v26 = vpop.f32.mrb[87].mxu1 }
 0x28e   : > { %v7217_v19 = vpop.f32.mrb[88].mxu1 }
 0x28f   : > { %v7219_v11 = vpop.f32.mrb[89].mxu1 }
 0x292   : > { %v7221_v2 = vpop.f32.mrb[90].mxu1 }
 0x293   : > { %v7223_v42 = vpop.f32.mrb[91].mxu1 }
 0x296   : > { %v7225_v53 = vpop.f32.mrb[92].mxu1 }
 0x297   : > { %v7227_v56 = vpop.f32.mrb[93].mxu1 }
 0x29a   : > { %v7229_v43 = vpop.f32.mrb[94].mxu1 }
 0x29b   : > { %v7231_v36 = vpop.f32.mrb[95].mxu1 }
 0x29e   : > { %v7233_v14 = vpop.f32.mrb[96].mxu1 }
 0x29f   : > { %v7235_v35 = vpop.f32.mrb[97].mxu1 }
 0x2a0   : > { %7559 = vst [vmem:[#allocation4_spill] sm:$0xff] %v7235_v35 }
 0x2a2   : > { %v7237_v60 = vpop.f32.mrb[98].mxu1 }
 0x2a3   : > { %7560 = vst [vmem:[#allocation5_spill] sm:$0xff] %v7237_v60  ;;  %v7239_v24 = vpop.f32.mrb[99].mxu1 }
 0x2a4   : > { %7561 = vst [vmem:[#allocation6_spill] sm:$0xff] %v7239_v24 }
 0x2a6   : > { %v7241_v31 = vpop.f32.mrb[100].mxu1 }
 0x2a7   : > { %7562 = vst [vmem:[#allocation7_spill] sm:$0xff] %v7241_v31  ;;  %v7243_v63 = vpop.f32.mrb[101].mxu1 }
 0x2a8   : > { %7563 = vst [vmem:[#allocation8_spill] sm:$0xff] %v7243_v63  ;;  %v3411_v63 = vrot.slane %v3383_v45, %v7557_v39 }
 0x2aa   : > { %v3586_v45 = vrot.slane %v3411_v63, %v7558_v13 }
 0x2b9   : > { %v5691_v59 = vpop.f32.mrb[8].mxu0 }
 0x2ba   : > { %v3724_v12 = vadd.f32 %v5691_v59, %v3566_v61  ;;  %v3044_v6 = vpop.f32.mrb[9].mxu0 }
 0x2bb   : > { %v3723_v5 = vadd.f32 %v3566_v61, %v3044_v6 }
 0x2bc   : > { %v3788_v47 = vsel %vm1321_vm4, %v3724_v12, -inf }
 0x2bd   : > { %v3787_v62 = vsel %vm1321_vm4, %v3723_v5, -inf  ;;  %v5694_v1 = vpop.f32.mrb[10].mxu0 }
 0x2be   : > { %v3789_v10 = vmax.f32 %v3787_v62, %v3788_v47  ;;  %v3726_v48 = vadd.f32 %v5694_v1, %v3570_v9  ;;  %v3054_v38 = vpop.f32.mrb[11].mxu0  ;;  %v3578_v62 = vrot.slane %v3414_v57, %v7558_v13 }
 0x2bf   : > { %v3725_v50 = vadd.f32 %v3570_v9, %v3054_v38 }
 0x2c0   : > { %v3790_v16 = vrot.slane %v3789_v10, 4  ;;  %v3797_v51 = vsel %vm1321_vm4, %v3726_v48, -inf }
 0x2c1   : > { %v3796_v41 = vsel %vm1321_vm4, %v3725_v50, -inf  ;;  %v5697_v61 = vpop.f32.mrb[12].mxu0 }
 0x2c2   : > { %v3791_v37 = vmax.f32 %v3789_v10, %v3790_v16  ;;  %v3798_v3 = vmax.f32 %v3796_v41, %v3797_v51  ;;  %v3728_v59 = vadd.f32 %v5697_v61, %v3574_v34  ;;  %v3064_v12 = vpop.f32.mrb[13].mxu0 }
 0x2c3   : > { %v3727_v6 = vadd.f32 %v3574_v34, %v3064_v12 }
 0x2c4   : > { %v3792_v5 = vrot.slane %v3791_v37, 2  ;;  %v3799_v47 = vrot.slane %v3798_v3, 4  ;;  %v3806_v9 = vsel %vm1321_vm4, %v3728_v59, -inf }
 0x2c5   : > { %v3805_v1 = vsel %vm1321_vm4, %v3727_v6, -inf  ;;  %v5700_v7 = vpop.f32.mrb[14].mxu0  ;;  %v3582_v6 = vrot.slane %v3397_v58, %v7558_v13 }
 0x2c6   : > { %v3793_v48 = vmax.f32 %v3791_v37, %v3792_v5  ;;  %v3800_v38 = vmax.f32 %v3798_v3, %v3799_v47  ;;  %v3807_v50 = vmax.f32 %v3805_v1, %v3806_v9  ;;  %v3730_v10 = vadd.f32 %v5700_v7, %v3578_v62  ;;  %v3074_v16 = vpop.f32.mrb[15].mxu0 }
 0x2c7   : > { %v3729_v51 = vadd.f32 %v3578_v62, %v3074_v16  ;;  %v7269_v5 = vadd.f32 %v5912_v46, %v6938_v18 }
 0x2c8   : > { %v3801_v41 = vrot.slane %v3800_v38, 2  ;;  %v3808_v34 = vrot.slane %v3807_v50, 4  ;;  %v3815_v61 = vsel %vm1321_vm4, %v3730_v10, -inf  ;;  %v3794_v12 = vrot.slane %v3793_v48, 1 }
 0x2c9   : > { %v3814_v59 = vsel %vm1321_vm4, %v3729_v51, -inf  ;;  %v5703_v57 = vpop.f32.mrb[16].mxu0  ;;  %v3413_v10 = vcombine.high %v3397_v58, %v3397_v58  ;;  %v3423_v46 = vrot.slane %v7269_v5, %v7557_v39 }
 0x2ca   : > { %v3802_v31 = vmax.f32 %v3800_v38, %v3801_v41  ;;  %v3809_v54 = vmax.f32 %v3807_v50, %v3808_v34  ;;  %v3816_v37 = vmax.f32 %v3814_v59, %v3815_v61  ;;  %v3084_v3 = vpop.f32.mrb[17].mxu0  ;;  %v3732_v47 = vadd.f32 %v5703_v57, %v3582_v6 }
 0x2cb   : > { %v3731_v9 = vadd.f32 %v3582_v6, %v3084_v3  ;;  %v3795_v16 = vmax.f32 %v3793_v48, %v3794_v12 }
 0x2cc   : > { %v3803_v62 = vrot.slane %v3802_v31, 1  ;;  %v3810_v1 = vrot.slane %v3809_v54, 2  ;;  %v3817_v7 = vrot.slane %v3816_v37, 4  ;;  %v3824_v51 = vsel %vm1321_vm4, %v3732_v47, -inf }
 0x2cd   : > { %v3823_v24 = vsel %vm1321_vm4, %v3731_v9, -inf  ;;  %v5706_v60 = vpop.f32.mrb[18].mxu0 }
 0x2ce   : > { %v3804_v38 = vmax.f32 %v3802_v31, %v3803_v62  ;;  %v3811_v50 = vmax.f32 %v3809_v54, %v3810_v1  ;;  %v3818_v41 = vmax.f32 %v3816_v37, %v3817_v7  ;;  %v3825_v34 = vmax.f32 %v3823_v24, %v3824_v51  ;;  %v3094_v18 = vpop.f32.mrb[19].mxu0 }
 0x2cf   : > { %v3734_v61 = vadd.f32 %v5706_v60, %v3586_v45  ;;  %v3733_v59 = vadd.f32 %v3586_v45, %v3094_v18  ;;  %v3590_v31 = vrot.slane %v3413_v10, %v7558_v13  ;;  %v3415_v54 = vcombine.high %v3411_v63, %v3411_v63 }
 0x2d0   : > { %v4684_v58 = vsel %vm4683_vm5, %v3804_v38, %v3795_v16  ;;  %v3812_v48 = vrot.slane %v3811_v50, 1  ;;  %v3819_v12 = vrot.slane %v3818_v41, 2  ;;  %v3826_v57 = vrot.slane %v3825_v34, 4 }
 0x2d1   : > { %v3833_v6 = vsel %vm1321_vm4, %v3734_v61, -inf  ;;  %v3832_v3 = vsel %vm1321_vm4, %v3733_v59, -inf  ;;  %v5709_v47 = vpop.f32.mrb[20].mxu0  ;;  %v3431_v60 = vcombine.high %v3423_v46, %v3423_v46  ;;  %v3594_v63 = vrot.slane %v3415_v54, %v7558_v13 }
 0x2d2   : > { %v3813_v24 = vmax.f32 %v3811_v50, %v3812_v48  ;;  %v3820_v37 = vmax.f32 %v3818_v41, %v3819_v12  ;;  %v3827_v9 = vmax.f32 %v3825_v34, %v3826_v57  ;;  %v3834_v62 = vmax.f32 %v3832_v3, %v3833_v6  ;;  %v3104_v1 = vpop.f32.mrb[21].mxu0 }
 0x2d3   : > { %v3736_v7 = vadd.f32 %v5709_v47, %v3590_v31  ;;  %v3735_v51 = vadd.f32 %v3590_v31, %v3104_v1  ;;  %v3439_v10 = vrot.slane %v3423_v46, %v7557_v39  ;;  %v3453_v46 = vrot.slane %v3431_v60, %v7557_v39 }
 0x2d4   : > { %v4686_v16 = vsel %vm4685_vm6, %v3813_v24, %v4684_v58  ;;  %v3821_v45 = vrot.slane %v3820_v37, 1  ;;  %v3828_v38 = vrot.slane %v3827_v9, 2  ;;  %v3835_v18 = vrot.slane %v3834_v62, 4 }
 0x2d5   : > { %v3842_v61 = vsel %vm1321_vm4, %v3736_v7, -inf  ;;  %v3841_v59 = vsel %vm1321_vm4, %v3735_v51, -inf  ;;  %v5712_v35 = vpop.f32.mrb[22].mxu0  ;;  %v3598_v54 = vrot.slane %v3439_v10, %v7558_v13 }
 0x2d6   : > { %v3822_v50 = vmax.f32 %v3820_v37, %v3821_v45  ;;  %v3829_v41 = vmax.f32 %v3827_v9, %v3828_v38  ;;  %v3836_v34 = vmax.f32 %v3834_v62, %v3835_v18  ;;  %v3843_v48 = vmax.f32 %v3841_v59, %v3842_v61  ;;  %v3114_v12 = vpop.f32.mrb[23].mxu0  ;;  %v7290_v37 = vpop.permute.xlu0 %4866 }
 0x2d7   : > { %v3738_v57 = vadd.f32 %v5712_v35, %v3594_v63  ;;  %v3737_v6 = vadd.f32 %v3594_v63, %v3114_v12 }
 0x2d8   : > { %v4688_v58 = vsel %vm4687_vm7, %v3822_v50, %v4686_v16  ;;  %v3830_v3 = vrot.slane %v3829_v41, 1  ;;  %v3837_v47 = vrot.slane %v3836_v34, 2  ;;  %v3844_v31 = vrot.slane %v3843_v48, 4 }
 0x2d9   : > { %v3851_v24 = vsel %vm1321_vm4, %v3738_v57, -inf  ;;  %v3850_v1 = vsel %vm1321_vm4, %v3737_v6, -inf  ;;  %v5715_v7 = vpop.f32.mrb[24].mxu0  ;;  %v3416_v16 = vcombine.high %v7269_v5, %v7269_v5 }
 0x2da   : > { %v3831_v9 = vmax.f32 %v3829_v41, %v3830_v3  ;;  %v3838_v62 = vmax.f32 %v3836_v34, %v3837_v47  ;;  %v3845_v35 = vmax.f32 %v3843_v48, %v3844_v31  ;;  %v3852_v51 = vmax.f32 %v3850_v1, %v3851_v24  ;;  %v3124_v45 = vpop.f32.mrb[25].mxu0  ;;  %v4855_v1 = vpop.permute.xlu0 %4854 }
 0x2db   : > { %v3740_v38 = vadd.f32 %v5715_v7, %v3598_v54  ;;  %v3739_v18 = vadd.f32 %v3598_v54, %v3124_v45  ;;  %v3602_v41 = vrot.slane %v3453_v46, %v7558_v13  ;;  %v3461_v34 = vcombine.high %v3439_v10, %v3439_v10 }
 0x2dc   : > { %v4690_v61 = vsel %vm4689_vm8, %v3831_v9, %v4688_v58  ;;  %v3839_v59 = vrot.slane %v3838_v62, 1  ;;  %v3846_v63 = vrot.slane %v3845_v35, 2  ;;  %v3853_v50 = vrot.slane %v3852_v51, 4 }
 0x2dd   : > { %v3860_v12 = vsel %vm1321_vm4, %v3740_v38, -inf  ;;  %v3859_v60 = vsel %vm1321_vm4, %v3739_v18, -inf  ;;  %v5718_v57 = vpop.f32.mrb[26].mxu0  ;;  %v3430_v31 = vrot.slane %v3416_v16, %v7557_v39 }
 0x2de   : > { %v3840_v48 = vmax.f32 %v3838_v62, %v3839_v59  ;;  %v3847_v6 = vmax.f32 %v3845_v35, %v3846_v63  ;;  %v3854_v3 = vmax.f32 %v3852_v51, %v3853_v50  ;;  %v3861_v47 = vmax.f32 %v3859_v60, %v3860_v12  ;;  %v3134_v5 = vpop.f32.mrb[27].mxu0 }
 0x2df   : > { %v3742_v24 = vadd.f32 %v5718_v57, %v3602_v41  ;;  %v3741_v58 = vadd.f32 %v3602_v41, %v3134_v5  ;;  %v3606_v62 = vrot.slane %v3461_v34, %v7558_v13  ;;  %v3463_v35 = vcombine.high %v3453_v46, %v3453_v46  ;;  %v7303_v57 = vpop.permute.xlu0 %4858 }
 0x2e0   : > { %v4692_v7 = vsel %vm4691_vm9, %v3840_v48, %v4690_v61  ;;  %v3848_v54 = vrot.slane %v3847_v6, 1  ;;  %v3855_v9 = vrot.slane %v3854_v3, 2  ;;  %v3862_v45 = vrot.slane %v3861_v47, 4 }
 0x2e1   : > { %v3869_v38 = vsel %vm1321_vm4, %v3742_v24, -inf  ;;  %v3868_v18 = vsel %vm1321_vm4, %v3741_v58, -inf  ;;  %v5721_v10 = vpop.f32.mrb[28].mxu0  ;;  %v3610_v46 = vrot.slane %v3463_v35, %v7558_v13  ;;  %v3446_v34 = vrot.slane %v3430_v31, %v7557_v39 }
 0x2e2   : > { %v3849_v51 = vmax.f32 %v3847_v6, %v3848_v54  ;;  %v3856_v59 = vmax.f32 %v3854_v3, %v3855_v9  ;;  %v3863_v63 = vmax.f32 %v3861_v47, %v3862_v45  ;;  %v3870_v16 = vmax.f32 %v3868_v18, %v3869_v38  ;;  %v3144_v50 = vpop.f32.mrb[29].mxu0 }
 0x2e3   : > { %v3744_v12 = vadd.f32 %v5721_v10, %v3606_v62  ;;  %v3743_v60 = vadd.f32 %v3606_v62, %v3144_v50  ;;  %v4783_v18 = vpop.permute.xlu0 %4782 }
 0x2e4   : > { %v4694_v61 = vsel %vm4693_vm10, %v3849_v51, %v4692_v7  ;;  %v3857_v41 = vrot.slane %v3856_v59, 1  ;;  %v3864_v48 = vrot.slane %v3863_v63, 2  ;;  %v3871_v5 = vrot.slane %v3870_v16, 4 }
 0x2e5   : > { %v3878_v24 = vsel %vm1321_vm4, %v3744_v12, -inf  ;;  %v3877_v58 = vsel %vm1321_vm4, %v3743_v60, -inf  ;;  %v5724_v9 = vpop.f32.mrb[30].mxu0  ;;  %v3432_v7 = vcombine.high %v3430_v31, %v3430_v31 }
 0x2e6   : > { %v3858_v6 = vmax.f32 %v3856_v59, %v3857_v41  ;;  %v3865_v3 = vmax.f32 %v3863_v63, %v3864_v48  ;;  %v3872_v47 = vmax.f32 %v3870_v16, %v3871_v5  ;;  %v3879_v54 = vmax.f32 %v3877_v58, %v3878_v24  ;;  %v3154_v38 = vpop.f32.mrb[31].mxu0 }
 0x2e7   : > { %v3746_v45 = vadd.f32 %v5724_v9, %v3610_v46  ;;  %v3745_v12 = vadd.f32 %v3610_v46, %v3154_v38  ;;  %v3614_v16 = vrot.slane %v3446_v34, %v7558_v13  ;;  %v3460_v48 = vrot.slane %v3432_v7, %v7557_v39 }
 0x2e8   : > { %v4696_v10 = vsel %vm4695_vm11, %v3858_v6, %v4694_v61  ;;  %v3873_v62 = vrot.slane %v3872_v47, 2  ;;  %v3880_v51 = vrot.slane %v3879_v54, 4  ;;  %v3866_v50 = vrot.slane %v3865_v3, 1 }
 0x2e9   : > { %v3887_v35 = vsel %vm1321_vm4, %v3746_v45, -inf  ;;  %v4878_v31 = vsel %vm1321_vm4, %v4696_v10, %v4783_v18  ;;  %v3886_v61 = vsel %vm1321_vm4, %v3745_v12, -inf  ;;  %v5727_v41 = vpop.f32.mrb[32].mxu0 }
 0x2ea   : > { %v3874_v59 = vmax.f32 %v3872_v47, %v3873_v62  ;;  %v3881_v63 = vmax.f32 %v3879_v54, %v3880_v51  ;;  %v4882_v60 = vsel %vm543_vm0, %v4878_v31, %v4855_v1  ;;  %v3888_v46 = vmax.f32 %v3886_v61, %v3887_v35  ;;  %v3164_v9 = vpop.f32.mrb[33].mxu0 }
 0x2eb   : > { %v4887_v5 = vsel %vm4886_vm12, %v4882_v60, %v7290_v37  ;;  %v3748_v6 = vadd.f32 %v5727_v41, %v3614_v16  ;;  %v3867_v47 = vmax.f32 %v3865_v3, %v3866_v50  ;;  %v3747_v54 = vadd.f32 %v3614_v16, %v3164_v9 }
 0x2ec   : > { %v3875_v24 = vrot.slane %v3874_v59, 1  ;;  %v3882_v58 = vrot.slane %v3881_v63, 2  ;;  %4892 = vst.msk [vmem:[%s7317_s13] sm:$0xff] %vm4891_vm13, %v4887_v5  ;;  %v3889_v1 = vrot.slane %v3888_v46, 4  ;;  %v3618_v62 = vrot.slane %v3460_v48, %v7558_v13 }
 0x2ed   : > { %v3896_v18 = vsel %vm1321_vm4, %v3748_v6, -inf  ;;  %v3895_v10 = vsel %vm1321_vm4, %v3747_v54, -inf  ;;  %v5730_v7 = vpop.f32.mrb[34].mxu0  ;;  %v3462_v37 = vcombine.high %v3446_v34, %v3446_v34 }
 0x2ee   : > { %v3876_v45 = vmax.f32 %v3874_v59, %v3875_v24  ;;  %v3883_v38 = vmax.f32 %v3881_v63, %v3882_v58  ;;  %v3890_v12 = vmax.f32 %v3888_v46, %v3889_v1  ;;  %v3897_v31 = vmax.f32 %v3895_v10, %v3896_v18  ;;  %v3174_v60 = vpop.f32.mrb[35].mxu0 }
 0x2ef   : > { %v3750_v61 = vadd.f32 %v5730_v7, %v3618_v62  ;;  %v3749_v3 = vadd.f32 %v3618_v62, %v3174_v60  ;;  %v3622_v24 = vrot.slane %v3462_v37, %v7558_v13 }
 0x2f0   : > { %v4697_v51 = vsel %vm4683_vm5, %v3876_v45, %v3867_v47  ;;  %v3884_v35 = vrot.slane %v3883_v38, 1  ;;  %v3891_v59 = vrot.slane %v3890_v12, 2  ;;  %v3898_v63 = vrot.slane %v3897_v31, 4 }
 0x2f1   : > { %v3905_v16 = vsel %vm1321_vm4, %v3750_v61, -inf  ;;  %v3904_v41 = vsel %vm1321_vm4, %v3749_v3, -inf  ;;  %v5733_v5 = vpop.f32.mrb[36].mxu0  ;;  %v3464_v45 = vcombine.high %v3460_v48, %v3460_v48 }
 0x2f2   : > { %v3885_v50 = vmax.f32 %v3883_v38, %v3884_v35  ;;  %v3892_v58 = vmax.f32 %v3890_v12, %v3891_v59  ;;  %v3899_v6 = vmax.f32 %v3897_v31, %v3898_v63  ;;  %v3906_v9 = vmax.f32 %v3904_v41, %v3905_v16  ;;  %v3184_v46 = vpop.f32.mrb[37].mxu0 }
 0x2f3   : > { %v3752_v47 = vadd.f32 %v5733_v5, %v3622_v24  ;;  %v3751_v54 = vadd.f32 %v3622_v24, %v3184_v46  ;;  %v3472_v12 = vrot.slane %v7017_v52, %v7557_v39  ;;  %v3626_v48 = vrot.slane %v3464_v45, %v7558_v13 }
 0x2f4   : > { %v4698_v34 = vsel %vm4685_vm6, %v3885_v50, %v4697_v51  ;;  %v3893_v1 = vrot.slane %v3892_v58, 1  ;;  %v3900_v38 = vrot.slane %v3899_v6, 2  ;;  %v3907_v18 = vrot.slane %v3906_v9, 4 }
 0x2f5   : > { %v3914_v10 = vsel %vm1321_vm4, %v3752_v47, -inf  ;;  %v3913_v7 = vsel %vm1321_vm4, %v3751_v54, -inf  ;;  %v5736_v62 = vpop.f32.mrb[38].mxu0  ;;  %v3488_v46 = vrot.slane %v3472_v12, %v7557_v39 }
 0x2f6   : > { %v3894_v35 = vmax.f32 %v3892_v58, %v3893_v1  ;;  %v3901_v60 = vmax.f32 %v3899_v6, %v3900_v38  ;;  %v3908_v37 = vmax.f32 %v3906_v9, %v3907_v18  ;;  %v3915_v61 = vmax.f32 %v3913_v7, %v3914_v10  ;;  %v3194_v51 = vpop.f32.mrb[39].mxu0 }
 0x2f7   : > { %v3200_v31 = vadd.f32 %v5736_v62, %v7165_v20  ;;  %v3195_v3 = vadd.f32 %v3194_v51, %v7167_v4  ;;  %v3480_v9 = vcombine.high %v3472_v12, %v3472_v12  ;;  %v3630_v62 = vrot.slane %v3488_v46, %v7558_v13 }
 0x2f8   : > { %v4699_v50 = vsel %vm4687_vm7, %v3894_v35, %v4698_v34  ;;  %v3902_v59 = vrot.slane %v3901_v60, 1  ;;  %v3909_v63 = vrot.slane %v3908_v37, 2  ;;  %v3916_v16 = vrot.slane %v3915_v61, 4 }
 0x2f9   : > { %v3754_v41 = vadd.f32 %v3626_v48, %v3200_v31  ;;  %v3753_v5 = vadd.f32 %v3626_v48, %v3195_v3  ;;  %v3465_v31 = vcombine.high %v7017_v52, %v7017_v52  ;;  %v3514_v3 = vcombine.high %v6984_v8, %v6984_v8 }
 0x2fa   : > { %v3903_v24 = vmax.f32 %v3901_v60, %v3902_v59  ;;  %v3910_v58 = vmax.f32 %v3908_v37, %v3909_v63  ;;  %v3917_v6 = vmax.f32 %v3915_v61, %v3916_v16  ;;  %v3502_v60 = vrot.slane %v3480_v9, %v7557_v39 }
 0x2fb   : > { %v3923_v47 = vsel %vm1321_vm4, %v3754_v41, -inf  ;;  %v3922_v20 = vsel %vm1321_vm4, %v3753_v5, -inf }
 0x2fc   : > { %v4700_v54 = vsel %vm4689_vm8, %v3903_v24, %v4699_v50  ;;  %v3911_v4 = vrot.slane %v3910_v58, 1  ;;  %v3918_v45 = vrot.slane %v3917_v6, 2  ;;  %v3924_v34 = vmax.f32 %v3922_v20, %v3923_v47 }
 0x2fd   : > { %v3634_v5 = vrot.slane %v3502_v60, %v7558_v13  ;;  %v3479_v47 = vrot.slane %v3465_v31, %v7557_v39 }
 0x2fe   : > { %v3912_v1 = vmax.f32 %v3910_v58, %v3911_v4  ;;  %v3919_v38 = vmax.f32 %v3917_v6, %v3918_v45  ;;  %v3925_v18 = vrot.slane %v3924_v34, 4  ;;  %v3510_v58 = vcombine.high %v3488_v46, %v3488_v46  ;;  %v4869_v46 = vpop.permute.xlu1 %4868 }
 0x2ff   : > { %v7366_v4 = vrot.slane %v6984_v8, %v7557_v39 }
 0x300   : > { %v5739_v10 = vpop.f32.mrb[40].mxu0  ;;  %v4701_v37 = vsel %vm4691_vm9, %v3912_v1, %v4700_v54  ;;  %v3920_v61 = vrot.slane %v3919_v38, 1  ;;  %v3926_v51 = vmax.f32 %v3924_v34, %v3925_v18  ;;  %v3512_v1 = vcombine.high %v3502_v60, %v3502_v60 }
 0x301   : > { %v3210_v7 = vadd.f32 %v5739_v10, %v7174_v55  ;;  %v3204_v35 = vpop.f32.mrb[41].mxu0 }
 0x302   : > { %v3205_v12 = vadd.f32 %v3204_v35, %v7176_v32  ;;  %v3921_v50 = vmax.f32 %v3919_v38, %v3920_v61  ;;  %v3927_v55 = vrot.slane %v3926_v51, 2  ;;  %v3481_v61 = vcombine.high %v3479_v47, %v3479_v47 }
 0x303   : > { %v3756_v48 = vadd.f32 %v3630_v62, %v3210_v7 }
 0x304   : > { %v3755_v59 = vadd.f32 %v3630_v62, %v3205_v12  ;;  %v5742_v63 = vpop.f32.mrb[42].mxu0  ;;  %v4702_v32 = vsel %vm4693_vm10, %v3921_v50, %v4701_v37  ;;  %v3928_v6 = vmax.f32 %v3926_v51, %v3927_v55  ;;  %v7372_v62 = vrot.slane %v3514_v3, %v7557_v39 }
 0x305   : > { %v3932_v16 = vsel %vm1321_vm4, %v3756_v48, -inf  ;;  %v3220_v41 = vadd.f32 %v5742_v63, %v7179_v25  ;;  %v3214_v24 = vpop.f32.mrb[43].mxu0  ;;  %v3495_v55 = vrot.slane %v3479_v47, %v7557_v39 }
 0x306   : > { %v3931_v52 = vsel %vm1321_vm4, %v3755_v59, -inf  ;;  %v3215_v9 = vadd.f32 %v3214_v24, %v7181_v0  ;;  %v3929_v25 = vrot.slane %v3928_v6, 1  ;;  %v3638_v0 = vrot.slane %v3510_v58, %v7558_v13  ;;  %v4785_v59 = vpop.permute.xlu0 %4784 }
 0x307   : > { %v3933_v20 = vmax.f32 %v3931_v52, %v3932_v16  ;;  %v3758_v54 = vadd.f32 %v3634_v5, %v3220_v41 }
 0x308   : > { %v3757_v45 = vadd.f32 %v3634_v5, %v3215_v9  ;;  %v5745_v34 = vpop.f32.mrb[44].mxu0  ;;  %v3930_v35 = vmax.f32 %v3928_v6, %v3929_v25  ;;  %v3529_v5 = vcombine.high %v7366_v4, %v7366_v4  ;;  %v4857_v6 = vpop.permute.xlu1 %4856 }
 0x309   : > { %v3934_v38 = vrot.slane %v3933_v20, 4  ;;  %v3941_v18 = vsel %vm1321_vm4, %v3758_v54, -inf  ;;  %v3230_v10 = vadd.f32 %v5745_v34, %v7184_v40  ;;  %v3224_v7 = vpop.f32.mrb[45].mxu0  ;;  %v3642_v40 = vrot.slane %v3512_v1, %v7558_v13 }
 0x30a   : > { %v3940_v8 = vsel %vm1321_vm4, %v3757_v45, -inf  ;;  %v3225_v37 = vadd.f32 %v3224_v7, %v7186_v23  ;;  %v4703_v31 = vsel %vm4695_vm11, %v3930_v35, %v4702_v32  ;;  %v3646_v45 = vrot.slane %v3495_v55, %v7558_v13 }
 0x30b   : > { %v3935_v51 = vmax.f32 %v3933_v20, %v3934_v38  ;;  %v3942_v60 = vmax.f32 %v3940_v8, %v3941_v18  ;;  %v3760_v12 = vadd.f32 %v3638_v0, %v3230_v10  ;;  %v4879_v32 = vsel %vm1321_vm4, %v4703_v31, %v4785_v59 }
 0x30c   : > { %v3759_v48 = vadd.f32 %v3638_v0, %v3225_v37  ;;  %v5748_v50 = vpop.f32.mrb[46].mxu0  ;;  %v4883_v34 = vsel %vm543_vm0, %v4879_v32, %v4857_v6  ;;  %v7396_v37 = vrot.slane %v7366_v4, %v7557_v39 }
 0x30d   : > { %v3936_v3 = vrot.slane %v3935_v51, 2  ;;  %v3943_v63 = vrot.slane %v3942_v60, 4  ;;  %v3950_v16 = vsel %vm1321_vm4, %v3760_v12, -inf  ;;  %v3240_v41 = vadd.f32 %v5748_v50, %v7189_v17  ;;  %v3234_v23 = vpop.f32.mrb[47].mxu0 }
 0x30e   : > { %v3949_v24 = vsel %vm1321_vm4, %v3759_v48, -inf  ;;  %v3235_v58 = vadd.f32 %v3234_v23, %v7191_v30  ;;  %v3509_v17 = vrot.slane %v3481_v61, %v7557_v39  ;;  %v4888_v8 = vsel %vm4886_vm12, %v4883_v34, %v4869_v46 }
 0x30f   : > { %v3937_v52 = vmax.f32 %v3935_v51, %v3936_v3  ;;  %v3944_v9 = vmax.f32 %v3942_v60, %v3943_v63  ;;  %v3951_v47 = vmax.f32 %v3949_v24, %v3950_v16  ;;  %v3762_v20 = vadd.f32 %v3642_v40, %v3240_v41  ;;  %4893 = vst.msk [vmem:[%s7317_s13 + $0x8] sm:$0xff] %vm4891_vm13, %v4888_v8 }
 0x310   : > { %v3761_v54 = vadd.f32 %v3642_v40, %v3235_v58  ;;  %v5751_v25 = vpop.f32.mrb[48].mxu0  ;;  %v3650_v50 = vrot.slane %v3509_v17, %v7558_v13  ;;  %v3511_v40 = vcombine.high %v3495_v55, %v3495_v55 }
 0x311   : > { %v3938_v1 = vrot.slane %v3937_v52, 1  ;;  %v3945_v38 = vrot.slane %v3944_v9, 2  ;;  %v3952_v18 = vrot.slane %v3951_v47, 4  ;;  %v3959_v30 = vsel %vm1321_vm4, %v3762_v20, -inf  ;;  %v3244_v10 = vpop.f32.mrb[49].mxu0 }
 0x312   : > { %v3958_v0 = vsel %vm1321_vm4, %v3761_v54, -inf  ;;  %v3250_v7 = vadd.f32 %v5751_v25, %v7195_v33  ;;  %v3245_v35 = vadd.f32 %v3244_v10, %v7197_v29  ;;  %v3654_v20 = vrot.slane %v3511_v40, %v7558_v13 }
 0x313   : > { %v3946_v61 = vmax.f32 %v3944_v9, %v3945_v38  ;;  %v3953_v51 = vmax.f32 %v3951_v47, %v3952_v18  ;;  %v3960_v60 = vmax.f32 %v3958_v0, %v3959_v30  ;;  %v3939_v63 = vmax.f32 %v3937_v52, %v3938_v1 }
 0x314   : > { %v3764_v12 = vadd.f32 %v3646_v45, %v3250_v7  ;;  %v3763_v31 = vadd.f32 %v3646_v45, %v3245_v35  ;;  %v5754_v48 = vpop.f32.mrb[50].mxu0  ;;  %v3513_v54 = vcombine.high %v3509_v17, %v3509_v17  ;;  %v3530_v17 = vcombine.high %v7372_v62, %v7372_v62 }
 0x315   : > { %v3947_v33 = vrot.slane %v3946_v61, 1  ;;  %v3954_v59 = vrot.slane %v3953_v51, 2  ;;  %v3961_v29 = vrot.slane %v3960_v60, 4  ;;  %v3260_v46 = vadd.f32 %v5754_v48, %v7201_v49  ;;  %v3254_v3 = vpop.f32.mrb[51].mxu0 }
 0x316   : > { %v3968_v16 = vsel %vm1321_vm4, %v3764_v12, -inf  ;;  %v3967_v41 = vsel %vm1321_vm4, %v3763_v31, -inf  ;;  %v3255_v23 = vadd.f32 %v3254_v3, %v7203_v22 }
 0x317   : > { %v3948_v24 = vmax.f32 %v3946_v61, %v3947_v33  ;;  %v3955_v58 = vmax.f32 %v3953_v51, %v3954_v59  ;;  %v3962_v32 = vmax.f32 %v3960_v60, %v3961_v29  ;;  %v3969_v6 = vmax.f32 %v3967_v41, %v3968_v16 }
 0x318   : > { %v3766_v9 = vadd.f32 %v3650_v50, %v3260_v46  ;;  %v3765_v47 = vadd.f32 %v3650_v50, %v3255_v23  ;;  %v5757_v55 = vpop.f32.mrb[52].mxu0  ;;  %v3658_v51 = vrot.slane %v3513_v54, %v7558_v13  ;;  %v3662_v23 = vrot.slane %v7396_v37, %v7558_v13 }
 0x319   : > { %v4704_v49 = vsel %vm4683_vm5, %v3948_v24, %v3939_v63  ;;  %v3956_v25 = vrot.slane %v3955_v58, 1  ;;  %v3963_v52 = vrot.slane %v3962_v32, 2  ;;  %v3970_v45 = vrot.slane %v3969_v6, 4  ;;  %v3264_v34 = vpop.f32.mrb[53].mxu0 }
 0x31a   : > { %v3977_v1 = vsel %vm1321_vm4, %v3766_v9, -inf  ;;  %v3976_v22 = vsel %vm1321_vm4, %v3765_v47, -inf  ;;  %v3270_v38 = vadd.f32 %v5757_v55, %v7205_v27  ;;  %v3265_v18 = vadd.f32 %v3264_v34, %v7207_v15 }
 0x31b   : > { %v3957_v30 = vmax.f32 %v3955_v58, %v3956_v25  ;;  %v3964_v10 = vmax.f32 %v3962_v32, %v3963_v52  ;;  %v3971_v0 = vmax.f32 %v3969_v6, %v3970_v45  ;;  %v3978_v7 = vmax.f32 %v3976_v22, %v3977_v1 }
 0x31c   : > { %v3768_v35 = vadd.f32 %v3654_v20, %v3270_v38  ;;  %v3767_v8 = vadd.f32 %v3654_v20, %v3265_v18  ;;  %v5760_v61 = vpop.f32.mrb[54].mxu0  ;;  %v3551_v24 = vrot.slane %v3529_v5, %v7557_v39  ;;  %v3559_v1 = vcombine.high %v7396_v37, %v7396_v37 }
 0x31d   : > { %v4705_v60 = vsel %vm4685_vm6, %v3957_v30, %v4704_v49  ;;  %v3965_v12 = vrot.slane %v3964_v10, 1  ;;  %v3972_v31 = vrot.slane %v3971_v0, 2  ;;  %v3979_v48 = vrot.slane %v3978_v7, 4  ;;  %v3274_v27 = vpop.f32.mrb[55].mxu0 }
 0x31e   : > { %v3986_v15 = vsel %vm1321_vm4, %v3768_v35, -inf  ;;  %v3985_v50 = vsel %vm1321_vm4, %v3767_v8, -inf  ;;  %v3280_v40 = vadd.f32 %v5760_v61, %v7209_v44  ;;  %v3275_v33 = vadd.f32 %v3274_v27, %v7211_v28 }
 0x31f   : > { %v3966_v59 = vmax.f32 %v3964_v10, %v3965_v12  ;;  %v3973_v29 = vmax.f32 %v3971_v0, %v3972_v31  ;;  %v3980_v46 = vmax.f32 %v3978_v7, %v3979_v48  ;;  %v3987_v3 = vmax.f32 %v3985_v50, %v3986_v15 }
 0x320   : > { %v3770_v63 = vadd.f32 %v3658_v51, %v3280_v40  ;;  %v3769_v16 = vadd.f32 %v3658_v51, %v3275_v33  ;;  %v5763_v41 = vpop.f32.mrb[56].mxu0  ;;  %v3666_v34 = vrot.slane %v3551_v24, %v7558_v13  ;;  %v3670_v31 = vrot.slane %v3559_v1, %v7558_v13 }
 0x321   : > { %v4706_v58 = vsel %vm4687_vm7, %v3966_v59, %v4705_v60  ;;  %v3974_v44 = vrot.slane %v3973_v29, 1  ;;  %v3981_v32 = vrot.slane %v3980_v46, 2  ;;  %v3988_v28 = vrot.slane %v3987_v3, 4  ;;  %v3284_v6 = vpop.f32.mrb[57].mxu0 }
 0x322   : > { %v3995_v9 = vsel %vm1321_vm4, %v3770_v63, -inf  ;;  %v3994_v47 = vsel %vm1321_vm4, %v3769_v16, -inf  ;;  %v3290_v55 = vadd.f32 %v5763_v41, %v7213_v21  ;;  %v3285_v20 = vadd.f32 %v3284_v6, %v7215_v26 }
 0x323   : > { %v3975_v54 = vmax.f32 %v3973_v29, %v3974_v44  ;;  %v3982_v49 = vmax.f32 %v3980_v46, %v3981_v32  ;;  %v3989_v25 = vmax.f32 %v3987_v3, %v3988_v28  ;;  %v3996_v52 = vmax.f32 %v3994_v47, %v3995_v9 }
 0x324   : > { %v3772_v4 = vadd.f32 %v3662_v23, %v3290_v55  ;;  %v3771_v5 = vadd.f32 %v3662_v23, %v3285_v20  ;;  %v5766_v45 = vpop.f32.mrb[58].mxu0  ;;  %v3561_v48 = vcombine.high %v3551_v24, %v3551_v24 }
 0x325   : > { %v3983_v22 = vrot.slane %v3982_v49, 1  ;;  %v3990_v38 = vrot.slane %v3989_v25, 2  ;;  %v3997_v18 = vrot.slane %v3996_v52, 4  ;;  %v3300_v30 = vadd.f32 %v5766_v45, %v7217_v19  ;;  %v3294_v21 = vpop.f32.mrb[59].mxu0 }
 0x326   : > { %v4004_v26 = vsel %vm1321_vm4, %v3772_v4, -inf  ;;  %v4003_v10 = vsel %vm1321_vm4, %v3771_v5, -inf  ;;  %v3295_v0 = vadd.f32 %v3294_v21, %v7219_v11  ;;  %v4707_v7 = vsel %vm4689_vm8, %v3975_v54, %v4706_v58  ;;  %v7449_v58 = vpop.permute.xlu1 %4860 }
 0x327   : > { %v3984_v35 = vmax.f32 %v3982_v49, %v3983_v22  ;;  %v3991_v8 = vmax.f32 %v3989_v25, %v3990_v38  ;;  %v3998_v61 = vmax.f32 %v3996_v52, %v3997_v18  ;;  %v4005_v51 = vmax.f32 %v4003_v10, %v4004_v26 }
 0x328   : > { %v3774_v60 = vadd.f32 %v3666_v34, %v3300_v30  ;;  %v3773_v37 = vadd.f32 %v3666_v34, %v3295_v0  ;;  %v5769_v12 = vpop.f32.mrb[60].mxu0  ;;  %v3674_v24 = vrot.slane %v3561_v48, %v7558_v13  ;;  %v7459_v54 = vrot.slane %v3530_v17, %v7557_v39 }
 0x329   : > { %v3992_v19 = vrot.slane %v3991_v8, 1  ;;  %v3999_v27 = vrot.slane %v3998_v61, 2  ;;  %v4006_v15 = vrot.slane %v4005_v51, 4  ;;  %v3310_v50 = vadd.f32 %v5769_v12, %v7221_v2  ;;  %v3304_v40 = vpop.f32.mrb[61].mxu0 }
 0x32a   : > { %v4013_v11 = vsel %vm1321_vm4, %v3774_v60, -inf  ;;  %v4012_v33 = vsel %vm1321_vm4, %v3773_v37, -inf  ;;  %v3305_v59 = vadd.f32 %v3304_v40, %v7223_v42  ;;  %v4708_v29 = vsel %vm4691_vm9, %v3984_v35, %v4707_v7  ;;  %v4787_v1 = vpop.permute.xlu1 %4786  ;;  %v4871_v7 = vpop.permute.xlu0 %4870 }
 0x32b   : > { %v3993_v46 = vmax.f32 %v3991_v8, %v3992_v19  ;;  %v4000_v3 = vmax.f32 %v3998_v61, %v3999_v27  ;;  %v4007_v63 = vmax.f32 %v4005_v51, %v4006_v15  ;;  %v4014_v16 = vmax.f32 %v4012_v33, %v4013_v11 }
 0x32c   : > { %v3776_v41 = vadd.f32 %v3670_v31, %v3310_v50  ;;  %v3775_v23 = vadd.f32 %v3670_v31, %v3305_v59  ;;  %v7447_v2 = vrot.slane %v7372_v62, %v7557_v39  ;;  %v5772_v42 = vpop.f32.mrb[62].mxu0  ;;  %v3682_v35 = vrot.slane %v7459_v54, %v7558_v13 }
 0x32d   : > { %v4001_v44 = vrot.slane %v4000_v3, 1  ;;  %v4008_v32 = vrot.slane %v4007_v63, 2  ;;  %v4015_v28 = vrot.slane %v4014_v16, 4  ;;  %v4709_v6 = vsel %vm4693_vm10, %v3993_v46, %v4708_v29  ;;  %v3314_v20 = vpop.f32.mrb[63].mxu0  ;;  %v7564_v46 = vld [vmem:[#allocation4_spill] sm:$0xff] }
 0x32e   : > { %v4022_v9 = vsel %vm1321_vm4, %v3776_v41, -inf  ;;  %v4021_v47 = vsel %vm1321_vm4, %v3775_v23, -inf  ;;  %v3320_v55 = vadd.f32 %v5772_v42, %v7225_v53  ;;  %v3315_v45 = vadd.f32 %v3314_v20, %v7227_v56 }
 0x32f   : > { %v4002_v49 = vmax.f32 %v4000_v3, %v4001_v44  ;;  %v4009_v25 = vmax.f32 %v4007_v63, %v4008_v32  ;;  %v4016_v52 = vmax.f32 %v4014_v16, %v4015_v28  ;;  %v4023_v4 = vmax.f32 %v4021_v47, %v4022_v9  ;;  %v7565_v28 = vld [vmem:[#allocation5_spill] sm:$0xff] }
 0x330   : > { %v3778_v5 = vadd.f32 %v3674_v24, %v3320_v55  ;;  %v3678_v34 = vrot.slane %v7447_v2, %v7558_v13  ;;  %v5775_v18 = vpop.f32.mrb[64].mxu0  ;;  %v3777_v62 = vadd.f32 %v3674_v24, %v3315_v45  ;;  %v3562_v63 = vcombine.high %v7459_v54, %v7459_v54  ;;  %v7566_v55 = vld [vmem:[#allocation6_spill] sm:$0xff] }
 0x331   : > { %v4010_v22 = vrot.slane %v4009_v25, 1  ;;  %v4017_v53 = vrot.slane %v4016_v52, 2  ;;  %v4024_v38 = vrot.slane %v4023_v4, 4  ;;  %v4710_v30 = vsel %vm4695_vm11, %v4002_v49, %v4709_v6  ;;  %v3324_v21 = vpop.f32.mrb[65].mxu0 }
 0x332   : > { %v4031_v39 = vsel %vm1321_vm4, %v3778_v5, -inf  ;;  %v3330_v17 = vadd.f32 %v5775_v18, %v7229_v43  ;;  %v4880_v26 = vsel %vm1321_vm4, %v4710_v30, %v4787_v1  ;;  %v3325_v0 = vadd.f32 %v3324_v21, %v7231_v36  ;;  %v7568_v21 = vld [vmem:[#allocation8_spill] sm:$0xff] }
 0x333   : > { %v4018_v10 = vmax.f32 %v4016_v52, %v4017_v53  ;;  %v4025_v56 = vmax.f32 %v4023_v4, %v4024_v38  ;;  %v4030_v8 = vsel %vm1321_vm4, %v3777_v62, -inf  ;;  %v4884_v51 = vsel %vm543_vm0, %v4880_v26, %v7303_v57  ;;  %v7567_v53 = vld [vmem:[#allocation7_spill] sm:$0xff] }
 0x334   : > { %v3780_v61 = vadd.f32 %v3678_v34, %v3330_v17  ;;  %v3560_v43 = vcombine.high %v7447_v2, %v7447_v2  ;;  %v4032_v12 = vmax.f32 %v4030_v8, %v4031_v39  ;;  %v3779_v31 = vadd.f32 %v3678_v34, %v3325_v0  ;;  %v5778_v48 = vpop.f32.mrb[66].mxu0 }
 0x335   : > { %v4019_v60 = vrot.slane %v4018_v10, 1  ;;  %v4026_v37 = vrot.slane %v4025_v56, 2  ;;  %v4011_v36 = vmax.f32 %v4009_v25, %v4010_v22  ;;  %v4889_v27 = vsel %vm4886_vm12, %v4884_v51, %v4871_v7  ;;  %v3334_v50 = vpop.f32.mrb[67].mxu0 }
 0x336   : > { %v4040_v19 = vsel %vm1321_vm4, %v3780_v61, -inf  ;;  %v3340_v15 = vadd.f32 %v5778_v48, %v7233_v14  ;;  %v4033_v57 = vrot.slane %v4032_v12, 4  ;;  %v4039_v33 = vsel %vm1321_vm4, %v3779_v31, -inf  ;;  %4894 = vst.msk [vmem:[%s7317_s13 + $0x10] sm:$0xff] %vm4891_vm13, %v4889_v27 }
 0x337   : > { %v4020_v40 = vmax.f32 %v4018_v10, %v4019_v60  ;;  %v4027_v11 = vmax.f32 %v4025_v56, %v4026_v37  ;;  %v4041_v59 = vmax.f32 %v4039_v33, %v4040_v19  ;;  %v3335_v3 = vadd.f32 %v3334_v50, %v7564_v46 }
 0x338   : > { %v3782_v29 = vadd.f32 %v3682_v35, %v3340_v15  ;;  %v4034_v23 = vmax.f32 %v4032_v12, %v4033_v57  ;;  %v5781_v14 = vpop.f32.mrb[68].mxu0  ;;  %v3686_v24 = vrot.slane %v3560_v43, %v7558_v13  ;;  %v3690_v18 = vrot.slane %v3562_v63, %v7558_v13  ;;  %v4789_v63 = vpop.permute.xlu1 %4788 }
 0x339   : > { %v4711_v16 = vsel %vm4683_vm5, %v4020_v40, %v4011_v36  ;;  %v4028_v41 = vrot.slane %v4027_v11, 1  ;;  %v4042_v2 = vrot.slane %v4041_v59, 4  ;;  %v3781_v32 = vadd.f32 %v3682_v35, %v3335_v3  ;;  %v3344_v6 = vpop.f32.mrb[69].mxu0 }
 0x33a   : > { %v4049_v44 = vsel %vm1321_vm4, %v3782_v29, -inf  ;;  %v3350_v42 = vadd.f32 %v5781_v14, %v7565_v28  ;;  %v4035_v47 = vrot.slane %v4034_v23, 2  ;;  %v3345_v20 = vadd.f32 %v3344_v6, %v7566_v55 }
 0x33b   : > { %v4029_v9 = vmax.f32 %v4027_v11, %v4028_v41  ;;  %v4043_v49 = vmax.f32 %v4041_v59, %v4042_v2  ;;  %v4048_v54 = vsel %vm1321_vm4, %v3781_v32, -inf }
 0x33c   : > { %v3784_v25 = vadd.f32 %v3686_v24, %v3350_v42  ;;  %v4036_v4 = vmax.f32 %v4034_v23, %v4035_v47  ;;  %v4050_v5 = vmax.f32 %v4048_v54, %v4049_v44  ;;  %v3783_v45 = vadd.f32 %v3686_v24, %v3345_v20  ;;  %v5784_v34 = vpop.f32.mrb[70].mxu0  ;;  %v4873_v14 = vpop.permute.xlu1 %4872 }
 0x33d   : > { %v4712_v52 = vsel %vm4685_vm6, %v4029_v9, %v4711_v16  ;;  %v4044_v1 = vrot.slane %v4043_v49, 2  ;;  %v3360_v38 = vadd.f32 %v5784_v34, %v7567_v53  ;;  %v3354_v30 = vpop.f32.mrb[71].mxu0 }
 0x33e   : > { %v4058_v22 = vsel %vm1321_vm4, %v3784_v25, -inf  ;;  %v4037_v39 = vrot.slane %v4036_v4, 1  ;;  %v4051_v62 = vrot.slane %v4050_v5, 4  ;;  %v4057_v17 = vsel %vm1321_vm4, %v3783_v45, -inf }
 0x33f   : > { %v3355_v26 = vadd.f32 %v3354_v30, %v7568_v21  ;;  %v4045_v10 = vmax.f32 %v4043_v49, %v4044_v1  ;;  %v4059_v56 = vmax.f32 %v4057_v17, %v4058_v22  ;;  %v3786_v0 = vadd.f32 %v3690_v18, %v3360_v38 }
 0x340   : > { %v4038_v7 = vmax.f32 %v4036_v4, %v4037_v39  ;;  %v4052_v35 = vmax.f32 %v4050_v5, %v4051_v62 }
 0x341   : > { %v3785_v8 = vadd.f32 %v3690_v18, %v3355_v26  ;;  %v4046_v61 = vrot.slane %v4045_v10, 1  ;;  %v4060_v51 = vrot.slane %v4059_v56, 4  ;;  %v4067_v43 = vsel %vm1321_vm4, %v3786_v0, -inf }
 0x342   : > { %v4713_v60 = vsel %vm4687_vm7, %v4038_v7, %v4712_v52  ;;  %v4053_v13 = vrot.slane %v4052_v35, 2 }
 0x343   : > { %v4066_v37 = vsel %vm1321_vm4, %v3785_v8, -inf  ;;  %v4047_v12 = vmax.f32 %v4045_v10, %v4046_v61  ;;  %v4061_v31 = vmax.f32 %v4059_v56, %v4060_v51 }
 0x344   : > { %v4068_v48 = vmax.f32 %v4066_v37, %v4067_v43  ;;  %v4054_v36 = vmax.f32 %v4052_v35, %v4053_v13 }
 0x345   : > { %v4062_v19 = vrot.slane %v4061_v31, 2  ;;  %v4714_v15 = vsel %vm4689_vm8, %v4047_v12, %v4713_v60 }
 0x346   : > { %v4069_v27 = vrot.slane %v4068_v48, 4  ;;  %v4055_v50 = vrot.slane %v4054_v36, 1 }
 0x347   : > { %v4063_v40 = vmax.f32 %v4061_v31, %v4062_v19 }
 0x348   : > { %v4070_v11 = vmax.f32 %v4068_v48, %v4069_v27  ;;  %v4056_v57 = vmax.f32 %v4054_v36, %v4055_v50 }
 0x349   : > { %v4064_v33 = vrot.slane %v4063_v40, 1 }
 0x34a   : > { %v4071_v59 = vrot.slane %v4070_v11, 2  ;;  %v4715_v29 = vsel %vm4691_vm9, %v4056_v57, %v4714_v15 }
 0x34b   : > { %v4065_v46 = vmax.f32 %v4063_v40, %v4064_v33 }
 0x34c   : > { %v4072_v3 = vmax.f32 %v4070_v11, %v4071_v59 }
 0x34d   : > { %v4716_v41 = vsel %vm4693_vm10, %v4065_v46, %v4715_v29 }
 0x34e   : > { %v4073_v16 = vrot.slane %v4072_v3, 1 }
 0x350   : > { %v4074_v23 = vmax.f32 %v4072_v3, %v4073_v16 }
 0x352   : > { %v4717_v24 = vsel %vm4695_vm11, %v4074_v23, %v4716_v41 }
 0x353   : > { %v4881_v2 = vsel %vm1321_vm4, %v4717_v24, %v4789_v63 }
 0x354   : > { %v4885_v44 = vsel %vm543_vm0, %v4881_v2, %v7449_v58 }
 0x355   : > { %v4890_v32 = vsel %vm4886_vm12, %v4885_v44, %v4873_v14 }
 0x356   : > { %4895 = vst.msk [vmem:[%s7317_s13 + $0x18] sm:$0xff] %vm4891_vm13, %v4890_v32 }
 0x357 PF: > { %s21_s19 = sadd.s32 1, %s5935_s19   ;;  %s7569_s17 = smov %s5931_s18 }
 0x358   : > { %p18_p5 = scmp.ge.s32.totalorder %s21_s19, 4   ;;  %s7570_s18 = smov %s7572_s20 }
 0x35a   :  { %20 = sbr.rel (!%p18_p5) target bundleno = 2 (0x2), region = 97 }

// kernel: feature_extraction_forward.11
= control target key start
LH: loop header
LB: loop body
LE: loop exit
PB: predicated region body
PF: predicated region fallthrough
CT: control target
= control target key end

     0   :  { %s7694_s0 = inlined_call_operand.vmem [shape: f32[2,32,24], index: 0, kind: input, shape index: {}]   ;;  %s7695_s1 = inlined_call_operand.vmem [shape: f32[2,32,16,12], index: 1, kind: input, shape index: {}]   ;;  %s7696_s2 = inlined_call_operand.vmem [shape: f32[24,12], index: 2, kind: input, shape index: {}]   ;;  %s7697_s3 = inlined_call_operand.vmem [shape: f32[1,12], index: 3, kind: input, shape index: {}]   ;;  %s7698_s4 = inlined_call_operand.vmem [shape: f32[12,12], index: 4, kind: input, shape index: {}]   ;;  %s7699_s5 = inlined_call_operand.vmem [shape: f32[24,12], index: 5, kind: input, shape index: {}]   ;;  %s7700_s6 = inlined_call_operand.vmem [shape: f32[1,12], index: 6, kind: input, shape index: {}]   ;;  %s7701_s7 = inlined_call_operand.vmem [shape: f32[12,12], index: 7, kind: input, shape index: {}]   ;;  %s7702_s8 = inlined_call_operand.vmem [shape: f32[12,12], index: 8, kind: input, shape index: {}]   ;;  %s7703_s9 = inlined_call_operand.vmem [shape: f32[24,12], index: 9, kind: input, shape index: {}]   ;;  %s7704_s10 = inlined_call_operand.vmem [shape: f32[1,12], index: 10, kind: input, shape index: {}]   ;;  %s7705_s11 = inlined_call_operand.hbm [shape: f32[2,32,60], index: 11, kind: output, shape index: {}]  }
   0x1   :  { %7715 = sst [smem:[#allocation12_spill]] %s7694_s0 }
   0x2   :  { %7716 = sst [smem:[#allocation13_spill]] %s7695_s1 }
   0x3   :  { %16 = vsyncpa [#allocation3], 0 }
   0x4   :  { %18 = vsyncpa [#allocation3 + $0x1], 0  ;;  %s6094_s17 = smov 0   ;;  %s6096_s18 = smov 0  }
   0x5   :  { %s6098_s19 = smov 0   ;;  %s6100_s20 = smov 0  }
   0x6   :  { %s6102_s21 = smov 0   ;;  %s6104_s22 = smov 0  }
   0x7 LB: > { %s5002_s23 = sadd.s32 4294967295, %s6024_s22   ;;  %s5003_s24 = sadd.s32 4294967294, %s6024_s22   ;;  %s6024_s22 = sphi %s6104_s22, %s24_s22   ;;  %s6020_s21 = sphi %s6102_s21, %s7754_s21   ;;  %s6016_s20 = sphi %s6100_s20, %s7753_s20   ;;  %s6012_s19 = sphi %s6098_s19, %s7752_s19   ;;  %s6008_s18 = sphi %s6096_s18, %s7751_s18   ;;  %s6004_s17 = sphi %s6094_s17, %s7750_s17  }
   0x8   : > { %s36_s25 = sadd.s32 1, %s6020_s21  ;;  %s290_s26 = sadd.s32 1, %s6012_s19 }
   0x9   : > { %p38_p0 = scmp.ge.s32.totalorder %s36_s25, 2  ;;  %p300_p1 = scmp.ne.s32.totalorder %s6012_s19, %s6008_s18 }
   0xa   : > { %p301_p2 = scmp.eq.s32.totalorder %s5002_s23, 1  ;;  %p306_p3 = scmp.ne.s32.totalorder %s6008_s18, %s6004_s17 }
   0xb   : > { %s7756_s25 = smov (%p38_p0, %s36_s25), 0  ;;  %p307_p5 = scmp.eq.s32.totalorder %s5003_s24, 1 }
   0xc   : > { %p6134_p4 = por %p301_p2, %p300_p1  ;;  %s285_s28 = ssub.s32 %s6020_s21, %s7756_s25 }
   0xd   : > { %p5006_p6 = scmp.ge.s32.totalorder %s6024_s22, 1  ;;  %p288_p7 = scmp.eq.s32.totalorder %s285_s28, 0 }
   0xe   : > { %p6141_p8 = por %p307_p5, %p306_p3  ;;  %p379_p9 = scmp.lt.s32.totalorder %s6024_s22, 3 }
   0xf   : > { %s6147_s30 = scalar_select %p288_p7, %s6012_s19, %s290_s26  }
  0x10   : > { %p380_p10 = pnand %p5006_p6, %p379_p9 }
  0x12   : > { %383 = sbr.rel (%p380_p10) target bundleno = 881 (0x371), region = 64 }
  0x19   : > { %v523_v0 = vld [vmem:[%s7696_s2] sm:$0xff]  ;;  %v524_v1 = vld [vmem:[%s7696_s2 + $0x8] sm:$0xff]  ;;  %p434_p11 = scmp.lt.s32.totalorder %s6016_s20, 1  ;;  %v525_v3 = vld [vmem:[%s7696_s2 + $0x10] sm:$0xff]  ;;  %vm533_vm0 = vcmask 195584   ;;  %s7719_s0 = sld [smem:[#allocation12_spill]]  ;;  %v829_v25 = vlaneseq }
  0x1a   : > { %v5785_v2 = vpack.c.bf16 %v524_v1, %v523_v0  ;;  %v631_v8 = vld [vmem:[%s7699_s5] sm:$0xff]  ;;  %v632_v9 = vld [vmem:[%s7699_s5 + $0x8] sm:$0xff]  ;;  %v633_v14 = vld [vmem:[%s7699_s5 + $0x10] sm:$0xff]  ;;  %vm1504_vm1 = vcmask 1043456   ;;  %vm6026_vm2 = vmmov 1   ;;  %s7723_s1 = sld [smem:[#allocation13_spill]] }
  0x1b   : > { %s6160_s24 = scalar_select %p434_p11, %s6016_s20, 1  ;;  %v5789_v10 = vpack.c.bf16 %v632_v9, %v631_v8  ;;  %v726_v11 = vld [vmem:[%s7703_s9] sm:$0xff]  ;;  %v727_v12 = vld [vmem:[%s7703_s9 + $0x8] sm:$0xff]  ;;  %v728_v15 = vld [vmem:[%s7703_s9 + $0x10] sm:$0xff]  ;;  %v6028_v23 = vmov 1966171168  }
  0x1c   : > { %5786 = vmatprep.subr.bf16.mxu0 %v5785_v2  ;;  %v5793_v13 = vpack.c.bf16 %v727_v12, %v726_v11  ;;  %v1309_v16 = vld [vmem:[%s7698_s4] sm:$0xff]  ;;  %v1310_v17 = vld [vmem:[%s7698_s4 + $0x8] sm:$0xf]  ;;  %vm6212_vm3 = vmpackc.low %vm1504_vm1, %vm6026_vm2  ;;  %v827_v24 = vunpack.c.l.s4 %v6028_v23  ;;  %v830_v27 = vshrl.u32 %v829_v25, 7  ;;  %vm1311_vm4 = vcmask 97280   ;;  %s6030_s23 = smov 12  }
  0x1d   : > { %5788 = vmatpush3.bf16.msra.mxu0 %v5785_v2  ;;  %s5227_s26 = sshll.u32 %s6160_s24, 5  ;;  %5790 = vmatprep.subr.bf16.mxu1 %v5789_v10  ;;  %v2383_v18 = vld [vmem:[%s7702_s8] sm:$0xff]  ;;  %v5797_v19 = vpack.c.bf16 %v1310_v17, %v1309_v16  ;;  %v2384_v20 = vld [vmem:[%s7702_s8 + $0x8] sm:$0xf]  ;;  %s5228_s12 = sshll.u32 %s6160_s24, 9  ;;  %vm4673_vm5 = vcmask 1041409  }
  0x1e   : > { %5453 = vmatprep.subr.mxu0 %v525_v3  ;;  %5792 = vmatpush3.bf16.msra.mxu1 %v5789_v10  ;;  %v6217_v22 = vpack.c.bf16 %v2384_v20, %v2383_v18  ;;  %v828_v26 = vunpack.c.0.s8 %v827_v24  ;;  %v5012_v28 = vld [vmem:[%s7697_s3] ss:$0 sm:$0xff]  ;;  %v6247_v36 = vsub.s32 0, %v830_v27  ;;  %vm4675_vm6 = vcmask 1042434   ;;  %s6029_s24 = smov 24   ;;  %s5229_s15 = sshll.u32 %s6016_s20, 9 }
  0x1f   : > { %s6166_s13 = scalar_lea.vmem %s7719_s0, %s5227_s26  ;;  %5465 = vmatprep.subr.mxu1 %v633_v14  ;;  %s6027_s0 = smov 36   ;;  %vm4677_vm7 = vcmask 1043459   ;;  %vm4679_vm8 = vcmask 1044484   ;;  %vm4681_vm9 = vcmask 1045509   ;;  %vm4683_vm10 = vcmask 1046534  }
  0x20   : > { %v455_v4 = vld [vmem:[%s6166_s13] sm:$0xff]  ;;  %v456_v5 = vld [vmem:[%s6166_s13 + $0x8] sm:$0xff]  ;;  %v457_v6 = vld [vmem:[%s6166_s13 + $0x10] sm:$0xff]  ;;  %v6238_v29 = vsub.s32 %v828_v26, %v830_v27  ;;  %s6245_s16 = scalar_lea.vmem %s7723_s1, %s5228_s12  ;;  %7724 = vst [vmem:[#allocation6_spill] sm:$0xff] %v6247_v36  ;;  %vm4685_vm11 = vcmask 1047559   ;;  %s430_s26 = sand.u32 1, %s6008_s18  }
  0x21   : > { %5455 = vmatprep.mubr.msk.f32.mxu0 %vm533_vm0, %v455_v4  ;;  %5467 = vmatprep.mubr.msk.f32.mxu1 %vm533_vm0, %v455_v4  ;;  %v458_v7 = vld [vmem:[%s6166_s13 + $0x18] sm:$0xff]  ;;  %v475_v49 = vld [vmem:[%s6245_s16 + $0x80] sm:$0xff]  ;;  %v476_v50 = vld [vmem:[%s6245_s16 + $0x88] sm:$0xff]  ;;  %s5007_s28 = sshll.u32 %s430_s26, 5  ;;  %vm4876_vm12 = vcmask 293888   ;;  %vm4881_vm13 = vcmask 490496  }
  0x22   : > { %5454 = vmatpush3.msra.mxu0 %v525_v3  ;;  %5466 = vmatpush3.msra.mxu1 %v633_v14  ;;  %7722 = vst [vmem:[#allocation5_spill] sm:$0xff] %v6238_v29  ;;  %v477_v55 = vld [vmem:[%s6245_s16 + $0x90] sm:$0xff]  ;;  %v478_v56 = vld [vmem:[%s6245_s16 + $0x98] sm:$0xff]  ;;  %v479_v61 = vld [vmem:[%s6245_s16 + $0xa0] sm:$0xff]  ;;  %s7451_s12 = scalar_lea.vmem [#allocation2], %s5007_s28  ;;  %s7648_s20 = scalar_lea.sflag [#allocation3], %s430_s26 }
  0x23   : > { %5456 = vmatmul.mubr.msk.f32.vlgmr.msra.gmra.mrb[0].mxu0 %vm533_vm0, %v456_v5  ;;  %5794 = vmatprep.subr.bf16.mxu0 %v5793_v13  ;;  %v480_v62 = vld [vmem:[%s6245_s16 + $0xa8] sm:$0xff]  ;;  %v481_v63 = vld [vmem:[%s6245_s16 + $0xb0] sm:$0xff]  ;;  %v486_v12 = vld [vmem:[%s6245_s16 + $0xd8] sm:$0xff]  ;;  %s4902_s14 = sshll.u32 %s7451_s12, 4  ;;  %s7633_s14 = int_to_ptr.vmem [resolvable:$true] %s4902_s14 }
  0x24   : > { %5458 = vmatprep.mubr.msk.f32.mxu0 %vm533_vm0, %v457_v6  ;;  %5796 = vmatpush3.bf16.msra.mxu0 %v5793_v13  ;;  %v485_v11 = vld [vmem:[%s6245_s16 + $0xd0] sm:$0xff]  ;;  %v487_v13 = vld [vmem:[%s6245_s16 + $0xe0] sm:$0xff]  ;;  %v488_v18 = vld [vmem:[%s6245_s16 + $0xe8] sm:$0xff] }
  0x25   : > { %5477 = vmatprep.subr.mxu0 %v728_v15  ;;  %5468 = vmatmul.mubr.msk.f32.vlgmr.msra.gmra.mrb[0].mxu1 %vm533_vm0, %v456_v5  ;;  %v490_v20 = vld [vmem:[%s6245_s16 + $0xf8] sm:$0xff] }
  0x26   : > { %5470 = vmatprep.mubr.msk.f32.mxu1 %vm533_vm0, %v457_v6  ;;  %5799 = vmatprep.subr.msk.bf16.mxu1 %vm6212_vm3, %v5797_v19 }
  0x27   : > { %5459 = vmatmul.mubr.msk.f32.gmra.mrb[2].mxu0 %vm533_vm0, %v458_v7  ;;  %5802 = vmatpush3.bf16.msk.msra.mxu1 %vm6212_vm3, %v5797_v19  ;;  %v489_v19 = vld [vmem:[%s6245_s16 + $0xf0] sm:$0xff] }
  0x28   : > { %5479 = vmatprep.mubr.msk.f32.mxu0 %vm533_vm0, %v455_v4  ;;  %5478 = vmatpush3.msra.mxu0 %v728_v15 }
  0x29   : > { %5471 = vmatmul.mubr.msk.f32.gmra.mrb[2].mxu1 %vm533_vm0, %v458_v7  ;;  %5805 = vmatprep.subr.msk.bf16.mxu0 %vm6212_vm3, %v6217_v22 }
  0x2a   : > { %5815 = vmatprep.subr.msk.bf16.mxu1 %vm6212_vm3, %v6217_v22  ;;  %4858 = vrot.lane.b32.xlu1 %v456_v5, %s6027_s0 }
  0x2b   : > { %5480 = vmatmul.mubr.msk.f32.vlgmr.msra.gmra.mrb[4].mxu0 %vm533_vm0, %v456_v5  ;;  %4856 = vrot.lane.b32.xlu0 %v455_v4, %s6027_s0  ;;  %v482_v4 = vld [vmem:[%s6245_s16 + $0xb8] sm:$0xff]  ;;  %v483_v5 = vld [vmem:[%s6245_s16 + $0xc0] sm:$0xff] }
  0x2c   : > { %5482 = vmatprep.mubr.msk.f32.mxu0 %vm533_vm0, %v457_v6  ;;  %5808 = vmatpush3.bf16.msk.msra.mxu0 %vm6212_vm3, %v6217_v22  ;;  %v484_v6 = vld [vmem:[%s6245_s16 + $0xc8] sm:$0xff] }
  0x2f   : > { %5483 = vmatmul.mubr.msk.f32.gmra.mrb[6].mxu0 %vm533_vm0, %v458_v7 }
  0xf6   : > { %v5457_v30 = vpop.f32.mrb[0].mxu0 }
  0xf7   : > { %v618_v31 = vadd.f32 %v5457_v30, %v5012_v28  ;;  %v612_v32 = vpop.f32.mrb[1].mxu0 }
  0xf8   : > { %v613_v33 = vadd.f32 %v5012_v28, %v612_v32 }
  0xf9   : > { %v874_v34 = vcombine.high %v618_v31, %v618_v31  ;;  %v881_v35 = vrot.slane %v618_v31, %v6238_v29 }
  0xfa   : > { %v825_v37 = vcombine.high %v613_v33, %v613_v33  ;;  %v832_v38 = vrot.slane %v613_v33, %v6238_v29  ;;  %v5460_v39 = vpop.f32.mrb[2].mxu0 }
  0xfb   : > { %v888_v40 = vrot.slane %v874_v34, %v6238_v29  ;;  %v889_v41 = vcombine.high %v881_v35, %v881_v35  ;;  %v897_v42 = vrot.slane %v881_v35, %v6238_v29  ;;  %v6252_v43 = vadd.f32 %v5460_v39, %v5012_v28  ;;  %v622_v44 = vpop.f32.mrb[3].mxu0 }
  0xfc   : > { %v6255_v45 = vrot.slane %v825_v37, %v6238_v29  ;;  %v840_v46 = vcombine.high %v832_v38, %v832_v38  ;;  %v6258_v47 = vrot.slane %v832_v38, %v6238_v29  ;;  %v6260_v48 = vadd.f32 %v5012_v28, %v622_v44 }
  0xfd   : > { %v890_v51 = vcombine.high %v888_v40, %v888_v40  ;;  %v904_v52 = vrot.slane %v888_v40, %v6238_v29  ;;  %v911_v53 = vrot.slane %v889_v41, %v6238_v29  ;;  %v919_v54 = vcombine.high %v897_v42, %v897_v42 }
  0xfe   : > { %v1056_v57 = vrot.slane %v897_v42, %v6247_v36  ;;  %v841_v58 = vcombine.high %v6255_v45, %v6255_v45  ;;  %v6273_v59 = vrot.slane %v6255_v45, %v6238_v29  ;;  %v6276_v60 = vrot.slane %v840_v46, %v6238_v29 }
  0xff   : > { %v918_v0 = vrot.slane %v890_v51, %v6238_v29  ;;  %v920_v1 = vcombine.high %v904_v52, %v904_v52  ;;  %v921_v2 = vcombine.high %v911_v53, %v911_v53  ;;  %v1060_v3 = vrot.slane %v911_v53, %v6247_v36 }
 0x100   : > { %v1064_v7 = vrot.slane %v919_v54, %v6247_v36  ;;  %v1072_v8 = vrot.slane %v904_v52, %v6247_v36  ;;  %v1197_v9 = vadd.f32 %v1056_v57, %v475_v49  ;;  %v1198_v10 = vadd.f32 %v1056_v57, %v476_v50 }
 0x101   : > { %v922_v14 = vcombine.high %v918_v0, %v918_v0  ;;  %v1068_v15 = vrot.slane %v921_v2, %v6247_v36  ;;  %v1076_v16 = vrot.slane %v918_v0, %v6247_v36  ;;  %v1080_v17 = vrot.slane %v920_v1, %v6247_v36 }
 0x102   : > { %v1199_v23 = vadd.f32 %v1060_v3, %v477_v55  ;;  %v1200_v24 = vadd.f32 %v1060_v3, %v478_v56  ;;  %v1201_v25 = vadd.f32 %v1064_v7, %v479_v61  ;;  %v1202_v26 = vadd.f32 %v1064_v7, %v480_v62 }
 0x103   : > { %v1084_v27 = vrot.slane %v922_v14, %v6247_v36  ;;  %v1203_v28 = vadd.f32 %v1068_v15, %v481_v63  ;;  %v1204_v30 = vadd.f32 %v1068_v15, %v482_v4  ;;  %v1205_v31 = vadd.f32 %v1072_v8, %v483_v5 }
 0x104   : > { %v1206_v32 = vadd.f32 %v1072_v8, %v484_v6  ;;  %v1207_v33 = vadd.f32 %v1076_v16, %v485_v11  ;;  %v1208_v34 = vadd.f32 %v1076_v16, %v486_v12  ;;  %v1209_v35 = vadd.f32 %v1080_v17, %v487_v13 }
 0x105   : > { %v1210_v37 = vadd.f32 %v1080_v17, %v488_v18  ;;  %v1211_v38 = vadd.f32 %v1084_v27, %v489_v19  ;;  %v1212_v39 = vadd.f32 %v1084_v27, %v490_v20  ;;  %v6298_v40 = vmax.f32 %v1197_v9, 0.0  ;;  %v460_v27 = vld [vmem:[%s6245_s16 + $0x8] sm:$0xff] }
 0x106   : > { %v6300_v41 = vmax.f32 %v1198_v10, 0.0  ;;  %v6302_v42 = vmax.f32 %v1199_v23, 0.0  ;;  %v6304_v44 = vmax.f32 %v1200_v24, 0.0  ;;  %v6306_v46 = vmax.f32 %v1201_v25, 0.0  ;;  %v472_v25 = vld [vmem:[%s6245_s16 + $0x68] sm:$0xff] }
 0x107   : > { %v6308_v49 = vmax.f32 %v1202_v26, 0.0  ;;  %v6310_v50 = vmax.f32 %v1203_v28, 0.0  ;;  %v6312_v51 = vmax.f32 %v1204_v30, 0.0  ;;  %v6314_v52 = vmax.f32 %v1205_v31, 0.0  ;;  %v459_v30 = vld [vmem:[%s6245_s16] sm:$0xff] }
 0x108   : > { %v6316_v53 = vmax.f32 %v1206_v32, 0.0  ;;  %v6318_v54 = vmax.f32 %v1207_v33, 0.0  ;;  %v6320_v55 = vmax.f32 %v1208_v34, 0.0  ;;  %v6322_v56 = vmax.f32 %v1209_v35, 0.0  ;;  %v461_v35 = vld [vmem:[%s6245_s16 + $0x10] sm:$0xff] }
 0x109   : > { %v6324_v57 = vmax.f32 %v1210_v37, 0.0  ;;  %v6326_v61 = vmax.f32 %v1211_v38, 0.0  ;;  %v6328_v62 = vmax.f32 %v1212_v39, 0.0  ;;  %v4425_v63 = vsel %vm1311_vm4, %v6298_v40, -inf  ;;  %v462_v37 = vld [vmem:[%s6245_s16 + $0x18] sm:$0xff]  ;;  %v463_v38 = vld [vmem:[%s6245_s16 + $0x20] sm:$0xff] }
 0x10a   : > { %v4426_v0 = vsel %vm1311_vm4, %v6300_v41, -inf  ;;  %v4434_v1 = vsel %vm1311_vm4, %v6302_v42, -inf  ;;  %v4435_v2 = vsel %vm1311_vm4, %v6304_v44, -inf  ;;  %v4443_v3 = vsel %vm1311_vm4, %v6306_v46, -inf }
 0x10b   : > { %v4427_v4 = vmax.f32 %v4425_v63, %v4426_v0  ;;  %v4436_v5 = vmax.f32 %v4434_v1, %v4435_v2  ;;  %v4444_v6 = vsel %vm1311_vm4, %v6308_v49, -inf  ;;  %v4452_v7 = vsel %vm1311_vm4, %v6310_v50, -inf  ;;  %v473_v63 = vld [vmem:[%s6245_s16 + $0x70] sm:$0xff]  ;;  %v474_v0 = vld [vmem:[%s6245_s16 + $0x78] sm:$0xff] }
 0x10c   : > { %v4445_v8 = vmax.f32 %v4443_v3, %v4444_v6  ;;  %v4453_v9 = vsel %vm1311_vm4, %v6312_v51, -inf  ;;  %v4461_v10 = vsel %vm1311_vm4, %v6314_v52, -inf  ;;  %v4462_v11 = vsel %vm1311_vm4, %v6316_v53, -inf }
 0x10d   : > { %v4428_v12 = vrot.slane %v4427_v4, 4  ;;  %v4437_v13 = vrot.slane %v4436_v5, 4  ;;  %v6350_v14 = vmax.f32 %v4452_v7, %v4453_v9  ;;  %v6352_v15 = vmax.f32 %v4461_v10, %v4462_v11  ;;  %v464_v11 = vld [vmem:[%s6245_s16 + $0x28] sm:$0xff] }
 0x10e   : > { %v4446_v16 = vrot.slane %v4445_v8, 4  ;;  %v6356_v17 = vsel %vm1311_vm4, %v6318_v54, -inf  ;;  %v6360_v18 = vsel %vm1311_vm4, %v6320_v55, -inf  ;;  %v6366_v19 = vrot.slane %v841_v58, %v6238_v29 }
 0x10f   : > { %v4429_v20 = vmax.f32 %v4427_v4, %v4428_v12  ;;  %v4438_v23 = vmax.f32 %v4436_v5, %v4437_v13  ;;  %v870_v28 = vcombine.high %v6258_v47, %v6258_v47  ;;  %v871_v45 = vcombine.high %v6273_v59, %v6273_v59 }
 0x110   : > { %v6370_v26 = vmax.f32 %v4445_v8, %v4446_v16  ;;  %v872_v58 = vcombine.high %v6276_v60, %v6276_v60  ;;  %v873_v33 = vcombine.high %v6366_v19, %v6366_v19  ;;  %v1024_v34 = vrot.slane %v6258_v47, %v6247_v36 }
 0x111   : > { %v4430_v31 = vrot.slane %v4429_v20, 2  ;;  %v4439_v32 = vrot.slane %v4438_v23, 2  ;;  %v1028_v1 = vrot.slane %v6276_v60, %v6247_v36  ;;  %v1032_v2 = vrot.slane %v870_v28, %v6247_v36 }
 0x112   : > { %v4448_v39 = vrot.slane %v6370_v26, 2  ;;  %v1040_v3 = vrot.slane %v6273_v59, %v6247_v36  ;;  %v1052_v47 = vrot.slane %v873_v33, %v6247_v36  ;;  %v1182_v6 = vadd.f32 %v1024_v34, %v460_v27 }
 0x113   : > { %v6395_v4 = vmax.f32 %v4429_v20, %v4430_v31  ;;  %v6397_v5 = vmax.f32 %v4438_v23, %v4439_v32  ;;  %v1181_v7 = vadd.f32 %v1024_v34, %v459_v30  ;;  %v1183_v8 = vadd.f32 %v1028_v1, %v461_v35  ;;  %v467_v34 = vld [vmem:[%s6245_s16 + $0x40] sm:$0xff]  ;;  %v468_v35 = vld [vmem:[%s6245_s16 + $0x48] sm:$0xff] }
 0x114   : > { %v1184_v9 = vadd.f32 %v1028_v1, %v462_v37  ;;  %v1185_v10 = vadd.f32 %v1032_v2, %v463_v38  ;;  %v1195_v12 = vadd.f32 %v1052_v47, %v473_v63  ;;  %v1196_v13 = vadd.f32 %v1052_v47, %v474_v0  ;;  %v465_v1 = vld [vmem:[%s6245_s16 + $0x30] sm:$0xff] }
 0x115   : > { %v4432_v60 = vrot.slane %v6395_v4, 1  ;;  %v1246_v16 = vmax.f32 %v1182_v6, 0.0  ;;  %v1245_v28 = vmax.f32 %v1181_v7, 0.0  ;;  %v1247_v20 = vmax.f32 %v1183_v8, 0.0  ;;  %v466_v8 = vld [vmem:[%s6245_s16 + $0x38] sm:$0xff] }
 0x116   : > { %v1248_v23 = vmax.f32 %v1184_v9, 0.0  ;;  %v1249_v31 = vmax.f32 %v1185_v10, 0.0  ;;  %v6402_v32 = vmax.f32 %v1195_v12, 0.0  ;;  %v6404_v27 = vmax.f32 %v1196_v13, 0.0 }
 0x117   : > { %v4354_v30 = vsel %vm1311_vm4, %v1246_v16, -inf  ;;  %v1186_v33 = vadd.f32 %v1032_v2, %v464_v11  ;;  %5489 = vmatprep.mubr.msk.f32.mxu1 %vm1311_vm4, %v1245_v28  ;;  %v4353_v37 = vsel %vm1311_vm4, %v1245_v28, -inf  ;;  %5589 = vmatprep.mubr.msk.f32.mxu0 %vm1311_vm4, %v1245_v28  ;;  %v4362_v38 = vsel %vm1311_vm4, %v1247_v20, -inf  ;;  %v469_v11 = vld [vmem:[%s6245_s16 + $0x50] sm:$0xff] }
 0x118   : > { %v4363_v63 = vsel %vm1311_vm4, %v1248_v23, -inf  ;;  %v4371_v0 = vsel %vm1311_vm4, %v1249_v31, -inf  ;;  %v4355_v47 = vmax.f32 %v4353_v37, %v4354_v30  ;;  %5490 = vmatmul.mubr.msk.f32.vlgmr.msra.gmra.mrb[4].mxu1 %vm1311_vm4, %v1246_v16  ;;  %5590 = vmatmul.mubr.msk.f32.vlgmr.msra.gmra.mrb[8].mxu0 %vm1311_vm4, %v1246_v16  ;;  %v1036_v7 = vrot.slane %v872_v58, %v6247_v36 }
 0x119   : > { %v4364_v2 = vmax.f32 %v4362_v38, %v4363_v63  ;;  %v1250_v6 = vmax.f32 %v1186_v33, 0.0  ;;  %5492 = vmatprep.mubr.msk.f32.mxu1 %vm1311_vm4, %v1247_v20  ;;  %5592 = vmatprep.mubr.msk.f32.mxu0 %vm1311_vm4, %v1247_v20  ;;  %v1189_v9 = vadd.f32 %v1040_v3, %v467_v34  ;;  %v1190_v10 = vadd.f32 %v1040_v3, %v468_v35  ;;  %v470_v63 = vld [vmem:[%s6245_s16 + $0x58] sm:$0xff] }
 0x11a   : > { %v1044_v12 = vrot.slane %v6366_v19, %v6247_v36  ;;  %v4441_v13 = vrot.slane %v6397_v5, 1  ;;  %v4356_v28 = vrot.slane %v4355_v47, 4  ;;  %v1187_v33 = vadd.f32 %v1036_v7, %v465_v1  ;;  %5816 = vmatpush3.bf16.msk.msra.mxu1 %vm6212_vm3, %v6217_v22 }
 0x11b   : > { %v4365_v16 = vrot.slane %v4364_v2, 4  ;;  %v4372_v30 = vsel %vm1311_vm4, %v1250_v6, -inf  ;;  %v1188_v20 = vadd.f32 %v1036_v7, %v466_v8  ;;  %v1253_v34 = vmax.f32 %v1189_v9, 0.0 }
 0x11c   : > { %v4373_v58 = vmax.f32 %v4371_v0, %v4372_v30  ;;  %v6430_v3 = vmax.f32 %v1190_v10, 0.0  ;;  %v4357_v35 = vmax.f32 %v4355_v47, %v4356_v28  ;;  %5493 = vmatmul.mubr.msk.f32.gmra.mrb[6].mxu1 %vm1311_vm4, %v1248_v23  ;;  %5593 = vmatmul.mubr.msk.f32.gmra.mrb[10].mxu0 %vm1311_vm4, %v1248_v23  ;;  %v1251_v37 = vmax.f32 %v1187_v33, 0.0 }
 0x11d   : > { %v4366_v19 = vmax.f32 %v4364_v2, %v4365_v16  ;;  %v1191_v38 = vadd.f32 %v1044_v12, %v469_v11  ;;  %5495 = vmatprep.mubr.msk.f32.mxu1 %vm1311_vm4, %v1249_v31  ;;  %5595 = vmatprep.mubr.msk.f32.mxu0 %vm1311_vm4, %v1249_v31  ;;  %v1252_v22 = vmax.f32 %v1188_v20, 0.0  ;;  %v4389_v0 = vsel %vm1311_vm4, %v1253_v34, -inf  ;;  %v471_v20 = vld [vmem:[%s6245_s16 + $0x60] sm:$0xff] }
 0x11e   : > { %v4374_v1 = vrot.slane %v4373_v58, 4  ;;  %v4390_v47 = vsel %vm1311_vm4, %v6430_v3, -inf  ;;  %v4358_v7 = vrot.slane %v4357_v35, 2  ;;  %v4380_v23 = vsel %vm1311_vm4, %v1251_v37, -inf }
 0x11f   : > { %v4367_v2 = vrot.slane %v4366_v19, 2  ;;  %v4391_v8 = vmax.f32 %v4389_v0, %v4390_v47  ;;  %v4381_v10 = vsel %vm1311_vm4, %v1252_v22, -inf  ;;  %v1255_v11 = vmax.f32 %v1191_v38, 0.0 }
 0x120   : > { %v4375_v9 = vmax.f32 %v4373_v58, %v4374_v1  ;;  %v1192_v28 = vadd.f32 %v1044_v12, %v470_v63  ;;  %v4359_v31 = vmax.f32 %v4357_v35, %v4358_v7  ;;  %5496 = vmatmul.mubr.msk.f32.gmra.mrb[8].mxu1 %vm1311_vm4, %v1250_v6  ;;  %5596 = vmatmul.mubr.msk.f32.gmra.mrb[12].mxu0 %vm1311_vm4, %v1250_v6  ;;  %v4479_v59 = vsel %vm1311_vm4, %v6322_v56, -inf }
 0x121   : > { %v4368_v16 = vmax.f32 %v4366_v19, %v4367_v2  ;;  %v4382_v30 = vmax.f32 %v4380_v23, %v4381_v10  ;;  %v4392_v33 = vrot.slane %v4391_v8, 4  ;;  %5498 = vmatprep.mubr.msk.f32.mxu1 %vm1311_vm4, %v1251_v37  ;;  %5598 = vmatprep.mubr.msk.f32.mxu0 %vm1311_vm4, %v1251_v37  ;;  %v4398_v58 = vsel %vm1311_vm4, %v1255_v11, -inf }
 0x122   : > { %v4376_v24 = vrot.slane %v4375_v9, 2  ;;  %v1256_v38 = vmax.f32 %v1192_v28, 0.0  ;;  %v1048_v12 = vrot.slane %v871_v45, %v6247_v36  ;;  %v4360_v6 = vrot.slane %v4359_v31, 1 }
 0x123   : > { %v4369_v35 = vrot.slane %v4368_v16, 1  ;;  %v4383_v19 = vrot.slane %v4382_v30, 4  ;;  %v6453_v63 = vmax.f32 %v4391_v8, %v4392_v33  ;;  %v4433_v10 = vmax.f32 %v6395_v4, %v4432_v60 }
 0x124   : > { %v4377_v1 = vmax.f32 %v4375_v9, %v4376_v24  ;;  %v4399_v0 = vsel %vm1311_vm4, %v1256_v38, -inf  ;;  %v1193_v47 = vadd.f32 %v1048_v12, %v471_v20  ;;  %v1194_v7 = vadd.f32 %v1048_v12, %v472_v25  ;;  %5499 = vmatmul.mubr.msk.f32.gmra.mrb[10].mxu1 %vm1311_vm4, %v1252_v22  ;;  %5599 = vmatmul.mubr.msk.f32.gmra.mrb[14].mxu0 %vm1311_vm4, %v1252_v22 }
 0x125   : > { %v6456_v37 = vmax.f32 %v4359_v31, %v4360_v6  ;;  %v6458_v2 = vmax.f32 %v4368_v16, %v4369_v35  ;;  %v4384_v23 = vmax.f32 %v4382_v30, %v4383_v19  ;;  %5501 = vmatprep.mubr.msk.f32.mxu1 %vm1311_vm4, %v1253_v34  ;;  %5601 = vmatprep.mubr.msk.f32.mxu0 %vm1311_vm4, %v1253_v34  ;;  %v7725_v30 = vrot.slane %v6350_v14, 4 }
 0x126   : > { %v4378_v45 = vrot.slane %v4377_v1, 1  ;;  %v4400_v24 = vmax.f32 %v4398_v58, %v4399_v0  ;;  %v1257_v8 = vmax.f32 %v1193_v47, 0.0  ;;  %v1258_v25 = vmax.f32 %v1194_v7, 0.0 }
 0x127   : > { %v4385_v9 = vrot.slane %v4384_v23, 2  ;;  %v4442_v22 = vmax.f32 %v6397_v5, %v4441_v13  ;;  %v4449_v28 = vmax.f32 %v6370_v26, %v4448_v39  ;;  %v4456_v33 = vmax.f32 %v6350_v14, %v7725_v30 }
 0x128   : > { %v4401_v31 = vrot.slane %v4400_v24, 4  ;;  %v4407_v34 = vsel %vm1311_vm4, %v1257_v8, -inf  ;;  %v4408_v16 = vsel %vm1311_vm4, %v1258_v25, -inf  ;;  %5502 = vmatmul.mubr.msk.f32.gmra.mrb[12].mxu1 %vm1311_vm4, %v6430_v3  ;;  %5602 = vmatmul.mubr.msk.f32.gmra.mrb[16].mxu0 %vm1311_vm4, %v6430_v3  ;;  %v7726_v39 = vrot.slane %v6352_v15, 4 }
 0x129   : > { %v4386_v4 = vmax.f32 %v4384_v23, %v4385_v9  ;;  %v4409_v5 = vmax.f32 %v4407_v34, %v4408_v16  ;;  %v4450_v26 = vrot.slane %v4449_v28, 1  ;;  %5504 = vmatprep.mubr.msk.f32.mxu1 %vm1311_vm4, %v1255_v11  ;;  %5604 = vmatprep.mubr.msk.f32.mxu0 %vm1311_vm4, %v1255_v11  ;;  %v4457_v13 = vrot.slane %v4456_v33, 2 }
 0x12a   : > { %v4465_v60 = vmax.f32 %v6352_v15, %v7726_v39  ;;  %v4472_v14 = vmax.f32 %v6356_v17, %v6360_v18  ;;  %v4480_v20 = vsel %vm1311_vm4, %v6324_v57, -inf  ;;  %v4488_v3 = vsel %vm1311_vm4, %v6326_v61, -inf }
 0x12b   : > { %v4451_v58 = vmax.f32 %v4449_v28, %v4450_v26  ;;  %v4481_v6 = vmax.f32 %v4479_v59, %v4480_v20  ;;  %v4489_v15 = vsel %vm1311_vm4, %v6328_v62, -inf  ;;  %v4458_v35 = vmax.f32 %v4456_v33, %v4457_v13 }
 0x12c   : > { %v4466_v12 = vrot.slane %v4465_v60, 2  ;;  %v4473_v19 = vrot.slane %v4472_v14, 4  ;;  %v4490_v0 = vmax.f32 %v4488_v3, %v4489_v15  ;;  %v4823_v11 = vsel %vm4673_vm5, %v4442_v22, %v4433_v10  ;;  %5505 = vmatmul.mubr.msk.f32.gmra.mrb[14].mxu1 %vm1311_vm4, %v1256_v38  ;;  %5605 = vmatmul.mubr.msk.f32.gmra.mrb[18].mxu0 %vm1311_vm4, %v1256_v38 }
 0x12d   : > { %v4482_v18 = vrot.slane %v4481_v6, 4  ;;  %v4824_v47 = vsel %vm4675_vm6, %v4451_v58, %v4823_v11  ;;  %v4379_v7 = vmax.f32 %v4377_v1, %v4378_v45  ;;  %5507 = vmatprep.mubr.msk.f32.mxu1 %vm1311_vm4, %v1257_v8  ;;  %5607 = vmatprep.mubr.msk.f32.mxu0 %vm1311_vm4, %v1257_v8  ;;  %v4459_v23 = vrot.slane %v4458_v35, 1 }
 0x12e   : > { %v4467_v17 = vmax.f32 %v4465_v60, %v4466_v12  ;;  %v4474_v59 = vmax.f32 %v4472_v14, %v4473_v19  ;;  %v4491_v9 = vrot.slane %v4490_v0, 4  ;;  %v4387_v28 = vrot.slane %v4386_v4, 1 }
 0x12f   : > { %v4483_v22 = vmax.f32 %v4481_v6, %v4482_v18  ;;  %v4394_v38 = vrot.slane %v6453_v63, 2  ;;  %v4402_v34 = vmax.f32 %v4400_v24, %v4401_v31  ;;  %v4460_v16 = vmax.f32 %v4458_v35, %v4459_v23 }
 0x130   : > { %v4468_v10 = vrot.slane %v4467_v17, 1  ;;  %v4475_v30 = vrot.slane %v4474_v59, 2  ;;  %v4492_v33 = vmax.f32 %v4490_v0, %v4491_v9  ;;  %v4388_v26 = vmax.f32 %v4386_v4, %v4387_v28  ;;  %5508 = vmatmul.mubr.msk.f32.gmra.mrb[16].mxu1 %vm1311_vm4, %v1258_v25  ;;  %5608 = vmatmul.mubr.msk.f32.gmra.mrb[20].mxu0 %vm1311_vm4, %v1258_v25 }
 0x131   : > { %v4484_v45 = vrot.slane %v4483_v22, 2  ;;  %v4395_v39 = vmax.f32 %v6453_v63, %v4394_v38  ;;  %v4403_v8 = vrot.slane %v4402_v34, 2  ;;  %v4825_v14 = vsel %vm4677_vm7, %v4460_v16, %v4824_v47  ;;  %5510 = vmatprep.mubr.msk.f32.mxu1 %vm1311_vm4, %v6402_v32  ;;  %5610 = vmatprep.mubr.msk.f32.mxu0 %vm1311_vm4, %v6402_v32 }
 0x132   : > { %v4469_v1 = vmax.f32 %v4467_v17, %v4468_v10  ;;  %v4476_v60 = vmax.f32 %v4474_v59, %v4475_v30  ;;  %v4493_v13 = vrot.slane %v4492_v33, 2  ;;  %v4410_v20 = vrot.slane %v4409_v5, 4 }
 0x133   : > { %v4485_v24 = vmax.f32 %v4483_v22, %v4484_v45  ;;  %v4396_v63 = vrot.slane %v4395_v39, 1  ;;  %v4404_v4 = vmax.f32 %v4402_v34, %v4403_v8  ;;  %v4416_v25 = vsel %vm1311_vm4, %v6402_v32, -inf }
 0x134   : > { %v4826_v31 = vsel %vm4679_vm8, %v4469_v1, %v4825_v14  ;;  %v4477_v3 = vrot.slane %v4476_v60, 1  ;;  %v4494_v58 = vmax.f32 %v4492_v33, %v4493_v13  ;;  %v4411_v12 = vmax.f32 %v4409_v5, %v4410_v20  ;;  %5511 = vmatmul.mubr.msk.f32.gmra.mrb[18].mxu1 %vm1311_vm4, %v6404_v27  ;;  %5611 = vmatmul.mubr.msk.f32.gmra.mrb[22].mxu0 %vm1311_vm4, %v6404_v27  ;;  %v508_v13 = vld [vmem:[%s6245_s16 + $0x188] sm:$0xff]  ;;  %v509_v14 = vld [vmem:[%s6245_s16 + $0x190] sm:$0xff] }
 0x135   : > { %v4486_v6 = vrot.slane %v4485_v24, 1  ;;  %v4397_v15 = vmax.f32 %v4395_v39, %v4396_v63  ;;  %v4405_v35 = vrot.slane %v4404_v4, 1  ;;  %v4417_v19 = vsel %vm1311_vm4, %v6404_v27, -inf  ;;  %5513 = vmatprep.mubr.msk.f32.mxu1 %vm1311_vm4, %v6298_v40  ;;  %5613 = vmatprep.mubr.msk.f32.mxu0 %vm1311_vm4, %v6298_v40 }
 0x136   : > { %v4478_v0 = vmax.f32 %v4476_v60, %v4477_v3  ;;  %v4495_v11 = vrot.slane %v4494_v58, 1  ;;  %v4412_v17 = vrot.slane %v4411_v12, 2  ;;  %v4418_v18 = vmax.f32 %v4416_v25, %v4417_v19  ;;  %v507_v60 = vld [vmem:[%s6245_s16 + $0x180] sm:$0xff]  ;;  %v510_v3 = vld [vmem:[%s6245_s16 + $0x198] sm:$0xff] }
 0x137   : > { %v4487_v32 = vmax.f32 %v4485_v24, %v4486_v6  ;;  %v4406_v5 = vmax.f32 %v4404_v4, %v4405_v35  ;;  %v4816_v47 = vsel %vm4673_vm5, %v6458_v2, %v6456_v37  ;;  %v972_v23 = vcombine.high %v6252_v43, %v6252_v43  ;;  %v514_v35 = vld [vmem:[%s6245_s16 + $0x1b8] sm:$0xff]  ;;  %v515_v19 = vld [vmem:[%s6245_s16 + $0x1c0] sm:$0xff] }
 0x138   : > { %v4496_v27 = vmax.f32 %v4494_v58, %v4495_v11  ;;  %v4827_v59 = vsel %vm4681_vm9, %v4478_v0, %v4826_v31  ;;  %v4413_v9 = vmax.f32 %v4411_v12, %v4412_v17  ;;  %v4419_v28 = vrot.slane %v4418_v18, 4  ;;  %5514 = vmatmul.mubr.msk.f32.gmra.mrb[20].mxu1 %vm1311_vm4, %v6300_v41  ;;  %5614 = vmatmul.mubr.msk.f32.gmra.mrb[24].mxu0 %vm1311_vm4, %v6300_v41  ;;  %v511_v58 = vld [vmem:[%s6245_s16 + $0x1a0] sm:$0xff]  ;;  %v512_v12 = vld [vmem:[%s6245_s16 + $0x1a8] sm:$0xff] }
 0x139   : > { %v4828_v10 = vsel %vm4683_vm10, %v4487_v32, %v4827_v59  ;;  %v4817_v22 = vsel %vm4675_vm6, %v4379_v7, %v4816_v47  ;;  %v979_v40 = vrot.slane %v6252_v43, %v6238_v29  ;;  %5516 = vmatprep.mubr.msk.f32.mxu1 %vm1311_vm4, %v6302_v42  ;;  %5616 = vmatprep.mubr.msk.f32.mxu0 %vm1311_vm4, %v6302_v42  ;;  %v517_v47 = vld [vmem:[%s6245_s16 + $0x1d0] sm:$0xff] }
 0x13a   : > { %v4829_v37 = vsel %vm4685_vm11, %v4496_v27, %v4828_v10  ;;  %v4414_v2 = vrot.slane %v4413_v9, 1  ;;  %v4420_v38 = vmax.f32 %v4418_v18, %v4419_v28  ;;  %v4818_v34 = vsel %vm4677_vm7, %v4388_v26, %v4817_v22  ;;  %v519_v28 = vld [vmem:[%s6245_s16 + $0x1e0] sm:$0xff]  ;;  %v520_v10 = vld [vmem:[%s6245_s16 + $0x1e8] sm:$0xff]  ;;  %v521_v22 = vld [vmem:[%s6245_s16 + $0x1f0] sm:$0xff] }
 0x13b   : > { %4846 = vrot.lane.b32.xlu1 %v4829_v37, %s6029_s24  ;;  %v4819_v41 = vsel %vm4679_vm8, %v4397_v15, %v4818_v34  ;;  %v986_v7 = vrot.slane %v972_v23, %v6238_v29  ;;  %v987_v43 = vcombine.high %v979_v40, %v979_v40  ;;  %v995_v16 = vrot.slane %v979_v40, %v6238_v29  ;;  %v513_v15 = vld [vmem:[%s6245_s16 + $0x1b0] sm:$0xff]  ;;  %v518_v23 = vld [vmem:[%s6245_s16 + $0x1d8] sm:$0xff] }
 0x13c   : > { %v4415_v30 = vmax.f32 %v4413_v9, %v4414_v2  ;;  %v4421_v33 = vrot.slane %v4420_v38, 2  ;;  %v4820_v26 = vsel %vm4681_vm9, %v4406_v5, %v4819_v41  ;;  %5517 = vmatmul.mubr.msk.f32.gmra.mrb[22].mxu1 %vm1311_vm4, %v6304_v44  ;;  %5617 = vmatmul.mubr.msk.f32.gmra.mrb[26].mxu0 %vm1311_vm4, %v6304_v44  ;;  %v923_v44 = vcombine.high %v6260_v48, %v6260_v48  ;;  %v516_v5 = vld [vmem:[%s6245_s16 + $0x1c8] sm:$0xff] }
 0x13d   : > { %v988_v42 = vcombine.high %v986_v7, %v986_v7  ;;  %v1002_v1 = vrot.slane %v986_v7, %v6238_v29  ;;  %v1009_v45 = vrot.slane %v987_v43, %v6238_v29  ;;  %5519 = vmatprep.mubr.msk.f32.mxu1 %vm1311_vm4, %v6306_v46  ;;  %5619 = vmatprep.mubr.msk.f32.mxu0 %vm1311_vm4, %v6306_v46 }
 0x13e   : > { %v4422_v39 = vmax.f32 %v4420_v38, %v4421_v33  ;;  %v1017_v8 = vcombine.high %v995_v16, %v995_v16  ;;  %v1120_v63 = vrot.slane %v995_v16, %v6247_v36  ;;  %v4821_v46 = vsel %vm4683_vm10, %v4415_v30, %v4820_v26 }
 0x13f   : > { %v1016_v20 = vrot.slane %v988_v42, %v6238_v29  ;;  %v1018_v24 = vcombine.high %v1002_v1, %v1002_v1  ;;  %v1019_v31 = vcombine.high %v1009_v45, %v1009_v45  ;;  %v1124_v25 = vrot.slane %v1009_v45, %v6247_v36 }
 0x140   : > { %v4423_v4 = vrot.slane %v4422_v39, 1  ;;  %v1128_v6 = vrot.slane %v1017_v8, %v6247_v36  ;;  %v1136_v17 = vrot.slane %v1002_v1, %v6247_v36  ;;  %5520 = vmatmul.mubr.msk.f32.gmra.mrb[24].mxu1 %vm1311_vm4, %v6308_v49  ;;  %v1229_v59 = vadd.f32 %v1120_v63, %v507_v60  ;;  %5620 = vmatmul.mubr.msk.f32.gmra.mrb[28].mxu0 %vm1311_vm4, %v6308_v49  ;;  %v522_v49 = vld [vmem:[%s6245_s16 + $0x1f8] sm:$0xff] }
 0x141   : > { %v1020_v0 = vcombine.high %v1016_v20, %v1016_v20  ;;  %v1132_v11 = vrot.slane %v1019_v31, %v6247_v36  ;;  %v1140_v18 = vrot.slane %v1016_v20, %v6247_v36  ;;  %v1144_v27 = vrot.slane %v1018_v24, %v6247_v36  ;;  %5522 = vmatprep.mubr.msk.f32.mxu1 %vm1311_vm4, %v6310_v50 }
 0x142   : > { %v4424_v32 = vmax.f32 %v4422_v39, %v4423_v4  ;;  %v1230_v9 = vadd.f32 %v1120_v63, %v508_v13  ;;  %v1231_v37 = vadd.f32 %v1124_v25, %v509_v14  ;;  %v1232_v2 = vadd.f32 %v1124_v25, %v510_v3  ;;  %5622 = vmatprep.mubr.msk.f32.mxu0 %vm1311_vm4, %v6310_v50 }
 0x143   : > { %v1148_v40 = vrot.slane %v1020_v0, %v6247_v36  ;;  %v1233_v38 = vadd.f32 %v1128_v6, %v511_v58  ;;  %v1234_v41 = vadd.f32 %v1128_v6, %v512_v12  ;;  %v1235_v7 = vadd.f32 %v1132_v11, %v513_v15 }
 0x144   : > { %v4822_v34 = vsel %vm4685_vm11, %v4424_v32, %v4821_v46  ;;  %v1236_v43 = vadd.f32 %v1132_v11, %v514_v35  ;;  %v1237_v16 = vadd.f32 %v1136_v17, %v515_v19  ;;  %v1238_v30 = vadd.f32 %v1136_v17, %v516_v5  ;;  %5523 = vmatmul.mubr.msk.f32.gmra.mrb[26].mxu1 %vm1311_vm4, %v6312_v51 }
 0x145   : > { %4844 = vrot.lane.b32.xlu0 %v4822_v34, %s6029_s24  ;;  %v1239_v33 = vadd.f32 %v1140_v18, %v517_v47  ;;  %v1240_v26 = vadd.f32 %v1140_v18, %v518_v23  ;;  %v1241_v42 = vadd.f32 %v1144_v27, %v519_v28  ;;  %v1242_v1 = vadd.f32 %v1144_v27, %v520_v10 }
 0x146   : > { %v1243_v45 = vadd.f32 %v1148_v40, %v521_v22  ;;  %v6598_v39 = vmax.f32 %v1229_v59, 0.0  ;;  %5623 = vmatmul.mubr.msk.f32.gmra.mrb[30].mxu0 %vm1311_vm4, %v6312_v51  ;;  %v6604_v8 = vmax.f32 %v1230_v9, 0.0  ;;  %v6606_v50 = vmax.f32 %v1231_v37, 0.0  ;;  %5525 = vmatprep.mubr.msk.f32.mxu1 %vm1311_vm4, %v6314_v52 }
 0x147   : > { %v6608_v60 = vmax.f32 %v1232_v2, 0.0  ;;  %v6610_v13 = vmax.f32 %v1233_v38, 0.0  ;;  %5625 = vmatprep.mubr.msk.f32.mxu0 %vm1311_vm4, %v6314_v52  ;;  %v1244_v14 = vadd.f32 %v1148_v40, %v522_v49  ;;  %v6616_v20 = vmax.f32 %v1234_v41, 0.0 }
 0x148   : > { %v6618_v24 = vmax.f32 %v1235_v7, 0.0  ;;  %v6620_v51 = vmax.f32 %v1236_v43, 0.0  ;;  %v6622_v31 = vmax.f32 %v1237_v16, 0.0  ;;  %v6624_v63 = vmax.f32 %v1238_v30, 0.0  ;;  %5526 = vmatmul.mubr.msk.f32.gmra.mrb[28].mxu1 %vm1311_vm4, %v6316_v53  ;;  %v491_v30 = vld [vmem:[%s6245_s16 + $0x100] sm:$0xff] }
 0x149   : > { %v6626_v4 = vmax.f32 %v1239_v33, 0.0  ;;  %v6628_v46 = vmax.f32 %v1240_v26, 0.0  ;;  %v6630_v3 = vmax.f32 %v1241_v42, 0.0  ;;  %v6632_v58 = vmax.f32 %v1242_v1, 0.0  ;;  %5528 = vmatprep.mubr.msk.f32.mxu1 %vm1311_vm4, %v6318_v54 }
 0x14a   : > { %v6634_v52 = vmax.f32 %v1243_v45, 0.0  ;;  %v4569_v12 = vsel %vm1311_vm4, %v6598_v39, -inf  ;;  %5626 = vmatmul.mubr.msk.f32.gmra.mrb[32].mxu0 %vm1311_vm4, %v6316_v53  ;;  %v4570_v25 = vsel %vm1311_vm4, %v6604_v8, -inf  ;;  %v4578_v6 = vsel %vm1311_vm4, %v6606_v50, -inf }
 0x14b   : > { %v4579_v15 = vsel %vm1311_vm4, %v6608_v60, -inf  ;;  %v4587_v35 = vsel %vm1311_vm4, %v6610_v13, -inf  ;;  %5628 = vmatprep.mubr.msk.f32.mxu0 %vm1311_vm4, %v6318_v54  ;;  %v4571_v19 = vmax.f32 %v4569_v12, %v4570_v25  ;;  %v4588_v0 = vsel %vm1311_vm4, %v6616_v20, -inf  ;;  %v500_v12 = vld [vmem:[%s6245_s16 + $0x148] sm:$0xff] }
 0x14c   : > { %v4580_v53 = vmax.f32 %v4578_v6, %v4579_v15  ;;  %v4596_v11 = vsel %vm1311_vm4, %v6618_v24, -inf  ;;  %v4589_v17 = vmax.f32 %v4587_v35, %v4588_v0  ;;  %v4597_v18 = vsel %vm1311_vm4, %v6620_v51, -inf  ;;  %5529 = vmatmul.mubr.msk.f32.gmra.mrb[30].mxu1 %vm1311_vm4, %v6320_v55  ;;  %v492_v35 = vld [vmem:[%s6245_s16 + $0x108] sm:$0xff]  ;;  %v502_v0 = vld [vmem:[%s6245_s16 + $0x158] sm:$0xff] }
 0x14d   : > { %v4605_v32 = vsel %vm1311_vm4, %v6622_v31, -inf  ;;  %v4606_v5 = vsel %vm1311_vm4, %v6624_v63, -inf  ;;  %v4572_v47 = vrot.slane %v4571_v19, 4  ;;  %v4598_v23 = vmax.f32 %v4596_v11, %v4597_v18  ;;  %5531 = vmatprep.mubr.msk.f32.mxu1 %vm1311_vm4, %v6322_v56  ;;  %v503_v11 = vld [vmem:[%s6245_s16 + $0x160] sm:$0xff] }
 0x14e   : > { %v4581_v54 = vrot.slane %v4580_v53, 4  ;;  %v4607_v27 = vmax.f32 %v4605_v32, %v4606_v5  ;;  %5629 = vmatmul.mubr.msk.f32.gmra.mrb[34].mxu0 %vm1311_vm4, %v6320_v55  ;;  %v6668_v59 = vmax.f32 %v1244_v14, 0.0  ;;  %v4590_v9 = vrot.slane %v4589_v17, 4  ;;  %v499_v14 = vld [vmem:[%s6245_s16 + $0x140] sm:$0xff]  ;;  %v504_v5 = vld [vmem:[%s6245_s16 + $0x168] sm:$0xff] }
 0x14f   : > { %v6672_v28 = vsel %vm1311_vm4, %v6626_v4, -inf  ;;  %v930_v10 = vrot.slane %v6260_v48, %v6238_v29  ;;  %5631 = vmatprep.mubr.msk.f32.mxu0 %vm1311_vm4, %v6322_v56  ;;  %v4573_v22 = vmax.f32 %v4571_v19, %v4572_v47  ;;  %v4599_v37 = vrot.slane %v4598_v23, 4 }
 0x150   : > { %v4582_v40 = vmax.f32 %v4580_v53, %v4581_v54  ;;  %v4608_v55 = vrot.slane %v4607_v27, 4  ;;  %v6680_v2 = vmax.f32 %v4589_v17, %v4590_v9  ;;  %v937_v38 = vrot.slane %v923_v44, %v6238_v29  ;;  %5532 = vmatmul.mubr.msk.f32.gmra.mrb[32].mxu1 %vm1311_vm4, %v6324_v57  ;;  %v501_v53 = vld [vmem:[%s6245_s16 + $0x150] sm:$0xff] }
 0x151   : > { %v938_v34 = vcombine.high %v930_v10, %v930_v10  ;;  %v946_v41 = vrot.slane %v930_v10, %v6238_v29  ;;  %v4574_v7 = vrot.slane %v4573_v22, 2  ;;  %v6689_v56 = vsel %vm1311_vm4, %v6628_v46, -inf  ;;  %5534 = vmatprep.mubr.msk.f32.mxu1 %vm1311_vm4, %v6326_v61  ;;  %v493_v9 = vld [vmem:[%s6245_s16 + $0x110] sm:$0xff] }
 0x152   : > { %v4583_v43 = vrot.slane %v4582_v40, 2  ;;  %5632 = vmatmul.mubr.msk.f32.gmra.mrb[36].mxu0 %vm1311_vm4, %v6324_v57  ;;  %v6695_v49 = vmax.f32 %v4598_v23, %v4599_v37  ;;  %v939_v48 = vcombine.high %v937_v38, %v937_v38  ;;  %v953_v44 = vrot.slane %v937_v38, %v6238_v29  ;;  %v505_v10 = vld [vmem:[%s6245_s16 + $0x170] sm:$0xff] }
 0x153   : > { %v6699_v16 = vrot.slane %v938_v34, %v6238_v29  ;;  %v6704_v33 = vmax.f32 %v4607_v27, %v4608_v55  ;;  %v6706_v26 = vmax.f32 %v4573_v22, %v4574_v7  ;;  %v4592_v57 = vrot.slane %v6680_v2, 2  ;;  %v506_v22 = vld [vmem:[%s6245_s16 + $0x178] sm:$0xff] }
 0x154   : > { %v968_v42 = vcombine.high %v946_v41, %v946_v41  ;;  %v1088_v1 = vrot.slane %v946_v41, %v6247_v36  ;;  %v6710_v45 = vmax.f32 %v4582_v40, %v4583_v43  ;;  %v967_v25 = vrot.slane %v939_v48, %v6238_v29  ;;  %5535 = vmatmul.mubr.msk.f32.gmra.mrb[34].mxu1 %vm1311_vm4, %v6328_v62 }
 0x155   : > { %v969_v6 = vcombine.high %v953_v44, %v953_v44  ;;  %v970_v15 = vcombine.high %v6699_v16, %v6699_v16  ;;  %v4576_v19 = vrot.slane %v6706_v26, 1  ;;  %v1092_v17 = vrot.slane %v6699_v16, %v6247_v36 }
 0x156   : > { %v1104_v18 = vrot.slane %v953_v44, %v6247_v36  ;;  %v1213_v32 = vadd.f32 %v1088_v1, %v491_v30  ;;  %v971_v47 = vcombine.high %v967_v25, %v967_v25  ;;  %v1096_v54 = vrot.slane %v968_v42, %v6247_v36 }
 0x157   : > { %v1108_v23 = vrot.slane %v967_v25, %v6247_v36  ;;  %v1112_v27 = vrot.slane %v969_v6, %v6247_v36  ;;  %v1214_v38 = vadd.f32 %v1088_v1, %v492_v35  ;;  %v1215_v30 = vadd.f32 %v1092_v17, %v493_v9  ;;  %v494_v25 = vld [vmem:[%s6245_s16 + $0x118] sm:$0xff] }
 0x158   : > { %v1221_v40 = vadd.f32 %v1104_v18, %v499_v14  ;;  %v1222_v37 = vadd.f32 %v1104_v18, %v500_v12  ;;  %v6734_v55 = vmax.f32 %v1213_v32, 0.0  ;;  %v1116_v34 = vrot.slane %v971_v47, %v6247_v36  ;;  %v496_v18 = vld [vmem:[%s6245_s16 + $0x128] sm:$0xff] }
 0x159   : > { %v1223_v41 = vadd.f32 %v1108_v23, %v501_v53  ;;  %v1224_v7 = vadd.f32 %v1108_v23, %v502_v0  ;;  %v1225_v43 = vadd.f32 %v1112_v27, %v503_v11  ;;  %v1226_v48 = vadd.f32 %v1112_v27, %v504_v5  ;;  %v495_v11 = vld [vmem:[%s6245_s16 + $0x120] sm:$0xff] }
 0x15a   : > { %v6737_v44 = vmax.f32 %v1221_v40, 0.0  ;;  %v6739_v16 = vmax.f32 %v1222_v37, 0.0  ;;  %5537 = vmatprep.mubr.msk.f32.mxu1 %vm1311_vm4, %v6734_v55  ;;  %v1227_v42 = vadd.f32 %v1116_v34, %v505_v10  ;;  %v1228_v14 = vadd.f32 %v1116_v34, %v506_v22  ;;  %v497_v40 = vld [vmem:[%s6245_s16 + $0x130] sm:$0xff] }
 0x15b   : > { %v6743_v12 = vmax.f32 %v1223_v41, 0.0  ;;  %v6745_v1 = vmax.f32 %v1224_v7, 0.0  ;;  %v6748_v6 = vmax.f32 %v1225_v43, 0.0  ;;  %v4497_v0 = vsel %vm1311_vm4, %v6734_v55, -inf  ;;  %v498_v43 = vld [vmem:[%s6245_s16 + $0x138] sm:$0xff] }
 0x15c   : > { %v4533_v35 = vsel %vm1311_vm4, %v6737_v44, -inf  ;;  %v4534_v53 = vsel %vm1311_vm4, %v6739_v16, -inf  ;;  %v6758_v32 = vmax.f32 %v1226_v48, 0.0  ;;  %v6760_v5 = vmax.f32 %v1227_v42, 0.0 }
 0x15d   : > { %v6762_v47 = vmax.f32 %v1228_v14, 0.0  ;;  %v6764_v23 = vmax.f32 %v4533_v35, %v4534_v53  ;;  %v6768_v27 = vsel %vm1311_vm4, %v6743_v12, -inf  ;;  %v6770_v9 = vmax.f32 %v1214_v38, 0.0 }
 0x15e   : > { %v6772_v10 = vmax.f32 %v1215_v30, 0.0  ;;  %v1216_v22 = vadd.f32 %v1092_v17, %v494_v25  ;;  %v6777_v37 = vsel %vm1311_vm4, %v6745_v1, -inf  ;;  %v1217_v34 = vadd.f32 %v1096_v54, %v495_v11 }
 0x15f   : > { %v1218_v41 = vadd.f32 %v1096_v54, %v496_v18  ;;  %v1100_v7 = vrot.slane %v970_v15, %v6247_v36  ;;  %5538 = vmatmul.mubr.msk.f32.gmra.mrb[36].mxu1 %vm1311_vm4, %v6770_v9  ;;  %v4498_v38 = vsel %vm1311_vm4, %v6770_v9, -inf  ;;  %v4585_v53 = vrot.slane %v6710_v45, 1 }
 0x160   : > { %7727 = vst [vmem:[#allocation7_spill] sm:$0xff] %v6772_v10  ;;  %v4506_v17 = vsel %vm1311_vm4, %v6772_v10, -inf  ;;  %v6788_v30 = vmax.f32 %v1216_v22, 0.0  ;;  %v4499_v42 = vmax.f32 %v4497_v0, %v4498_v38  ;;  %5540 = vmatprep.mubr.msk.f32.mxu1 %vm1311_vm4, %v6772_v10  ;;  %v6792_v54 = vmax.f32 %v1217_v34, 0.0 }
 0x161   : > { %v6794_v15 = vmax.f32 %v1218_v41, 0.0  ;;  %v1219_v14 = vadd.f32 %v1100_v7, %v497_v40  ;;  %v1220_v35 = vadd.f32 %v1100_v7, %v498_v43  ;;  %v4593_v11 = vmax.f32 %v6680_v2, %v4592_v57 }
 0x162   : > { %7728 = vst [vmem:[#allocation8_spill] sm:$0xff] %v6788_v30  ;;  %7729 = vst [vmem:[#allocation9_spill] sm:$0xff] %v6792_v54  ;;  %v4507_v25 = vsel %vm1311_vm4, %v6788_v30, -inf  ;;  %v4500_v18 = vrot.slane %v4499_v42, 4  ;;  %v4515_v22 = vsel %vm1311_vm4, %v6792_v54, -inf  ;;  %v4577_v2 = vmax.f32 %v6706_v26, %v4576_v19 }
 0x163   : > { %7730 = vst [vmem:[#allocation10_spill] sm:$0xff] %v6794_v15  ;;  %v4508_v0 = vmax.f32 %v4506_v17, %v4507_v25  ;;  %v4516_v34 = vsel %vm1311_vm4, %v6794_v15, -inf  ;;  %5541 = vmatmul.mubr.msk.f32.gmra.mrb[38].mxu1 %vm1311_vm4, %v6788_v30  ;;  %v6808_v41 = vmax.f32 %v1219_v14, 0.0  ;;  %v6810_v7 = vmax.f32 %v1220_v35, 0.0 }
 0x164   : > { %v4517_v40 = vmax.f32 %v4515_v22, %v4516_v34  ;;  %v4501_v57 = vmax.f32 %v4499_v42, %v4500_v18  ;;  %5543 = vmatprep.mubr.msk.f32.mxu1 %vm1311_vm4, %v6792_v54  ;;  %v4586_v38 = vmax.f32 %v6710_v45, %v4585_v53  ;;  %v4601_v17 = vrot.slane %v6695_v49, 2 }
 0x165   : > { %7731 = vst [vmem:[#allocation11_spill] sm:$0xff] %v6808_v41  ;;  %v4509_v43 = vrot.slane %v4508_v0, 4  ;;  %v4524_v14 = vsel %vm1311_vm4, %v6808_v41, -inf  ;;  %v4525_v35 = vsel %vm1311_vm4, %v6810_v7, -inf  ;;  %v4610_v22 = vrot.slane %v6704_v33, 2 }
 0x166   : > { %v4518_v25 = vrot.slane %v4517_v40, 4  ;;  %v4502_v34 = vrot.slane %v4501_v57, 2  ;;  %v4526_v19 = vmax.f32 %v4524_v14, %v4525_v35  ;;  %v4594_v42 = vrot.slane %v4593_v11, 1 }
 0x167   : > { %v4510_v26 = vmax.f32 %v4508_v0, %v4509_v43  ;;  %5544 = vmatmul.mubr.msk.f32.gmra.mrb[40].mxu1 %vm1311_vm4, %v6794_v15  ;;  %v4602_v45 = vmax.f32 %v6695_v49, %v4601_v17  ;;  %v4611_v53 = vmax.f32 %v6704_v33, %v4610_v22  ;;  %v4616_v48 = vmax.f32 %v6672_v28, %v6689_v56 }
 0x168   : > { %v4519_v18 = vmax.f32 %v4517_v40, %v4518_v25  ;;  %v4503_v36 = vmax.f32 %v4501_v57, %v4502_v34  ;;  %5546 = vmatprep.mubr.msk.f32.mxu1 %vm1311_vm4, %v6808_v41  ;;  %v4527_v54 = vrot.slane %v4526_v19, 4  ;;  %v4623_v0 = vsel %vm1311_vm4, %v6630_v3, -inf }
 0x169   : > { %v4511_v29 = vrot.slane %v4510_v26, 2  ;;  %v4603_v14 = vrot.slane %v4602_v45, 1  ;;  %v4612_v35 = vrot.slane %v4611_v53, 1  ;;  %v4617_v40 = vrot.slane %v4616_v48, 4 }
 0x16a   : > { %v4520_v43 = vrot.slane %v4519_v18, 2  ;;  %v4504_v25 = vrot.slane %v4503_v36, 1  ;;  %v4528_v17 = vmax.f32 %v4526_v19, %v4527_v54  ;;  %v4624_v33 = vsel %vm1311_vm4, %v6632_v58, -inf }
 0x16b   : > { %v4512_v49 = vmax.f32 %v4510_v26, %v4511_v29  ;;  %5547 = vmatmul.mubr.msk.f32.gmra.mrb[42].mxu1 %vm1311_vm4, %v6810_v7  ;;  %v4595_v56 = vmax.f32 %v4593_v11, %v4594_v42  ;;  %v4604_v57 = vmax.f32 %v4602_v45, %v4603_v14  ;;  %v4618_v22 = vmax.f32 %v4616_v48, %v4617_v40 }
 0x16c   : > { %v4521_v28 = vmax.f32 %v4519_v18, %v4520_v43  ;;  %v4529_v41 = vrot.slane %v4528_v17, 2  ;;  %v4613_v15 = vmax.f32 %v4611_v53, %v4612_v35  ;;  %v4625_v30 = vmax.f32 %v4623_v0, %v4624_v33  ;;  %5549 = vmatprep.mubr.msk.f32.mxu1 %vm1311_vm4, %v6737_v44 }
 0x16d   : > { %v4513_v34 = vrot.slane %v4512_v49, 1  ;;  %v4505_v10 = vmax.f32 %v4503_v36, %v4504_v25  ;;  %v4619_v29 = vrot.slane %v4618_v22, 2  ;;  %v4632_v54 = vsel %vm1311_vm4, %v6634_v52, -inf }
 0x16e   : > { %v4633_v26 = vsel %vm1311_vm4, %v6668_v59, -inf  ;;  %v4522_v19 = vrot.slane %v4521_v28, 1  ;;  %v4530_v18 = vmax.f32 %v4528_v17, %v4529_v41  ;;  %v4626_v11 = vrot.slane %v4625_v30, 4 }
 0x16f   : > { %v4634_v42 = vmax.f32 %v4632_v54, %v4633_v26  ;;  %v4514_v48 = vmax.f32 %v4512_v49, %v4513_v34  ;;  %v4620_v45 = vmax.f32 %v4618_v22, %v4619_v29  ;;  %v4837_v53 = vsel %vm4673_vm5, %v4586_v38, %v4577_v2  ;;  %5550 = vmatmul.mubr.msk.f32.gmra.mrb[44].mxu1 %vm1311_vm4, %v6739_v16 }
 0x170   : > { %v7732_v0 = vrot.slane %v6764_v23, 4  ;;  %v4627_v36 = vmax.f32 %v4625_v30, %v4626_v11  ;;  %v4838_v35 = vsel %vm4675_vm6, %v4595_v56, %v4837_v53  ;;  %v4531_v40 = vrot.slane %v4530_v18, 1  ;;  %5552 = vmatprep.mubr.msk.f32.mxu1 %vm1311_vm4, %v6743_v12  ;;  %v2382_v11 = vld [vmem:[%s7701_s7 + $0x8] sm:$0xf] }
 0x171   : > { %v4635_v14 = vrot.slane %v4634_v42, 4  ;;  %v4621_v41 = vrot.slane %v4620_v45, 1  ;;  %v4839_v25 = vsel %vm4677_vm7, %v4604_v57, %v4838_v35  ;;  %v4544_v2 = vmax.f32 %v6768_v27, %v6777_v37 }
 0x172   : > { %v4537_v43 = vmax.f32 %v6764_v23, %v7732_v0  ;;  %v4628_v38 = vrot.slane %v4627_v36, 2  ;;  %v4840_v17 = vsel %vm4679_vm8, %v4613_v15, %v4839_v25  ;;  %v4523_v33 = vmax.f32 %v4521_v28, %v4522_v19  ;;  %v2381_v19 = vld [vmem:[%s7701_s7] sm:$0xff] }
 0x173   : > { %v4636_v23 = vmax.f32 %v4634_v42, %v4635_v14  ;;  %v4622_v30 = vmax.f32 %v4620_v45, %v4621_v41  ;;  %v4545_v34 = vrot.slane %v4544_v2, 4  ;;  %v4551_v56 = vsel %vm1311_vm4, %v6748_v6, -inf  ;;  %5553 = vmatmul.mubr.msk.f32.gmra.mrb[46].mxu1 %vm1311_vm4, %v6745_v1 }
 0x174   : > { %v4538_v49 = vrot.slane %v4537_v43, 2  ;;  %v4629_v29 = vmax.f32 %v4627_v36, %v4628_v38  ;;  %v4552_v54 = vsel %vm1311_vm4, %v6758_v32, -inf  ;;  %v4560_v27 = vsel %vm1311_vm4, %v6760_v5, -inf  ;;  %5555 = vmatprep.mubr.msk.f32.mxu1 %vm1311_vm4, %v6748_v6 }
 0x175   : > { %v4637_v57 = vrot.slane %v4636_v23, 2  ;;  %v4532_v37 = vmax.f32 %v4530_v18, %v4531_v40  ;;  %v4546_v28 = vmax.f32 %v4544_v2, %v4545_v34  ;;  %v4553_v26 = vmax.f32 %v4551_v56, %v4552_v54 }
 0x176   : > { %v4539_v22 = vmax.f32 %v4537_v43, %v4538_v49  ;;  %v4630_v42 = vrot.slane %v4629_v29, 1  ;;  %v4561_v53 = vsel %vm1311_vm4, %v6762_v47, -inf  ;;  %v4830_v0 = vsel %vm4673_vm5, %v4514_v48, %v4505_v10  ;;  %v6882_v49 = vpop.f32.mrb[0].mxu1 }
 0x177   : > { %v4638_v45 = vmax.f32 %v4636_v23, %v4637_v57  ;;  %v4841_v18 = vsel %vm4681_vm9, %v4622_v30, %v4840_v17  ;;  %v4547_v43 = vrot.slane %v4546_v28, 2  ;;  %v4554_v36 = vrot.slane %v4553_v26, 4  ;;  %5556 = vmatmul.mubr.msk.f32.gmra.mrb[48].mxu1 %vm1311_vm4, %v6758_v32  ;;  %v6884_v23 = vpop.f32.mrb[1].mxu1 }
 0x178   : > { %v4540_v15 = vrot.slane %v4539_v22, 1  ;;  %v4562_v14 = vmax.f32 %v4560_v27, %v4561_v53  ;;  %v4631_v35 = vmax.f32 %v4629_v29, %v4630_v42  ;;  %v4831_v41 = vsel %vm4675_vm6, %v4523_v33, %v4830_v0  ;;  %5558 = vmatprep.mubr.msk.f32.mxu1 %vm1311_vm4, %v6760_v5  ;;  %v5472_v33 = vpop.f32.mrb[2].mxu1 }
 0x179   : > { %v4639_v40 = vrot.slane %v4638_v45, 1  ;;  %v5809_v25 = vpack.c.bf16 %v2382_v11, %v2381_v19  ;;  %v4548_v10 = vmax.f32 %v4546_v28, %v4547_v43  ;;  %v4555_v48 = vmax.f32 %v4553_v26, %v4554_v36  ;;  %v717_v54 = vpop.f32.mrb[3].mxu1 }
 0x17a   : > { %v4541_v2 = vmax.f32 %v4539_v22, %v4540_v15  ;;  %v4563_v38 = vrot.slane %v4562_v14, 4  ;;  %v4842_v30 = vsel %vm4683_vm10, %v4631_v35, %v4841_v18  ;;  %v4832_v34 = vsel %vm4677_vm7, %v4532_v37, %v4831_v41  ;;  %v6897_v22 = vld [vmem:[%s7700_s6] ss:$0 sm:$0xff]  ;;  %v7734_v35 = vld [vmem:[#allocation8_spill] sm:$0xff]  ;;  %v7736_v41 = vld [vmem:[#allocation10_spill] sm:$0xff] }
 0x17b   : > { %v4640_v17 = vmax.f32 %v4638_v45, %v4639_v40  ;;  %5811 = vmatprep.subr.msk.bf16.mxu0 %vm6212_vm3, %v5809_v25  ;;  %v4549_v56 = vrot.slane %v4548_v10, 1  ;;  %v4556_v29 = vrot.slane %v4555_v48, 2  ;;  %5559 = vmatmul.mubr.msk.f32.gmra.mrb[50].mxu1 %vm1311_vm4, %v6762_v47  ;;  %v6903_v37 = vadd.f32 %v5472_v33, %v6897_v22  ;;  %v7735_v40 = vld [vmem:[#allocation9_spill] sm:$0xff] }
 0x17c   : > { %v4564_v57 = vmax.f32 %v4562_v14, %v4563_v38  ;;  %5814 = vmatpush3.bf16.msk.msra.mxu0 %vm6212_vm3, %v5809_v25  ;;  %5561 = vmatprep.mubr.msk.f32.mxu1 %vm1311_vm4, %v6598_v39  ;;  %v4833_v26 = vsel %vm4679_vm8, %v4541_v2, %v4832_v34  ;;  %v6913_v45 = vadd.f32 %v6897_v22, %v717_v54  ;;  %v7733_v14 = vld [vmem:[#allocation7_spill] sm:$0xff] }
 0x17d   : > { %v4843_v27 = vsel %vm4685_vm11, %v4640_v17, %v4842_v30  ;;  %v4550_v15 = vmax.f32 %v4548_v10, %v4549_v56  ;;  %v4557_v28 = vmax.f32 %v4555_v48, %v4556_v29  ;;  %v713_v25 = vadd.f32 %v6882_v49, %v6897_v22 }
 0x17e   : > { %4850 = vrot.lane.b32.xlu1 %v4843_v27, %s6029_s24  ;;  %v4565_v21 = vrot.slane %v4564_v57, 2 }
 0x17f   : > { %v4558_v19 = vrot.slane %v4557_v28, 1  ;;  %5562 = vmatmul.mubr.msk.f32.gmra.mrb[52].mxu1 %vm1311_vm4, %v6604_v8  ;;  %v4834_v42 = vsel %vm4681_vm9, %v4550_v15, %v4833_v26 }
 0x180   : > { %v4566_v11 = vmax.f32 %v4564_v57, %v4565_v21  ;;  %5564 = vmatprep.mubr.msk.f32.mxu1 %vm1311_vm4, %v6606_v50 }
 0x181   : > { %v4559_v53 = vmax.f32 %v4557_v28, %v4558_v19 }
 0x182   : > { %v4567_v0 = vrot.slane %v4566_v11, 1 }
 0x183   : > { %v4835_v43 = vsel %vm4683_vm10, %v4559_v53, %v4834_v42  ;;  %5565 = vmatmul.mubr.msk.f32.gmra.mrb[54].mxu1 %vm1311_vm4, %v6608_v60 }
 0x184   : > { %v4568_v18 = vmax.f32 %v4566_v11, %v4567_v0  ;;  %5567 = vmatprep.mubr.msk.f32.mxu1 %vm1311_vm4, %v6610_v13 }
 0x186   : > { %v4836_v36 = vsel %vm4685_vm11, %v4568_v18, %v4835_v43 }
 0x187   : > { %4848 = vrot.lane.b32.xlu0 %v4836_v36, %s6029_s24  ;;  %5568 = vmatmul.mubr.msk.f32.gmra.mrb[56].mxu1 %vm1311_vm4, %v6616_v20 }
 0x188   : > { %5570 = vmatprep.mubr.msk.f32.mxu1 %vm1311_vm4, %v6618_v24 }
 0x18b   : > { %5571 = vmatmul.mubr.msk.f32.gmra.mrb[58].mxu1 %vm1311_vm4, %v6620_v51 }
 0x18c   : > { %5573 = vmatprep.mubr.msk.f32.mxu1 %vm1311_vm4, %v6622_v31 }
 0x18f   : > { %5574 = vmatmul.mubr.msk.f32.gmra.mrb[60].mxu1 %vm1311_vm4, %v6624_v63 }
 0x190   : > { %5576 = vmatprep.mubr.msk.f32.mxu1 %vm1311_vm4, %v6626_v4 }
 0x193   : > { %5577 = vmatmul.mubr.msk.f32.gmra.mrb[62].mxu1 %vm1311_vm4, %v6628_v46 }
 0x194   : > { %5579 = vmatprep.mubr.msk.f32.mxu1 %vm1311_vm4, %v6630_v3 }
 0x197   : > { %5580 = vmatmul.mubr.msk.f32.gmra.mrb[64].mxu1 %vm1311_vm4, %v6632_v58 }
 0x198   : > { %5582 = vmatprep.mubr.msk.f32.mxu1 %vm1311_vm4, %v6634_v52 }
 0x19b   : > { %5583 = vmatmul.mubr.msk.f32.gmra.mrb[66].mxu1 %vm1311_vm4, %v6668_v59 }
 0x19c   : > { %5634 = vmatprep.mubr.msk.f32.mxu1 %vm1311_vm4, %v6326_v61  ;;  %v7737_v61 = vld [vmem:[#allocation11_spill] sm:$0xff] }
 0x19f   : > { %5635 = vmatmul.mubr.msk.f32.vlgmr.msra.gmra.mrb[68].mxu1 %vm1311_vm4, %v6328_v62  ;;  %v708_v62 = vadd.f32 %v6897_v22, %v6884_v23  ;;  %v1946_v22 = vcombine.high %v713_v25, %v713_v25 }
 0x1a0   : > { %5637 = vmatprep.mubr.msk.f32.mxu1 %vm1311_vm4, %v6734_v55 }
 0x1a3   : > { %5638 = vmatmul.mubr.msk.f32.gmra.mrb[70].mxu1 %vm1311_vm4, %v6770_v9 }
 0x1a4   : > { %5640 = vmatprep.mubr.msk.f32.mxu1 %vm1311_vm4, %v7733_v14 }
 0x1a7   : > { %5641 = vmatmul.mubr.msk.f32.gmra.mrb[72].mxu1 %vm1311_vm4, %v7734_v35 }
 0x1a8   : > { %5643 = vmatprep.mubr.msk.f32.mxu1 %vm1311_vm4, %v7735_v40 }
 0x1ab   : > { %5644 = vmatmul.mubr.msk.f32.gmra.mrb[74].mxu1 %vm1311_vm4, %v7736_v41 }
 0x1ac   : > { %5646 = vmatprep.mubr.msk.f32.mxu1 %vm1311_vm4, %v7737_v61 }
 0x1af   : > { %5647 = vmatmul.mubr.msk.f32.gmra.mrb[76].mxu1 %vm1311_vm4, %v6810_v7 }
 0x1b0   : > { %5649 = vmatprep.mubr.msk.f32.mxu1 %vm1311_vm4, %v6737_v44 }
 0x1b3   : > { %5650 = vmatmul.mubr.msk.f32.gmra.mrb[78].mxu1 %vm1311_vm4, %v6739_v16 }
 0x1b4   : > { %5652 = vmatprep.mubr.msk.f32.mxu1 %vm1311_vm4, %v6743_v12 }
 0x1b7   : > { %5653 = vmatmul.mubr.msk.f32.gmra.mrb[80].mxu1 %vm1311_vm4, %v6745_v1 }
 0x1b8   : > { %5655 = vmatprep.mubr.msk.f32.mxu1 %vm1311_vm4, %v6748_v6 }
 0x1bb   : > { %5656 = vmatmul.mubr.msk.f32.gmra.mrb[82].mxu1 %vm1311_vm4, %v6758_v32 }
 0x1bc   : > { %5658 = vmatprep.mubr.msk.f32.mxu1 %vm1311_vm4, %v6760_v5 }
 0x1bf   : > { %5659 = vmatmul.mubr.msk.f32.gmra.mrb[84].mxu1 %vm1311_vm4, %v6762_v47 }
 0x1c0   : > { %5661 = vmatprep.mubr.msk.f32.mxu1 %vm1311_vm4, %v6598_v39  ;;  %v7738_v39 = vld [vmem:[#allocation5_spill] sm:$0xff] }
 0x1c1   : > { %v7033_v54 = vrot.slane %v713_v25, %v7738_v39  ;;  %v7042_v40 = vrot.slane %v1946_v22, %v7738_v39 }
 0x1c3   : > { %5662 = vmatmul.mubr.msk.f32.gmra.mrb[86].mxu1 %vm1311_vm4, %v6604_v8  ;;  %v1904_v8 = vrot.slane %v708_v62, %v7738_v39  ;;  %v1961_v41 = vcombine.high %v7033_v54, %v7033_v54 }
 0x1c4   : > { %5664 = vmatprep.mubr.msk.f32.mxu1 %vm1311_vm4, %v6606_v50 }
 0x1c5   : > { %v1920_v50 = vrot.slane %v1904_v8, %v7738_v39 }
 0x1c7   : > { %5665 = vmatmul.mubr.msk.f32.gmra.mrb[88].mxu1 %vm1311_vm4, %v6608_v60  ;;  %v1912_v60 = vcombine.high %v1904_v8, %v1904_v8 }
 0x1c8   : > { %5667 = vmatprep.mubr.msk.f32.mxu1 %vm1311_vm4, %v6610_v13  ;;  %v7739_v13 = vld [vmem:[#allocation6_spill] sm:$0xff] }
 0x1cb   : > { %5668 = vmatmul.mubr.msk.f32.gmra.mrb[90].mxu1 %vm1311_vm4, %v6616_v20  ;;  %v2096_v20 = vrot.slane %v1920_v50, %v7739_v13 }
 0x1cc   : > { %5670 = vmatprep.mubr.msk.f32.mxu1 %vm1311_vm4, %v6618_v24  ;;  %v1934_v24 = vrot.slane %v1912_v60, %v7738_v39 }
 0x1ce   : > { %v1944_v7 = vcombine.high %v1934_v24, %v1934_v24 }
 0x1cf   : > { %5671 = vmatmul.mubr.msk.f32.gmra.mrb[92].mxu1 %vm1311_vm4, %v6620_v51 }
 0x1d0   : > { %5673 = vmatprep.mubr.msk.f32.mxu1 %vm1311_vm4, %v6622_v31  ;;  %v2108_v49 = vrot.slane %v1944_v7, %v7739_v13 }
 0x1d3   : > { %5674 = vmatmul.mubr.msk.f32.gmra.mrb[94].mxu1 %vm1311_vm4, %v6624_v63 }
 0x1d4   : > { %5676 = vmatprep.mubr.msk.f32.mxu1 %vm1311_vm4, %v6626_v4  ;;  %v1897_v4 = vcombine.high %v708_v62, %v708_v62 }
 0x1d6   : > { %v1911_v1 = vrot.slane %v1897_v4, %v7738_v39 }
 0x1d7   : > { %5677 = vmatmul.mubr.msk.f32.gmra.mrb[96].mxu1 %vm1311_vm4, %v6628_v46 }
 0x1d8   : > { %5679 = vmatprep.mubr.msk.f32.mxu1 %vm1311_vm4, %v6630_v3  ;;  %v1913_v33 = vcombine.high %v1911_v1, %v1911_v1  ;;  %v1927_v28 = vrot.slane %v1911_v1, %v7738_v39 }
 0x1da   : > { %v1941_v18 = vrot.slane %v1913_v33, %v7738_v39  ;;  %v2112_v8 = vrot.slane %v1927_v28, %v7739_v13 }
 0x1db   : > { %5680 = vmatmul.mubr.msk.f32.gmra.mrb[98].mxu1 %vm1311_vm4, %v6632_v58  ;;  %v2100_v58 = vrot.slane %v1934_v24, %v7739_v13 }
 0x1dc   : > { %5682 = vmatprep.mubr.msk.f32.mxu1 %vm1311_vm4, %v6634_v52  ;;  %v1942_v52 = vcombine.high %v1920_v50, %v1920_v50  ;;  %v1945_v1 = vcombine.high %v1941_v18, %v1941_v18 }
 0x1de   : > { %v2104_v9 = vrot.slane %v1942_v52, %v7739_v13 }
 0x1df   : > { %5683 = vmatmul.mubr.msk.f32.gmra.mrb[100].mxu1 %vm1311_vm4, %v6668_v59 }
 0x1eb   : > { %v5491_v51 = vpop.f32.mrb[4].mxu1 }
 0x1ec   : > { %v2254_v31 = vadd.f32 %v5491_v51, %v2096_v20  ;;  %v1574_v63 = vpop.f32.mrb[5].mxu1  ;;  %v7050_v51 = vrot.slane %v7033_v54, %v7738_v39 }
 0x1ed   : > { %v2253_v46 = vadd.f32 %v2096_v20, %v1574_v63 }
 0x1ee   : > { %v2318_v3 = vmax.f32 %v2254_v31, 0.0 }
 0x1ef   : > { %v2317_v55 = vmax.f32 %v2253_v46, 0.0  ;;  %v5494_v59 = vpop.f32.mrb[6].mxu1 }
 0x1f0   : > { %v4066_v44 = vsel %vm1311_vm4, %v2318_v3, -inf  ;;  %v2256_v16 = vadd.f32 %v5494_v59, %v2100_v58  ;;  %v1584_v12 = vpop.f32.mrb[7].mxu1 }
 0x1f1   : > { %v4065_v6 = vsel %vm1311_vm4, %v2317_v55, -inf  ;;  %v2255_v32 = vadd.f32 %v2100_v58, %v1584_v12  ;;  %5689 = vmatprep.mubr.msk.f32.mxu0 %vm1311_vm4, %v2317_v55  ;;  %v2116_v55 = vrot.slane %v1941_v18, %v7739_v13  ;;  %v1943_v12 = vcombine.high %v1927_v28, %v1927_v28  ;;  %v7067_v18 = vpop.f32.mrb[4].mxu0 }
 0x1f2   : > { %v4067_v5 = vmax.f32 %v4065_v6, %v4066_v44  ;;  %v2320_v47 = vmax.f32 %v2256_v16, 0.0  ;;  %5690 = vmatmul.mubr.msk.f32.vlgmr.msra.gmra.mrb[8].mxu0 %vm1311_vm4, %v2318_v3 }
 0x1f3   : > { %v2319_v2 = vmax.f32 %v2255_v32, 0.0  ;;  %v5497_v10 = vpop.f32.mrb[8].mxu1 }
 0x1f4   : > { %v4068_v48 = vrot.slane %v4067_v5, 4  ;;  %v4075_v38 = vsel %vm1311_vm4, %v2320_v47, -inf  ;;  %v2258_v23 = vadd.f32 %v5497_v10, %v2104_v9  ;;  %v1594_v17 = vpop.f32.mrb[9].mxu1 }
 0x1f5   : > { %v4074_v30 = vsel %vm1311_vm4, %v2319_v2, -inf  ;;  %v2257_v34 = vadd.f32 %v2104_v9, %v1594_v17  ;;  %5692 = vmatprep.mubr.msk.f32.mxu0 %vm1311_vm4, %v2319_v2 }
 0x1f6   : > { %v4069_v56 = vmax.f32 %v4067_v5, %v4068_v48  ;;  %v4076_v29 = vmax.f32 %v4074_v30, %v4075_v38  ;;  %v2322_v57 = vmax.f32 %v2258_v23, 0.0  ;;  %5693 = vmatmul.mubr.msk.f32.gmra.mrb[10].mxu0 %vm1311_vm4, %v2320_v47 }
 0x1f7   : > { %v2321_v27 = vmax.f32 %v2257_v34, 0.0  ;;  %v5500_v15 = vpop.f32.mrb[10].mxu1 }
 0x1f8   : > { %v4070_v21 = vrot.slane %v4069_v56, 2  ;;  %v4077_v26 = vrot.slane %v4076_v29, 4  ;;  %v4084_v19 = vsel %vm1311_vm4, %v2322_v57, -inf  ;;  %v2260_v11 = vadd.f32 %v5500_v15, %v2108_v49  ;;  %v1604_v42 = vpop.f32.mrb[11].mxu1 }
 0x1f9   : > { %v4083_v53 = vsel %vm1311_vm4, %v2321_v27, -inf  ;;  %v2259_v0 = vadd.f32 %v2108_v49, %v1604_v42  ;;  %5695 = vmatprep.mubr.msk.f32.mxu0 %vm1311_vm4, %v2321_v27 }
 0x1fa   : > { %v4071_v43 = vmax.f32 %v4069_v56, %v4070_v21  ;;  %v4078_v36 = vmax.f32 %v4076_v29, %v4077_v26  ;;  %v4085_v14 = vmax.f32 %v4083_v53, %v4084_v19  ;;  %v2324_v35 = vmax.f32 %v2260_v11, 0.0  ;;  %5696 = vmatmul.mubr.msk.f32.gmra.mrb[12].mxu0 %vm1311_vm4, %v2322_v57 }
 0x1fb   : > { %v2323_v61 = vmax.f32 %v2259_v0, 0.0  ;;  %v5503_v62 = vpop.f32.mrb[12].mxu1  ;;  %v2120_v56 = vrot.slane %v1943_v12, %v7739_v13  ;;  %v2124_v29 = vrot.slane %v1945_v1, %v7739_v13  ;;  %v1991_v12 = vcombine.high %v7050_v51, %v7050_v51 }
 0x1fc   : > { %v4079_v50 = vrot.slane %v4078_v36, 2  ;;  %v4086_v60 = vrot.slane %v4085_v14, 4  ;;  %v4093_v20 = vsel %vm1311_vm4, %v2324_v35, -inf  ;;  %v1614_v24 = vpop.f32.mrb[13].mxu1  ;;  %v4072_v31 = vrot.slane %v4071_v43, 1 }
 0x1fd   : > { %v4092_v63 = vsel %vm1311_vm4, %v2323_v61, -inf  ;;  %v2262_v4 = vadd.f32 %v5503_v62, %v2112_v8  ;;  %v2261_v46 = vadd.f32 %v2112_v8, %v1614_v24  ;;  %5698 = vmatprep.mubr.msk.f32.mxu0 %vm1311_vm4, %v2323_v61  ;;  %v7075_v61 = vrot.slane %v1961_v41, %v7738_v39  ;;  %v7077_v62 = vpop.f32.mrb[5].mxu0 }
 0x1fe   : > { %v4080_v3 = vmax.f32 %v4078_v36, %v4079_v50  ;;  %v4087_v58 = vmax.f32 %v4085_v14, %v4086_v60  ;;  %v4094_v52 = vmax.f32 %v4092_v63, %v4093_v20  ;;  %5699 = vmatmul.mubr.msk.f32.gmra.mrb[14].mxu0 %vm1311_vm4, %v2324_v35  ;;  %v4073_v7 = vmax.f32 %v4071_v43, %v4072_v31 }
 0x1ff   : > { %v2326_v59 = vmax.f32 %v2262_v4, 0.0  ;;  %v2325_v44 = vmax.f32 %v2261_v46, 0.0  ;;  %v5506_v16 = vpop.f32.mrb[14].mxu1  ;;  %v2128_v35 = vrot.slane %v7050_v51, %v7739_v13 }
 0x200   : > { %v4081_v6 = vrot.slane %v4080_v3, 1  ;;  %v4088_v32 = vrot.slane %v4087_v58, 2  ;;  %v4095_v5 = vrot.slane %v4094_v52, 4  ;;  %v2264_v47 = vadd.f32 %v5506_v16, %v2116_v55  ;;  %v1624_v9 = vpop.f32.mrb[15].mxu1 }
 0x201   : > { %v4102_v25 = vsel %vm1311_vm4, %v2326_v59, -inf  ;;  %v4101_v2 = vsel %vm1311_vm4, %v2325_v44, -inf  ;;  %v2263_v10 = vadd.f32 %v2116_v55, %v1624_v9  ;;  %5701 = vmatprep.mubr.msk.f32.mxu0 %vm1311_vm4, %v2325_v44  ;;  %v2132_v16 = vrot.slane %v7075_v61, %v7739_v13 }
 0x202   : > { %v4082_v48 = vmax.f32 %v4080_v3, %v4081_v6  ;;  %v4089_v38 = vmax.f32 %v4087_v58, %v4088_v32  ;;  %v4096_v23 = vmax.f32 %v4094_v52, %v4095_v5  ;;  %v4103_v17 = vmax.f32 %v4101_v2, %v4102_v25  ;;  %5702 = vmatmul.mubr.msk.f32.gmra.mrb[16].mxu0 %vm1311_vm4, %v2326_v59  ;;  %v5484_v52 = vpop.f32.mrb[6].mxu0 }
 0x203   : > { %v2328_v30 = vmax.f32 %v2264_v47, 0.0  ;;  %v2327_v34 = vmax.f32 %v2263_v10, 0.0  ;;  %v5509_v33 = vpop.f32.mrb[16].mxu1  ;;  %v7088_v1 = vpop.f32.mrb[7].mxu0 }
 0x204   : > { %v4744_v57 = vsel %vm4673_vm5, %v4082_v48, %v4073_v7  ;;  %v4090_v49 = vrot.slane %v4089_v38, 1  ;;  %v4097_v22 = vrot.slane %v4096_v23, 2  ;;  %v4104_v27 = vrot.slane %v4103_v17, 4  ;;  %v1634_v15 = vpop.f32.mrb[17].mxu1 }
 0x205   : > { %v4111_v28 = vsel %vm1311_vm4, %v2328_v30, -inf  ;;  %v4110_v21 = vsel %vm1311_vm4, %v2327_v34, -inf  ;;  %v2266_v26 = vadd.f32 %v5509_v33, %v2120_v56  ;;  %v2265_v19 = vadd.f32 %v2120_v56, %v1634_v15  ;;  %5704 = vmatprep.mubr.msk.f32.mxu0 %vm1311_vm4, %v2327_v34 }
 0x206   : > { %v4091_v11 = vmax.f32 %v4089_v38, %v4090_v49  ;;  %v4098_v42 = vmax.f32 %v4096_v23, %v4097_v22  ;;  %v4105_v53 = vmax.f32 %v4103_v17, %v4104_v27  ;;  %v4112_v0 = vmax.f32 %v4110_v21, %v4111_v28  ;;  %5705 = vmatmul.mubr.msk.f32.gmra.mrb[18].mxu0 %vm1311_vm4, %v2328_v30 }
 0x207   : > { %v2330_v43 = vmax.f32 %v2266_v26, 0.0  ;;  %v2329_v36 = vmax.f32 %v2265_v19, 0.0  ;;  %v5512_v14 = vpop.f32.mrb[18].mxu1  ;;  %v2136_v33 = vrot.slane %v1991_v12, %v7739_v13  ;;  %v7098_v56 = vrot.slane %v7042_v40, %v7738_v39 }
 0x208   : > { %v4099_v8 = vrot.slane %v4098_v42, 1  ;;  %v4106_v50 = vrot.slane %v4105_v53, 2  ;;  %v4113_v60 = vrot.slane %v4112_v0, 4  ;;  %v2268_v20 = vadd.f32 %v5512_v14, %v2124_v29  ;;  %v1644_v24 = vpop.f32.mrb[19].mxu1 }
 0x209   : > { %v4120_v31 = vsel %vm1311_vm4, %v2330_v43, -inf  ;;  %v4119_v63 = vsel %vm1311_vm4, %v2329_v36, -inf  ;;  %v2267_v4 = vadd.f32 %v2124_v29, %v1644_v24  ;;  %5707 = vmatprep.mubr.msk.f32.mxu0 %vm1311_vm4, %v2329_v36  ;;  %v4745_v46 = vsel %vm4675_vm6, %v4091_v11, %v4744_v57 }
 0x20a   : > { %v4100_v3 = vmax.f32 %v4098_v42, %v4099_v8  ;;  %v4107_v54 = vmax.f32 %v4105_v53, %v4106_v50  ;;  %v4114_v41 = vmax.f32 %v4112_v0, %v4113_v60  ;;  %v4121_v58 = vmax.f32 %v4119_v63, %v4120_v31  ;;  %5708 = vmatmul.mubr.msk.f32.gmra.mrb[20].mxu0 %vm1311_vm4, %v2330_v43  ;;  %v7108_v0 = vld [vmem:[%s7704_s10] ss:$0 sm:$0xff] }
 0x20b   : > { %v2332_v55 = vmax.f32 %v2268_v20, 0.0  ;;  %v2331_v59 = vmax.f32 %v2267_v4, 0.0  ;;  %v5515_v44 = vpop.f32.mrb[20].mxu1  ;;  %v7113_v8 = vadd.f32 %v5484_v52, %v7108_v0 }
 0x20c   : > { %v4108_v6 = vrot.slane %v4107_v54, 1  ;;  %v4115_v32 = vrot.slane %v4114_v41, 2  ;;  %v4122_v5 = vrot.slane %v4121_v58, 4  ;;  %v2270_v47 = vadd.f32 %v5515_v44, %v2128_v35  ;;  %v1654_v9 = vpop.f32.mrb[21].mxu1 }
 0x20d   : > { %v4129_v7 = vsel %vm1311_vm4, %v2332_v55, -inf  ;;  %v4128_v25 = vsel %vm1311_vm4, %v2331_v59, -inf  ;;  %v2269_v2 = vadd.f32 %v2128_v35, %v1654_v9  ;;  %5710 = vmatprep.mubr.msk.f32.mxu0 %vm1311_vm4, %v2331_v59  ;;  %v4746_v10 = vsel %vm4677_vm7, %v4100_v3, %v4745_v46 }
 0x20e   : > { %v4109_v48 = vmax.f32 %v4107_v54, %v4108_v6  ;;  %v4116_v38 = vmax.f32 %v4114_v41, %v4115_v32  ;;  %v4123_v23 = vmax.f32 %v4121_v58, %v4122_v5  ;;  %v4130_v51 = vmax.f32 %v4128_v25, %v4129_v7  ;;  %5711 = vmatmul.mubr.msk.f32.gmra.mrb[22].mxu0 %vm1311_vm4, %v2332_v55 }
 0x20f   : > { %v2334_v17 = vmax.f32 %v2270_v47, 0.0  ;;  %v2333_v30 = vmax.f32 %v2269_v2, 0.0  ;;  %v5518_v34 = vpop.f32.mrb[22].mxu1  ;;  %v1993_v35 = vcombine.high %v7075_v61, %v7075_v61  ;;  %v1962_v44 = vcombine.high %v7042_v40, %v7042_v40 }
 0x210   : > { %v4117_v29 = vrot.slane %v4116_v38, 1  ;;  %v4124_v57 = vrot.slane %v4123_v23, 2  ;;  %v4131_v49 = vrot.slane %v4130_v51, 4  ;;  %v2272_v22 = vadd.f32 %v5518_v34, %v2132_v16  ;;  %v1664_v27 = vpop.f32.mrb[23].mxu1 }
 0x211   : > { %v4138_v15 = vsel %vm1311_vm4, %v2334_v17, -inf  ;;  %v4137_v28 = vsel %vm1311_vm4, %v2333_v30, -inf  ;;  %v2271_v21 = vadd.f32 %v2132_v16, %v1664_v27  ;;  %5713 = vmatprep.mubr.msk.f32.mxu0 %vm1311_vm4, %v2333_v30  ;;  %v4747_v26 = vsel %vm4679_vm8, %v4109_v48, %v4746_v10 }
 0x212   : > { %v4118_v19 = vmax.f32 %v4116_v38, %v4117_v29  ;;  %v4125_v11 = vmax.f32 %v4123_v23, %v4124_v57  ;;  %v4132_v42 = vmax.f32 %v4130_v51, %v4131_v49  ;;  %v4139_v53 = vmax.f32 %v4137_v28, %v4138_v15  ;;  %5714 = vmatmul.mubr.msk.f32.gmra.mrb[24].mxu0 %vm1311_vm4, %v2334_v17 }
 0x213   : > { %v2336_v43 = vmax.f32 %v2272_v22, 0.0  ;;  %v2335_v36 = vmax.f32 %v2271_v21, 0.0  ;;  %v5521_v14 = vpop.f32.mrb[24].mxu1  ;;  %v2140_v55 = vrot.slane %v1993_v35, %v7739_v13  ;;  %v2144_v23 = vrot.slane %v7098_v56, %v7739_v13 }
 0x214   : > { %v4126_v50 = vrot.slane %v4125_v11, 1  ;;  %v4133_v60 = vrot.slane %v4132_v42, 2  ;;  %v4140_v20 = vrot.slane %v4139_v53, 4  ;;  %v2274_v24 = vadd.f32 %v5521_v14, %v2136_v33  ;;  %v1674_v31 = vpop.f32.mrb[25].mxu1 }
 0x215   : > { %v4147_v63 = vsel %vm1311_vm4, %v2336_v43, -inf  ;;  %v4146_v4 = vsel %vm1311_vm4, %v2335_v36, -inf  ;;  %v2273_v46 = vadd.f32 %v2136_v33, %v1674_v31  ;;  %5716 = vmatprep.mubr.msk.f32.mxu0 %vm1311_vm4, %v2335_v36  ;;  %v4748_v3 = vsel %vm4681_vm9, %v4118_v19, %v4747_v26 }
 0x216   : > { %v4134_v54 = vmax.f32 %v4132_v42, %v4133_v60  ;;  %v4141_v41 = vmax.f32 %v4139_v53, %v4140_v20  ;;  %v4148_v61 = vmax.f32 %v4146_v4, %v4147_v63  ;;  %v2338_v58 = vmax.f32 %v2274_v24, 0.0  ;;  %5717 = vmatmul.mubr.msk.f32.gmra.mrb[26].mxu0 %vm1311_vm4, %v2336_v43 }
 0x217   : > { %v2337_v52 = vmax.f32 %v2273_v46, 0.0  ;;  %v4127_v59 = vmax.f32 %v4125_v11, %v4126_v50  ;;  %v5524_v32 = vpop.f32.mrb[26].mxu1  ;;  %v1990_v17 = vrot.slane %v1962_v44, %v7738_v39  ;;  %v1992_v57 = vcombine.high %v7098_v56, %v7098_v56 }
 0x218   : > { %v4142_v16 = vrot.slane %v4141_v41, 2  ;;  %v4149_v12 = vrot.slane %v4148_v61, 4  ;;  %v4156_v6 = vsel %vm1311_vm4, %v2338_v58, -inf  ;;  %v4135_v5 = vrot.slane %v4134_v54, 1  ;;  %v1684_v7 = vpop.f32.mrb[27].mxu1 }
 0x219   : > { %v4155_v47 = vsel %vm1311_vm4, %v2337_v52, -inf  ;;  %v2276_v9 = vadd.f32 %v5524_v32, %v2140_v55  ;;  %5719 = vmatprep.mubr.msk.f32.mxu0 %vm1311_vm4, %v2337_v52  ;;  %v4749_v25 = vsel %vm4683_vm10, %v4127_v59, %v4748_v3  ;;  %v2275_v38 = vadd.f32 %v2140_v55, %v1684_v7 }
 0x21a   : > { %v4143_v2 = vmax.f32 %v4141_v41, %v4142_v16  ;;  %v4150_v10 = vmax.f32 %v4148_v61, %v4149_v12  ;;  %v4157_v48 = vmax.f32 %v4155_v47, %v4156_v6  ;;  %5720 = vmatmul.mubr.msk.f32.gmra.mrb[28].mxu0 %vm1311_vm4, %v2338_v58  ;;  %v4136_v51 = vmax.f32 %v4134_v54, %v4135_v5 }
 0x21b   : > { %v2340_v40 = vmax.f32 %v2276_v9, 0.0  ;;  %v2339_v33 = vmax.f32 %v2275_v38, 0.0  ;;  %v5527_v29 = vpop.f32.mrb[28].mxu1  ;;  %v2148_v56 = vrot.slane %v1990_v17, %v7739_v13  ;;  %v2152_v35 = vrot.slane %v1992_v57, %v7739_v13 }
 0x21c   : > { %v4151_v30 = vrot.slane %v4150_v10, 2  ;;  %v4158_v34 = vrot.slane %v4157_v48, 4  ;;  %v2278_v22 = vadd.f32 %v5527_v29, %v2144_v23  ;;  %v1694_v27 = vpop.f32.mrb[29].mxu1  ;;  %v4750_v15 = vsel %vm4685_vm11, %v4136_v51, %v4749_v25 }
 0x21d   : > { %v4165_v49 = vsel %vm1311_vm4, %v2340_v40, -inf  ;;  %v4144_v28 = vrot.slane %v4143_v2, 1  ;;  %v4164_v19 = vsel %vm1311_vm4, %v2339_v33, -inf  ;;  %4772 = vrot.lane.b32.xlu0 %v4750_v15, %s6030_s23  ;;  %5722 = vmatprep.mubr.msk.f32.mxu0 %vm1311_vm4, %v2339_v33  ;;  %v2277_v53 = vadd.f32 %v2144_v23, %v1694_v27 }
 0x21e   : > { %v4152_v21 = vmax.f32 %v4150_v10, %v4151_v30  ;;  %v4159_v26 = vmax.f32 %v4157_v48, %v4158_v34  ;;  %v4166_v11 = vmax.f32 %v4164_v19, %v4165_v49  ;;  %v2342_v42 = vmax.f32 %v2278_v22, 0.0  ;;  %5723 = vmatmul.mubr.msk.f32.gmra.mrb[30].mxu0 %vm1311_vm4, %v2340_v40 }
 0x21f   : > { %v5530_v14 = vpop.f32.mrb[30].mxu1  ;;  %v1994_v50 = vcombine.high %v1990_v17, %v1990_v17  ;;  %v2341_v24 = vmax.f32 %v2277_v53, 0.0  ;;  %v4145_v4 = vmax.f32 %v4143_v2, %v4144_v28  ;;  %v7146_v52 = vadd.f32 %v7108_v0, %v7088_v1 }
 0x220   : > { %v4153_v43 = vrot.slane %v4152_v21, 1  ;;  %v4160_v36 = vrot.slane %v4159_v26, 2  ;;  %v4167_v60 = vrot.slane %v4166_v11, 4  ;;  %v4174_v20 = vsel %vm1311_vm4, %v2342_v42, -inf  ;;  %v1704_v63 = vpop.f32.mrb[31].mxu1 }
 0x221   : > { %v2280_v31 = vadd.f32 %v5530_v14, %v2148_v56  ;;  %v2279_v54 = vadd.f32 %v2148_v56, %v1704_v63  ;;  %v4173_v61 = vsel %vm1311_vm4, %v2341_v24, -inf  ;;  %5725 = vmatprep.mubr.msk.f32.mxu0 %vm1311_vm4, %v2341_v24  ;;  %v2156_v48 = vrot.slane %v1994_v50, %v7739_v13 }
 0x222   : > { %v4154_v46 = vmax.f32 %v4152_v21, %v4153_v43  ;;  %v4161_v3 = vmax.f32 %v4159_v26, %v4160_v36  ;;  %v4168_v41 = vmax.f32 %v4166_v11, %v4167_v60  ;;  %v4175_v44 = vmax.f32 %v4173_v61, %v4174_v20  ;;  %5726 = vmatmul.mubr.msk.f32.gmra.mrb[32].mxu0 %vm1311_vm4, %v2342_v42 }
 0x223   : > { %v2344_v58 = vmax.f32 %v2280_v31, 0.0  ;;  %v2343_v16 = vmax.f32 %v2279_v54, 0.0  ;;  %v5533_v12 = vpop.f32.mrb[32].mxu1  ;;  %v2002_v38 = vrot.slane %v6913_v45, %v7738_v39 }
 0x224   : > { %v4751_v55 = vsel %vm4673_vm5, %v4154_v46, %v4145_v4  ;;  %v4162_v59 = vrot.slane %v4161_v3, 1  ;;  %v4169_v6 = vrot.slane %v4168_v41, 2  ;;  %v2282_v5 = vadd.f32 %v5533_v12, %v2152_v35  ;;  %v1714_v47 = vpop.f32.mrb[33].mxu1 }
 0x225   : > { %v4183_v32 = vsel %vm1311_vm4, %v2344_v58, -inf  ;;  %v4176_v7 = vrot.slane %v4175_v44, 4  ;;  %v4182_v25 = vsel %vm1311_vm4, %v2343_v16, -inf  ;;  %v2281_v2 = vadd.f32 %v2152_v35, %v1714_v47  ;;  %5728 = vmatprep.mubr.msk.f32.mxu0 %vm1311_vm4, %v2343_v16 }
 0x226   : > { %v4163_v9 = vmax.f32 %v4161_v3, %v4162_v59  ;;  %v4170_v1 = vmax.f32 %v4168_v41, %v4169_v6  ;;  %v4184_v0 = vmax.f32 %v4182_v25, %v4183_v32  ;;  %v2346_v10 = vmax.f32 %v2282_v5, 0.0  ;;  %5729 = vmatmul.mubr.msk.f32.gmra.mrb[34].mxu0 %vm1311_vm4, %v2344_v58 }
 0x227   : > { %v4177_v40 = vmax.f32 %v4175_v44, %v4176_v7  ;;  %v2345_v23 = vmax.f32 %v2281_v2, 0.0  ;;  %v5536_v51 = vpop.f32.mrb[34].mxu1  ;;  %v2010_v19 = vcombine.high %v2002_v38, %v2002_v38  ;;  %v2018_v53 = vrot.slane %v2002_v38, %v7738_v39 }
 0x228   : > { %v4752_v17 = vsel %vm4675_vm6, %v4163_v9, %v4751_v55  ;;  %v4171_v30 = vrot.slane %v4170_v1, 1  ;;  %v4185_v34 = vrot.slane %v4184_v0, 4  ;;  %v4192_v33 = vsel %vm1311_vm4, %v2346_v10, -inf  ;;  %v1724_v57 = vpop.f32.mrb[35].mxu1 }
 0x229   : > { %v2284_v29 = vadd.f32 %v5536_v51, %v2156_v48  ;;  %v4178_v49 = vrot.slane %v4177_v40, 2  ;;  %v4191_v22 = vsel %vm1311_vm4, %v2345_v23, -inf  ;;  %v2283_v27 = vadd.f32 %v2156_v48, %v1724_v57  ;;  %5731 = vmatprep.mubr.msk.f32.mxu0 %vm1311_vm4, %v2345_v23 }
 0x22a   : > { %v4172_v15 = vmax.f32 %v4170_v1, %v4171_v30  ;;  %v4186_v28 = vmax.f32 %v4184_v0, %v4185_v34  ;;  %v4193_v21 = vmax.f32 %v4191_v22, %v4192_v33  ;;  %5732 = vmatmul.mubr.msk.f32.gmra.mrb[36].mxu0 %vm1311_vm4, %v2346_v10  ;;  %v2032_v63 = vrot.slane %v2010_v19, %v7738_v39 }
 0x22b   : > { %v2348_v26 = vmax.f32 %v2284_v29, 0.0  ;;  %v4179_v11 = vmax.f32 %v4177_v40, %v4178_v49  ;;  %v2347_v42 = vmax.f32 %v2283_v27, 0.0  ;;  %v2160_v54 = vrot.slane %v2018_v53, %v7739_v13 }
 0x22c   : > { %v4187_v56 = vrot.slane %v4186_v28, 2  ;;  %v4194_v43 = vrot.slane %v4193_v21, 4  ;;  %v4753_v14 = vsel %vm4677_vm7, %v4172_v15, %v4752_v17  ;;  %v1995_v41 = vcombine.high %v6913_v45, %v6913_v45 }
 0x22d   : > { %v4201_v36 = vsel %vm1311_vm4, %v2348_v26, -inf  ;;  %v4180_v35 = vrot.slane %v4179_v11, 1  ;;  %v4200_v50 = vsel %vm1311_vm4, %v2347_v42, -inf  ;;  %5734 = vmatprep.mubr.msk.f32.mxu0 %vm1311_vm4, %v2347_v42  ;;  %v2164_v32 = vrot.slane %v2032_v63, %v7739_v13 }
 0x22e   : > { %v4188_v60 = vmax.f32 %v4186_v28, %v4187_v56  ;;  %v4195_v20 = vmax.f32 %v4193_v21, %v4194_v43  ;;  %v4202_v24 = vmax.f32 %v4200_v50, %v4201_v36  ;;  %5735 = vmatmul.mubr.msk.f32.gmra.mrb[38].mxu0 %vm1311_vm4, %v2348_v26  ;;  %v2040_v5 = vcombine.high %v2018_v53, %v2018_v53 }
 0x22f   : > { %v4181_v31 = vmax.f32 %v4179_v11, %v4180_v35  ;;  %v2009_v2 = vrot.slane %v1995_v41, %v7738_v39  ;;  %v2042_v30 = vcombine.high %v2032_v63, %v2032_v63  ;;  %v2044_v35 = vcombine.high %v6903_v37, %v6903_v37 }
 0x230   : > { %v4189_v4 = vrot.slane %v4188_v60, 1  ;;  %v4196_v46 = vrot.slane %v4195_v20, 2  ;;  %v4203_v3 = vrot.slane %v4202_v24, 4  ;;  %v2168_v17 = vrot.slane %v2040_v5, %v7739_v13  ;;  %v5943_v5 = vld [vmem:[%s6166_s13 + $0x10] sm:$0xff] }
 0x231   : > { %v4754_v58 = vsel %vm4679_vm8, %v4181_v31, %v4753_v14  ;;  %v2172_v42 = vrot.slane %v2042_v30, %v7739_v13  ;;  %v2011_v53 = vcombine.high %v2009_v2, %v2009_v2  ;;  %v7192_v50 = vrot.slane %v6903_v37, %v7738_v39 }
 0x232   : > { %v5539_v61 = vpop.f32.mrb[36].mxu1  ;;  %v4190_v55 = vmax.f32 %v4188_v60, %v4189_v4  ;;  %v4197_v59 = vmax.f32 %v4195_v20, %v4196_v46  ;;  %v4204_v44 = vmax.f32 %v4202_v24, %v4203_v3  ;;  %v2025_v24 = vrot.slane %v2009_v2, %v7738_v39 }
 0x233   : > { %v2286_v16 = vadd.f32 %v5539_v61, %v2160_v54  ;;  %v1734_v12 = vpop.f32.mrb[37].mxu1  ;;  %v2039_v37 = vrot.slane %v2011_v53, %v7738_v39  ;;  %v7212_v2 = vrot.slane %v7192_v50, %v7738_v39 }
 0x234   : > { %v2285_v6 = vadd.f32 %v2160_v54, %v1734_v12  ;;  %v4198_v47 = vrot.slane %v4197_v59, 1  ;;  %v4205_v9 = vrot.slane %v4204_v44, 2  ;;  %v4755_v25 = vsel %vm4681_vm9, %v4190_v55, %v4754_v58 }
 0x235   : > { %v2350_v7 = vmax.f32 %v2286_v16, 0.0  ;;  %v2059_v16 = vcombine.high %v7192_v50, %v7192_v50 }
 0x236   : > { %v2349_v45 = vmax.f32 %v2285_v6, 0.0  ;;  %v5542_v1 = vpop.f32.mrb[38].mxu1  ;;  %v4206_v0 = vmax.f32 %v4204_v44, %v4205_v9  ;;  %v4199_v40 = vmax.f32 %v4197_v59, %v4198_v47  ;;  %v7202_v44 = vrot.slane %v2044_v35, %v7738_v39 }
 0x237   : > { %v4210_v10 = vsel %vm1311_vm4, %v2350_v7, -inf  ;;  %v2288_v48 = vadd.f32 %v5542_v1, %v2164_v32  ;;  %v1744_v38 = vpop.f32.mrb[39].mxu1 }
 0x238   : > { %v4209_v23 = vsel %vm1311_vm4, %v2349_v45, -inf  ;;  %v2287_v51 = vadd.f32 %v2164_v32, %v1744_v38  ;;  %5737 = vmatprep.mubr.msk.f32.mxu0 %vm1311_vm4, %v2349_v45  ;;  %v4207_v29 = vrot.slane %v4206_v0, 1  ;;  %v4756_v57 = vsel %vm4683_vm10, %v4199_v40, %v4755_v25 }
 0x239   : > { %v4211_v34 = vmax.f32 %v4209_v23, %v4210_v10  ;;  %v2352_v33 = vmax.f32 %v2288_v48, 0.0  ;;  %5738 = vmatmul.mubr.msk.f32.gmra.mrb[40].mxu0 %vm1311_vm4, %v2350_v7  ;;  %v2176_v32 = vrot.slane %v2025_v24, %v7739_v13  ;;  %v2180_v23 = vrot.slane %v2039_v37, %v7739_v13 }
 0x23a   : > { %v2351_v49 = vmax.f32 %v2287_v51, 0.0  ;;  %v5545_v22 = vpop.f32.mrb[40].mxu1  ;;  %v4208_v26 = vmax.f32 %v4206_v0, %v4207_v29 }
 0x23b   : > { %v4212_v27 = vrot.slane %v4211_v34, 4  ;;  %v4219_v15 = vsel %vm1311_vm4, %v2352_v33, -inf  ;;  %v2290_v28 = vadd.f32 %v5545_v22, %v2168_v17  ;;  %v1754_v21 = vpop.f32.mrb[41].mxu1 }
 0x23c   : > { %v4218_v19 = vsel %vm1311_vm4, %v2351_v49, -inf  ;;  %v2289_v11 = vadd.f32 %v2168_v17, %v1754_v21  ;;  %5740 = vmatprep.mubr.msk.f32.mxu0 %vm1311_vm4, %v2351_v49  ;;  %v4757_v14 = vsel %vm4685_vm11, %v4208_v26, %v4756_v57 }
 0x23d   : > { %v4213_v56 = vmax.f32 %v4211_v34, %v4212_v27  ;;  %v4220_v43 = vmax.f32 %v4218_v19, %v4219_v15  ;;  %v2354_v36 = vmax.f32 %v2290_v28, 0.0  ;;  %5741 = vmatmul.mubr.msk.f32.gmra.mrb[42].mxu0 %vm1311_vm4, %v2352_v33  ;;  %4774 = vrot.lane.b32.xlu0 %v4757_v14, %s6030_s23  ;;  %v2041_v34 = vcombine.high %v2025_v24, %v2025_v24 }
 0x23e   : > { %v2353_v60 = vmax.f32 %v2289_v11, 0.0  ;;  %v5548_v20 = vpop.f32.mrb[42].mxu1  ;;  %v2043_v33 = vcombine.high %v2039_v37, %v2039_v37 }
 0x23f   : > { %v4214_v31 = vrot.slane %v4213_v56, 2  ;;  %v4221_v63 = vrot.slane %v4220_v43, 4  ;;  %v4228_v4 = vsel %vm1311_vm4, %v2354_v36, -inf  ;;  %v2292_v46 = vadd.f32 %v5548_v20, %v2172_v42  ;;  %v1764_v3 = vpop.f32.mrb[43].mxu1 }
 0x240   : > { %v4227_v54 = vsel %vm1311_vm4, %v2353_v60, -inf  ;;  %v2291_v41 = vadd.f32 %v2172_v42, %v1764_v3  ;;  %5743 = vmatprep.mubr.msk.f32.mxu0 %vm1311_vm4, %v2353_v60  ;;  %v2184_v14 = vrot.slane %v2041_v34, %v7739_v13  ;;  %v2188_v35 = vrot.slane %v2043_v33, %v7739_v13 }
 0x241   : > { %v4215_v61 = vmax.f32 %v4213_v56, %v4214_v31  ;;  %v4222_v58 = vmax.f32 %v4220_v43, %v4221_v63  ;;  %v4229_v55 = vmax.f32 %v4227_v54, %v4228_v4  ;;  %v2356_v59 = vmax.f32 %v2292_v46, 0.0  ;;  %5744 = vmatmul.mubr.msk.f32.gmra.mrb[44].mxu0 %vm1311_vm4, %v2354_v36  ;;  %4860 = vrot.lane.b32.xlu0 %v5943_v5, %s6027_s0 }
 0x242   : > { %v2355_v12 = vmax.f32 %v2291_v41, 0.0  ;;  %v5551_v6 = vpop.f32.mrb[44].mxu1 }
 0x243   : > { %v4223_v47 = vrot.slane %v4222_v58, 2  ;;  %v4230_v9 = vrot.slane %v4229_v55, 4  ;;  %v4237_v7 = vsel %vm1311_vm4, %v2356_v59, -inf  ;;  %v1774_v25 = vpop.f32.mrb[45].mxu1  ;;  %v4216_v45 = vrot.slane %v4215_v61, 1 }
 0x244   : > { %v4236_v1 = vsel %vm1311_vm4, %v2355_v12, -inf  ;;  %v2294_v0 = vadd.f32 %v5551_v6, %v2176_v32  ;;  %v2293_v10 = vadd.f32 %v2176_v32, %v1774_v25  ;;  %5746 = vmatprep.mubr.msk.f32.mxu0 %vm1311_vm4, %v2355_v12  ;;  %v2192_v6 = vrot.slane %v7212_v2, %v7739_v13 }
 0x245   : > { %v4224_v48 = vmax.f32 %v4222_v58, %v4223_v47  ;;  %v4231_v38 = vmax.f32 %v4229_v55, %v4230_v9  ;;  %v4238_v40 = vmax.f32 %v4236_v1, %v4237_v7  ;;  %5747 = vmatmul.mubr.msk.f32.gmra.mrb[46].mxu0 %vm1311_vm4, %v2356_v59  ;;  %v4217_v15 = vmax.f32 %v4215_v61, %v4216_v45 }
 0x246   : > { %v2358_v51 = vmax.f32 %v2294_v0, 0.0  ;;  %v2357_v17 = vmax.f32 %v2293_v10, 0.0  ;;  %v5554_v30 = vpop.f32.mrb[46].mxu1  ;;  %v2081_v32 = vrot.slane %v2059_v16, %v7738_v39 }
 0x247   : > { %v4225_v29 = vrot.slane %v4224_v48, 1  ;;  %v4232_v57 = vrot.slane %v4231_v38, 2  ;;  %v4239_v49 = vrot.slane %v4238_v40, 4  ;;  %v2296_v22 = vadd.f32 %v5554_v30, %v2180_v23  ;;  %v1784_v27 = vpop.f32.mrb[47].mxu1 }
 0x248   : > { %v4246_v28 = vsel %vm1311_vm4, %v2358_v51, -inf  ;;  %v4245_v21 = vsel %vm1311_vm4, %v2357_v17, -inf  ;;  %v2295_v26 = vadd.f32 %v2180_v23, %v1784_v27  ;;  %5749 = vmatprep.mubr.msk.f32.mxu0 %vm1311_vm4, %v2357_v17  ;;  %v2196_v17 = vrot.slane %v2081_v32, %v7739_v13 }
 0x249   : > { %v4226_v19 = vmax.f32 %v4224_v48, %v4225_v29  ;;  %v4233_v11 = vmax.f32 %v4231_v38, %v4232_v57  ;;  %v4240_v42 = vmax.f32 %v4238_v40, %v4239_v49  ;;  %v4247_v53 = vmax.f32 %v4245_v21, %v4246_v28  ;;  %5750 = vmatmul.mubr.msk.f32.gmra.mrb[48].mxu0 %vm1311_vm4, %v2358_v51 }
 0x24a   : > { %v2360_v56 = vmax.f32 %v2296_v22, 0.0  ;;  %v2359_v43 = vmax.f32 %v2295_v26, 0.0  ;;  %v5557_v36 = vpop.f32.mrb[48].mxu1  ;;  %v2089_v30 = vcombine.high %v7212_v2, %v7212_v2 }
 0x24b   : > { %v4758_v60 = vsel %vm4673_vm5, %v4226_v19, %v4217_v15  ;;  %v4234_v20 = vrot.slane %v4233_v11, 1  ;;  %v4241_v24 = vrot.slane %v4240_v42, 2  ;;  %v4248_v31 = vrot.slane %v4247_v53, 4  ;;  %v1794_v63 = vpop.f32.mrb[49].mxu1 }
 0x24c   : > { %v4255_v4 = vsel %vm1311_vm4, %v2360_v56, -inf  ;;  %v4254_v46 = vsel %vm1311_vm4, %v2359_v43, -inf  ;;  %v2298_v3 = vadd.f32 %v5557_v36, %v2184_v14  ;;  %v2297_v54 = vadd.f32 %v2184_v14, %v1794_v63  ;;  %5752 = vmatprep.mubr.msk.f32.mxu0 %vm1311_vm4, %v2359_v43 }
 0x24d   : > { %v4235_v41 = vmax.f32 %v4233_v11, %v4234_v20  ;;  %v4242_v37 = vmax.f32 %v4240_v42, %v4241_v24  ;;  %v4249_v61 = vmax.f32 %v4247_v53, %v4248_v31  ;;  %v4256_v58 = vmax.f32 %v4254_v46, %v4255_v4  ;;  %5753 = vmatmul.mubr.msk.f32.gmra.mrb[50].mxu0 %vm1311_vm4, %v2360_v56 }
 0x24e   : > { %v2362_v55 = vmax.f32 %v2298_v3, 0.0  ;;  %v2361_v59 = vmax.f32 %v2297_v54, 0.0  ;;  %v5560_v12 = vpop.f32.mrb[50].mxu1  ;;  %v2200_v56 = vrot.slane %v2089_v30, %v7739_v13  ;;  %v2091_v43 = vcombine.high %v2081_v32, %v2081_v32 }
 0x24f   : > { %v4243_v5 = vrot.slane %v4242_v37, 1  ;;  %v4250_v47 = vrot.slane %v4249_v61, 2  ;;  %v4257_v9 = vrot.slane %v4256_v58, 4  ;;  %v2300_v7 = vadd.f32 %v5560_v12, %v2188_v35  ;;  %v1804_v25 = vpop.f32.mrb[51].mxu1 }
 0x250   : > { %v4264_v45 = vsel %vm1311_vm4, %v2362_v55, -inf  ;;  %v4263_v1 = vsel %vm1311_vm4, %v2361_v59, -inf  ;;  %v2299_v0 = vadd.f32 %v2188_v35, %v1804_v25  ;;  %5755 = vmatprep.mubr.msk.f32.mxu0 %vm1311_vm4, %v2361_v59  ;;  %v4759_v10 = vsel %vm4675_vm6, %v4235_v41, %v4758_v60 }
 0x251   : > { %v4244_v48 = vmax.f32 %v4242_v37, %v4243_v5  ;;  %v4251_v38 = vmax.f32 %v4249_v61, %v4250_v47  ;;  %v4258_v40 = vmax.f32 %v4256_v58, %v4257_v9  ;;  %v4265_v23 = vmax.f32 %v4263_v1, %v4264_v45  ;;  %5756 = vmatmul.mubr.msk.f32.gmra.mrb[52].mxu0 %vm1311_vm4, %v2362_v55 }
 0x252   : > { %v2364_v50 = vmax.f32 %v2300_v7, 0.0  ;;  %v2363_v16 = vmax.f32 %v2299_v0, 0.0  ;;  %v5563_v51 = vpop.f32.mrb[52].mxu1  ;;  %v2204_v55 = vrot.slane %v2091_v43, %v7739_v13  ;;  %v2060_v59 = vcombine.high %v7202_v44, %v7202_v44 }
 0x253   : > { %v4252_v34 = vrot.slane %v4251_v38, 1  ;;  %v4259_v33 = vrot.slane %v4258_v40, 2  ;;  %v4266_v29 = vrot.slane %v4265_v23, 4  ;;  %v2302_v57 = vadd.f32 %v5563_v51, %v2192_v6  ;;  %v1814_v49 = vpop.f32.mrb[53].mxu1 }
 0x254   : > { %v4273_v22 = vsel %vm1311_vm4, %v2364_v50, -inf  ;;  %v4272_v27 = vsel %vm1311_vm4, %v2363_v16, -inf  ;;  %v2301_v15 = vadd.f32 %v2192_v6, %v1814_v49  ;;  %5758 = vmatprep.mubr.msk.f32.mxu0 %vm1311_vm4, %v2363_v16  ;;  %v4760_v28 = vsel %vm4677_vm7, %v4244_v48, %v4759_v10 }
 0x255   : > { %v4253_v21 = vmax.f32 %v4251_v38, %v4252_v34  ;;  %v4260_v26 = vmax.f32 %v4258_v40, %v4259_v33  ;;  %v4267_v19 = vmax.f32 %v4265_v23, %v4266_v29  ;;  %v4274_v11 = vmax.f32 %v4272_v27, %v4273_v22  ;;  %5759 = vmatmul.mubr.msk.f32.gmra.mrb[54].mxu0 %vm1311_vm4, %v2364_v50 }
 0x256   : > { %v2366_v2 = vmax.f32 %v2302_v57, 0.0  ;;  %v2365_v42 = vmax.f32 %v2301_v15, 0.0  ;;  %v5566_v53 = vpop.f32.mrb[54].mxu1  ;;  %v2074_v23 = vrot.slane %v7202_v44, %v7738_v39  ;;  %v2088_v16 = vrot.slane %v2060_v59, %v7738_v39 }
 0x257   : > { %v4261_v36 = vrot.slane %v4260_v26, 1  ;;  %v4268_v14 = vrot.slane %v4267_v19, 2  ;;  %v4275_v35 = vrot.slane %v4274_v11, 4  ;;  %v2304_v60 = vadd.f32 %v5566_v53, %v2196_v17  ;;  %v1824_v20 = vpop.f32.mrb[55].mxu1 }
 0x258   : > { %v4282_v24 = vsel %vm1311_vm4, %v2366_v2, -inf  ;;  %v4281_v31 = vsel %vm1311_vm4, %v2365_v42, -inf  ;;  %v2303_v63 = vadd.f32 %v2196_v17, %v1824_v20  ;;  %5761 = vmatprep.mubr.msk.f32.mxu0 %vm1311_vm4, %v2365_v42  ;;  %v4761_v4 = vsel %vm4679_vm8, %v4253_v21, %v4760_v28 }
 0x259   : > { %v4262_v46 = vmax.f32 %v4260_v26, %v4261_v36  ;;  %v4269_v3 = vmax.f32 %v4267_v19, %v4268_v14  ;;  %v4276_v54 = vmax.f32 %v4274_v11, %v4275_v35  ;;  %v4283_v41 = vmax.f32 %v4281_v31, %v4282_v24  ;;  %5762 = vmatmul.mubr.msk.f32.gmra.mrb[56].mxu0 %vm1311_vm4, %v2366_v2 }
 0x25a   : > { %v2368_v37 = vmax.f32 %v2304_v60, 0.0  ;;  %v2367_v61 = vmax.f32 %v2303_v63, 0.0  ;;  %v5569_v58 = vpop.f32.mrb[56].mxu1  ;;  %v2208_v19 = vrot.slane %v2074_v23, %v7739_v13  ;;  %v2212_v63 = vrot.slane %v2088_v16, %v7739_v13 }
 0x25b   : > { %v4270_v12 = vrot.slane %v4269_v3, 1  ;;  %v4277_v6 = vrot.slane %v4276_v54, 2  ;;  %v4284_v32 = vrot.slane %v4283_v41, 4  ;;  %v2306_v5 = vadd.f32 %v5569_v58, %v2200_v56  ;;  %v1834_v47 = vpop.f32.mrb[57].mxu1 }
 0x25c   : > { %v4291_v9 = vsel %vm1311_vm4, %v2368_v37, -inf  ;;  %v4290_v7 = vsel %vm1311_vm4, %v2367_v61, -inf  ;;  %v2305_v25 = vadd.f32 %v2200_v56, %v1834_v47  ;;  %5764 = vmatprep.mubr.msk.f32.mxu0 %vm1311_vm4, %v2367_v61  ;;  %v4762_v45 = vsel %vm4681_vm9, %v4262_v46, %v4761_v4 }
 0x25d   : > { %v4278_v1 = vmax.f32 %v4276_v54, %v4277_v6  ;;  %v4285_v0 = vmax.f32 %v4283_v41, %v4284_v32  ;;  %v4292_v10 = vmax.f32 %v4290_v7, %v4291_v9  ;;  %v2370_v48 = vmax.f32 %v2306_v5, 0.0  ;;  %5765 = vmatmul.mubr.msk.f32.gmra.mrb[58].mxu0 %vm1311_vm4, %v2368_v37 }
 0x25e   : > { %v2369_v38 = vmax.f32 %v2305_v25, 0.0  ;;  %v5572_v40 = vpop.f32.mrb[58].mxu1  ;;  %v4271_v50 = vmax.f32 %v4269_v3, %v4270_v12  ;;  %v2090_v54 = vcombine.high %v2074_v23, %v2074_v23  ;;  %v2092_v41 = vcombine.high %v2088_v16, %v2088_v16 }
 0x25f   : > { %v4286_v51 = vrot.slane %v4285_v0, 2  ;;  %v4293_v17 = vrot.slane %v4292_v10, 4  ;;  %v4300_v30 = vsel %vm1311_vm4, %v2370_v48, -inf  ;;  %v2308_v34 = vadd.f32 %v5572_v40, %v2204_v55  ;;  %v1844_v33 = vpop.f32.mrb[59].mxu1 }
 0x260   : > { %v4299_v29 = vsel %vm1311_vm4, %v2369_v38, -inf  ;;  %v2307_v57 = vadd.f32 %v2204_v55, %v1844_v33  ;;  %5767 = vmatprep.mubr.msk.f32.mxu0 %vm1311_vm4, %v2369_v38  ;;  %v4279_v49 = vrot.slane %v4278_v1, 1  ;;  %v4763_v22 = vsel %vm4683_vm10, %v4271_v50, %v4762_v45 }
 0x261   : > { %v4287_v27 = vmax.f32 %v4285_v0, %v4286_v51  ;;  %v4294_v15 = vmax.f32 %v4292_v10, %v4293_v17  ;;  %v4301_v44 = vmax.f32 %v4299_v29, %v4300_v30  ;;  %v2372_v28 = vmax.f32 %v2308_v34, 0.0  ;;  %5768 = vmatmul.mubr.msk.f32.gmra.mrb[60].mxu0 %vm1311_vm4, %v2370_v48 }
 0x262   : > { %v2371_v21 = vmax.f32 %v2307_v57, 0.0  ;;  %v5575_v26 = vpop.f32.mrb[60].mxu1  ;;  %v4280_v11 = vmax.f32 %v4278_v1, %v4279_v49  ;;  %v2216_v10 = vrot.slane %v2090_v54, %v7739_v13  ;;  %v2220_v48 = vrot.slane %v2092_v41, %v7739_v13 }
 0x263   : > { %v4288_v2 = vrot.slane %v4287_v27, 1  ;;  %v4295_v42 = vrot.slane %v4294_v15, 2  ;;  %v4302_v53 = vrot.slane %v4301_v44, 4  ;;  %v4309_v56 = vsel %vm1311_vm4, %v2372_v28, -inf  ;;  %v1854_v43 = vpop.f32.mrb[61].mxu1 }
 0x264   : > { %v4308_v36 = vsel %vm1311_vm4, %v2371_v21, -inf  ;;  %v2310_v14 = vadd.f32 %v5575_v26, %v2208_v19  ;;  %v2309_v35 = vadd.f32 %v2208_v19, %v1854_v43  ;;  %v4764_v60 = vsel %vm4685_vm11, %v4280_v11, %v4763_v22  ;;  %5770 = vmatprep.mubr.msk.f32.mxu0 %vm1311_vm4, %v2371_v21 }
 0x265   : > { %v4296_v20 = vmax.f32 %v4294_v15, %v4295_v42  ;;  %v4303_v24 = vmax.f32 %v4301_v44, %v4302_v53  ;;  %v4310_v31 = vmax.f32 %v4308_v36, %v4309_v56  ;;  %4776 = vrot.lane.b32.xlu1 %v4764_v60, %s6030_s23  ;;  %5771 = vmatmul.mubr.msk.f32.gmra.mrb[62].mxu0 %vm1311_vm4, %v2372_v28 }
 0x266   : > { %v2374_v4 = vmax.f32 %v2310_v14, 0.0  ;;  %v2373_v46 = vmax.f32 %v2309_v35, 0.0  ;;  %v5578_v3 = vpop.f32.mrb[62].mxu1  ;;  %v4289_v12 = vmax.f32 %v4287_v27, %v4288_v2 }
 0x267   : > { %v4297_v37 = vrot.slane %v4296_v20, 1  ;;  %v4304_v61 = vrot.slane %v4303_v24, 2  ;;  %v4311_v58 = vrot.slane %v4310_v31, 4  ;;  %v2312_v55 = vadd.f32 %v5578_v3, %v2212_v63  ;;  %v1864_v59 = vpop.f32.mrb[63].mxu1 }
 0x268   : > { %v4318_v6 = vsel %vm1311_vm4, %v2374_v4, -inf  ;;  %v4317_v32 = vsel %vm1311_vm4, %v2373_v46, -inf  ;;  %v2311_v5 = vadd.f32 %v2212_v63, %v1864_v59  ;;  %5773 = vmatprep.mubr.msk.f32.mxu0 %vm1311_vm4, %v2373_v46 }
 0x269   : > { %v4298_v47 = vmax.f32 %v4296_v20, %v4297_v37  ;;  %v4305_v9 = vmax.f32 %v4303_v24, %v4304_v61  ;;  %v4312_v7 = vmax.f32 %v4310_v31, %v4311_v58  ;;  %v4319_v25 = vmax.f32 %v4317_v32, %v4318_v6  ;;  %5774 = vmatmul.mubr.msk.f32.gmra.mrb[64].mxu0 %vm1311_vm4, %v2374_v4 }
 0x26a   : > { %v2376_v45 = vmax.f32 %v2312_v55, 0.0  ;;  %v2375_v1 = vmax.f32 %v2311_v5, 0.0  ;;  %v5581_v0 = vpop.f32.mrb[64].mxu1 }
 0x26b   : > { %v4765_v38 = vsel %vm4673_vm5, %v4298_v47, %v4289_v12  ;;  %v4306_v40 = vrot.slane %v4305_v9, 1  ;;  %v4313_v23 = vrot.slane %v4312_v7, 2  ;;  %v4320_v50 = vrot.slane %v4319_v25, 4  ;;  %v1874_v16 = vpop.f32.mrb[65].mxu1 }
 0x26c   : > { %v4327_v51 = vsel %vm1311_vm4, %v2376_v45, -inf  ;;  %v4326_v17 = vsel %vm1311_vm4, %v2375_v1, -inf  ;;  %v2314_v30 = vadd.f32 %v5581_v0, %v2216_v10  ;;  %v2313_v34 = vadd.f32 %v2216_v10, %v1874_v16  ;;  %5776 = vmatprep.mubr.msk.f32.mxu0 %vm1311_vm4, %v2375_v1 }
 0x26d   : > { %v4307_v33 = vmax.f32 %v4305_v9, %v4306_v40  ;;  %v4314_v29 = vmax.f32 %v4312_v7, %v4313_v23  ;;  %v4321_v57 = vmax.f32 %v4319_v25, %v4320_v50  ;;  %v4328_v49 = vmax.f32 %v4326_v17, %v4327_v51  ;;  %5777 = vmatmul.mubr.msk.f32.gmra.mrb[66].mxu0 %vm1311_vm4, %v2376_v45 }
 0x26e   : > { %v2378_v22 = vmax.f32 %v2314_v30, 0.0  ;;  %v2377_v27 = vmax.f32 %v2313_v34, 0.0  ;;  %v5584_v15 = vpop.f32.mrb[66].mxu1 }
 0x26f   : > { %v4315_v44 = vrot.slane %v4314_v29, 1  ;;  %v4322_v28 = vrot.slane %v4321_v57, 2  ;;  %v4329_v21 = vrot.slane %v4328_v49, 4  ;;  %v2316_v26 = vadd.f32 %v5584_v15, %v2220_v48  ;;  %v1884_v19 = vpop.f32.mrb[67].mxu1 }
 0x270   : > { %v4336_v11 = vsel %vm1311_vm4, %v2378_v22, -inf  ;;  %v4335_v2 = vsel %vm1311_vm4, %v2377_v27, -inf  ;;  %v2315_v42 = vadd.f32 %v2220_v48, %v1884_v19  ;;  %5779 = vmatprep.mubr.msk.f32.mxu0 %vm1311_vm4, %v2377_v27  ;;  %v4766_v53 = vsel %vm4675_vm6, %v4307_v33, %v4765_v38 }
 0x271   : > { %v4316_v56 = vmax.f32 %v4314_v29, %v4315_v44  ;;  %v4323_v43 = vmax.f32 %v4321_v57, %v4322_v28  ;;  %v4330_v36 = vmax.f32 %v4328_v49, %v4329_v21  ;;  %v4337_v14 = vmax.f32 %v4335_v2, %v4336_v11  ;;  %5780 = vmatmul.mubr.msk.f32.gmra.mrb[68].mxu0 %vm1311_vm4, %v2378_v22  ;;  %v5944_v57 = vld [vmem:[%s6166_s13 + $0x18] sm:$0xff]  ;;  %s5946_s13 = scalar_lea.vmem %s7633_s14, 512 }
 0x272   : > { %v2380_v35 = vmax.f32 %v2316_v26, 0.0  ;;  %v2379_v60 = vmax.f32 %v2315_v42, 0.0  ;;  %v7294_v20 = vpop.f32.mrb[68].mxu1  ;;  %p5947_p12 = scmp.ne.s32.totalorder %s7633_s14, %s5946_s13 }
 0x273   : > { %v4324_v24 = vrot.slane %v4323_v43, 1  ;;  %v4331_v31 = vrot.slane %v4330_v36, 2  ;;  %v4338_v63 = vrot.slane %v4337_v14, 4  ;;  %v7296_v4 = vpop.f32.mrb[69].mxu1  ;;  %v4767_v46 = vsel %vm4677_vm7, %v4316_v56, %v4766_v53 }
 0x274   : > { %v4345_v3 = vsel %vm1311_vm4, %v2380_v35, -inf  ;;  %v4344_v54 = vsel %vm1311_vm4, %v2379_v60, -inf  ;;  %5782 = vmatprep.mubr.msk.f32.mxu0 %vm1311_vm4, %v2379_v60  ;;  %p5948_p13 = pnand %p5947_p12, %p6134_p4 }
 0x275   : > { %v4325_v41 = vmax.f32 %v4323_v43, %v4324_v24  ;;  %v4332_v37 = vmax.f32 %v4330_v36, %v4331_v31  ;;  %v4339_v61 = vmax.f32 %v4337_v14, %v4338_v63  ;;  %v4346_v58 = vmax.f32 %v4344_v54, %v4345_v3  ;;  %5783 = vmatmul.mubr.msk.f32.gmra.mrb[70].mxu0 %vm1311_vm4, %v2380_v35 }
 0x276   : > { %v7303_v55 = vpop.f32.mrb[70].mxu1  ;;  %p5949_p0 = pneg %p5948_p13 }
 0x277   : > { %v4333_v59 = vrot.slane %v4332_v37, 1  ;;  %v4340_v12 = vrot.slane %v4339_v61, 2  ;;  %v4347_v6 = vrot.slane %v4346_v58, 4  ;;  %v7305_v32 = vpop.f32.mrb[71].mxu1  ;;  %v4768_v5 = vsel %vm4679_vm8, %v4325_v41, %v4767_v46  ;;  %v5945_v46 = vld [vmem:[%s7704_s10] ss:$0 sm:$0xff] }
 0x278   : > { %v803_v3 = vadd.f32 %v5945_v46, %v7077_v62 }
 0x279   : > { %v4334_v47 = vmax.f32 %v4332_v37, %v4333_v59  ;;  %v4341_v9 = vmax.f32 %v4339_v61, %v4340_v12  ;;  %v4348_v7 = vmax.f32 %v4346_v58, %v4347_v6 }
 0x27a   : > { %v7308_v25 = vpop.f32.mrb[72].mxu1  ;;  %v3364_v54 = vrot.slane %v803_v3, %v7738_v39 }
 0x27b   : > { %v4342_v45 = vrot.slane %v4341_v9, 1  ;;  %v4349_v1 = vrot.slane %v4348_v7, 2  ;;  %v7310_v0 = vpop.f32.mrb[73].mxu1  ;;  %v4769_v10 = vsel %vm4681_vm9, %v4334_v47, %v4768_v5 }
 0x27c   : > { %v3372_v41 = vcombine.high %v3364_v54, %v3364_v54  ;;  %v3380_v37 = vrot.slane %v3364_v54, %v7738_v39 }
 0x27d   : > { %v4350_v48 = vmax.f32 %v4348_v7, %v4349_v1  ;;  %v4343_v38 = vmax.f32 %v4341_v9, %v4342_v45  ;;  %v3357_v45 = vcombine.high %v803_v3, %v803_v3 }
 0x27e   : > { %v7313_v40 = vpop.f32.mrb[74].mxu1  ;;  %v3556_v61 = vrot.slane %v3380_v37, %v7739_v13  ;;  %v3394_v58 = vrot.slane %v3372_v41, %v7738_v39  ;;  %v3402_v7 = vcombine.high %v3380_v37, %v3380_v37 }
 0x27f   : > { %v7315_v23 = vpop.f32.mrb[75].mxu1  ;;  %v4351_v50 = vrot.slane %v4350_v48, 1  ;;  %v4770_v16 = vsel %vm4683_vm10, %v4343_v38, %v4769_v10  ;;  %v3371_v54 = vrot.slane %v3357_v45, %v7738_v39 }
 0x280   : > { %v3560_v9 = vrot.slane %v3394_v58, %v7739_v13 }
 0x281   : > { %v4352_v51 = vmax.f32 %v4350_v48, %v4351_v50  ;;  %v3373_v45 = vcombine.high %v3371_v54, %v3371_v54 }
 0x282   : > { %v7318_v17 = vpop.f32.mrb[76].mxu1 }
 0x283   : > { %v7320_v30 = vpop.f32.mrb[77].mxu1  ;;  %v4771_v34 = vsel %vm4685_vm11, %v4352_v51, %v4770_v16 }
 0x284   : > { %4778 = vrot.lane.b32.xlu1 %v4771_v34, %s6030_s23  ;;  %v3564_v34 = vrot.slane %v3402_v7, %v7739_v13  ;;  %s7641_s23 = scalar_lea.hbm %s7705_s11, %s5229_s15 }
 0x286   : > { %v7324_v33 = vpop.f32.mrb[78].mxu1 }
 0x287   : > { %v7326_v29 = vpop.f32.mrb[79].mxu1 }
 0x288   : > { %4862 = vrot.lane.b32.xlu1 %v5944_v57, %s6027_s0  ;;  %v3404_v57 = vcombine.high %v3394_v58, %v3394_v58  ;;  %v3387_v58 = vrot.slane %v3371_v54, %v7738_v39  ;;  %s6031_s0 = smov [#allocation2]  }
 0x289   : > { %s5950_s28 = sshll.u32 %s6031_s0, 4  ;;  %s5951_s28 = int_to_ptr.vmem [resolvable:$false] %s5950_s28 }
 0x28a   : > { %v7330_v49 = vpop.f32.mrb[80].mxu1  ;;  %s5952_s1 = scalar_lea.vmem %s5951_s28, 1024  ;;  %p5953_p1 = scmp.lt.s32.totalorder %s7633_s14, %s5951_s28 }
 0x28b   : > { %v7332_v22 = vpop.f32.mrb[81].mxu1  ;;  %p5954_p2 = scmp.lt.s32.totalorder %s5952_s1, %s5946_s13 }
 0x28d   : > { %p5955_p3 = por %p5954_p2, %p5953_p1 }
 0x28e   : > { %v7334_v27 = vpop.f32.mrb[82].mxu1 }
 0x28f   : > { %v7336_v15 = vpop.f32.mrb[83].mxu1  ;;  %p5956_p5 = pnand %p5955_p3, %p5949_p0 }
 0x292   : > { %v7338_v44 = vpop.f32.mrb[84].mxu1 }
 0x293   : > { %v7340_v28 = vpop.f32.mrb[85].mxu1 }
 0x296   : > { %v7342_v21 = vpop.f32.mrb[86].mxu1 }
 0x297   : > { %v7344_v26 = vpop.f32.mrb[87].mxu1 }
 0x29a   : > { %v7346_v19 = vpop.f32.mrb[88].mxu1 }
 0x29b   : > { %v7348_v11 = vpop.f32.mrb[89].mxu1 }
 0x29e   : > { %v7350_v2 = vpop.f32.mrb[90].mxu1 }
 0x29f   : > { %v7352_v42 = vpop.f32.mrb[91].mxu1 }
 0x2a2   : > { %v7354_v53 = vpop.f32.mrb[92].mxu1 }
 0x2a3   : > { %v7356_v56 = vpop.f32.mrb[93].mxu1 }
 0x2a6   : > { %v7358_v43 = vpop.f32.mrb[94].mxu1 }
 0x2a7   : > { %v7360_v36 = vpop.f32.mrb[95].mxu1 }
 0x2aa   : > { %v7362_v14 = vpop.f32.mrb[96].mxu1 }
 0x2ab   : > { %v7364_v35 = vpop.f32.mrb[97].mxu1 }
 0x2ac   : > { %7740 = vst [vmem:[#allocation7_spill] sm:$0xff] %v7364_v35 }
 0x2ae   : > { %v7366_v60 = vpop.f32.mrb[98].mxu1 }
 0x2af   : > { %7741 = vst [vmem:[#allocation8_spill] sm:$0xff] %v7366_v60  ;;  %v7368_v24 = vpop.f32.mrb[99].mxu1 }
 0x2b0   : > { %7742 = vst [vmem:[#allocation9_spill] sm:$0xff] %v7368_v24 }
 0x2b2   : > { %v7370_v31 = vpop.f32.mrb[100].mxu1 }
 0x2b3   : > { %7743 = vst [vmem:[#allocation10_spill] sm:$0xff] %v7370_v31  ;;  %v7372_v63 = vpop.f32.mrb[101].mxu1 }
 0x2b4   : > { %7744 = vst [vmem:[#allocation11_spill] sm:$0xff] %v7372_v63  ;;  %v3401_v63 = vrot.slane %v3373_v45, %v7738_v39 }
 0x2b6   : > { %v3576_v45 = vrot.slane %v3401_v63, %v7739_v13 }
 0x2c5   : > { %v5691_v59 = vpop.f32.mrb[8].mxu0 }
 0x2c6   : > { %v3714_v12 = vadd.f32 %v5691_v59, %v3556_v61  ;;  %v3034_v6 = vpop.f32.mrb[9].mxu0 }
 0x2c7   : > { %v3713_v5 = vadd.f32 %v3556_v61, %v3034_v6 }
 0x2c8   : > { %v3778_v47 = vsel %vm1311_vm4, %v3714_v12, -inf }
 0x2c9   : > { %v3777_v62 = vsel %vm1311_vm4, %v3713_v5, -inf  ;;  %v5694_v1 = vpop.f32.mrb[10].mxu0 }
 0x2ca   : > { %v3779_v10 = vmax.f32 %v3777_v62, %v3778_v47  ;;  %v3716_v48 = vadd.f32 %v5694_v1, %v3560_v9  ;;  %v3044_v38 = vpop.f32.mrb[11].mxu0  ;;  %v3568_v62 = vrot.slane %v3404_v57, %v7739_v13 }
 0x2cb   : > { %v3715_v50 = vadd.f32 %v3560_v9, %v3044_v38 }
 0x2cc   : > { %v3780_v16 = vrot.slane %v3779_v10, 4  ;;  %v3787_v51 = vsel %vm1311_vm4, %v3716_v48, -inf }
 0x2cd   : > { %v3786_v41 = vsel %vm1311_vm4, %v3715_v50, -inf  ;;  %v5697_v61 = vpop.f32.mrb[12].mxu0 }
 0x2ce   : > { %v3781_v37 = vmax.f32 %v3779_v10, %v3780_v16  ;;  %v3788_v3 = vmax.f32 %v3786_v41, %v3787_v51  ;;  %v3718_v59 = vadd.f32 %v5697_v61, %v3564_v34  ;;  %v3054_v12 = vpop.f32.mrb[13].mxu0 }
 0x2cf   : > { %v3717_v6 = vadd.f32 %v3564_v34, %v3054_v12 }
 0x2d0   : > { %v3782_v5 = vrot.slane %v3781_v37, 2  ;;  %v3789_v47 = vrot.slane %v3788_v3, 4  ;;  %v3796_v9 = vsel %vm1311_vm4, %v3718_v59, -inf }
 0x2d1   : > { %v3795_v1 = vsel %vm1311_vm4, %v3717_v6, -inf  ;;  %v5700_v7 = vpop.f32.mrb[14].mxu0  ;;  %v3572_v6 = vrot.slane %v3387_v58, %v7739_v13 }
 0x2d2   : > { %v3783_v48 = vmax.f32 %v3781_v37, %v3782_v5  ;;  %v3790_v38 = vmax.f32 %v3788_v3, %v3789_v47  ;;  %v3797_v50 = vmax.f32 %v3795_v1, %v3796_v9  ;;  %v3720_v10 = vadd.f32 %v5700_v7, %v3568_v62  ;;  %v3064_v16 = vpop.f32.mrb[15].mxu0 }
 0x2d3   : > { %v3719_v51 = vadd.f32 %v3568_v62, %v3064_v16  ;;  %v7398_v5 = vadd.f32 %v5945_v46, %v7067_v18 }
 0x2d4   : > { %v3791_v41 = vrot.slane %v3790_v38, 2  ;;  %v3798_v34 = vrot.slane %v3797_v50, 4  ;;  %v3805_v61 = vsel %vm1311_vm4, %v3720_v10, -inf  ;;  %v3784_v12 = vrot.slane %v3783_v48, 1 }
 0x2d5   : > { %v3804_v59 = vsel %vm1311_vm4, %v3719_v51, -inf  ;;  %v5703_v57 = vpop.f32.mrb[16].mxu0  ;;  %v3403_v10 = vcombine.high %v3387_v58, %v3387_v58  ;;  %v3413_v46 = vrot.slane %v7398_v5, %v7738_v39 }
 0x2d6   : > { %v3792_v31 = vmax.f32 %v3790_v38, %v3791_v41  ;;  %v3799_v54 = vmax.f32 %v3797_v50, %v3798_v34  ;;  %v3806_v37 = vmax.f32 %v3804_v59, %v3805_v61  ;;  %v3074_v3 = vpop.f32.mrb[17].mxu0  ;;  %v3722_v47 = vadd.f32 %v5703_v57, %v3572_v6 }
 0x2d7   : > { %v3721_v9 = vadd.f32 %v3572_v6, %v3074_v3  ;;  %v3785_v16 = vmax.f32 %v3783_v48, %v3784_v12 }
 0x2d8   : > { %v3793_v62 = vrot.slane %v3792_v31, 1  ;;  %v3800_v1 = vrot.slane %v3799_v54, 2  ;;  %v3807_v7 = vrot.slane %v3806_v37, 4  ;;  %v3814_v51 = vsel %vm1311_vm4, %v3722_v47, -inf }
 0x2d9   : > { %v3813_v24 = vsel %vm1311_vm4, %v3721_v9, -inf  ;;  %v5706_v60 = vpop.f32.mrb[18].mxu0 }
 0x2da   : > { %v3794_v38 = vmax.f32 %v3792_v31, %v3793_v62  ;;  %v3801_v50 = vmax.f32 %v3799_v54, %v3800_v1  ;;  %v3808_v41 = vmax.f32 %v3806_v37, %v3807_v7  ;;  %v3815_v34 = vmax.f32 %v3813_v24, %v3814_v51  ;;  %v3084_v18 = vpop.f32.mrb[19].mxu0 }
 0x2db   : > { %v3724_v61 = vadd.f32 %v5706_v60, %v3576_v45  ;;  %v3723_v59 = vadd.f32 %v3576_v45, %v3084_v18  ;;  %v3580_v31 = vrot.slane %v3403_v10, %v7739_v13  ;;  %v3405_v54 = vcombine.high %v3401_v63, %v3401_v63 }
 0x2dc   : > { %v4674_v58 = vsel %vm4673_vm5, %v3794_v38, %v3785_v16  ;;  %v3802_v48 = vrot.slane %v3801_v50, 1  ;;  %v3809_v12 = vrot.slane %v3808_v41, 2  ;;  %v3816_v57 = vrot.slane %v3815_v34, 4 }
 0x2dd   : > { %v3823_v6 = vsel %vm1311_vm4, %v3724_v61, -inf  ;;  %v3822_v3 = vsel %vm1311_vm4, %v3723_v59, -inf  ;;  %v5709_v47 = vpop.f32.mrb[20].mxu0  ;;  %v3421_v60 = vcombine.high %v3413_v46, %v3413_v46  ;;  %v3584_v63 = vrot.slane %v3405_v54, %v7739_v13 }
 0x2de   : > { %v3803_v24 = vmax.f32 %v3801_v50, %v3802_v48  ;;  %v3810_v37 = vmax.f32 %v3808_v41, %v3809_v12  ;;  %v3817_v9 = vmax.f32 %v3815_v34, %v3816_v57  ;;  %v3824_v62 = vmax.f32 %v3822_v3, %v3823_v6  ;;  %v3094_v1 = vpop.f32.mrb[21].mxu0 }
 0x2df   : > { %v3726_v7 = vadd.f32 %v5709_v47, %v3580_v31  ;;  %v3725_v51 = vadd.f32 %v3580_v31, %v3094_v1  ;;  %v3429_v10 = vrot.slane %v3413_v46, %v7738_v39  ;;  %v3443_v46 = vrot.slane %v3421_v60, %v7738_v39 }
 0x2e0   : > { %v4676_v16 = vsel %vm4675_vm6, %v3803_v24, %v4674_v58  ;;  %v3811_v45 = vrot.slane %v3810_v37, 1  ;;  %v3818_v38 = vrot.slane %v3817_v9, 2  ;;  %v3825_v18 = vrot.slane %v3824_v62, 4 }
 0x2e1   : > { %v3832_v61 = vsel %vm1311_vm4, %v3726_v7, -inf  ;;  %v3831_v59 = vsel %vm1311_vm4, %v3725_v51, -inf  ;;  %v5712_v35 = vpop.f32.mrb[22].mxu0  ;;  %v3588_v54 = vrot.slane %v3429_v10, %v7739_v13 }
 0x2e2   : > { %v3812_v50 = vmax.f32 %v3810_v37, %v3811_v45  ;;  %v3819_v41 = vmax.f32 %v3817_v9, %v3818_v38  ;;  %v3826_v34 = vmax.f32 %v3824_v62, %v3825_v18  ;;  %v3833_v48 = vmax.f32 %v3831_v59, %v3832_v61  ;;  %v3104_v12 = vpop.f32.mrb[23].mxu0  ;;  %v7419_v37 = vpop.permute.xlu0 %4856 }
 0x2e3   : > { %v3728_v57 = vadd.f32 %v5712_v35, %v3584_v63  ;;  %v3727_v6 = vadd.f32 %v3584_v63, %v3104_v12 }
 0x2e4   : > { %v4678_v58 = vsel %vm4677_vm7, %v3812_v50, %v4676_v16  ;;  %v3820_v3 = vrot.slane %v3819_v41, 1  ;;  %v3827_v47 = vrot.slane %v3826_v34, 2  ;;  %v3834_v31 = vrot.slane %v3833_v48, 4 }
 0x2e5   : > { %v3841_v24 = vsel %vm1311_vm4, %v3728_v57, -inf  ;;  %v3840_v1 = vsel %vm1311_vm4, %v3727_v6, -inf  ;;  %v5715_v7 = vpop.f32.mrb[24].mxu0  ;;  %v3406_v16 = vcombine.high %v7398_v5, %v7398_v5 }
 0x2e6   : > { %v3821_v9 = vmax.f32 %v3819_v41, %v3820_v3  ;;  %v3828_v62 = vmax.f32 %v3826_v34, %v3827_v47  ;;  %v3835_v35 = vmax.f32 %v3833_v48, %v3834_v31  ;;  %v3842_v51 = vmax.f32 %v3840_v1, %v3841_v24  ;;  %v3114_v45 = vpop.f32.mrb[25].mxu0  ;;  %v4845_v1 = vpop.permute.xlu0 %4844 }
 0x2e7   : > { %v3730_v38 = vadd.f32 %v5715_v7, %v3588_v54  ;;  %v3729_v18 = vadd.f32 %v3588_v54, %v3114_v45  ;;  %v3592_v41 = vrot.slane %v3443_v46, %v7739_v13  ;;  %v3451_v34 = vcombine.high %v3429_v10, %v3429_v10 }
 0x2e8   : > { %v4680_v61 = vsel %vm4679_vm8, %v3821_v9, %v4678_v58  ;;  %v3829_v59 = vrot.slane %v3828_v62, 1  ;;  %v3836_v63 = vrot.slane %v3835_v35, 2  ;;  %v3843_v50 = vrot.slane %v3842_v51, 4 }
 0x2e9   : > { %v3850_v12 = vsel %vm1311_vm4, %v3730_v38, -inf  ;;  %v3849_v60 = vsel %vm1311_vm4, %v3729_v18, -inf  ;;  %v5718_v57 = vpop.f32.mrb[26].mxu0  ;;  %v3420_v31 = vrot.slane %v3406_v16, %v7738_v39 }
 0x2ea   : > { %v3830_v48 = vmax.f32 %v3828_v62, %v3829_v59  ;;  %v3837_v6 = vmax.f32 %v3835_v35, %v3836_v63  ;;  %v3844_v3 = vmax.f32 %v3842_v51, %v3843_v50  ;;  %v3851_v47 = vmax.f32 %v3849_v60, %v3850_v12  ;;  %v3124_v5 = vpop.f32.mrb[27].mxu0 }
 0x2eb   : > { %v3732_v24 = vadd.f32 %v5718_v57, %v3592_v41  ;;  %v3731_v58 = vadd.f32 %v3592_v41, %v3124_v5  ;;  %v3596_v35 = vrot.slane %v3451_v34, %v7739_v13  ;;  %v3453_v51 = vcombine.high %v3443_v46, %v3443_v46 }
 0x2ec   : > { %v4682_v7 = vsel %vm4681_vm9, %v3830_v48, %v4680_v61  ;;  %v3838_v54 = vrot.slane %v3837_v6, 1  ;;  %v3845_v9 = vrot.slane %v3844_v3, 2  ;;  %v3852_v45 = vrot.slane %v3851_v47, 4  ;;  %v7433_v61 = vpop.permute.xlu0 %4848 }
 0x2ed   : > { %v3859_v38 = vsel %vm1311_vm4, %v3732_v24, -inf  ;;  %v3858_v10 = vsel %vm1311_vm4, %v3731_v58, -inf  ;;  %v5721_v62 = vpop.f32.mrb[28].mxu0  ;;  %v3600_v34 = vrot.slane %v3453_v51, %v7739_v13 }
 0x2ee   : > { %v3839_v18 = vmax.f32 %v3837_v6, %v3838_v54  ;;  %v3846_v59 = vmax.f32 %v3844_v3, %v3845_v9  ;;  %v3853_v16 = vmax.f32 %v3851_v47, %v3852_v45  ;;  %v3860_v63 = vmax.f32 %v3858_v10, %v3859_v38  ;;  %v3134_v50 = vpop.f32.mrb[29].mxu0 }
 0x2ef   : > { %v3734_v12 = vadd.f32 %v5721_v62, %v3596_v35  ;;  %v3733_v60 = vadd.f32 %v3596_v35, %v3134_v50  ;;  %v3436_v6 = vrot.slane %v3420_v31, %v7738_v39  ;;  %v3422_v38 = vcombine.high %v3420_v31, %v3420_v31 }
 0x2f0   : > { %v4684_v57 = vsel %vm4683_vm10, %v3839_v18, %v4682_v7  ;;  %v3847_v41 = vrot.slane %v3846_v59, 1  ;;  %v3854_v48 = vrot.slane %v3853_v16, 2  ;;  %v3861_v5 = vrot.slane %v3860_v63, 4  ;;  %v4773_v10 = vpop.permute.xlu0 %4772 }
 0x2f1   : > { %v3868_v24 = vsel %vm1311_vm4, %v3734_v12, -inf  ;;  %v3867_v46 = vsel %vm1311_vm4, %v3733_v60, -inf  ;;  %v5724_v9 = vpop.f32.mrb[30].mxu0  ;;  %v3604_v60 = vrot.slane %v3436_v6, %v7739_v13 }
 0x2f2   : > { %v3848_v3 = vmax.f32 %v3846_v59, %v3847_v41  ;;  %v3855_v47 = vmax.f32 %v3853_v16, %v3854_v48  ;;  %v3862_v58 = vmax.f32 %v3860_v63, %v3861_v5  ;;  %v3869_v54 = vmax.f32 %v3867_v46, %v3868_v24  ;;  %v3144_v7 = vpop.f32.mrb[31].mxu0 }
 0x2f3   : > { %v3736_v45 = vadd.f32 %v5724_v9, %v3600_v34  ;;  %v3735_v59 = vadd.f32 %v3600_v34, %v3144_v7 }
 0x2f4   : > { %v4686_v62 = vsel %vm4685_vm11, %v3848_v3, %v4684_v57  ;;  %v3863_v35 = vrot.slane %v3862_v58, 2  ;;  %v3870_v18 = vrot.slane %v3869_v54, 4  ;;  %v3856_v51 = vrot.slane %v3855_v47, 1 }
 0x2f5   : > { %v3877_v50 = vsel %vm1311_vm4, %v3736_v45, -inf  ;;  %v4868_v16 = vsel %vm1311_vm4, %v4686_v62, %v4773_v10  ;;  %v3876_v31 = vsel %vm1311_vm4, %v3735_v59, -inf  ;;  %v5727_v48 = vpop.f32.mrb[32].mxu0  ;;  %v3450_v57 = vrot.slane %v3422_v38, %v7738_v39 }
 0x2f6   : > { %v3864_v63 = vmax.f32 %v3862_v58, %v3863_v35  ;;  %v3871_v12 = vmax.f32 %v3869_v54, %v3870_v18  ;;  %v4872_v41 = vsel %vm533_vm0, %v4868_v16, %v4845_v1  ;;  %v3878_v3 = vmax.f32 %v3876_v31, %v3877_v50  ;;  %v3154_v9 = vpop.f32.mrb[33].mxu0 }
 0x2f7   : > { %v4877_v5 = vsel %vm4876_vm12, %v4872_v41, %v7419_v37  ;;  %v3738_v34 = vadd.f32 %v5727_v48, %v3604_v60  ;;  %v3857_v58 = vmax.f32 %v3855_v47, %v3856_v51  ;;  %v3737_v1 = vadd.f32 %v3604_v60, %v3154_v9 }
 0x2f8   : > { %v3865_v24 = vrot.slane %v3864_v63, 1  ;;  %v3872_v46 = vrot.slane %v3871_v12, 2  ;;  %4882 = vst.msk [vmem:[%s7451_s12] sm:$0xff] %vm4881_vm13, %v4877_v5  ;;  %v3879_v7 = vrot.slane %v3878_v3, 4  ;;  %v3608_v62 = vrot.slane %v3450_v57, %v7739_v13 }
 0x2f9   : > { %v3886_v38 = vsel %vm1311_vm4, %v3738_v34, -inf  ;;  %v3885_v10 = vsel %vm1311_vm4, %v3737_v1, -inf  ;;  %v5730_v37 = vpop.f32.mrb[34].mxu0  ;;  %v3452_v35 = vcombine.high %v3436_v6, %v3436_v6 }
 0x2fa   : > { %v3866_v54 = vmax.f32 %v3864_v63, %v3865_v24  ;;  %v3873_v45 = vmax.f32 %v3871_v12, %v3872_v46  ;;  %v3880_v59 = vmax.f32 %v3878_v3, %v3879_v7  ;;  %v3887_v16 = vmax.f32 %v3885_v10, %v3886_v38  ;;  %v3164_v41 = vpop.f32.mrb[35].mxu0 }
 0x2fb   : > { %v3740_v31 = vadd.f32 %v5730_v37, %v3608_v62  ;;  %v3739_v47 = vadd.f32 %v3608_v62, %v3164_v41  ;;  %v3612_v24 = vrot.slane %v3452_v35, %v7739_v13 }
 0x2fc   : > { %v4687_v18 = vsel %vm4673_vm5, %v3866_v54, %v3857_v58  ;;  %v3874_v50 = vrot.slane %v3873_v45, 1  ;;  %v3881_v63 = vrot.slane %v3880_v59, 2  ;;  %v3888_v12 = vrot.slane %v3887_v16, 4 }
 0x2fd   : > { %v3895_v60 = vsel %vm1311_vm4, %v3740_v31, -inf  ;;  %v3894_v48 = vsel %vm1311_vm4, %v3739_v47, -inf  ;;  %v5733_v5 = vpop.f32.mrb[36].mxu0  ;;  %v3454_v54 = vcombine.high %v3450_v57, %v3450_v57 }
 0x2fe   : > { %v3875_v51 = vmax.f32 %v3873_v45, %v3874_v50  ;;  %v3882_v46 = vmax.f32 %v3880_v59, %v3881_v63  ;;  %v3889_v34 = vmax.f32 %v3887_v16, %v3888_v12  ;;  %v3896_v9 = vmax.f32 %v3894_v48, %v3895_v60  ;;  %v3174_v3 = vpop.f32.mrb[37].mxu0 }
 0x2ff   : > { %v3742_v58 = vadd.f32 %v5733_v5, %v3612_v24  ;;  %v3741_v1 = vadd.f32 %v3612_v24, %v3174_v3  ;;  %v3462_v59 = vrot.slane %v7146_v52, %v7738_v39  ;;  %v3616_v57 = vrot.slane %v3454_v54, %v7739_v13 }
 0x300   : > { %v4688_v6 = vsel %vm4675_vm6, %v3875_v51, %v4687_v18  ;;  %v3883_v7 = vrot.slane %v3882_v46, 1  ;;  %v3890_v45 = vrot.slane %v3889_v34, 2  ;;  %v3897_v38 = vrot.slane %v3896_v9, 4 }
 0x301   : > { %v3904_v10 = vsel %vm1311_vm4, %v3742_v58, -inf  ;;  %v3903_v37 = vsel %vm1311_vm4, %v3741_v1, -inf  ;;  %v5736_v62 = vpop.f32.mrb[38].mxu0  ;;  %v3478_v3 = vrot.slane %v3462_v59, %v7738_v39 }
 0x302   : > { %v3884_v50 = vmax.f32 %v3882_v46, %v3883_v7  ;;  %v3891_v41 = vmax.f32 %v3889_v34, %v3890_v45  ;;  %v3898_v35 = vmax.f32 %v3896_v9, %v3897_v38  ;;  %v3905_v31 = vmax.f32 %v3903_v37, %v3904_v10  ;;  %v3184_v18 = vpop.f32.mrb[39].mxu0 }
 0x303   : > { %v3190_v16 = vadd.f32 %v5736_v62, %v7294_v20  ;;  %v3185_v47 = vadd.f32 %v3184_v18, %v7296_v4  ;;  %v3470_v9 = vcombine.high %v3462_v59, %v3462_v59  ;;  %v3620_v62 = vrot.slane %v3478_v3, %v7739_v13 }
 0x304   : > { %v4689_v51 = vsel %vm4677_vm7, %v3884_v50, %v4688_v6  ;;  %v3892_v63 = vrot.slane %v3891_v41, 1  ;;  %v3899_v12 = vrot.slane %v3898_v35, 2  ;;  %v3906_v60 = vrot.slane %v3905_v31, 4 }
 0x305   : > { %v3744_v48 = vadd.f32 %v3616_v57, %v3190_v16  ;;  %v3743_v5 = vadd.f32 %v3616_v57, %v3185_v47  ;;  %v3455_v16 = vcombine.high %v7146_v52, %v7146_v52  ;;  %v3504_v47 = vcombine.high %v7113_v8, %v7113_v8 }
 0x306   : > { %v3893_v24 = vmax.f32 %v3891_v41, %v3892_v63  ;;  %v3900_v46 = vmax.f32 %v3898_v35, %v3899_v12  ;;  %v3907_v34 = vmax.f32 %v3905_v31, %v3906_v60  ;;  %v3492_v41 = vrot.slane %v3470_v9, %v7738_v39 }
 0x307   : > { %v3913_v58 = vsel %vm1311_vm4, %v3744_v48, -inf  ;;  %v3912_v20 = vsel %vm1311_vm4, %v3743_v5, -inf }
 0x308   : > { %v4690_v1 = vsel %vm4679_vm8, %v3893_v24, %v4689_v51  ;;  %v3901_v4 = vrot.slane %v3900_v46, 1  ;;  %v3908_v54 = vrot.slane %v3907_v34, 2  ;;  %v3914_v6 = vmax.f32 %v3912_v20, %v3913_v58 }
 0x309   : > { %v3624_v5 = vrot.slane %v3492_v41, %v7739_v13  ;;  %v3469_v58 = vrot.slane %v3455_v16, %v7738_v39 }
 0x30a   : > { %v3902_v7 = vmax.f32 %v3900_v46, %v3901_v4  ;;  %v3909_v45 = vmax.f32 %v3907_v34, %v3908_v54  ;;  %v3915_v38 = vrot.slane %v3914_v6, 4  ;;  %v3500_v46 = vcombine.high %v3478_v3, %v3478_v3  ;;  %v4859_v3 = vpop.permute.xlu1 %4858 }
 0x30b   : > { %v7493_v4 = vrot.slane %v7113_v8, %v7738_v39 }
 0x30c   : > { %v5739_v10 = vpop.f32.mrb[40].mxu0  ;;  %v4691_v35 = vsel %vm4681_vm9, %v3902_v7, %v4690_v1  ;;  %v3910_v31 = vrot.slane %v3909_v45, 1  ;;  %v3916_v18 = vmax.f32 %v3914_v6, %v3915_v38  ;;  %v3502_v7 = vcombine.high %v3492_v41, %v3492_v41 }
 0x30d   : > { %v3200_v37 = vadd.f32 %v5739_v10, %v7303_v55  ;;  %v3194_v50 = vpop.f32.mrb[41].mxu0 }
 0x30e   : > { %v3195_v59 = vadd.f32 %v3194_v50, %v7305_v32  ;;  %v3911_v51 = vmax.f32 %v3909_v45, %v3910_v31  ;;  %v3917_v55 = vrot.slane %v3916_v18, 2  ;;  %v3471_v31 = vcombine.high %v3469_v58, %v3469_v58 }
 0x30f   : > { %v3746_v57 = vadd.f32 %v3620_v62, %v3200_v37 }
 0x310   : > { %v3745_v63 = vadd.f32 %v3620_v62, %v3195_v59  ;;  %v5742_v12 = vpop.f32.mrb[42].mxu0  ;;  %v4692_v32 = vsel %vm4683_vm10, %v3911_v51, %v4691_v35  ;;  %v3918_v34 = vmax.f32 %v3916_v18, %v3917_v55  ;;  %v7499_v62 = vrot.slane %v3504_v47, %v7738_v39 }
 0x311   : > { %v3922_v60 = vsel %vm1311_vm4, %v3746_v57, -inf  ;;  %v3210_v48 = vadd.f32 %v5742_v12, %v7308_v25  ;;  %v3204_v24 = vpop.f32.mrb[43].mxu0  ;;  %v3485_v55 = vrot.slane %v3469_v58, %v7738_v39 }
 0x312   : > { %v3921_v52 = vsel %vm1311_vm4, %v3745_v63, -inf  ;;  %v3205_v9 = vadd.f32 %v3204_v24, %v7310_v0  ;;  %v3919_v25 = vrot.slane %v3918_v34, 1  ;;  %v3628_v0 = vrot.slane %v3500_v46, %v7739_v13  ;;  %v4775_v63 = vpop.permute.xlu0 %4774 }
 0x313   : > { %v3923_v20 = vmax.f32 %v3921_v52, %v3922_v60  ;;  %v3748_v1 = vadd.f32 %v3624_v5, %v3210_v48 }
 0x314   : > { %v3747_v54 = vadd.f32 %v3624_v5, %v3205_v9  ;;  %v5745_v6 = vpop.f32.mrb[44].mxu0  ;;  %v3920_v50 = vmax.f32 %v3918_v34, %v3919_v25  ;;  %v3519_v5 = vcombine.high %v7493_v4, %v7493_v4  ;;  %v4847_v34 = vpop.permute.xlu1 %4846 }
 0x315   : > { %v3924_v45 = vrot.slane %v3923_v20, 4  ;;  %v3931_v38 = vsel %vm1311_vm4, %v3748_v1, -inf  ;;  %v3220_v10 = vadd.f32 %v5745_v6, %v7313_v40  ;;  %v3214_v37 = vpop.f32.mrb[45].mxu0  ;;  %v3632_v40 = vrot.slane %v3502_v7, %v7739_v13 }
 0x316   : > { %v3930_v8 = vsel %vm1311_vm4, %v3747_v54, -inf  ;;  %v3215_v35 = vadd.f32 %v3214_v37, %v7315_v23  ;;  %v4693_v16 = vsel %vm4685_vm11, %v3920_v50, %v4692_v32  ;;  %v3636_v54 = vrot.slane %v3485_v55, %v7739_v13 }
 0x317   : > { %v3925_v18 = vmax.f32 %v3923_v20, %v3924_v45  ;;  %v3932_v41 = vmax.f32 %v3930_v8, %v3931_v38  ;;  %v3750_v59 = vadd.f32 %v3628_v0, %v3220_v10  ;;  %v4869_v32 = vsel %vm1311_vm4, %v4693_v16, %v4775_v63 }
 0x318   : > { %v3749_v57 = vadd.f32 %v3628_v0, %v3215_v35  ;;  %v5748_v51 = vpop.f32.mrb[46].mxu0  ;;  %v4873_v6 = vsel %vm533_vm0, %v4869_v32, %v4847_v34  ;;  %v7523_v35 = vrot.slane %v7493_v4, %v7738_v39 }
 0x319   : > { %v3926_v47 = vrot.slane %v3925_v18, 2  ;;  %v3933_v12 = vrot.slane %v3932_v41, 4  ;;  %v3940_v60 = vsel %vm1311_vm4, %v3750_v59, -inf  ;;  %v3230_v48 = vadd.f32 %v5748_v51, %v7318_v17  ;;  %v3224_v23 = vpop.f32.mrb[47].mxu0 }
 0x31a   : > { %v3939_v24 = vsel %vm1311_vm4, %v3749_v57, -inf  ;;  %v3225_v46 = vadd.f32 %v3224_v23, %v7320_v30  ;;  %v3499_v17 = vrot.slane %v3471_v31, %v7738_v39  ;;  %v4878_v8 = vsel %vm4876_vm12, %v4873_v6, %v4859_v3 }
 0x31b   : > { %v3927_v52 = vmax.f32 %v3925_v18, %v3926_v47  ;;  %v3934_v9 = vmax.f32 %v3932_v41, %v3933_v12  ;;  %v3941_v58 = vmax.f32 %v3939_v24, %v3940_v60  ;;  %v3752_v20 = vadd.f32 %v3632_v40, %v3230_v48  ;;  %4883 = vst.msk [vmem:[%s7451_s12 + $0x8] sm:$0xff] %vm4881_vm13, %v4878_v8 }
 0x31c   : > { %v3751_v1 = vadd.f32 %v3632_v40, %v3225_v46  ;;  %v5751_v25 = vpop.f32.mrb[48].mxu0  ;;  %v3640_v51 = vrot.slane %v3499_v17, %v7739_v13  ;;  %v3501_v40 = vcombine.high %v3485_v55, %v3485_v55 }
 0x31d   : > { %v3928_v7 = vrot.slane %v3927_v52, 1  ;;  %v3935_v45 = vrot.slane %v3934_v9, 2  ;;  %v3942_v38 = vrot.slane %v3941_v58, 4  ;;  %v3949_v30 = vsel %vm1311_vm4, %v3752_v20, -inf  ;;  %v3234_v10 = vpop.f32.mrb[49].mxu0 }
 0x31e   : > { %v3948_v0 = vsel %vm1311_vm4, %v3751_v1, -inf  ;;  %v3240_v37 = vadd.f32 %v5751_v25, %v7324_v33  ;;  %v3235_v50 = vadd.f32 %v3234_v10, %v7326_v29  ;;  %v3644_v20 = vrot.slane %v3501_v40, %v7739_v13 }
 0x31f   : > { %v3936_v31 = vmax.f32 %v3934_v9, %v3935_v45  ;;  %v3943_v18 = vmax.f32 %v3941_v58, %v3942_v38  ;;  %v3950_v41 = vmax.f32 %v3948_v0, %v3949_v30  ;;  %v3929_v12 = vmax.f32 %v3927_v52, %v3928_v7 }
 0x320   : > { %v3754_v59 = vadd.f32 %v3636_v54, %v3240_v37  ;;  %v3753_v16 = vadd.f32 %v3636_v54, %v3235_v50  ;;  %v5754_v57 = vpop.f32.mrb[50].mxu0  ;;  %v3503_v1 = vcombine.high %v3499_v17, %v3499_v17  ;;  %v3520_v17 = vcombine.high %v7499_v62, %v7499_v62 }
 0x321   : > { %v3937_v33 = vrot.slane %v3936_v31, 1  ;;  %v3944_v63 = vrot.slane %v3943_v18, 2  ;;  %v3951_v29 = vrot.slane %v3950_v41, 4  ;;  %v3250_v3 = vadd.f32 %v5754_v57, %v7330_v49  ;;  %v3244_v47 = vpop.f32.mrb[51].mxu0 }
 0x322   : > { %v3958_v60 = vsel %vm1311_vm4, %v3754_v59, -inf  ;;  %v3957_v48 = vsel %vm1311_vm4, %v3753_v16, -inf  ;;  %v3245_v23 = vadd.f32 %v3244_v47, %v7332_v22 }
 0x323   : > { %v3938_v24 = vmax.f32 %v3936_v31, %v3937_v33  ;;  %v3945_v46 = vmax.f32 %v3943_v18, %v3944_v63  ;;  %v3952_v32 = vmax.f32 %v3950_v41, %v3951_v29  ;;  %v3959_v34 = vmax.f32 %v3957_v48, %v3958_v60 }
 0x324   : > { %v3756_v9 = vadd.f32 %v3640_v51, %v3250_v3  ;;  %v3755_v58 = vadd.f32 %v3640_v51, %v3245_v23  ;;  %v5757_v55 = vpop.f32.mrb[52].mxu0  ;;  %v3648_v18 = vrot.slane %v3503_v1, %v7739_v13  ;;  %v3652_v23 = vrot.slane %v7523_v35, %v7739_v13 }
 0x325   : > { %v4694_v49 = vsel %vm4673_vm5, %v3938_v24, %v3929_v12  ;;  %v3946_v25 = vrot.slane %v3945_v46, 1  ;;  %v3953_v52 = vrot.slane %v3952_v32, 2  ;;  %v3960_v54 = vrot.slane %v3959_v34, 4  ;;  %v3254_v6 = vpop.f32.mrb[53].mxu0 }
 0x326   : > { %v3967_v7 = vsel %vm1311_vm4, %v3756_v9, -inf  ;;  %v3966_v22 = vsel %vm1311_vm4, %v3755_v58, -inf  ;;  %v3260_v45 = vadd.f32 %v5757_v55, %v7334_v27  ;;  %v3255_v38 = vadd.f32 %v3254_v6, %v7336_v15 }
 0x327   : > { %v3947_v30 = vmax.f32 %v3945_v46, %v3946_v25  ;;  %v3954_v10 = vmax.f32 %v3952_v32, %v3953_v52  ;;  %v3961_v0 = vmax.f32 %v3959_v34, %v3960_v54  ;;  %v3968_v37 = vmax.f32 %v3966_v22, %v3967_v7 }
 0x328   : > { %v3758_v50 = vadd.f32 %v3644_v20, %v3260_v45  ;;  %v3757_v8 = vadd.f32 %v3644_v20, %v3255_v38  ;;  %v5760_v31 = vpop.f32.mrb[54].mxu0  ;;  %v3541_v24 = vrot.slane %v3519_v5, %v7738_v39  ;;  %v3549_v7 = vcombine.high %v7523_v35, %v7523_v35 }
 0x329   : > { %v4695_v41 = vsel %vm4675_vm6, %v3947_v30, %v4694_v49  ;;  %v3955_v59 = vrot.slane %v3954_v10, 1  ;;  %v3962_v16 = vrot.slane %v3961_v0, 2  ;;  %v3969_v57 = vrot.slane %v3968_v37, 4  ;;  %v3264_v27 = vpop.f32.mrb[55].mxu0 }
 0x32a   : > { %v3976_v15 = vsel %vm1311_vm4, %v3758_v50, -inf  ;;  %v3975_v51 = vsel %vm1311_vm4, %v3757_v8, -inf  ;;  %v3270_v40 = vadd.f32 %v5760_v31, %v7338_v44  ;;  %v3265_v33 = vadd.f32 %v3264_v27, %v7340_v28 }
 0x32b   : > { %v3956_v63 = vmax.f32 %v3954_v10, %v3955_v59  ;;  %v3963_v29 = vmax.f32 %v3961_v0, %v3962_v16  ;;  %v3970_v3 = vmax.f32 %v3968_v37, %v3969_v57  ;;  %v3977_v47 = vmax.f32 %v3975_v51, %v3976_v15 }
 0x32c   : > { %v3760_v12 = vadd.f32 %v3648_v18, %v3270_v40  ;;  %v3759_v60 = vadd.f32 %v3648_v18, %v3265_v33  ;;  %v5763_v48 = vpop.f32.mrb[56].mxu0  ;;  %v3656_v6 = vrot.slane %v3541_v24, %v7739_v13  ;;  %v3660_v16 = vrot.slane %v3549_v7, %v7739_v13 }
 0x32d   : > { %v4696_v46 = vsel %vm4677_vm7, %v3956_v63, %v4695_v41  ;;  %v3964_v44 = vrot.slane %v3963_v29, 1  ;;  %v3971_v32 = vrot.slane %v3970_v3, 2  ;;  %v3978_v28 = vrot.slane %v3977_v47, 4  ;;  %v3274_v34 = vpop.f32.mrb[57].mxu0 }
 0x32e   : > { %v3985_v9 = vsel %vm1311_vm4, %v3760_v12, -inf  ;;  %v3984_v58 = vsel %vm1311_vm4, %v3759_v60, -inf  ;;  %v3280_v55 = vadd.f32 %v5763_v48, %v7342_v21  ;;  %v3275_v20 = vadd.f32 %v3274_v34, %v7344_v26 }
 0x32f   : > { %v3965_v1 = vmax.f32 %v3963_v29, %v3964_v44  ;;  %v3972_v49 = vmax.f32 %v3970_v3, %v3971_v32  ;;  %v3979_v25 = vmax.f32 %v3977_v47, %v3978_v28  ;;  %v3986_v52 = vmax.f32 %v3984_v58, %v3985_v9 }
 0x330   : > { %v3762_v4 = vadd.f32 %v3652_v23, %v3280_v55  ;;  %v3761_v5 = vadd.f32 %v3652_v23, %v3275_v20  ;;  %v5766_v54 = vpop.f32.mrb[58].mxu0  ;;  %v3551_v57 = vcombine.high %v3541_v24, %v3541_v24 }
 0x331   : > { %v3973_v22 = vrot.slane %v3972_v49, 1  ;;  %v3980_v45 = vrot.slane %v3979_v25, 2  ;;  %v3987_v38 = vrot.slane %v3986_v52, 4  ;;  %v3290_v30 = vadd.f32 %v5766_v54, %v7346_v19  ;;  %v3284_v21 = vpop.f32.mrb[59].mxu0 }
 0x332   : > { %v3994_v26 = vsel %vm1311_vm4, %v3762_v4, -inf  ;;  %v3993_v10 = vsel %vm1311_vm4, %v3761_v5, -inf  ;;  %v3285_v0 = vadd.f32 %v3284_v21, %v7348_v11  ;;  %v4697_v37 = vsel %vm4679_vm8, %v3965_v1, %v4696_v46  ;;  %v7576_v46 = vpop.permute.xlu1 %4850 }
 0x333   : > { %v3974_v50 = vmax.f32 %v3972_v49, %v3973_v22  ;;  %v3981_v8 = vmax.f32 %v3979_v25, %v3980_v45  ;;  %v3988_v31 = vmax.f32 %v3986_v52, %v3987_v38  ;;  %v3995_v18 = vmax.f32 %v3993_v10, %v3994_v26 }
 0x334   : > { %v3764_v41 = vadd.f32 %v3656_v6, %v3290_v30  ;;  %v3763_v35 = vadd.f32 %v3656_v6, %v3285_v0  ;;  %v5769_v59 = vpop.f32.mrb[60].mxu0  ;;  %v3664_v24 = vrot.slane %v3551_v57, %v7739_v13  ;;  %v7586_v1 = vrot.slane %v3520_v17, %v7738_v39 }
 0x335   : > { %v3982_v19 = vrot.slane %v3981_v8, 1  ;;  %v3989_v27 = vrot.slane %v3988_v31, 2  ;;  %v3996_v15 = vrot.slane %v3995_v18, 4  ;;  %v3300_v51 = vadd.f32 %v5769_v59, %v7350_v2  ;;  %v3294_v40 = vpop.f32.mrb[61].mxu0 }
 0x336   : > { %v4003_v11 = vsel %vm1311_vm4, %v3764_v41, -inf  ;;  %v4002_v33 = vsel %vm1311_vm4, %v3763_v35, -inf  ;;  %v3295_v63 = vadd.f32 %v3294_v40, %v7352_v42  ;;  %v4698_v29 = vsel %vm4681_vm9, %v3974_v50, %v4697_v37  ;;  %v4777_v7 = vpop.permute.xlu1 %4776  ;;  %v4861_v37 = vpop.permute.xlu0 %4860 }
 0x337   : > { %v3983_v3 = vmax.f32 %v3981_v8, %v3982_v19  ;;  %v3990_v47 = vmax.f32 %v3988_v31, %v3989_v27  ;;  %v3997_v12 = vmax.f32 %v3995_v18, %v3996_v15  ;;  %v4004_v60 = vmax.f32 %v4002_v33, %v4003_v11 }
 0x338   : > { %v3766_v48 = vadd.f32 %v3660_v16, %v3300_v51  ;;  %v3765_v23 = vadd.f32 %v3660_v16, %v3295_v63  ;;  %v7574_v2 = vrot.slane %v7499_v62, %v7738_v39  ;;  %v5772_v42 = vpop.f32.mrb[62].mxu0  ;;  %v3672_v50 = vrot.slane %v7586_v1, %v7739_v13 }
 0x339   : > { %v3991_v44 = vrot.slane %v3990_v47, 1  ;;  %v3998_v32 = vrot.slane %v3997_v12, 2  ;;  %v4005_v28 = vrot.slane %v4004_v60, 4  ;;  %v4699_v34 = vsel %vm4683_vm10, %v3983_v3, %v4698_v29  ;;  %v3304_v20 = vpop.f32.mrb[63].mxu0  ;;  %v7745_v3 = vld [vmem:[#allocation7_spill] sm:$0xff] }
 0x33a   : > { %v4012_v9 = vsel %vm1311_vm4, %v3766_v48, -inf  ;;  %v4011_v58 = vsel %vm1311_vm4, %v3765_v23, -inf  ;;  %v3310_v55 = vadd.f32 %v5772_v42, %v7354_v53  ;;  %v3305_v54 = vadd.f32 %v3304_v20, %v7356_v56 }
 0x33b   : > { %v3992_v49 = vmax.f32 %v3990_v47, %v3991_v44  ;;  %v3999_v25 = vmax.f32 %v3997_v12, %v3998_v32  ;;  %v4006_v52 = vmax.f32 %v4004_v60, %v4005_v28  ;;  %v4013_v4 = vmax.f32 %v4011_v58, %v4012_v9  ;;  %v7746_v28 = vld [vmem:[#allocation8_spill] sm:$0xff] }
 0x33c   : > { %v3768_v5 = vadd.f32 %v3664_v24, %v3310_v55  ;;  %v3668_v6 = vrot.slane %v7574_v2, %v7739_v13  ;;  %v5775_v38 = vpop.f32.mrb[64].mxu0  ;;  %v3767_v62 = vadd.f32 %v3664_v24, %v3305_v54  ;;  %v3552_v12 = vcombine.high %v7586_v1, %v7586_v1  ;;  %v7747_v55 = vld [vmem:[#allocation9_spill] sm:$0xff] }
 0x33d   : > { %v4000_v22 = vrot.slane %v3999_v25, 1  ;;  %v4007_v53 = vrot.slane %v4006_v52, 2  ;;  %v4014_v45 = vrot.slane %v4013_v4, 4  ;;  %v4700_v30 = vsel %vm4685_vm11, %v3992_v49, %v4699_v34  ;;  %v3314_v21 = vpop.f32.mrb[65].mxu0 }
 0x33e   : > { %v4021_v39 = vsel %vm1311_vm4, %v3768_v5, -inf  ;;  %v3320_v17 = vadd.f32 %v5775_v38, %v7358_v43  ;;  %v4870_v26 = vsel %vm1311_vm4, %v4700_v30, %v4777_v7  ;;  %v3315_v0 = vadd.f32 %v3314_v21, %v7360_v36  ;;  %v7749_v21 = vld [vmem:[#allocation11_spill] sm:$0xff] }
 0x33f   : > { %v4008_v10 = vmax.f32 %v4006_v52, %v4007_v53  ;;  %v4015_v56 = vmax.f32 %v4013_v4, %v4014_v45  ;;  %v4020_v8 = vsel %vm1311_vm4, %v3767_v62, -inf  ;;  %v4874_v18 = vsel %vm533_vm0, %v4870_v26, %v7433_v61  ;;  %v7748_v53 = vld [vmem:[#allocation10_spill] sm:$0xff] }
 0x340   : > { %v3770_v31 = vadd.f32 %v3668_v6, %v3320_v17  ;;  %v3550_v43 = vcombine.high %v7574_v2, %v7574_v2  ;;  %v4022_v59 = vmax.f32 %v4020_v8, %v4021_v39  ;;  %v3769_v16 = vadd.f32 %v3668_v6, %v3315_v0  ;;  %v5778_v57 = vpop.f32.mrb[66].mxu0 }
 0x341   : > { %v4009_v41 = vrot.slane %v4008_v10, 1  ;;  %v4016_v35 = vrot.slane %v4015_v56, 2  ;;  %v4001_v36 = vmax.f32 %v3999_v25, %v4000_v22  ;;  %v4879_v27 = vsel %vm4876_vm12, %v4874_v18, %v4861_v37  ;;  %v3324_v51 = vpop.f32.mrb[67].mxu0 }
 0x342   : > { %v4030_v19 = vsel %vm1311_vm4, %v3770_v31, -inf  ;;  %v3330_v15 = vadd.f32 %v5778_v57, %v7362_v14  ;;  %v4023_v61 = vrot.slane %v4022_v59, 4  ;;  %v4029_v33 = vsel %vm1311_vm4, %v3769_v16, -inf  ;;  %4884 = vst.msk [vmem:[%s7451_s12 + $0x10] sm:$0xff] %vm4881_vm13, %v4879_v27 }
 0x343   : > { %v4010_v40 = vmax.f32 %v4008_v10, %v4009_v41  ;;  %v4017_v11 = vmax.f32 %v4015_v56, %v4016_v35  ;;  %v4031_v63 = vmax.f32 %v4029_v33, %v4030_v19  ;;  %v3325_v47 = vadd.f32 %v3324_v51, %v7745_v3 }
 0x344   : > { %v3772_v29 = vadd.f32 %v3672_v50, %v3330_v15  ;;  %v4024_v23 = vmax.f32 %v4022_v59, %v4023_v61  ;;  %v5781_v14 = vpop.f32.mrb[68].mxu0  ;;  %v3676_v24 = vrot.slane %v3550_v43, %v7739_v13  ;;  %v3680_v38 = vrot.slane %v3552_v12, %v7739_v13  ;;  %v4779_v12 = vpop.permute.xlu1 %4778 }
 0x345   : > { %v4701_v60 = vsel %vm4673_vm5, %v4010_v40, %v4001_v36  ;;  %v4018_v48 = vrot.slane %v4017_v11, 1  ;;  %v4032_v2 = vrot.slane %v4031_v63, 4  ;;  %v3771_v32 = vadd.f32 %v3672_v50, %v3325_v47  ;;  %v3334_v34 = vpop.f32.mrb[69].mxu0 }
 0x346   : > { %v4039_v44 = vsel %vm1311_vm4, %v3772_v29, -inf  ;;  %v3340_v42 = vadd.f32 %v5781_v14, %v7746_v28  ;;  %v4025_v58 = vrot.slane %v4024_v23, 2  ;;  %v3335_v20 = vadd.f32 %v3334_v34, %v7747_v55 }
 0x347   : > { %v4019_v9 = vmax.f32 %v4017_v11, %v4018_v48  ;;  %v4033_v49 = vmax.f32 %v4031_v63, %v4032_v2  ;;  %v4038_v1 = vsel %vm1311_vm4, %v3771_v32, -inf }
 0x348   : > { %v3774_v25 = vadd.f32 %v3676_v24, %v3340_v42  ;;  %v4026_v4 = vmax.f32 %v4024_v23, %v4025_v58  ;;  %v4040_v5 = vmax.f32 %v4038_v1, %v4039_v44  ;;  %v3773_v54 = vadd.f32 %v3676_v24, %v3335_v20  ;;  %v5784_v6 = vpop.f32.mrb[70].mxu0  ;;  %v4863_v14 = vpop.permute.xlu1 %4862 }
 0x349   : > { %v4702_v52 = vsel %vm4675_vm6, %v4019_v9, %v4701_v60  ;;  %v4034_v7 = vrot.slane %v4033_v49, 2  ;;  %v3350_v45 = vadd.f32 %v5784_v6, %v7748_v53  ;;  %v3344_v30 = vpop.f32.mrb[71].mxu0 }
 0x34a   : > { %v4048_v22 = vsel %vm1311_vm4, %v3774_v25, -inf  ;;  %v4027_v39 = vrot.slane %v4026_v4, 1  ;;  %v4041_v62 = vrot.slane %v4040_v5, 4  ;;  %v4047_v17 = vsel %vm1311_vm4, %v3773_v54, -inf }
 0x34b   : > { %v3345_v26 = vadd.f32 %v3344_v30, %v7749_v21  ;;  %v4035_v10 = vmax.f32 %v4033_v49, %v4034_v7  ;;  %v4049_v56 = vmax.f32 %v4047_v17, %v4048_v22  ;;  %v3776_v0 = vadd.f32 %v3680_v38, %v3350_v45 }
 0x34c   : > { %v4028_v37 = vmax.f32 %v4026_v4, %v4027_v39  ;;  %v4042_v50 = vmax.f32 %v4040_v5, %v4041_v62 }
 0x34d   : > { %v3775_v8 = vadd.f32 %v3680_v38, %v3345_v26  ;;  %v4036_v31 = vrot.slane %v4035_v10, 1  ;;  %v4050_v18 = vrot.slane %v4049_v56, 4  ;;  %v4057_v43 = vsel %vm1311_vm4, %v3776_v0, -inf }
 0x34e   : > { %v4703_v41 = vsel %vm4677_vm7, %v4028_v37, %v4702_v52  ;;  %v4043_v13 = vrot.slane %v4042_v50, 2 }
 0x34f   : > { %v4056_v35 = vsel %vm1311_vm4, %v3775_v8, -inf  ;;  %v4037_v59 = vmax.f32 %v4035_v10, %v4036_v31  ;;  %v4051_v16 = vmax.f32 %v4049_v56, %v4050_v18 }
 0x350   : > { %v4058_v57 = vmax.f32 %v4056_v35, %v4057_v43  ;;  %v4044_v36 = vmax.f32 %v4042_v50, %v4043_v13 }
 0x351   : > { %v4052_v19 = vrot.slane %v4051_v16, 2  ;;  %v4704_v15 = vsel %vm4679_vm8, %v4037_v59, %v4703_v41 }
 0x352   : > { %v4059_v27 = vrot.slane %v4058_v57, 4  ;;  %v4045_v51 = vrot.slane %v4044_v36, 1 }
 0x353   : > { %v4053_v40 = vmax.f32 %v4051_v16, %v4052_v19 }
 0x354   : > { %v4060_v11 = vmax.f32 %v4058_v57, %v4059_v27  ;;  %v4046_v61 = vmax.f32 %v4044_v36, %v4045_v51 }
 0x355   : > { %v4054_v33 = vrot.slane %v4053_v40, 1 }
 0x356   : > { %v4061_v63 = vrot.slane %v4060_v11, 2  ;;  %v4705_v29 = vsel %vm4681_vm9, %v4046_v61, %v4704_v15 }
 0x357   : > { %v4055_v3 = vmax.f32 %v4053_v40, %v4054_v33 }
 0x358   : > { %v4062_v47 = vmax.f32 %v4060_v11, %v4061_v63 }
 0x359   : > { %v4706_v48 = vsel %vm4683_vm10, %v4055_v3, %v4705_v29 }
 0x35a   : > { %v4063_v60 = vrot.slane %v4062_v47, 1 }
 0x35c   : > { %v4064_v23 = vmax.f32 %v4062_v47, %v4063_v60 }
 0x35e   : > { %v4707_v24 = vsel %vm4685_vm11, %v4064_v23, %v4706_v48 }
 0x35f   : > { %v4871_v2 = vsel %vm1311_vm4, %v4707_v24, %v4779_v12 }
 0x360   : > { %v4875_v44 = vsel %vm533_vm0, %v4871_v2, %v7576_v46 }
 0x361   : > { %v4880_v32 = vsel %vm4876_vm12, %v4875_v44, %v4863_v14 }
 0x362   : > { %4885 = vst.msk [vmem:[%s7451_s12 + $0x18] sm:$0xff] %vm4881_vm13, %v4880_v32 }
 0x363   : > { %5959 = shalt.err (!%p5956_p5)
}
 0x364   : > { %s5960_s26 = scalar_lea.hbm %s7641_s23, 512  ;;  %s5964_s16 = scalar_lea.hbm %s7705_s11, 1024 }
 0x365   : > { %p5961_p6 = scmp.ne.s32.totalorder %s7641_s23, %s5960_s26  ;;  %p5965_p10 = scmp.lt.u32.totalorder %s7641_s23, %s7705_s11 }
 0x366   : > { %p5966_p11 = scmp.lt.u32.totalorder %s5964_s16, %s5960_s26  ;;  %p5968_p13 = scmp.lt.u32.totalorder %s5960_s26, %s7641_s23 }
 0x367   : > { %p5962_p7 = pnand %p5961_p6, %p6134_p4 }
 0x368   : > { %p5967_p12 = por %p5966_p11, %p5965_p10 }
 0x369   : > { %p5963_p9 = pneg %p5962_p7 }
 0x36a   : > { %p5969_p0 = por %p5968_p13, %p5967_p12 }
 0x36c   : > { %p5970_p1 = pnand %p5969_p0, %p5963_p9 }
 0x36e   : > { %5973 = shalt.err (!%p5970_p1)
}
 0x36f   : > { %s6032_s1 = smov 128   ;;  %s6033_s13 = smov 8  }
 0x370   : > { %5881 = dma.vmem_to_hbm [thread:$0]  (%p6134_p4), %s7633_s14, 512, %s7641_s23, %s7648_s20, %s6032_s1, %s6032_s1, %s6033_s13  }
 0x371 PF: > { %p5887_p2 = scmp.ge.s32.totalorder %s6024_s22, 2  ;;  %s4917_s28 = sand.u32 1, %s6004_s17  }
 0x372   : > { %s4918_s26 = scalar_lea.sflag [#allocation3], %s4917_s28 }
 0x373   : > { %p5884_p3 = pnand %p5887_p2, %p6141_p8 }
 0x375   : > { %5999 = dma.done.wait (!%p5884_p3), %s4918_s26, 512  }
 0x376   : > { %6001 = vsyncadd (!%p5884_p3), %s4918_s26, 4294966784  ;;  %s24_s22 = sadd.s32 1, %s6024_s22   ;;  %s7750_s17 = smov %s6008_s18 }
 0x377   : > { %p21_p5 = scmp.ge.s32.totalorder %s24_s22, 4   ;;  %s7751_s18 = smov %s6012_s19 }
 0x378   : > { %s7752_s19 = smov %s6147_s30  ;;  %s7753_s20 = smov %s6020_s21 }
 0x379   : > { %s7754_s21 = smov %s7756_s25  ;;  %23 = sbr.rel (!%p21_p5) target bundleno = 7 (0x7), region = 102 }
 0x380   :  { %4923 = vsyncpa [#allocation3], 1 }
 0x381   :  { %4925 = vsyncpa [#allocation3 + $0x1], 1 }

</bundles_post_ra>
